<compile_context>
chip_gen: v5e
topology: v5e:2x2
jax: 0.10.0
libtpu: 0.0.40
codegen_flags: <defaults>
</compile_context>

<pallas_src>
import functools

import numpy as np

import jax
import jax.numpy as jnp
from jax.experimental import pallas as pl
from jax.experimental.pallas import tpu as pltpu


def _round_up(x, m):
    return (x + m - 1) // m * m


# ------------------------------ fused kernel --------------------------------

def _resnet_fused_kernel(
    x_ref, sel_ref, m_full_ref, m_half_ref,
    w_stem_ref, s_stem_ref,
    w11_ref, s11_ref, w12_ref, s12_ref,
    w2c_ref, s2c_ref, w22_ref, s22_ref,
    wfc_ref, bfc_ref,
    logit_ref, feat_ref,
    can_a, can_b, can_2,
    *, wp, wp2, l_full, l_half, inv_pool,
):
    """Whole backbone + head for one image of the batch grid.

    x_ref:   (can_full, cin_pad) bf16  flattened zero-padded input canvas
    sel_ref: (l_half, l_full)    bf16  one-hot stride-2 subsample matrix
    m_*_ref: (l_*, 1)            f32   1.0 where a dense row is a real pixel
    w_*:     im2col weight matrices (bf16, BN scale folded in)
    s_*:     (1, Cout) f32 BN shift vectors
    can_*:   VMEM scratch padded canvases (f32) for inter-layer activations
    """
    off_full = wp + 1
    off_half = wp2 + 1
    c2 = w22_ref.shape[1]

    # Borders / unwritten tail rows of every canvas must be zero each step.
    can_a[...] = jnp.zeros_like(can_a)
    can_b[...] = jnp.zeros_like(can_b)
    can_2[...] = jnp.zeros_like(can_2)

    m_full = m_full_ref[...]
    m_half = m_half_ref[...]

    def conv3x3(src_ref, w_ref, row_stride, out_rows):
        """3x3 conv over a flattened padded canvas: 9 shifted-slice matmuls."""
        cin = w_ref.shape[0] // 9
        cout = w_ref.shape[1]
        acc = jnp.zeros((out_rows, cout), jnp.float32)
        for t in range(9):
            off = (t // 3) * row_stride + (t % 3)          # static tap offset
            a = src_ref[pl.ds(off, out_rows), :].astype(jnp.bfloat16)
            wt = w_ref[pl.ds(t * cin, cin), :]
            acc = acc + jnp.dot(a, wt, preferred_element_type=jnp.float32)
        return acc

    # ---- stem: conv3x3 + BN + ReLU -> padded canvas A -----------------------
    h = jnp.maximum(conv3x3(x_ref, w_stem_ref, wp, l_full) + s_stem_ref[...], 0.0)
    can_a[pl.ds(off_full, l_full), :] = h * m_full

    # ---- block1 conv1 + BN + ReLU -> canvas B --------------------------------
    h = jnp.maximum(conv3x3(can_a, w11_ref, wp, l_full) + s11_ref[...], 0.0)
    can_b[pl.ds(off_full, l_full), :] = h * m_full

    # ---- block1 conv2 + BN + identity residual + ReLU -> canvas A ------------
    res = can_a[pl.ds(off_full, l_full), :]
    h = jnp.maximum(conv3x3(can_b, w12_ref, wp, l_full) + s12_ref[...] + res, 0.0)
    can_a[pl.ds(off_full, l_full), :] = h * m_full      # canA = block1 output

    # ---- block2 conv1 (stride 2) + fused 1x1 downsample ----------------------
    # Dense stride-1 conv (Cout = 2*c2: main | downsample), then the stride-2
    # subsample is a one-hot selection matmul.  Rows of `sel` for border
    # positions are all-zero, so the slab store below also zeroes the new
    # canvas' left/right border columns.
    d = conv3x3(can_a, w2c_ref, wp, l_full) + s2c_ref[...]        # (l_full, 2*c2)
    sub = jnp.dot(sel_ref[...], d.astype(jnp.bfloat16),
                  preferred_element_type=jnp.float32)             # (l_half, 2*c2)
    can_2[pl.ds(off_half, l_half), :] = jnp.maximum(sub[:, :c2], 0.0)  # main+ReLU
    res2 = sub[:, c2:]                                            # downsample path

    # ---- block2 conv2 + BN + downsample residual + ReLU ----------------------
    h = jnp.maximum(conv3x3(can_2, w22_ref, wp2, l_half) + s22_ref[...] + res2, 0.0)
    h = h * m_half                                                # kill wrap rows

    # ---- head: global average pool (AdaptiveAvgPool2d((1,1)) + flatten) + fc -
    feats = jnp.sum(h, axis=0, keepdims=True) * inv_pool          # (1, c2)
    feat_ref[...] = feats.astype(feat_ref.dtype)
    logits = jnp.dot(feats, wfc_ref[...], preferred_element_type=jnp.float32)
    logit_ref[...] = (logits + bfc_ref[...]).astype(logit_ref.dtype)


# ----------------------- parameter prep (plain JAX) -------------------------

def fold_bn(w, bn, eps=1e-5, cin_pad=None):
    """Fold eval-mode BN into the conv weight (scale) and a shift vector."""
    gamma, beta, mean, var = bn
    scale = gamma * jax.lax.rsqrt(var + eps)     # (Cout,)
    shift = beta - mean * scale
    kh, kw, cin, cout = w.shape
    wscaled = w * scale
    if cin_pad is not None and cin_pad > cin:
        wscaled = jnp.pad(wscaled, ((0, 0), (0, 0), (0, cin_pad - cin), (0, 0)))
        cin = cin_pad
    return wscaled.reshape(kh * kw * cin, cout), shift


def fuse_conv1_downsample(p, eps=1e-5):
    """Fuse block2 conv1 (3x3, stride 2) and its 1x1 downsample into one matmul.

    The 1x1 stride-2 pad-0 conv reads exactly the centre tap of the 3x3
    stride-2 pad-1 conv, so its weight is embedded at centre-tap rows and the
    output channels are concatenated: columns [:c2] = conv1, [c2:] = downsample.
    """
    w1, s1 = fold_bn(p["conv1_w"], p["bn1"], eps)        # (9*c1, c2)
    wd, sd = fold_bn(p["down_w"], p["bn_down"], eps)     # (c1, c2)
    c1 = p["conv1_w"].shape[2]
    wd_emb = jnp.zeros_like(w1).at[4 * c1:5 * c1, :].set(wd)
    return jnp.concatenate([w1, wd_emb], axis=1), jnp.concatenate([s1, sd])


# ------------------------------ forward pass --------------------------------

def resnet_with_features_forward(params, x_nchw):
    n, cin, hh, ww = x_nchw.shape
    c1 = params["stem"]["conv_w"].shape[-1]
    c2 = params["block2"]["conv2_w"].shape[-1]
    nc = params["fc"]["w"].shape[-1]
    h2, w2 = hh // 2, ww // 2

    # canvas / dense-row geometry (all row counts rounded to multiples of 8)
    hp, wp = hh + 2, ww + 2
    l_full = _round_up((hh - 1) * wp + ww, 8)
    can_full = _round_up(max(hp * wp, 2 * wp + 2 + l_full), 8)
    hp2, wp2 = h2 + 2, w2 + 2
    l_half = _round_up((h2 - 1) * wp2 + w2, 8)
    can_half = _round_up(max(hp2 * wp2, 2 * wp2 + 2 + l_half), 8)
    cin_p = _round_up(max(cin, 8), 8)        # pad stem Cin for sublane alignment

    # ---- input: NCHW -> NHWC, zero-pad spatial border + channels, flatten ----
    x = jnp.transpose(x_nchw, (0, 2, 3, 1)).astype(jnp.float32)
    xp = jnp.pad(x, ((0, 0), (1, 1), (1, 1), (0, cin_p - cin)))
    xflat = xp.reshape(n, hp * wp, cin_p)
    xflat = jnp.pad(xflat, ((0, 0), (0, can_full - hp * wp), (0, 0)))
    xflat = xflat.astype(jnp.bfloat16)

    # ---- fold eval-mode BN into weights, build fused block2 conv1 matrix -----
    w_s, s_s = fold_bn(params["stem"]["conv_w"], params["stem"]["bn"],
                       cin_pad=cin_p)
    p1 = params["block1"]
    w11, s11 = fold_bn(p1["conv1_w"], p1["bn1"])
    w12, s12 = fold_bn(p1["conv2_w"], p1["bn2"])
    p2 = params["block2"]
    w2c, s2c = fuse_conv1_downsample(p2)                 # (9*c1, 2*c2)
    w22, s22 = fold_bn(p2["conv2_w"], p2["bn2"])

    # ---- constant helpers (numpy, baked in at trace time) --------------------
    m_full = jnp.asarray((np.arange(l_full) % wp < ww)
                         .astype(np.float32).reshape(l_full, 1))
    m_half = jnp.asarray((np.arange(l_half) % wp2 < w2)
                         .astype(np.float32).reshape(l_half, 1))
    sel_np = np.zeros((l_half, l_full), np.float32)
    for r in range(h2):
        for c in range(w2):
            sel_np[r * wp2 + c, (2 * r) * wp + 2 * c] = 1.0
    sel = jnp.asarray(sel_np, jnp.bfloat16)

    bf = jnp.bfloat16
    f32 = jnp.float32
    args = (
        xflat, sel, m_full, m_half,
        w_s.astype(bf), s_s.reshape(1, c1).astype(f32),
        w11.astype(bf), s11.reshape(1, c1).astype(f32),
        w12.astype(bf), s12.reshape(1, c1).astype(f32),
        w2c.astype(bf), s2c.reshape(1, 2 * c2).astype(f32),
        w22.astype(bf), s22.reshape(1, c2).astype(f32),
        params["fc"]["w"].astype(f32),
        params["fc"]["b"].reshape(1, nc).astype(f32),
    )

    def full2d(shape):
        return pl.BlockSpec(shape, lambda b: (0, 0))     # resident across grid

    in_specs = [
        pl.BlockSpec((None, can_full, cin_p), lambda b: (b, 0, 0)),  # x (per image)
        full2d((l_half, l_full)),                                    # sel
        full2d((l_full, 1)), full2d((l_half, 1)),                    # masks
        full2d((9 * cin_p, c1)), full2d((1, c1)),                    # stem
        full2d((9 * c1, c1)), full2d((1, c1)),                       # b1 conv1
        full2d((9 * c1, c1)), full2d((1, c1)),                       # b1 conv2
        full2d((9 * c1, 2 * c2)), full2d((1, 2 * c2)),               # b2 conv1+down
        full2d((9 * c2, c2)), full2d((1, c2)),                       # b2 conv2
        full2d((c2, nc)), full2d((1, nc)),                           # fc
    ]
    out_specs = (pl.BlockSpec((None, 1, nc), lambda b: (b, 0, 0)),
                 pl.BlockSpec((None, 1, c2), lambda b: (b, 0, 0)))
    out_shape = (jax.ShapeDtypeStruct((n, 1, nc), jnp.float32),
                 jax.ShapeDtypeStruct((n, 1, c2), jnp.float32))
    scratch_shapes = [
        pltpu.VMEM((can_full, c1), jnp.float32),   # canvas A (stem / block1 out)
        pltpu.VMEM((can_full, c1), jnp.float32),   # canvas B
        pltpu.VMEM((can_half, c2), jnp.float32),   # canvas for 8x8 stage
    ]

    kernel = functools.partial(
        _resnet_fused_kernel, wp=wp, wp2=wp2, l_full=l_full, l_half=l_half,
        inv_pool=1.0 / float(h2 * w2))

    logits3, feats3 = pl.pallas_call(
        kernel,
        out_shape=out_shape,
        grid=(n,),
        in_specs=in_specs,
        out_specs=out_specs,
        scratch_shapes=scratch_shapes,
        compiler_params=pltpu.CompilerParams(
            dimension_semantics=("parallel",)),
    )(*args)
    return logits3.reshape(n, nc), feats3.reshape(n, c2)


# ------------------------------ parameter init ------------------------------

def init_conv(key, kh, kw, cin, cout):
    return 0.1 * jax.random.normal(key, (kh, kw, cin, cout), jnp.float32)


def init_bn(key, c):
    k1, k2, k3, k4 = jax.random.split(key, 4)
    gamma = 1.0 + 0.1 * jax.random.normal(k1, (c,), jnp.float32)
    beta = 0.1 * jax.random.normal(k2, (c,), jnp.float32)
    mean = 0.1 * jax.random.normal(k3, (c,), jnp.float32)
    var = 1.0 + 0.1 * jax.random.uniform(k4, (c,), jnp.float32)
    return (gamma, beta, mean, var)


def init_params(key, cin=3, c1=16, c2=32, num_classes=10):
    ks = jax.random.split(key, 16)
    return {
        "stem": {"conv_w": init_conv(ks[0], 3, 3, cin, c1), "bn": init_bn(ks[1], c1)},
        "block1": {
            "conv1_w": init_conv(ks[2], 3, 3, c1, c1), "bn1": init_bn(ks[3], c1),
            "conv2_w": init_conv(ks[4], 3, 3, c1, c1), "bn2": init_bn(ks[5], c1),
        },
        "block2": {
            "conv1_w": init_conv(ks[6], 3, 3, c1, c2), "bn1": init_bn(ks[7], c2),
            "conv2_w": init_conv(ks[8], 3, 3, c2, c2), "bn2": init_bn(ks[9], c2),
            "down_w": init_conv(ks[10], 1, 1, c1, c2), "bn_down": init_bn(ks[11], c2),
        },
        "fc": {
            "w": 0.1 * jax.random.normal(ks[12], (c2, num_classes), jnp.float32),
            "b": 0.1 * jax.random.normal(ks[13], (num_classes,), jnp.float32),
        },
    }


# ----------------------------------- main -----------------------------------

if __name__ == "__main__":
    key = jax.random.PRNGKey(0)
    k_x, k_p = jax.random.split(key)
    # PyTorch-convention NCHW input (small CIFAR-like shape): [2, 3, 16, 16]
    x = jax.random.normal(k_x, (2, 3, 16, 16), jnp.float32)
    params = init_params(k_p)

    fwd = jax.jit(resnet_with_features_forward)
    logits, feats = fwd(params, x)
    jax.block_until_ready(logits)
    jax.block_until_ready(feats)
    assert logits.shape == (2, 10) and feats.shape == (2, 32)
    assert bool(jnp.isfinite(logits).all()) and bool(jnp.isfinite(feats).all())
    print("KERNEL_OK")
</pallas_src>

<mosaic_0001>
module attributes {stable_mosaic.version = 11 : i64} {
  func.func @_resnet_fused_kernel(%arg0: i32, %arg1: memref<1x328x8xbf16, #tpu.memory_space<vmem>>, %arg2: memref<80x288xbf16, #tpu.memory_space<vmem>>, %arg3: memref<288x1xf32, #tpu.memory_space<vmem>>, %arg4: memref<80x1xf32, #tpu.memory_space<vmem>>, %arg5: memref<72x16xbf16, #tpu.memory_space<vmem>>, %arg6: memref<1x16xf32, #tpu.memory_space<vmem>>, %arg7: memref<144x16xbf16, #tpu.memory_space<vmem>>, %arg8: memref<1x16xf32, #tpu.memory_space<vmem>>, %arg9: memref<144x16xbf16, #tpu.memory_space<vmem>>, %arg10: memref<1x16xf32, #tpu.memory_space<vmem>>, %arg11: memref<144x64xbf16, #tpu.memory_space<vmem>>, %arg12: memref<1x64xf32, #tpu.memory_space<vmem>>, %arg13: memref<288x32xbf16, #tpu.memory_space<vmem>>, %arg14: memref<1x32xf32, #tpu.memory_space<vmem>>, %arg15: memref<32x10xf32, #tpu.memory_space<vmem>>, %arg16: memref<1x10xf32, #tpu.memory_space<vmem>>, %arg17: memref<1x1x10xf32, #tpu.memory_space<vmem>>, %arg18: memref<1x1x32xf32, #tpu.memory_space<vmem>>, %arg19: memref<328x16xf32, #tpu.memory_space<vmem>>, %arg20: memref<328x16xf32, #tpu.memory_space<vmem>>, %arg21: memref<104x32xf32, #tpu.memory_space<vmem>>) attributes {dimension_semantics = [#tpu.dimension_semantics<parallel>], iteration_bounds = array<i64: 2>, scalar_prefetch = 0 : i64, scratch_operands = 3 : i64, tpu.core_type = #tpu.core_type<tc>, window_params = [{transform_indices = @transform_0, window_bounds = array<i64: 1, 328, 8>}, {pipeline_mode = #tpu.pipeline_mode<synchronous>, transform_indices = @transform_1, window_bounds = array<i64: 80, 288>}, {pipeline_mode = #tpu.pipeline_mode<synchronous>, transform_indices = @transform_2, window_bounds = array<i64: 288, 1>}, {pipeline_mode = #tpu.pipeline_mode<synchronous>, transform_indices = @transform_3, window_bounds = array<i64: 80, 1>}, {pipeline_mode = #tpu.pipeline_mode<synchronous>, transform_indices = @transform_4, window_bounds = array<i64: 72, 16>}, {pipeline_mode = #tpu.pipeline_mode<synchronous>, transform_indices = @transform_5, window_bounds = array<i64: 1, 16>}, {pipeline_mode = #tpu.pipeline_mode<synchronous>, transform_indices = @transform_6, window_bounds = array<i64: 144, 16>}, {pipeline_mode = #tpu.pipeline_mode<synchronous>, transform_indices = @transform_7, window_bounds = array<i64: 1, 16>}, {pipeline_mode = #tpu.pipeline_mode<synchronous>, transform_indices = @transform_8, window_bounds = array<i64: 144, 16>}, {pipeline_mode = #tpu.pipeline_mode<synchronous>, transform_indices = @transform_9, window_bounds = array<i64: 1, 16>}, {pipeline_mode = #tpu.pipeline_mode<synchronous>, transform_indices = @transform_10, window_bounds = array<i64: 144, 64>}, {pipeline_mode = #tpu.pipeline_mode<synchronous>, transform_indices = @transform_11, window_bounds = array<i64: 1, 64>}, {pipeline_mode = #tpu.pipeline_mode<synchronous>, transform_indices = @transform_12, window_bounds = array<i64: 288, 32>}, {pipeline_mode = #tpu.pipeline_mode<synchronous>, transform_indices = @transform_13, window_bounds = array<i64: 1, 32>}, {pipeline_mode = #tpu.pipeline_mode<synchronous>, transform_indices = @transform_14, window_bounds = array<i64: 32, 10>}, {pipeline_mode = #tpu.pipeline_mode<synchronous>, transform_indices = @transform_15, window_bounds = array<i64: 1, 10>}, {transform_indices = @transform_16, window_bounds = array<i64: 1, 1, 10>}, {transform_indices = @transform_17, window_bounds = array<i64: 1, 1, 32>}]} {
    %cst = arith.constant 0.000000e+00 : f32
    %0 = vector.broadcast %cst : f32 to vector<328x16xf32>
    %c0 = arith.constant 0 : index
    %c0_0 = arith.constant 0 : index
    %1 = vector.load %arg19[%c0, %c0_0] : memref<328x16xf32, #tpu.memory_space<vmem>>, vector<328x16xf32>
    tpu.vector_store %arg19[%c0, %c0_0], %0 {strides = array<i32>} : memref<328x16xf32, #tpu.memory_space<vmem>>, vector<328x16xf32>,
    %cst_1 = arith.constant 0.000000e+00 : f32
    %2 = vector.broadcast %cst_1 : f32 to vector<328x16xf32>
    %c0_2 = arith.constant 0 : index
    %c0_3 = arith.constant 0 : index
    %3 = vector.load %arg20[%c0_2, %c0_3] : memref<328x16xf32, #tpu.memory_space<vmem>>, vector<328x16xf32>
    tpu.vector_store %arg20[%c0_2, %c0_3], %2 {strides = array<i32>} : memref<328x16xf32, #tpu.memory_space<vmem>>, vector<328x16xf32>,
    %cst_4 = arith.constant 0.000000e+00 : f32
    %4 = vector.broadcast %cst_4 : f32 to vector<104x32xf32>
    %c0_5 = arith.constant 0 : index
    %c0_6 = arith.constant 0 : index
    %5 = vector.load %arg21[%c0_5, %c0_6] : memref<104x32xf32, #tpu.memory_space<vmem>>, vector<104x32xf32>
    tpu.vector_store %arg21[%c0_5, %c0_6], %4 {strides = array<i32>} : memref<104x32xf32, #tpu.memory_space<vmem>>, vector<104x32xf32>,
    %c0_7 = arith.constant 0 : index
    %c0_8 = arith.constant 0 : index
    %6 = vector.load %arg3[%c0_7, %c0_8] : memref<288x1xf32, #tpu.memory_space<vmem>>, vector<288x1xf32>
    %c0_9 = arith.constant 0 : index
    %c0_10 = arith.constant 0 : index
    %7 = vector.load %arg4[%c0_9, %c0_10] : memref<80x1xf32, #tpu.memory_space<vmem>>, vector<80x1xf32>
    %cst_11 = arith.constant 0.000000e+00 : f32
    %8 = vector.broadcast %cst_11 : f32 to vector<288x16xf32>
    %c0_12 = arith.constant 0 : index
    %c0_13 = arith.constant 0 : index
    %c0_14 = arith.constant 0 : index
    %9 = vector.load %arg1[%c0_12, %c0_13, %c0_14] : memref<1x328x8xbf16, #tpu.memory_space<vmem>>, vector<1x288x8xbf16>
    %10 = vector.shape_cast %9 : vector<1x288x8xbf16> to vector<288x8xbf16>
    %c0_15 = arith.constant 0 : index
    %c0_16 = arith.constant 0 : index
    %11 = vector.load %arg5[%c0_15, %c0_16] : memref<72x16xbf16, #tpu.memory_space<vmem>>, vector<8x16xbf16>
    %cst_17 = arith.constant dense<0.000000e+00> : vector<288x16xf32>
    %12 = tpu.matmul %10, %11, %cst_17 {dimension_numbers = #tpu.dot_dimension_numbers<[1], [0], [0], [1], [0, 0, 1, 1], [], []>} : vector<288x8xbf16>, vector<8x16xbf16>, vector<288x16xf32> -> vector<288x16xf32>
    %13 = arith.addf %8, %12 : vector<288x16xf32>
    %c0_18 = arith.constant 0 : index
    %c1 = arith.constant 1 : index
    %c0_19 = arith.constant 0 : index
    %14 = vector.load %arg1[%c0_18, %c1, %c0_19] : memref<1x328x8xbf16, #tpu.memory_space<vmem>>, vector<1x288x8xbf16>
    %15 = vector.shape_cast %14 : vector<1x288x8xbf16> to vector<288x8xbf16>
    %c8 = arith.constant 8 : index
    %c0_20 = arith.constant 0 : index
    %16 = vector.load %arg5[%c8, %c0_20] : memref<72x16xbf16, #tpu.memory_space<vmem>>, vector<8x16xbf16>
    %cst_21 = arith.constant dense<0.000000e+00> : vector<288x16xf32>
    %17 = tpu.matmul %15, %16, %cst_21 {dimension_numbers = #tpu.dot_dimension_numbers<[1], [0], [0], [1], [0, 0, 1, 1], [], []>} : vector<288x8xbf16>, vector<8x16xbf16>, vector<288x16xf32> -> vector<288x16xf32>
    %18 = arith.addf %13, %17 : vector<288x16xf32>
    %c0_22 = arith.constant 0 : index
    %c2 = arith.constant 2 : index
    %c0_23 = arith.constant 0 : index
    %19 = vector.load %arg1[%c0_22, %c2, %c0_23] : memref<1x328x8xbf16, #tpu.memory_space<vmem>>, vector<1x288x8xbf16>
    %20 = vector.shape_cast %19 : vector<1x288x8xbf16> to vector<288x8xbf16>
    %c16 = arith.constant 16 : index
    %c0_24 = arith.constant 0 : index
    %21 = vector.load %arg5[%c16, %c0_24] : memref<72x16xbf16, #tpu.memory_space<vmem>>, vector<8x16xbf16>
    %cst_25 = arith.constant dense<0.000000e+00> : vector<288x16xf32>
    %22 = tpu.matmul %20, %21, %cst_25 {dimension_numbers = #tpu.dot_dimension_numbers<[1], [0], [0], [1], [0, 0, 1, 1], [], []>} : vector<288x8xbf16>, vector<8x16xbf16>, vector<288x16xf32> -> vector<288x16xf32>
    %23 = arith.addf %18, %22 : vector<288x16xf32>
    %c0_26 = arith.constant 0 : index
    %c18 = arith.constant 18 : index
    %c0_27 = arith.constant 0 : index
    %24 = vector.load %arg1[%c0_26, %c18, %c0_27] : memref<1x328x8xbf16, #tpu.memory_space<vmem>>, vector<1x288x8xbf16>
    %25 = vector.shape_cast %24 : vector<1x288x8xbf16> to vector<288x8xbf16>
    %c24 = arith.constant 24 : index
    %c0_28 = arith.constant 0 : index
    %26 = vector.load %arg5[%c24, %c0_28] : memref<72x16xbf16, #tpu.memory_space<vmem>>, vector<8x16xbf16>
    %cst_29 = arith.constant dense<0.000000e+00> : vector<288x16xf32>
    %27 = tpu.matmul %25, %26, %cst_29 {dimension_numbers = #tpu.dot_dimension_numbers<[1], [0], [0], [1], [0, 0, 1, 1], [], []>} : vector<288x8xbf16>, vector<8x16xbf16>, vector<288x16xf32> -> vector<288x16xf32>
    %28 = arith.addf %23, %27 : vector<288x16xf32>
    %c0_30 = arith.constant 0 : index
    %c19 = arith.constant 19 : index
    %c0_31 = arith.constant 0 : index
    %29 = vector.load %arg1[%c0_30, %c19, %c0_31] : memref<1x328x8xbf16, #tpu.memory_space<vmem>>, vector<1x288x8xbf16>
    %30 = vector.shape_cast %29 : vector<1x288x8xbf16> to vector<288x8xbf16>
    %c32 = arith.constant 32 : index
    %c0_32 = arith.constant 0 : index
    %31 = vector.load %arg5[%c32, %c0_32] : memref<72x16xbf16, #tpu.memory_space<vmem>>, vector<8x16xbf16>
    %cst_33 = arith.constant dense<0.000000e+00> : vector<288x16xf32>
    %32 = tpu.matmul %30, %31, %cst_33 {dimension_numbers = #tpu.dot_dimension_numbers<[1], [0], [0], [1], [0, 0, 1, 1], [], []>} : vector<288x8xbf16>, vector<8x16xbf16>, vector<288x16xf32> -> vector<288x16xf32>
    %33 = arith.addf %28, %32 : vector<288x16xf32>
    %c0_34 = arith.constant 0 : index
    %c20 = arith.constant 20 : index
    %c0_35 = arith.constant 0 : index
    %34 = vector.load %arg1[%c0_34, %c20, %c0_35] : memref<1x328x8xbf16, #tpu.memory_space<vmem>>, vector<1x288x8xbf16>
    %35 = vector.shape_cast %34 : vector<1x288x8xbf16> to vector<288x8xbf16>
    %c40 = arith.constant 40 : index
    %c0_36 = arith.constant 0 : index
    %36 = vector.load %arg5[%c40, %c0_36] : memref<72x16xbf16, #tpu.memory_space<vmem>>, vector<8x16xbf16>
    %cst_37 = arith.constant dense<0.000000e+00> : vector<288x16xf32>
    %37 = tpu.matmul %35, %36, %cst_37 {dimension_numbers = #tpu.dot_dimension_numbers<[1], [0], [0], [1], [0, 0, 1, 1], [], []>} : vector<288x8xbf16>, vector<8x16xbf16>, vector<288x16xf32> -> vector<288x16xf32>
    %38 = arith.addf %33, %37 : vector<288x16xf32>
    %c0_38 = arith.constant 0 : index
    %c36 = arith.constant 36 : index
    %c0_39 = arith.constant 0 : index
    %39 = vector.load %arg1[%c0_38, %c36, %c0_39] : memref<1x328x8xbf16, #tpu.memory_space<vmem>>, vector<1x288x8xbf16>
    %40 = vector.shape_cast %39 : vector<1x288x8xbf16> to vector<288x8xbf16>
    %c48 = arith.constant 48 : index
    %c0_40 = arith.constant 0 : index
    %41 = vector.load %arg5[%c48, %c0_40] : memref<72x16xbf16, #tpu.memory_space<vmem>>, vector<8x16xbf16>
    %cst_41 = arith.constant dense<0.000000e+00> : vector<288x16xf32>
    %42 = tpu.matmul %40, %41, %cst_41 {dimension_numbers = #tpu.dot_dimension_numbers<[1], [0], [0], [1], [0, 0, 1, 1], [], []>} : vector<288x8xbf16>, vector<8x16xbf16>, vector<288x16xf32> -> vector<288x16xf32>
    %43 = arith.addf %38, %42 : vector<288x16xf32>
    %c0_42 = arith.constant 0 : index
    %c37 = arith.constant 37 : index
    %c0_43 = arith.constant 0 : index
    %44 = vector.load %arg1[%c0_42, %c37, %c0_43] : memref<1x328x8xbf16, #tpu.memory_space<vmem>>, vector<1x288x8xbf16>
    %45 = vector.shape_cast %44 : vector<1x288x8xbf16> to vector<288x8xbf16>
    %c56 = arith.constant 56 : index
    %c0_44 = arith.constant 0 : index
    %46 = vector.load %arg5[%c56, %c0_44] : memref<72x16xbf16, #tpu.memory_space<vmem>>, vector<8x16xbf16>
    %cst_45 = arith.constant dense<0.000000e+00> : vector<288x16xf32>
    %47 = tpu.matmul %45, %46, %cst_45 {dimension_numbers = #tpu.dot_dimension_numbers<[1], [0], [0], [1], [0, 0, 1, 1], [], []>} : vector<288x8xbf16>, vector<8x16xbf16>, vector<288x16xf32> -> vector<288x16xf32>
    %48 = arith.addf %43, %47 : vector<288x16xf32>
    %c0_46 = arith.constant 0 : index
    %c38 = arith.constant 38 : index
    %c0_47 = arith.constant 0 : index
    %49 = vector.load %arg1[%c0_46, %c38, %c0_47] : memref<1x328x8xbf16, #tpu.memory_space<vmem>>, vector<1x288x8xbf16>
    %50 = vector.shape_cast %49 : vector<1x288x8xbf16> to vector<288x8xbf16>
    %c64 = arith.constant 64 : index
    %c0_48 = arith.constant 0 : index
    %51 = vector.load %arg5[%c64, %c0_48] : memref<72x16xbf16, #tpu.memory_space<vmem>>, vector<8x16xbf16>
    %cst_49 = arith.constant dense<0.000000e+00> : vector<288x16xf32>
    %52 = tpu.matmul %50, %51, %cst_49 {dimension_numbers = #tpu.dot_dimension_numbers<[1], [0], [0], [1], [0, 0, 1, 1], [], []>} : vector<288x8xbf16>, vector<8x16xbf16>, vector<288x16xf32> -> vector<288x16xf32>
    %53 = arith.addf %48, %52 : vector<288x16xf32>
    %c0_50 = arith.constant 0 : index
    %c0_51 = arith.constant 0 : index
    %54 = vector.load %arg6[%c0_50, %c0_51] : memref<1x16xf32, #tpu.memory_space<vmem>>, vector<1x16xf32>
    %55 = vector.broadcast %54 : vector<1x16xf32> to vector<288x16xf32>
    %56 = arith.addf %53, %55 : vector<288x16xf32>
    %cst_52 = arith.constant 0.000000e+00 : f32
    %57 = vector.broadcast %cst_52 : f32 to vector<288x16xf32>
    %58 = arith.maximumf %56, %57 : vector<288x16xf32>
    %59 = vector.broadcast %6 : vector<288x1xf32> to vector<288x16xf32>
    %60 = arith.mulf %58, %59 : vector<288x16xf32>
    %c19_53 = arith.constant 19 : index
    %c0_54 = arith.constant 0 : index
    %61 = vector.load %arg19[%c19_53, %c0_54] : memref<328x16xf32, #tpu.memory_space<vmem>>, vector<288x16xf32>
    tpu.vector_store %arg19[%c19_53, %c0_54], %60 {strides = array<i32>} : memref<328x16xf32, #tpu.memory_space<vmem>>, vector<288x16xf32>,
    %cst_55 = arith.constant 0.000000e+00 : f32
    %62 = vector.broadcast %cst_55 : f32 to vector<288x16xf32>
    %c0_56 = arith.constant 0 : index
    %c0_57 = arith.constant 0 : index
    %63 = vector.load %arg19[%c0_56, %c0_57] : memref<328x16xf32, #tpu.memory_space<vmem>>, vector<288x16xf32>
    %64 = arith.truncf %63 : vector<288x16xf32> to vector<288x16xbf16>
    %c0_58 = arith.constant 0 : index
    %c0_59 = arith.constant 0 : index
    %65 = vector.load %arg7[%c0_58, %c0_59] : memref<144x16xbf16, #tpu.memory_space<vmem>>, vector<16x16xbf16>
    %cst_60 = arith.constant dense<0.000000e+00> : vector<288x16xf32>
    %66 = tpu.matmul %64, %65, %cst_60 {dimension_numbers = #tpu.dot_dimension_numbers<[1], [0], [0], [1], [0, 0, 1, 1], [], []>} : vector<288x16xbf16>, vector<16x16xbf16>, vector<288x16xf32> -> vector<288x16xf32>
    %67 = arith.addf %62, %66 : vector<288x16xf32>
    %c1_61 = arith.constant 1 : index
    %c0_62 = arith.constant 0 : index
    %68 = vector.load %arg19[%c1_61, %c0_62] : memref<328x16xf32, #tpu.memory_space<vmem>>, vector<288x16xf32>
    %69 = arith.truncf %68 : vector<288x16xf32> to vector<288x16xbf16>
    %c16_63 = arith.constant 16 : index
    %c0_64 = arith.constant 0 : index
    %70 = vector.load %arg7[%c16_63, %c0_64] : memref<144x16xbf16, #tpu.memory_space<vmem>>, vector<16x16xbf16>
    %cst_65 = arith.constant dense<0.000000e+00> : vector<288x16xf32>
    %71 = tpu.matmul %69, %70, %cst_65 {dimension_numbers = #tpu.dot_dimension_numbers<[1], [0], [0], [1], [0, 0, 1, 1], [], []>} : vector<288x16xbf16>, vector<16x16xbf16>, vector<288x16xf32> -> vector<288x16xf32>
    %72 = arith.addf %67, %71 : vector<288x16xf32>
    %c2_66 = arith.constant 2 : index
    %c0_67 = arith.constant 0 : index
    %73 = vector.load %arg19[%c2_66, %c0_67] : memref<328x16xf32, #tpu.memory_space<vmem>>, vector<288x16xf32>
    %74 = arith.truncf %73 : vector<288x16xf32> to vector<288x16xbf16>
    %c32_68 = arith.constant 32 : index
    %c0_69 = arith.constant 0 : index
    %75 = vector.load %arg7[%c32_68, %c0_69] : memref<144x16xbf16, #tpu.memory_space<vmem>>, vector<16x16xbf16>
    %cst_70 = arith.constant dense<0.000000e+00> : vector<288x16xf32>
    %76 = tpu.matmul %74, %75, %cst_70 {dimension_numbers = #tpu.dot_dimension_numbers<[1], [0], [0], [1], [0, 0, 1, 1], [], []>} : vector<288x16xbf16>, vector<16x16xbf16>, vector<288x16xf32> -> vector<288x16xf32>
    %77 = arith.addf %72, %76 : vector<288x16xf32>
    %c18_71 = arith.constant 18 : index
    %c0_72 = arith.constant 0 : index
    %78 = vector.load %arg19[%c18_71, %c0_72] : memref<328x16xf32, #tpu.memory_space<vmem>>, vector<288x16xf32>
    %79 = arith.truncf %78 : vector<288x16xf32> to vector<288x16xbf16>
    %c48_73 = arith.constant 48 : index
    %c0_74 = arith.constant 0 : index
    %80 = vector.load %arg7[%c48_73, %c0_74] : memref<144x16xbf16, #tpu.memory_space<vmem>>, vector<16x16xbf16>
    %cst_75 = arith.constant dense<0.000000e+00> : vector<288x16xf32>
    %81 = tpu.matmul %79, %80, %cst_75 {dimension_numbers = #tpu.dot_dimension_numbers<[1], [0], [0], [1], [0, 0, 1, 1], [], []>} : vector<288x16xbf16>, vector<16x16xbf16>, vector<288x16xf32> -> vector<288x16xf32>
    %82 = arith.addf %77, %81 : vector<288x16xf32>
    %c19_76 = arith.constant 19 : index
    %c0_77 = arith.constant 0 : index
    %83 = vector.load %arg19[%c19_76, %c0_77] : memref<328x16xf32, #tpu.memory_space<vmem>>, vector<288x16xf32>
    %84 = arith.truncf %83 : vector<288x16xf32> to vector<288x16xbf16>
    %c64_78 = arith.constant 64 : index
    %c0_79 = arith.constant 0 : index
    %85 = vector.load %arg7[%c64_78, %c0_79] : memref<144x16xbf16, #tpu.memory_space<vmem>>, vector<16x16xbf16>
    %cst_80 = arith.constant dense<0.000000e+00> : vector<288x16xf32>
    %86 = tpu.matmul %84, %85, %cst_80 {dimension_numbers = #tpu.dot_dimension_numbers<[1], [0], [0], [1], [0, 0, 1, 1], [], []>} : vector<288x16xbf16>, vector<16x16xbf16>, vector<288x16xf32> -> vector<288x16xf32>
    %87 = arith.addf %82, %86 : vector<288x16xf32>
    %c20_81 = arith.constant 20 : index
    %c0_82 = arith.constant 0 : index
    %88 = vector.load %arg19[%c20_81, %c0_82] : memref<328x16xf32, #tpu.memory_space<vmem>>, vector<288x16xf32>
    %89 = arith.truncf %88 : vector<288x16xf32> to vector<288x16xbf16>
    %c80 = arith.constant 80 : index
    %c0_83 = arith.constant 0 : index
    %90 = vector.load %arg7[%c80, %c0_83] : memref<144x16xbf16, #tpu.memory_space<vmem>>, vector<16x16xbf16>
    %cst_84 = arith.constant dense<0.000000e+00> : vector<288x16xf32>
    %91 = tpu.matmul %89, %90, %cst_84 {dimension_numbers = #tpu.dot_dimension_numbers<[1], [0], [0], [1], [0, 0, 1, 1], [], []>} : vector<288x16xbf16>, vector<16x16xbf16>, vector<288x16xf32> -> vector<288x16xf32>
    %92 = arith.addf %87, %91 : vector<288x16xf32>
    %c36_85 = arith.constant 36 : index
    %c0_86 = arith.constant 0 : index
    %93 = vector.load %arg19[%c36_85, %c0_86] : memref<328x16xf32, #tpu.memory_space<vmem>>, vector<288x16xf32>
    %94 = arith.truncf %93 : vector<288x16xf32> to vector<288x16xbf16>
    %c96 = arith.constant 96 : index
    %c0_87 = arith.constant 0 : index
    %95 = vector.load %arg7[%c96, %c0_87] : memref<144x16xbf16, #tpu.memory_space<vmem>>, vector<16x16xbf16>
    %cst_88 = arith.constant dense<0.000000e+00> : vector<288x16xf32>
    %96 = tpu.matmul %94, %95, %cst_88 {dimension_numbers = #tpu.dot_dimension_numbers<[1], [0], [0], [1], [0, 0, 1, 1], [], []>} : vector<288x16xbf16>, vector<16x16xbf16>, vector<288x16xf32> -> vector<288x16xf32>
    %97 = arith.addf %92, %96 : vector<288x16xf32>
    %c37_89 = arith.constant 37 : index
    %c0_90 = arith.constant 0 : index
    %98 = vector.load %arg19[%c37_89, %c0_90] : memref<328x16xf32, #tpu.memory_space<vmem>>, vector<288x16xf32>
    %99 = arith.truncf %98 : vector<288x16xf32> to vector<288x16xbf16>
    %c112 = arith.constant 112 : index
    %c0_91 = arith.constant 0 : index
    %100 = vector.load %arg7[%c112, %c0_91] : memref<144x16xbf16, #tpu.memory_space<vmem>>, vector<16x16xbf16>
    %cst_92 = arith.constant dense<0.000000e+00> : vector<288x16xf32>
    %101 = tpu.matmul %99, %100, %cst_92 {dimension_numbers = #tpu.dot_dimension_numbers<[1], [0], [0], [1], [0, 0, 1, 1], [], []>} : vector<288x16xbf16>, vector<16x16xbf16>, vector<288x16xf32> -> vector<288x16xf32>
    %102 = arith.addf %97, %101 : vector<288x16xf32>
    %c38_93 = arith.constant 38 : index
    %c0_94 = arith.constant 0 : index
    %103 = vector.load %arg19[%c38_93, %c0_94] : memref<328x16xf32, #tpu.memory_space<vmem>>, vector<288x16xf32>
    %104 = arith.truncf %103 : vector<288x16xf32> to vector<288x16xbf16>
    %c128 = arith.constant 128 : index
    %c0_95 = arith.constant 0 : index
    %105 = vector.load %arg7[%c128, %c0_95] : memref<144x16xbf16, #tpu.memory_space<vmem>>, vector<16x16xbf16>
    %cst_96 = arith.constant dense<0.000000e+00> : vector<288x16xf32>
    %106 = tpu.matmul %104, %105, %cst_96 {dimension_numbers = #tpu.dot_dimension_numbers<[1], [0], [0], [1], [0, 0, 1, 1], [], []>} : vector<288x16xbf16>, vector<16x16xbf16>, vector<288x16xf32> -> vector<288x16xf32>
    %107 = arith.addf %102, %106 : vector<288x16xf32>
    %c0_97 = arith.constant 0 : index
    %c0_98 = arith.constant 0 : index
    %108 = vector.load %arg8[%c0_97, %c0_98] : memref<1x16xf32, #tpu.memory_space<vmem>>, vector<1x16xf32>
    %109 = vector.broadcast %108 : vector<1x16xf32> to vector<288x16xf32>
    %110 = arith.addf %107, %109 : vector<288x16xf32>
    %cst_99 = arith.constant 0.000000e+00 : f32
    %111 = vector.broadcast %cst_99 : f32 to vector<288x16xf32>
    %112 = arith.maximumf %110, %111 : vector<288x16xf32>
    %113 = vector.broadcast %6 : vector<288x1xf32> to vector<288x16xf32>
    %114 = arith.mulf %112, %113 : vector<288x16xf32>
    %c19_100 = arith.constant 19 : index
    %c0_101 = arith.constant 0 : index
    %115 = vector.load %arg20[%c19_100, %c0_101] : memref<328x16xf32, #tpu.memory_space<vmem>>, vector<288x16xf32>
    tpu.vector_store %arg20[%c19_100, %c0_101], %114 {strides = array<i32>} : memref<328x16xf32, #tpu.memory_space<vmem>>, vector<288x16xf32>,
    %c19_102 = arith.constant 19 : index
    %c0_103 = arith.constant 0 : index
    %116 = vector.load %arg19[%c19_102, %c0_103] : memref<328x16xf32, #tpu.memory_space<vmem>>, vector<288x16xf32>
    %cst_104 = arith.constant 0.000000e+00 : f32
    %117 = vector.broadcast %cst_104 : f32 to vector<288x16xf32>
    %c0_105 = arith.constant 0 : index
    %c0_106 = arith.constant 0 : index
    %118 = vector.load %arg20[%c0_105, %c0_106] : memref<328x16xf32, #tpu.memory_space<vmem>>, vector<288x16xf32>
    %119 = arith.truncf %118 : vector<288x16xf32> to vector<288x16xbf16>
    %c0_107 = arith.constant 0 : index
    %c0_108 = arith.constant 0 : index
    %120 = vector.load %arg9[%c0_107, %c0_108] : memref<144x16xbf16, #tpu.memory_space<vmem>>, vector<16x16xbf16>
    %cst_109 = arith.constant dense<0.000000e+00> : vector<288x16xf32>
    %121 = tpu.matmul %119, %120, %cst_109 {dimension_numbers = #tpu.dot_dimension_numbers<[1], [0], [0], [1], [0, 0, 1, 1], [], []>} : vector<288x16xbf16>, vector<16x16xbf16>, vector<288x16xf32> -> vector<288x16xf32>
    %122 = arith.addf %117, %121 : vector<288x16xf32>
    %c1_110 = arith.constant 1 : index
    %c0_111 = arith.constant 0 : index
    %123 = vector.load %arg20[%c1_110, %c0_111] : memref<328x16xf32, #tpu.memory_space<vmem>>, vector<288x16xf32>
    %124 = arith.truncf %123 : vector<288x16xf32> to vector<288x16xbf16>
    %c16_112 = arith.constant 16 : index
    %c0_113 = arith.constant 0 : index
    %125 = vector.load %arg9[%c16_112, %c0_113] : memref<144x16xbf16, #tpu.memory_space<vmem>>, vector<16x16xbf16>
    %cst_114 = arith.constant dense<0.000000e+00> : vector<288x16xf32>
    %126 = tpu.matmul %124, %125, %cst_114 {dimension_numbers = #tpu.dot_dimension_numbers<[1], [0], [0], [1], [0, 0, 1, 1], [], []>} : vector<288x16xbf16>, vector<16x16xbf16>, vector<288x16xf32> -> vector<288x16xf32>
    %127 = arith.addf %122, %126 : vector<288x16xf32>
    %c2_115 = arith.constant 2 : index
    %c0_116 = arith.constant 0 : index
    %128 = vector.load %arg20[%c2_115, %c0_116] : memref<328x16xf32, #tpu.memory_space<vmem>>, vector<288x16xf32>
    %129 = arith.truncf %128 : vector<288x16xf32> to vector<288x16xbf16>
    %c32_117 = arith.constant 32 : index
    %c0_118 = arith.constant 0 : index
    %130 = vector.load %arg9[%c32_117, %c0_118] : memref<144x16xbf16, #tpu.memory_space<vmem>>, vector<16x16xbf16>
    %cst_119 = arith.constant dense<0.000000e+00> : vector<288x16xf32>
    %131 = tpu.matmul %129, %130, %cst_119 {dimension_numbers = #tpu.dot_dimension_numbers<[1], [0], [0], [1], [0, 0, 1, 1], [], []>} : vector<288x16xbf16>, vector<16x16xbf16>, vector<288x16xf32> -> vector<288x16xf32>
    %132 = arith.addf %127, %131 : vector<288x16xf32>
    %c18_120 = arith.constant 18 : index
    %c0_121 = arith.constant 0 : index
    %133 = vector.load %arg20[%c18_120, %c0_121] : memref<328x16xf32, #tpu.memory_space<vmem>>, vector<288x16xf32>
    %134 = arith.truncf %133 : vector<288x16xf32> to vector<288x16xbf16>
    %c48_122 = arith.constant 48 : index
    %c0_123 = arith.constant 0 : index
    %135 = vector.load %arg9[%c48_122, %c0_123] : memref<144x16xbf16, #tpu.memory_space<vmem>>, vector<16x16xbf16>
    %cst_124 = arith.constant dense<0.000000e+00> : vector<288x16xf32>
    %136 = tpu.matmul %134, %135, %cst_124 {dimension_numbers = #tpu.dot_dimension_numbers<[1], [0], [0], [1], [0, 0, 1, 1], [], []>} : vector<288x16xbf16>, vector<16x16xbf16>, vector<288x16xf32> -> vector<288x16xf32>
    %137 = arith.addf %132, %136 : vector<288x16xf32>
    %c19_125 = arith.constant 19 : index
    %c0_126 = arith.constant 0 : index
    %138 = vector.load %arg20[%c19_125, %c0_126] : memref<328x16xf32, #tpu.memory_space<vmem>>, vector<288x16xf32>
    %139 = arith.truncf %138 : vector<288x16xf32> to vector<288x16xbf16>
    %c64_127 = arith.constant 64 : index
    %c0_128 = arith.constant 0 : index
    %140 = vector.load %arg9[%c64_127, %c0_128] : memref<144x16xbf16, #tpu.memory_space<vmem>>, vector<16x16xbf16>
    %cst_129 = arith.constant dense<0.000000e+00> : vector<288x16xf32>
    %141 = tpu.matmul %139, %140, %cst_129 {dimension_numbers = #tpu.dot_dimension_numbers<[1], [0], [0], [1], [0, 0, 1, 1], [], []>} : vector<288x16xbf16>, vector<16x16xbf16>, vector<288x16xf32> -> vector<288x16xf32>
    %142 = arith.addf %137, %141 : vector<288x16xf32>
    %c20_130 = arith.constant 20 : index
    %c0_131 = arith.constant 0 : index
    %143 = vector.load %arg20[%c20_130, %c0_131] : memref<328x16xf32, #tpu.memory_space<vmem>>, vector<288x16xf32>
    %144 = arith.truncf %143 : vector<288x16xf32> to vector<288x16xbf16>
    %c80_132 = arith.constant 80 : index
    %c0_133 = arith.constant 0 : index
    %145 = vector.load %arg9[%c80_132, %c0_133] : memref<144x16xbf16, #tpu.memory_space<vmem>>, vector<16x16xbf16>
    %cst_134 = arith.constant dense<0.000000e+00> : vector<288x16xf32>
    %146 = tpu.matmul %144, %145, %cst_134 {dimension_numbers = #tpu.dot_dimension_numbers<[1], [0], [0], [1], [0, 0, 1, 1], [], []>} : vector<288x16xbf16>, vector<16x16xbf16>, vector<288x16xf32> -> vector<288x16xf32>
    %147 = arith.addf %142, %146 : vector<288x16xf32>
    %c36_135 = arith.constant 36 : index
    %c0_136 = arith.constant 0 : index
    %148 = vector.load %arg20[%c36_135, %c0_136] : memref<328x16xf32, #tpu.memory_space<vmem>>, vector<288x16xf32>
    %149 = arith.truncf %148 : vector<288x16xf32> to vector<288x16xbf16>
    %c96_137 = arith.constant 96 : index
    %c0_138 = arith.constant 0 : index
    %150 = vector.load %arg9[%c96_137, %c0_138] : memref<144x16xbf16, #tpu.memory_space<vmem>>, vector<16x16xbf16>
    %cst_139 = arith.constant dense<0.000000e+00> : vector<288x16xf32>
    %151 = tpu.matmul %149, %150, %cst_139 {dimension_numbers = #tpu.dot_dimension_numbers<[1], [0], [0], [1], [0, 0, 1, 1], [], []>} : vector<288x16xbf16>, vector<16x16xbf16>, vector<288x16xf32> -> vector<288x16xf32>
    %152 = arith.addf %147, %151 : vector<288x16xf32>
    %c37_140 = arith.constant 37 : index
    %c0_141 = arith.constant 0 : index
    %153 = vector.load %arg20[%c37_140, %c0_141] : memref<328x16xf32, #tpu.memory_space<vmem>>, vector<288x16xf32>
    %154 = arith.truncf %153 : vector<288x16xf32> to vector<288x16xbf16>
    %c112_142 = arith.constant 112 : index
    %c0_143 = arith.constant 0 : index
    %155 = vector.load %arg9[%c112_142, %c0_143] : memref<144x16xbf16, #tpu.memory_space<vmem>>, vector<16x16xbf16>
    %cst_144 = arith.constant dense<0.000000e+00> : vector<288x16xf32>
    %156 = tpu.matmul %154, %155, %cst_144 {dimension_numbers = #tpu.dot_dimension_numbers<[1], [0], [0], [1], [0, 0, 1, 1], [], []>} : vector<288x16xbf16>, vector<16x16xbf16>, vector<288x16xf32> -> vector<288x16xf32>
    %157 = arith.addf %152, %156 : vector<288x16xf32>
    %c38_145 = arith.constant 38 : index
    %c0_146 = arith.constant 0 : index
    %158 = vector.load %arg20[%c38_145, %c0_146] : memref<328x16xf32, #tpu.memory_space<vmem>>, vector<288x16xf32>
    %159 = arith.truncf %158 : vector<288x16xf32> to vector<288x16xbf16>
    %c128_147 = arith.constant 128 : index
    %c0_148 = arith.constant 0 : index
    %160 = vector.load %arg9[%c128_147, %c0_148] : memref<144x16xbf16, #tpu.memory_space<vmem>>, vector<16x16xbf16>
    %cst_149 = arith.constant dense<0.000000e+00> : vector<288x16xf32>
    %161 = tpu.matmul %159, %160, %cst_149 {dimension_numbers = #tpu.dot_dimension_numbers<[1], [0], [0], [1], [0, 0, 1, 1], [], []>} : vector<288x16xbf16>, vector<16x16xbf16>, vector<288x16xf32> -> vector<288x16xf32>
    %162 = arith.addf %157, %161 : vector<288x16xf32>
    %c0_150 = arith.constant 0 : index
    %c0_151 = arith.constant 0 : index
    %163 = vector.load %arg10[%c0_150, %c0_151] : memref<1x16xf32, #tpu.memory_space<vmem>>, vector<1x16xf32>
    %164 = vector.broadcast %163 : vector<1x16xf32> to vector<288x16xf32>
    %165 = arith.addf %162, %164 : vector<288x16xf32>
    %166 = arith.addf %165, %116 : vector<288x16xf32>
    %cst_152 = arith.constant 0.000000e+00 : f32
    %167 = vector.broadcast %cst_152 : f32 to vector<288x16xf32>
    %168 = arith.maximumf %166, %167 : vector<288x16xf32>
    %169 = vector.broadcast %6 : vector<288x1xf32> to vector<288x16xf32>
    %170 = arith.mulf %168, %169 : vector<288x16xf32>
    %c19_153 = arith.constant 19 : index
    %c0_154 = arith.constant 0 : index
    %171 = vector.load %arg19[%c19_153, %c0_154] : memref<328x16xf32, #tpu.memory_space<vmem>>, vector<288x16xf32>
    tpu.vector_store %arg19[%c19_153, %c0_154], %170 {strides = array<i32>} : memref<328x16xf32, #tpu.memory_space<vmem>>, vector<288x16xf32>,
    %cst_155 = arith.constant 0.000000e+00 : f32
    %172 = vector.broadcast %cst_155 : f32 to vector<288x64xf32>
    %c0_156 = arith.constant 0 : index
    %c0_157 = arith.constant 0 : index
    %173 = vector.load %arg19[%c0_156, %c0_157] : memref<328x16xf32, #tpu.memory_space<vmem>>, vector<288x16xf32>
    %174 = arith.truncf %173 : vector<288x16xf32> to vector<288x16xbf16>
    %c0_158 = arith.constant 0 : index
    %c0_159 = arith.constant 0 : index
    %175 = vector.load %arg11[%c0_158, %c0_159] : memref<144x64xbf16, #tpu.memory_space<vmem>>, vector<16x64xbf16>
    %cst_160 = arith.constant dense<0.000000e+00> : vector<288x64xf32>
    %176 = tpu.matmul %174, %175, %cst_160 {dimension_numbers = #tpu.dot_dimension_numbers<[1], [0], [0], [1], [0, 0, 1, 1], [], []>} : vector<288x16xbf16>, vector<16x64xbf16>, vector<288x64xf32> -> vector<288x64xf32>
    %177 = arith.addf %172, %176 : vector<288x64xf32>
    %c1_161 = arith.constant 1 : index
    %c0_162 = arith.constant 0 : index
    %178 = vector.load %arg19[%c1_161, %c0_162] : memref<328x16xf32, #tpu.memory_space<vmem>>, vector<288x16xf32>
    %179 = arith.truncf %178 : vector<288x16xf32> to vector<288x16xbf16>
    %c16_163 = arith.constant 16 : index
    %c0_164 = arith.constant 0 : index
    %180 = vector.load %arg11[%c16_163, %c0_164] : memref<144x64xbf16, #tpu.memory_space<vmem>>, vector<16x64xbf16>
    %cst_165 = arith.constant dense<0.000000e+00> : vector<288x64xf32>
    %181 = tpu.matmul %179, %180, %cst_165 {dimension_numbers = #tpu.dot_dimension_numbers<[1], [0], [0], [1], [0, 0, 1, 1], [], []>} : vector<288x16xbf16>, vector<16x64xbf16>, vector<288x64xf32> -> vector<288x64xf32>
    %182 = arith.addf %177, %181 : vector<288x64xf32>
    %c2_166 = arith.constant 2 : index
    %c0_167 = arith.constant 0 : index
    %183 = vector.load %arg19[%c2_166, %c0_167] : memref<328x16xf32, #tpu.memory_space<vmem>>, vector<288x16xf32>
    %184 = arith.truncf %183 : vector<288x16xf32> to vector<288x16xbf16>
    %c32_168 = arith.constant 32 : index
    %c0_169 = arith.constant 0 : index
    %185 = vector.load %arg11[%c32_168, %c0_169] : memref<144x64xbf16, #tpu.memory_space<vmem>>, vector<16x64xbf16>
    %cst_170 = arith.constant dense<0.000000e+00> : vector<288x64xf32>
    %186 = tpu.matmul %184, %185, %cst_170 {dimension_numbers = #tpu.dot_dimension_numbers<[1], [0], [0], [1], [0, 0, 1, 1], [], []>} : vector<288x16xbf16>, vector<16x64xbf16>, vector<288x64xf32> -> vector<288x64xf32>
    %187 = arith.addf %182, %186 : vector<288x64xf32>
    %c18_171 = arith.constant 18 : index
    %c0_172 = arith.constant 0 : index
    %188 = vector.load %arg19[%c18_171, %c0_172] : memref<328x16xf32, #tpu.memory_space<vmem>>, vector<288x16xf32>
    %189 = arith.truncf %188 : vector<288x16xf32> to vector<288x16xbf16>
    %c48_173 = arith.constant 48 : index
    %c0_174 = arith.constant 0 : index
    %190 = vector.load %arg11[%c48_173, %c0_174] : memref<144x64xbf16, #tpu.memory_space<vmem>>, vector<16x64xbf16>
    %cst_175 = arith.constant dense<0.000000e+00> : vector<288x64xf32>
    %191 = tpu.matmul %189, %190, %cst_175 {dimension_numbers = #tpu.dot_dimension_numbers<[1], [0], [0], [1], [0, 0, 1, 1], [], []>} : vector<288x16xbf16>, vector<16x64xbf16>, vector<288x64xf32> -> vector<288x64xf32>
    %192 = arith.addf %187, %191 : vector<288x64xf32>
    %c19_176 = arith.constant 19 : index
    %c0_177 = arith.constant 0 : index
    %193 = vector.load %arg19[%c19_176, %c0_177] : memref<328x16xf32, #tpu.memory_space<vmem>>, vector<288x16xf32>
    %194 = arith.truncf %193 : vector<288x16xf32> to vector<288x16xbf16>
    %c64_178 = arith.constant 64 : index
    %c0_179 = arith.constant 0 : index
    %195 = vector.load %arg11[%c64_178, %c0_179] : memref<144x64xbf16, #tpu.memory_space<vmem>>, vector<16x64xbf16>
    %cst_180 = arith.constant dense<0.000000e+00> : vector<288x64xf32>
    %196 = tpu.matmul %194, %195, %cst_180 {dimension_numbers = #tpu.dot_dimension_numbers<[1], [0], [0], [1], [0, 0, 1, 1], [], []>} : vector<288x16xbf16>, vector<16x64xbf16>, vector<288x64xf32> -> vector<288x64xf32>
    %197 = arith.addf %192, %196 : vector<288x64xf32>
    %c20_181 = arith.constant 20 : index
    %c0_182 = arith.constant 0 : index
    %198 = vector.load %arg19[%c20_181, %c0_182] : memref<328x16xf32, #tpu.memory_space<vmem>>, vector<288x16xf32>
    %199 = arith.truncf %198 : vector<288x16xf32> to vector<288x16xbf16>
    %c80_183 = arith.constant 80 : index
    %c0_184 = arith.constant 0 : index
    %200 = vector.load %arg11[%c80_183, %c0_184] : memref<144x64xbf16, #tpu.memory_space<vmem>>, vector<16x64xbf16>
    %cst_185 = arith.constant dense<0.000000e+00> : vector<288x64xf32>
    %201 = tpu.matmul %199, %200, %cst_185 {dimension_numbers = #tpu.dot_dimension_numbers<[1], [0], [0], [1], [0, 0, 1, 1], [], []>} : vector<288x16xbf16>, vector<16x64xbf16>, vector<288x64xf32> -> vector<288x64xf32>
    %202 = arith.addf %197, %201 : vector<288x64xf32>
    %c36_186 = arith.constant 36 : index
    %c0_187 = arith.constant 0 : index
    %203 = vector.load %arg19[%c36_186, %c0_187] : memref<328x16xf32, #tpu.memory_space<vmem>>, vector<288x16xf32>
    %204 = arith.truncf %203 : vector<288x16xf32> to vector<288x16xbf16>
    %c96_188 = arith.constant 96 : index
    %c0_189 = arith.constant 0 : index
    %205 = vector.load %arg11[%c96_188, %c0_189] : memref<144x64xbf16, #tpu.memory_space<vmem>>, vector<16x64xbf16>
    %cst_190 = arith.constant dense<0.000000e+00> : vector<288x64xf32>
    %206 = tpu.matmul %204, %205, %cst_190 {dimension_numbers = #tpu.dot_dimension_numbers<[1], [0], [0], [1], [0, 0, 1, 1], [], []>} : vector<288x16xbf16>, vector<16x64xbf16>, vector<288x64xf32> -> vector<288x64xf32>
    %207 = arith.addf %202, %206 : vector<288x64xf32>
    %c37_191 = arith.constant 37 : index
    %c0_192 = arith.constant 0 : index
    %208 = vector.load %arg19[%c37_191, %c0_192] : memref<328x16xf32, #tpu.memory_space<vmem>>, vector<288x16xf32>
    %209 = arith.truncf %208 : vector<288x16xf32> to vector<288x16xbf16>
    %c112_193 = arith.constant 112 : index
    %c0_194 = arith.constant 0 : index
    %210 = vector.load %arg11[%c112_193, %c0_194] : memref<144x64xbf16, #tpu.memory_space<vmem>>, vector<16x64xbf16>
    %cst_195 = arith.constant dense<0.000000e+00> : vector<288x64xf32>
    %211 = tpu.matmul %209, %210, %cst_195 {dimension_numbers = #tpu.dot_dimension_numbers<[1], [0], [0], [1], [0, 0, 1, 1], [], []>} : vector<288x16xbf16>, vector<16x64xbf16>, vector<288x64xf32> -> vector<288x64xf32>
    %212 = arith.addf %207, %211 : vector<288x64xf32>
    %c38_196 = arith.constant 38 : index
    %c0_197 = arith.constant 0 : index
    %213 = vector.load %arg19[%c38_196, %c0_197] : memref<328x16xf32, #tpu.memory_space<vmem>>, vector<288x16xf32>
    %214 = arith.truncf %213 : vector<288x16xf32> to vector<288x16xbf16>
    %c128_198 = arith.constant 128 : index
    %c0_199 = arith.constant 0 : index
    %215 = vector.load %arg11[%c128_198, %c0_199] : memref<144x64xbf16, #tpu.memory_space<vmem>>, vector<16x64xbf16>
    %cst_200 = arith.constant dense<0.000000e+00> : vector<288x64xf32>
    %216 = tpu.matmul %214, %215, %cst_200 {dimension_numbers = #tpu.dot_dimension_numbers<[1], [0], [0], [1], [0, 0, 1, 1], [], []>} : vector<288x16xbf16>, vector<16x64xbf16>, vector<288x64xf32> -> vector<288x64xf32>
    %217 = arith.addf %212, %216 : vector<288x64xf32>
    %c0_201 = arith.constant 0 : index
    %c0_202 = arith.constant 0 : index
    %218 = vector.load %arg12[%c0_201, %c0_202] : memref<1x64xf32, #tpu.memory_space<vmem>>, vector<1x64xf32>
    %219 = vector.broadcast %218 : vector<1x64xf32> to vector<288x64xf32>
    %220 = arith.addf %217, %219 : vector<288x64xf32>
    %c0_203 = arith.constant 0 : index
    %c0_204 = arith.constant 0 : index
    %221 = vector.load %arg2[%c0_203, %c0_204] : memref<80x288xbf16, #tpu.memory_space<vmem>>, vector<80x288xbf16>
    %222 = arith.truncf %220 : vector<288x64xf32> to vector<288x64xbf16>
    %cst_205 = arith.constant dense<0.000000e+00> : vector<80x64xf32>
    %223 = tpu.matmul %221, %222, %cst_205 {dimension_numbers = #tpu.dot_dimension_numbers<[1], [0], [0], [1], [0, 0, 1, 1], [], []>} : vector<80x288xbf16>, vector<288x64xbf16>, vector<80x64xf32> -> vector<80x64xf32>
    %224 = vector.extract_strided_slice %223 {offsets = [0, 0], sizes = [80, 32], strides = [1, 1]} : vector<80x64xf32> to vector<80x32xf32>
    %cst_206 = arith.constant 0.000000e+00 : f32
    %225 = vector.broadcast %cst_206 : f32 to vector<80x32xf32>
    %226 = arith.maximumf %224, %225 : vector<80x32xf32>
    %c11 = arith.constant 11 : index
    %c0_207 = arith.constant 0 : index
    %227 = vector.load %arg21[%c11, %c0_207] : memref<104x32xf32, #tpu.memory_space<vmem>>, vector<80x32xf32>
    tpu.vector_store %arg21[%c11, %c0_207], %226 {strides = array<i32>} : memref<104x32xf32, #tpu.memory_space<vmem>>, vector<80x32xf32>,
    %228 = vector.extract_strided_slice %223 {offsets = [0, 32], sizes = [80, 32], strides = [1, 1]} : vector<80x64xf32> to vector<80x32xf32>
    %cst_208 = arith.constant 0.000000e+00 : f32
    %229 = vector.broadcast %cst_208 : f32 to vector<80x32xf32>
    %c0_209 = arith.constant 0 : index
    %c0_210 = arith.constant 0 : index
    %230 = vector.load %arg21[%c0_209, %c0_210] : memref<104x32xf32, #tpu.memory_space<vmem>>, vector<80x32xf32>
    %231 = arith.truncf %230 : vector<80x32xf32> to vector<80x32xbf16>
    %c0_211 = arith.constant 0 : index
    %c0_212 = arith.constant 0 : index
    %232 = vector.load %arg13[%c0_211, %c0_212] : memref<288x32xbf16, #tpu.memory_space<vmem>>, vector<32x32xbf16>
    %cst_213 = arith.constant dense<0.000000e+00> : vector<80x32xf32>
    %233 = tpu.matmul %231, %232, %cst_213 {dimension_numbers = #tpu.dot_dimension_numbers<[1], [0], [0], [1], [0, 0, 1, 1], [], []>} : vector<80x32xbf16>, vector<32x32xbf16>, vector<80x32xf32> -> vector<80x32xf32>
    %234 = arith.addf %229, %233 : vector<80x32xf32>
    %c1_214 = arith.constant 1 : index
    %c0_215 = arith.constant 0 : index
    %235 = vector.load %arg21[%c1_214, %c0_215] : memref<104x32xf32, #tpu.memory_space<vmem>>, vector<80x32xf32>
    %236 = arith.truncf %235 : vector<80x32xf32> to vector<80x32xbf16>
    %c32_216 = arith.constant 32 : index
    %c0_217 = arith.constant 0 : index
    %237 = vector.load %arg13[%c32_216, %c0_217] : memref<288x32xbf16, #tpu.memory_space<vmem>>, vector<32x32xbf16>
    %cst_218 = arith.constant dense<0.000000e+00> : vector<80x32xf32>
    %238 = tpu.matmul %236, %237, %cst_218 {dimension_numbers = #tpu.dot_dimension_numbers<[1], [0], [0], [1], [0, 0, 1, 1], [], []>} : vector<80x32xbf16>, vector<32x32xbf16>, vector<80x32xf32> -> vector<80x32xf32>
    %239 = arith.addf %234, %238 : vector<80x32xf32>
    %c2_219 = arith.constant 2 : index
    %c0_220 = arith.constant 0 : index
    %240 = vector.load %arg21[%c2_219, %c0_220] : memref<104x32xf32, #tpu.memory_space<vmem>>, vector<80x32xf32>
    %241 = arith.truncf %240 : vector<80x32xf32> to vector<80x32xbf16>
    %c64_221 = arith.constant 64 : index
    %c0_222 = arith.constant 0 : index
    %242 = vector.load %arg13[%c64_221, %c0_222] : memref<288x32xbf16, #tpu.memory_space<vmem>>, vector<32x32xbf16>
    %cst_223 = arith.constant dense<0.000000e+00> : vector<80x32xf32>
    %243 = tpu.matmul %241, %242, %cst_223 {dimension_numbers = #tpu.dot_dimension_numbers<[1], [0], [0], [1], [0, 0, 1, 1], [], []>} : vector<80x32xbf16>, vector<32x32xbf16>, vector<80x32xf32> -> vector<80x32xf32>
    %244 = arith.addf %239, %243 : vector<80x32xf32>
    %c10 = arith.constant 10 : index
    %c0_224 = arith.constant 0 : index
    %245 = vector.load %arg21[%c10, %c0_224] : memref<104x32xf32, #tpu.memory_space<vmem>>, vector<80x32xf32>
    %246 = arith.truncf %245 : vector<80x32xf32> to vector<80x32xbf16>
    %c96_225 = arith.constant 96 : index
    %c0_226 = arith.constant 0 : index
    %247 = vector.load %arg13[%c96_225, %c0_226] : memref<288x32xbf16, #tpu.memory_space<vmem>>, vector<32x32xbf16>
    %cst_227 = arith.constant dense<0.000000e+00> : vector<80x32xf32>
    %248 = tpu.matmul %246, %247, %cst_227 {dimension_numbers = #tpu.dot_dimension_numbers<[1], [0], [0], [1], [0, 0, 1, 1], [], []>} : vector<80x32xbf16>, vector<32x32xbf16>, vector<80x32xf32> -> vector<80x32xf32>
    %249 = arith.addf %244, %248 : vector<80x32xf32>
    %c11_228 = arith.constant 11 : index
    %c0_229 = arith.constant 0 : index
    %250 = vector.load %arg21[%c11_228, %c0_229] : memref<104x32xf32, #tpu.memory_space<vmem>>, vector<80x32xf32>
    %251 = arith.truncf %250 : vector<80x32xf32> to vector<80x32xbf16>
    %c128_230 = arith.constant 128 : index
    %c0_231 = arith.constant 0 : index
    %252 = vector.load %arg13[%c128_230, %c0_231] : memref<288x32xbf16, #tpu.memory_space<vmem>>, vector<32x32xbf16>
    %cst_232 = arith.constant dense<0.000000e+00> : vector<80x32xf32>
    %253 = tpu.matmul %251, %252, %cst_232 {dimension_numbers = #tpu.dot_dimension_numbers<[1], [0], [0], [1], [0, 0, 1, 1], [], []>} : vector<80x32xbf16>, vector<32x32xbf16>, vector<80x32xf32> -> vector<80x32xf32>
    %254 = arith.addf %249, %253 : vector<80x32xf32>
    %c12 = arith.constant 12 : index
    %c0_233 = arith.constant 0 : index
    %255 = vector.load %arg21[%c12, %c0_233] : memref<104x32xf32, #tpu.memory_space<vmem>>, vector<80x32xf32>
    %256 = arith.truncf %255 : vector<80x32xf32> to vector<80x32xbf16>
    %c160 = arith.constant 160 : index
    %c0_234 = arith.constant 0 : index
    %257 = vector.load %arg13[%c160, %c0_234] : memref<288x32xbf16, #tpu.memory_space<vmem>>, vector<32x32xbf16>
    %cst_235 = arith.constant dense<0.000000e+00> : vector<80x32xf32>
    %258 = tpu.matmul %256, %257, %cst_235 {dimension_numbers = #tpu.dot_dimension_numbers<[1], [0], [0], [1], [0, 0, 1, 1], [], []>} : vector<80x32xbf16>, vector<32x32xbf16>, vector<80x32xf32> -> vector<80x32xf32>
    %259 = arith.addf %254, %258 : vector<80x32xf32>
    %c20_236 = arith.constant 20 : index
    %c0_237 = arith.constant 0 : index
    %260 = vector.load %arg21[%c20_236, %c0_237] : memref<104x32xf32, #tpu.memory_space<vmem>>, vector<80x32xf32>
    %261 = arith.truncf %260 : vector<80x32xf32> to vector<80x32xbf16>
    %c192 = arith.constant 192 : index
    %c0_238 = arith.constant 0 : index
    %262 = vector.load %arg13[%c192, %c0_238] : memref<288x32xbf16, #tpu.memory_space<vmem>>, vector<32x32xbf16>
    %cst_239 = arith.constant dense<0.000000e+00> : vector<80x32xf32>
    %263 = tpu.matmul %261, %262, %cst_239 {dimension_numbers = #tpu.dot_dimension_numbers<[1], [0], [0], [1], [0, 0, 1, 1], [], []>} : vector<80x32xbf16>, vector<32x32xbf16>, vector<80x32xf32> -> vector<80x32xf32>
    %264 = arith.addf %259, %263 : vector<80x32xf32>
    %c21 = arith.constant 21 : index
    %c0_240 = arith.constant 0 : index
    %265 = vector.load %arg21[%c21, %c0_240] : memref<104x32xf32, #tpu.memory_space<vmem>>, vector<80x32xf32>
    %266 = arith.truncf %265 : vector<80x32xf32> to vector<80x32xbf16>
    %c224 = arith.constant 224 : index
    %c0_241 = arith.constant 0 : index
    %267 = vector.load %arg13[%c224, %c0_241] : memref<288x32xbf16, #tpu.memory_space<vmem>>, vector<32x32xbf16>
    %cst_242 = arith.constant dense<0.000000e+00> : vector<80x32xf32>
    %268 = tpu.matmul %266, %267, %cst_242 {dimension_numbers = #tpu.dot_dimension_numbers<[1], [0], [0], [1], [0, 0, 1, 1], [], []>} : vector<80x32xbf16>, vector<32x32xbf16>, vector<80x32xf32> -> vector<80x32xf32>
    %269 = arith.addf %264, %268 : vector<80x32xf32>
    %c22 = arith.constant 22 : index
    %c0_243 = arith.constant 0 : index
    %270 = vector.load %arg21[%c22, %c0_243] : memref<104x32xf32, #tpu.memory_space<vmem>>, vector<80x32xf32>
    %271 = arith.truncf %270 : vector<80x32xf32> to vector<80x32xbf16>
    %c256 = arith.constant 256 : index
    %c0_244 = arith.constant 0 : index
    %272 = vector.load %arg13[%c256, %c0_244] : memref<288x32xbf16, #tpu.memory_space<vmem>>, vector<32x32xbf16>
    %cst_245 = arith.constant dense<0.000000e+00> : vector<80x32xf32>
    %273 = tpu.matmul %271, %272, %cst_245 {dimension_numbers = #tpu.dot_dimension_numbers<[1], [0], [0], [1], [0, 0, 1, 1], [], []>} : vector<80x32xbf16>, vector<32x32xbf16>, vector<80x32xf32> -> vector<80x32xf32>
    %274 = arith.addf %269, %273 : vector<80x32xf32>
    %c0_246 = arith.constant 0 : index
    %c0_247 = arith.constant 0 : index
    %275 = vector.load %arg14[%c0_246, %c0_247] : memref<1x32xf32, #tpu.memory_space<vmem>>, vector<1x32xf32>
    %276 = vector.broadcast %275 : vector<1x32xf32> to vector<80x32xf32>
    %277 = arith.addf %274, %276 : vector<80x32xf32>
    %278 = arith.addf %277, %228 : vector<80x32xf32>
    %cst_248 = arith.constant 0.000000e+00 : f32
    %279 = vector.broadcast %cst_248 : f32 to vector<80x32xf32>
    %280 = arith.maximumf %278, %279 : vector<80x32xf32>
    %281 = vector.broadcast %7 : vector<80x1xf32> to vector<80x32xf32>
    %282 = arith.mulf %280, %281 : vector<80x32xf32>
    %cst_249 = arith.constant dense<0.000000e+00> : vector<32xf32>
    %283 = vector.multi_reduction <add>, %282, %cst_249 [0] : vector<80x32xf32> to vector<32xf32>
    %284 = vector.shape_cast %283 : vector<32xf32> to vector<1x32xf32>
    %cst_250 = arith.constant 1.562500e-02 : f32
    %285 = vector.broadcast %cst_250 : f32 to vector<1x32xf32>
    %286 = arith.mulf %284, %285 : vector<1x32xf32>
    %c0_251 = arith.constant 0 : index
    %c0_252 = arith.constant 0 : index
    %c0_253 = arith.constant 0 : index
    %287 = vector.load %arg18[%c0_251, %c0_252, %c0_253] : memref<1x1x32xf32, #tpu.memory_space<vmem>>, vector<1x1x32xf32>
    %288 = vector.shape_cast %287 : vector<1x1x32xf32> to vector<1x32xf32>
    %289 = vector.shape_cast %286 : vector<1x32xf32> to vector<1x1x32xf32>
    tpu.vector_store %arg18[%c0_251, %c0_252, %c0_253], %289 {strides = array<i32>} : memref<1x1x32xf32, #tpu.memory_space<vmem>>, vector<1x1x32xf32>,
    %c0_254 = arith.constant 0 : index
    %c0_255 = arith.constant 0 : index
    %290 = vector.load %arg15[%c0_254, %c0_255] : memref<32x10xf32, #tpu.memory_space<vmem>>, vector<32x10xf32>
    %cst_256 = arith.constant dense<0.000000e+00> : vector<1x10xf32>
    %291 = tpu.matmul %286, %290, %cst_256 {dimension_numbers = #tpu.dot_dimension_numbers<[1], [0], [0], [1], [0, 0, 1, 1], [], []>} : vector<1x32xf32>, vector<32x10xf32>, vector<1x10xf32> -> vector<1x10xf32>
    %c0_257 = arith.constant 0 : index
    %c0_258 = arith.constant 0 : index
    %292 = vector.load %arg16[%c0_257, %c0_258] : memref<1x10xf32, #tpu.memory_space<vmem>>, vector<1x10xf32>
    %293 = arith.addf %291, %292 : vector<1x10xf32>
    %c0_259 = arith.constant 0 : index
    %c0_260 = arith.constant 0 : index
    %c0_261 = arith.constant 0 : index
    %294 = vector.load %arg17[%c0_259, %c0_260, %c0_261] : memref<1x1x10xf32, #tpu.memory_space<vmem>>, vector<1x1x10xf32>
    %295 = vector.shape_cast %294 : vector<1x1x10xf32> to vector<1x10xf32>
    %296 = vector.shape_cast %293 : vector<1x10xf32> to vector<1x1x10xf32>
    tpu.vector_store %arg17[%c0_259, %c0_260, %c0_261], %296 {strides = array<i32>} : memref<1x1x10xf32, #tpu.memory_space<vmem>>, vector<1x1x10xf32>,
    return
  }
  func.func @transform_0(%arg0: i32) -> (i32, i32, i32) {
    %c0_i32 = arith.constant 0 : i32
    %c0_i32_0 = arith.constant 0 : i32
    %c0_i32_1 = arith.constant 0 : i32
    return %arg0, %c0_i32, %c0_i32_0 : i32, i32, i32
  }
  func.func @transform_1(%arg0: i32) -> (i32, i32) {
    %c0_i32 = arith.constant 0 : i32
    %c0_i32_0 = arith.constant 0 : i32
    %c0_i32_1 = arith.constant 0 : i32
    return %c0_i32, %c0_i32_0 : i32, i32
  }
  func.func @transform_2(%arg0: i32) -> (i32, i32) {
    %c0_i32 = arith.constant 0 : i32
    %c0_i32_0 = arith.constant 0 : i32
    %c0_i32_1 = arith.constant 0 : i32
    return %c0_i32, %c0_i32_0 : i32, i32
  }
  func.func @transform_3(%arg0: i32) -> (i32, i32) {
    %c0_i32 = arith.constant 0 : i32
    %c0_i32_0 = arith.constant 0 : i32
    %c0_i32_1 = arith.constant 0 : i32
    return %c0_i32, %c0_i32_0 : i32, i32
  }
  func.func @transform_4(%arg0: i32) -> (i32, i32) {
    %c0_i32 = arith.constant 0 : i32
    %c0_i32_0 = arith.constant 0 : i32
    %c0_i32_1 = arith.constant 0 : i32
    return %c0_i32, %c0_i32_0 : i32, i32
  }
  func.func @transform_5(%arg0: i32) -> (i32, i32) {
    %c0_i32 = arith.constant 0 : i32
    %c0_i32_0 = arith.constant 0 : i32
    %c0_i32_1 = arith.constant 0 : i32
    return %c0_i32, %c0_i32_0 : i32, i32
  }
  func.func @transform_6(%arg0: i32) -> (i32, i32) {
    %c0_i32 = arith.constant 0 : i32
    %c0_i32_0 = arith.constant 0 : i32
    %c0_i32_1 = arith.constant 0 : i32
    return %c0_i32, %c0_i32_0 : i32, i32
  }
  func.func @transform_7(%arg0: i32) -> (i32, i32) {
    %c0_i32 = arith.constant 0 : i32
    %c0_i32_0 = arith.constant 0 : i32
    %c0_i32_1 = arith.constant 0 : i32
    return %c0_i32, %c0_i32_0 : i32, i32
  }
  func.func @transform_8(%arg0: i32) -> (i32, i32) {
    %c0_i32 = arith.constant 0 : i32
    %c0_i32_0 = arith.constant 0 : i32
    %c0_i32_1 = arith.constant 0 : i32
    return %c0_i32, %c0_i32_0 : i32, i32
  }
  func.func @transform_9(%arg0: i32) -> (i32, i32) {
    %c0_i32 = arith.constant 0 : i32
    %c0_i32_0 = arith.constant 0 : i32
    %c0_i32_1 = arith.constant 0 : i32
    return %c0_i32, %c0_i32_0 : i32, i32
  }
  func.func @transform_10(%arg0: i32) -> (i32, i32) {
    %c0_i32 = arith.constant 0 : i32
    %c0_i32_0 = arith.constant 0 : i32
    %c0_i32_1 = arith.constant 0 : i32
    return %c0_i32, %c0_i32_0 : i32, i32
  }
  func.func @transform_11(%arg0: i32) -> (i32, i32) {
    %c0_i32 = arith.constant 0 : i32
    %c0_i32_0 = arith.constant 0 : i32
    %c0_i32_1 = arith.constant 0 : i32
    return %c0_i32, %c0_i32_0 : i32, i32
  }
  func.func @transform_12(%arg0: i32) -> (i32, i32) {
    %c0_i32 = arith.constant 0 : i32
    %c0_i32_0 = arith.constant 0 : i32
    %c0_i32_1 = arith.constant 0 : i32
    return %c0_i32, %c0_i32_0 : i32, i32
  }
  func.func @transform_13(%arg0: i32) -> (i32, i32) {
    %c0_i32 = arith.constant 0 : i32
    %c0_i32_0 = arith.constant 0 : i32
    %c0_i32_1 = arith.constant 0 : i32
    return %c0_i32, %c0_i32_0 : i32, i32
  }
  func.func @transform_14(%arg0: i32) -> (i32, i32) {
    %c0_i32 = arith.constant 0 : i32
    %c0_i32_0 = arith.constant 0 : i32
    %c0_i32_1 = arith.constant 0 : i32
    return %c0_i32, %c0_i32_0 : i32, i32
  }
  func.func @transform_15(%arg0: i32) -> (i32, i32) {
    %c0_i32 = arith.constant 0 : i32
    %c0_i32_0 = arith.constant 0 : i32
    %c0_i32_1 = arith.constant 0 : i32
    return %c0_i32, %c0_i32_0 : i32, i32
  }
  func.func @transform_16(%arg0: i32) -> (i32, i32, i32) {
    %c0_i32 = arith.constant 0 : i32
    %c0_i32_0 = arith.constant 0 : i32
    %c0_i32_1 = arith.constant 0 : i32
    return %arg0, %c0_i32, %c0_i32_0 : i32, i32, i32
  }
  func.func @transform_17(%arg0: i32) -> (i32, i32, i32) {
    %c0_i32 = arith.constant 0 : i32
    %c0_i32_0 = arith.constant 0 : i32
    %c0_i32_1 = arith.constant 0 : i32
    return %arg0, %c0_i32, %c0_i32_0 : i32, i32, i32
  }
}

</mosaic_0001>

<bundles_post_ra>
// kernel: resnet_with_features_forward.1
= control target key start
LH: loop header
LB: loop body
LE: loop exit
PB: predicated region body
PF: predicated region fallthrough
CT: control target
= control target key end

     0   :  { %s18109_s0 = inlined_call_operand.vmem [shape: bf16[2,328,8], index: 0, kind: input, shape index: {}]   ;;  %s18110_s1 = inlined_call_operand.vmem [shape: bf16[80,288], index: 1, kind: input, shape index: {}]   ;;  %s18111_s2 = inlined_call_operand.vmem [shape: f32[288,1], index: 2, kind: input, shape index: {}]   ;;  %s18112_s3 = inlined_call_operand.vmem [shape: f32[80,1], index: 3, kind: input, shape index: {}]   ;;  %s18113_s4 = inlined_call_operand.vmem [shape: bf16[72,16], index: 4, kind: input, shape index: {}]   ;;  %s18114_s5 = inlined_call_operand.vmem [shape: f32[1,16], index: 5, kind: input, shape index: {}]   ;;  %s18115_s6 = inlined_call_operand.vmem [shape: bf16[144,16], index: 6, kind: input, shape index: {}]   ;;  %s18116_s7 = inlined_call_operand.vmem [shape: f32[1,16], index: 7, kind: input, shape index: {}]   ;;  %s18117_s8 = inlined_call_operand.vmem [shape: bf16[144,16], index: 8, kind: input, shape index: {}]   ;;  %s18118_s9 = inlined_call_operand.vmem [shape: f32[1,16], index: 9, kind: input, shape index: {}]   ;;  %s18119_s10 = inlined_call_operand.vmem [shape: bf16[144,64], index: 10, kind: input, shape index: {}]   ;;  %s18120_s11 = inlined_call_operand.vmem [shape: f32[1,64], index: 11, kind: input, shape index: {}]   ;;  %s18121_s12 = inlined_call_operand.vmem [shape: bf16[288,32], index: 12, kind: input, shape index: {}]   ;;  %s18122_s13 = inlined_call_operand.vmem [shape: f32[1,32], index: 13, kind: input, shape index: {}]   ;;  %s18123_s14 = inlined_call_operand.vmem [shape: f32[32,10], index: 14, kind: input, shape index: {}]   ;;  %s18124_s15 = inlined_call_operand.vmem [shape: f32[1,10], index: 15, kind: input, shape index: {}]   ;;  %s18125_s16 = inlined_call_operand.hbm [shape: f32[2,1,10], index: 16, kind: output, shape index: {0}]   ;;  %s18126_s17 = inlined_call_operand.hbm [shape: f32[2,1,32], index: 17, kind: output, shape index: {1}]  }
   0x1   :  { %18207 = sst [smem:[#allocation68_spill]] %s18109_s0 }
   0x2   :  { %18208 = sst [smem:[#allocation69_spill]] %s18110_s1 }
   0x3   :  { %18209 = sst [smem:[#allocation70_spill]] %s18111_s2 }
   0x4   :  { %18210 = sst [smem:[#allocation71_spill]] %s18112_s3 }
   0x5   :  { %18211 = sst [smem:[#allocation72_spill]] %s18113_s4 }
   0x6   :  { %18212 = sst [smem:[#allocation73_spill]] %s18114_s5 }
   0x7   :  { %18213 = sst [smem:[#allocation74_spill]] %s18115_s6 }
   0x8   :  { %18214 = sst [smem:[#allocation75_spill]] %s18116_s7 }
   0x9   :  { %23 = vsyncpa [#allocation6], 0 }
   0xa   :  { %25 = vsyncpa [#allocation6 + $0x1], 0 }
   0xb   :  { %26 = vsyncpa [#allocation8], 0 }
   0xc   :  { %28 = vsyncpa [#allocation8 + $0x1], 0  ;;  %s13626_s24 = smov 0   ;;  %s13628_s25 = smov 0  }
   0xd   :  { %s13630_s26 = smov 0   ;;  %s13632_s27 = smov 0  }
   0xe LB: > { %18215 = sst [smem:[#allocation11_spill]] %s13527_s26  ;;  %s13647_s28 = sadd.s32 4294967295, %s13531_s27   ;;  %s13531_s27 = sphi %s13632_s27, %s18456_s27   ;;  %s13527_s26 = sphi %s13630_s26, %s18458_s26   ;;  %s13523_s25 = sphi %s13628_s25, %s18460_s25   ;;  %s13519_s24 = sphi %s13626_s24, %s18459_s24  }
   0xf   : > { %s12080_s29 = sadd.s32 4294967294, %s13531_s27   ;;  %s13651_s0 = sadd.s32 1, %s13531_s27  }
  0x10   : > { %18216 = sst [smem:[#allocation12_spill]] %s13651_s0  ;;  %s382_s30 = sadd.s32 1, %s13527_s26 }
  0x11   : > { %s379_s18 = ssub.s32 %s13531_s27, %s13651_s0  ;;  %p392_p0 = scmp.ne.s32.totalorder %s13527_s26, %s13523_s25 }
  0x12   : > { %p380_p1 = scmp.eq.s32.totalorder %s379_s18, 0  ;;  %p393_p2 = scmp.eq.s32.totalorder %s13647_s28, 1 }
  0x13   : > { %p398_p3 = scmp.ne.s32.totalorder %s13523_s25, %s13519_s24  ;;  %p399_p4 = scmp.eq.s32.totalorder %s12080_s29, 1 }
  0x14   : > { %s13662_s19 = scalar_select %p380_p1, %s13527_s26, %s382_s30  }
  0x15   : > { %p13664_p5 = por %p393_p2, %p392_p0  ;;  %p13668_p6 = por %p399_p4, %p398_p3 }
  0x16   : > { %18217 = sst [smem:[#allocation13_spill]] %s13662_s19  ;;  %p12083_p7 = scmp.ge.s32.totalorder %s13531_s27, 1 }
  0x17   : > { %s18219_s20 = scalar_select %p13668_p6, 1, 0 }
  0x18   : > { %p496_p8 = scmp.lt.s32.totalorder %s13531_s27, 3 }
  0x19   : > { %18220 = sst [smem:[#allocation14_spill]] %s18219_s20 }
  0x1a   : > { %p497_p9 = pnand %p12083_p7, %p496_p8 }
  0x1c   : > { %500 = sbr.rel (%p497_p9) target bundleno = 3886 (0xf2e), region = 84 }
  0x21   : > { %vm1036_vm0 = vcmask 1043456   ;;  %s18221_s4 = sld [smem:[#allocation72_spill]]  ;;  %p551_p10 = scmp.lt.s32.totalorder %s13647_s28, 1  ;;  %vm981_vm1 = vcmask 64512   ;;  %vm1282_vm2 = vcmask 1046528   ;;  %vm2245_vm4 = vcmask 1045504  }
  0x22   : > { %s18222_s0 = sld [smem:[#allocation68_spill]]  ;;  %vm832_vm3 = vsmask.f32 7424  ;;  %vm1877_vm5 = vsmask.f32 6400  ;;  %vm3208_vm7 = vcmask 1044480  }
  0x23   : > { %s552_s21 = scalar_select %p551_p10, %s13647_s28, 1  ;;  %vm2840_vm6 = vsmask.f32 5376  ;;  %vm557_vm8 = vcmask 130048   ;;  %vm640_vm9 = vcmask 261120   ;;  %vm11935_vm10 = vcmask 253952  }
  0x24   : > { %s18223_s2 = sld [smem:[#allocation70_spill]]  ;;  %s13535_s30 = smov 96  }
  0x25   : > { %s13348_s22 = smul.u32 164, %s552_s21  ;;  %s18233_s3 = sld [smem:[#allocation71_spill]] }
  0x26   : > { %s18244_s6 = sld [smem:[#allocation74_spill]] }
  0x27   : > { %v1278_v0 = vld [vmem:[%s18221_s4 + $0x8] sm:$0xf]  ;;  %v738_v1 = vld [vmem:[%s18221_s4 + $0x4] sm:$0xf]  ;;  %v736_v4 = vld [vmem:[%s18221_s4] sm:$0xf] }
  0x28   : > { %v1375_v2 = vsel %vm1036_vm0, %v1278_v0, 0  ;;  %v1038_v3 = vsel %vm1036_vm0, %v738_v1, 0  ;;  %v1549_v5 = vld [vmem:[%s18221_s4 + $0xc] sm:$0xf]  ;;  %v1176_v6 = vsel %vm1036_vm0, %v736_v4, 0  ;;  %s13695_s20 = scalar_lea.vmem %s18222_s0, %s13348_s22  ;;  %s18251_s5 = sld [smem:[#allocation73_spill]] }
  0x29   : > { %1384 = vmatpush.bf16.msra.mxu2 %v1375_v2  ;;  %1047 = vmatpush.bf16.msra.mxu0 %v1038_v3  ;;  %v1735_v7 = vsel %vm1036_vm0, %v1549_v5, 0  ;;  %v13345_v8 = vld [vmem:[%s13695_s20] sm:$0xf0]  ;;  %v13230_v9 = vld [vmem:[%s13695_s20 + $0x8] sm:$0xff]  ;;  %v13346_v10 = vld [vmem:[%s13695_s20] sm:$0xe] }
  0x2a   : > { %1185 = vmatpush.bf16.msra.mxu1 %v1176_v6  ;;  %1744 = vmatpush.bf16.msra.mxu3 %v1735_v7  ;;  %v13347_v11 = vor.u32 %v13346_v10, %v13345_v8  ;;  %v13342_v12 = vld [vmem:[%s13695_s20] sm:$0xff]   ;;  %v1512_v13 = vld [vmem:[%s13695_s20 + $0x8] sm:$0xe]  ;;  %v13703_v14 = vld [vmem:[%s13695_s20 + $0xc] sm:$0xf]  ;;  %v1284_v15 = vrot.slane %v13230_v9, 1 }
  0x2b   : > { %v834_v16 = vshrl.u32 %v13342_v12, 16  ;;  %v836_v17 = vshll.u32 %v13342_v12, 16  ;;  %v841_v18 = vshll.u32 %v13230_v9, 16  ;;  %v13707_v19 = vld [vmem:[%s13695_s20 + $0x10] sm:$0xff]  ;;  %v1587_v21 = vunpack.c.l.b16 %v1512_v13  ;;  %v13724_v36 = vld [vmem:[%s13695_s20 + $0x18] sm:$0xff]  ;;  %v13736_v47 = vld [vmem:[%s13695_s20 + $0x20] sm:$0xff] }
  0x2c   : > { %v1283_v20 = vrot.slane %v13347_v11, 1  ;;  %v1588_v22 = vunpack.c.l.b16 %v13703_v14  ;;  %v1644_v27 = vrot.slane %v13707_v19, 1  ;;  %v13231_v32 = vld [vmem:[%s13695_s20 + $0x10] sm:$0xff]  ;;  %v845_v33 = vshrl.u32 %v13230_v9, 16  ;;  %v13232_v43 = vld [vmem:[%s13695_s20 + $0x18] sm:$0xff]  ;;  %v13233_v54 = vld [vmem:[%s13695_s20 + $0x20] sm:$0xff] }
  0x2d   : > { %12171 = vmatmul.msk.bf16.vlgmr.msra.gmra.mxu1 %vm981_vm1, %v13342_v12  ;;  %v838_v23 = vrot.slane %v836_v17, 1  ;;  %v843_v24 = vrot.slane %v841_v18, 1  ;;  %v849_v34 = vshll.u32 %v13231_v32, 16  ;;  %v1286_v35 = vrot.slane %v13231_v32, 1  ;;  %v13748_v58 = vld [vmem:[%s13695_s20 + $0x28] sm:$0xff]  ;;  %v13251_v5 = vld [vmem:[%s13695_s20 + $0x30] sm:$0xff] }
  0x2e   : > { %v1285_v25 = vsel %vm1282_vm2, %v1283_v20, %v1284_v15  ;;  %v13713_v26 = vpack.c.b16 %v1588_v22, %v1587_v21  ;;  %v1646_v40 = vrot.slane %v13724_v36, 1  ;;  %v853_v44 = vshrl.u32 %v13231_v32, 16  ;;  %v13234_v1 = vld [vmem:[%s13695_s20 + $0x28] sm:$0xff]  ;;  %v13235_v12 = vld [vmem:[%s13695_s20 + $0x30] sm:$0xff]  ;;  %v13252_v17 = vld [vmem:[%s13695_s20 + $0x38] sm:$0xff]  ;;  %s18328_s7 = sld [smem:[#allocation75_spill]] }
  0x2f   : > { %12189 = vmatmul.msk.bf16.vlgmr.msra.gmra.mxu2 %vm981_vm1, %v1285_v25  ;;  %v839_v28 = vor.u32 %v838_v23, %v834_v16  ;;  %v847_v37 = vor.u32 %v845_v33, %v843_v24  ;;  %v851_v38 = vrot.slane %v849_v34, 1  ;;  %v1287_v39 = vsel %vm1282_vm2, %v1284_v15, %v1286_v35  ;;  %s18452_s22 = sld [smem:[#allocation69_spill]]  ;;  %s18054_s0 = sand.u32 1, %s13523_s25  }
  0x30   : > { %v1643_v29 = vrot.slane %v13713_v26, 1  ;;  %v1647_v42 = vsel %vm1282_vm2, %v1644_v27, %v1646_v40  ;;  %v857_v45 = vshll.u32 %v13232_v43, 16  ;;  %v1288_v46 = vrot.slane %v13232_v43, 1  ;;  %s550_s19 = scalar_lea.vmem [#allocation7], %s18054_s0  ;;  %s11972_s23 = scalar_lea.sflag [#allocation8], %s18054_s0 }
  0x31   : > { %v844_v30 = vsel %vm832_vm3, %v839_v28, %v843_v24  ;;  %v852_v41 = vsel %vm832_vm3, %v847_v37, %v851_v38  ;;  %v855_v48 = vor.u32 %v853_v44, %v851_v38  ;;  %v1648_v51 = vrot.slane %v13736_v47, 1 }
  0x32   : > { %12153 = vmatmul.msk.bf16.vlgmr.msra.gmra.mxu0 %vm981_vm1, %v844_v30  ;;  %v1645_v31 = vsel %vm1282_vm2, %v1643_v29, %v1644_v27  ;;  %v859_v49 = vrot.slane %v857_v45, 1  ;;  %v1289_v50 = vsel %vm1282_vm2, %v1286_v35, %v1288_v46  ;;  %v861_v55 = vshrl.u32 %v13232_v43, 16  ;;  %v13236_v27 = vld [vmem:[%s13695_s20 + $0x38] sm:$0xff] }
  0x33   : > { %12275 = vmatmul.msk.bf16.vlgmr.msra.gmra.mxu3 %vm981_vm1, %v1645_v31  ;;  %v1649_v53 = vsel %vm1282_vm2, %v1646_v40, %v1648_v51  ;;  %v865_v56 = vshll.u32 %v13233_v54, 16  ;;  %v1290_v57 = vrot.slane %v13233_v54, 1  ;;  %v1650_v62 = vrot.slane %v13748_v58, 1  ;;  %v13253_v31 = vld [vmem:[%s13695_s20 + $0x40] sm:$0xff] }
  0x34   : > { %v860_v52 = vsel %vm832_vm3, %v855_v48, %v859_v49  ;;  %v863_v59 = vor.u32 %v861_v55, %v859_v49  ;;  %v869_v2 = vshrl.u32 %v13233_v54, 16  ;;  %v873_v3 = vshll.u32 %v13234_v1, 16 }
  0x35   : > { %v867_v60 = vrot.slane %v865_v56, 1  ;;  %v1291_v61 = vsel %vm1282_vm2, %v1288_v46, %v1290_v57  ;;  %v1651_v0 = vsel %vm1282_vm2, %v1648_v51, %v1650_v62  ;;  %v1292_v4 = vrot.slane %v13234_v1, 1  ;;  %v13238_v51 = vld [vmem:[%s13695_s20 + $0x48] sm:$0xff]  ;;  %v13255_v56 = vld [vmem:[%s13695_s20 + $0x50] sm:$0xff] }
  0x36   : > { %v875_v7 = vrot.slane %v873_v3, 1  ;;  %v877_v13 = vshrl.u32 %v13234_v1, 16  ;;  %v881_v15 = vshll.u32 %v13235_v12, 16  ;;  %v1294_v16 = vrot.slane %v13235_v12, 1 }
  0x37   : > { %v868_v63 = vsel %vm832_vm3, %v863_v59, %v867_v60  ;;  %v871_v6 = vor.u32 %v869_v2, %v867_v60  ;;  %v1293_v8 = vsel %vm1282_vm2, %v1290_v57, %v1292_v4  ;;  %v1654_v23 = vrot.slane %v13252_v17, 1 }
  0x38   : > { %v879_v18 = vor.u32 %v877_v13, %v875_v7  ;;  %v883_v20 = vrot.slane %v881_v15, 1  ;;  %v1295_v21 = vsel %vm1282_vm2, %v1292_v4, %v1294_v16  ;;  %v885_v28 = vshrl.u32 %v13235_v12, 16  ;;  %v13256_v15 = vld [vmem:[%s13695_s20 + $0x58] sm:$0xff] }
  0x39   : > { %v876_v10 = vsel %vm832_vm3, %v871_v6, %v875_v7  ;;  %v889_v29 = vshll.u32 %v13236_v27, 16  ;;  %v1296_v30 = vrot.slane %v13236_v27, 1  ;;  %v1656_v35 = vrot.slane %v13253_v31, 1 }
  0x3a   : > { %v884_v24 = vsel %vm832_vm3, %v879_v18, %v883_v20  ;;  %v893_v40 = vshrl.u32 %v13236_v27, 16  ;;  %v1300_v55 = vrot.slane %v13238_v51, 1 }
  0x3b   : > { %v891_v33 = vrot.slane %v889_v29, 1  ;;  %v1297_v34 = vsel %vm1282_vm2, %v1294_v16, %v1296_v30  ;;  %v1657_v38 = vsel %vm1282_vm2, %v1654_v23, %v1656_v35 }
  0x3d   : > { %12172 = vmatmul.msk.bf16.gmra.mxu1 %vm981_vm1, %v13230_v9  ;;  %v1652_v9 = vrot.slane %v13251_v5, 1  ;;  %v895_v44 = vor.u32 %v893_v40, %v891_v33  ;;  %v13239_v5 = vld [vmem:[%s13695_s20 + $0x50] sm:$0xff] }
  0x3e   : > { %v1302_v13 = vrot.slane %v13239_v5, 1 }
  0x3f   : > { %12190 = vmatmul.msk.bf16.gmra.mxu2 %vm981_vm1, %v1287_v39  ;;  %v1653_v11 = vsel %vm1282_vm2, %v1650_v62, %v1652_v9  ;;  %v1655_v25 = vsel %vm1282_vm2, %v1652_v9, %v1654_v23  ;;  %v13237_v39 = vld [vmem:[%s13695_s20 + $0x40] sm:$0xff]  ;;  %v909_v9 = vshrl.u32 %v13238_v51, 16  ;;  %v1662_v23 = vrot.slane %v13256_v15, 1 }
  0x42   : > { %12154 = vmatmul.msk.bf16.gmra.mxu0 %vm981_vm1, %v852_v41  ;;  %v897_v41 = vshll.u32 %v13237_v39, 16 }
  0x43   : > { %12276 = vmatmul.msk.bf16.gmra.mxu3 %vm981_vm1, %v1647_v42  ;;  %v1298_v42 = vrot.slane %v13237_v39, 1 }
  0x44   : > { %v899_v45 = vrot.slane %v897_v41, 1 }
  0x45   : > { %v1299_v46 = vsel %vm1282_vm2, %v1296_v30, %v1298_v42  ;;  %v1301_v60 = vsel %vm1282_vm2, %v1298_v42, %v1300_v55 }
  0x46   : > { %v900_v49 = vsel %vm832_vm3, %v895_v44, %v899_v45  ;;  %v13257_v44 = vld [vmem:[%s13695_s20 + $0x60] sm:$0xff] }
  0x4d   : > { %12173 = vmatmul.msk.bf16.gmra.mxu1 %vm981_vm1, %v13231_v32  ;;  %v887_v32 = vor.u32 %v885_v28, %v883_v20 }
  0x4f   : > { %12191 = vmatmul.msk.bf16.gmra.mxu2 %vm981_vm1, %v1289_v50  ;;  %v892_v37 = vsel %vm832_vm3, %v887_v32, %v891_v33 }
  0x52   : > { %12155 = vmatmul.msk.bf16.gmra.mxu0 %vm981_vm1, %v860_v52  ;;  %v901_v52 = vshrl.u32 %v13237_v39, 16 }
  0x53   : > { %12277 = vmatmul.msk.bf16.gmra.mxu3 %vm981_vm1, %v1649_v53  ;;  %v905_v53 = vshll.u32 %v13238_v51, 16 }
  0x54   : > { %v903_v57 = vor.u32 %v901_v52, %v899_v45 }
  0x55   : > { %v907_v59 = vrot.slane %v905_v53, 1 }
  0x57   : > { %v911_v18 = vor.u32 %v909_v9, %v907_v59 }
  0x5d   : > { %12174 = vmatmul.msk.bf16.gmra.mxu1 %vm981_vm1, %v13232_v43  ;;  %v13254_v43 = vld [vmem:[%s13695_s20 + $0x48] sm:$0xff] }
  0x5e   : > { %v1658_v48 = vrot.slane %v13254_v43, 1 }
  0x5f   : > { %12192 = vmatmul.msk.bf16.gmra.mxu2 %vm981_vm1, %v1291_v61  ;;  %v1660_v61 = vrot.slane %v13255_v56, 1 }
  0x60   : > { %v1659_v50 = vsel %vm1282_vm2, %v1656_v35, %v1658_v48 }
  0x61   : > { %v1663_v30 = vsel %vm1282_vm2, %v1660_v61, %v1662_v23 }
  0x62   : > { %12156 = vmatmul.msk.bf16.gmra.mxu0 %vm981_vm1, %v868_v63  ;;  %v908_v63 = vsel %vm832_vm3, %v903_v57, %v907_v59 }
  0x63   : > { %12278 = vmatmul.msk.bf16.gmra.mxu3 %vm981_vm1, %v1651_v0 }
  0x6d   : > { %12175 = vmatmul.msk.bf16.gmra.mxu1 %vm981_vm1, %v13233_v54 }
  0x6f   : > { %12193 = vmatmul.msk.bf16.gmra.mxu2 %vm981_vm1, %v1293_v8 }
  0x72   : > { %12157 = vmatmul.msk.bf16.gmra.mxu0 %vm981_vm1, %v876_v10  ;;  %v913_v10 = vshll.u32 %v13239_v5, 16 }
  0x73   : > { %12279 = vmatmul.msk.bf16.gmra.mxu3 %vm981_vm1, %v1653_v11 }
  0x74   : > { %v915_v20 = vrot.slane %v913_v10, 1 }
  0x76   : > { %v916_v28 = vsel %vm832_vm3, %v911_v18, %v915_v20 }
  0x7d   : > { %12176 = vmatmul.msk.bf16.gmra.mxu1 %vm981_vm1, %v13234_v1  ;;  %v1661_v1 = vsel %vm1282_vm2, %v1658_v48, %v1660_v61 }
  0x7f   : > { %12194 = vmatmul.msk.bf16.gmra.mxu2 %vm981_vm1, %v1295_v21  ;;  %v1303_v21 = vsel %vm1282_vm2, %v1300_v55, %v1302_v13 }
  0x82   : > { %12158 = vmatmul.msk.bf16.gmra.mxu0 %vm981_vm1, %v884_v24 }
  0x83   : > { %12280 = vmatmul.msk.bf16.gmra.mxu3 %vm981_vm1, %v1655_v25 }
  0x8d   : > { %12177 = vmatmul.msk.bf16.gmra.mxu1 %vm981_vm1, %v13235_v12 }
  0x8f   : > { %12195 = vmatmul.msk.bf16.gmra.mxu2 %vm981_vm1, %v1297_v34  ;;  %v13240_v34 = vld [vmem:[%s13695_s20 + $0x58] sm:$0xff] }
  0x90   : > { %v921_v40 = vshll.u32 %v13240_v34, 16  ;;  %v1304_v43 = vrot.slane %v13240_v34, 1 }
  0x92   : > { %12159 = vmatmul.msk.bf16.gmra.mxu0 %vm981_vm1, %v892_v37 }
  0x93   : > { %12281 = vmatmul.msk.bf16.gmra.mxu3 %vm981_vm1, %v1657_v38 }
  0x9d   : > { %12178 = vmatmul.msk.bf16.gmra.mxu1 %vm981_vm1, %v13236_v27 }
  0x9f   : > { %12196 = vmatmul.msk.bf16.gmra.mxu2 %vm981_vm1, %v1299_v46 }
  0xa2   : > { %12160 = vmatmul.msk.bf16.gmra.mxu0 %vm981_vm1, %v900_v49  ;;  %v923_v49 = vrot.slane %v921_v40, 1  ;;  %v13259_v40 = vld [vmem:[%s13695_s20 + $0x70] sm:$0xff] }
  0xa3   : > { %12282 = vmatmul.msk.bf16.gmra.mxu3 %vm981_vm1, %v1659_v50  ;;  %v1305_v50 = vsel %vm1282_vm2, %v1302_v13, %v1304_v43 }
  0xaa   : > { %v1187_v54 = vpop.f32.mrf.mxu1 }
  0xad   : > { %12179 = vmatmul.msk.bf16.gmra.mxu1 %vm981_vm1, %v13237_v39  ;;  %v917_v39 = vshrl.u32 %v13239_v5, 16 }
  0xaf   : > { %v1049_v62 = vpop.f32.mrf.mxu0  ;;  %12197 = vmatmul.msk.bf16.gmra.mxu2 %vm981_vm1, %v1301_v60  ;;  %v919_v48 = vor.u32 %v917_v39, %v915_v20 }
  0xb0   : > { %v1188_v0 = vadd.f32 %v1187_v54, %v1049_v62  ;;  %v13241_v62 = vld [vmem:[%s13695_s20 + $0x60] sm:$0xff] }
  0xb1   : > { %v924_v55 = vsel %vm832_vm3, %v919_v48, %v923_v49 }
  0xb2   : > { %v1189_v2 = vpop.f32.mrf.mxu1  ;;  %12161 = vmatmul.msk.bf16.gmra.mxu0 %vm981_vm1, %v908_v63  ;;  %v1386_v3 = vpop.f32.mrf.mxu2 }
  0xb3   : > { %12283 = vmatmul.msk.bf16.gmra.mxu3 %vm981_vm1, %v1661_v1  ;;  %v1476_v4 = vadd.f32 %v1386_v3, %v1188_v0  ;;  %v929_v3 = vshll.u32 %v13241_v62, 16 }
  0xb6   : > { %v1746_v6 = vpop.f32.mrf.mxu3 }
  0xb7   : > { %v13804_v7 = vadd.f32 %v1746_v6, %v1476_v4  ;;  %v1051_v8 = vpop.f32.mrf.mxu0  ;;  %v1306_v6 = vrot.slane %v13241_v62, 1 }
  0xb8   : > { %v1190_v11 = vadd.f32 %v1189_v2, %v1051_v8  ;;  %v925_v2 = vshrl.u32 %v13240_v34, 16  ;;  %v13258_v8 = vld [vmem:[%s13695_s20 + $0x68] sm:$0xff] }
  0xb9   : > { %v1307_v13 = vsel %vm1282_vm2, %v1304_v43, %v1306_v6  ;;  %v1666_v15 = vrot.slane %v13258_v8, 1 }
  0xba   : > { %v1192_v12 = vpop.f32.mrf.mxu1  ;;  %v1388_v16 = vpop.f32.mrf.mxu2 }
  0xbb   : > { %v1477_v17 = vadd.f32 %v1388_v16, %v1190_v11  ;;  %v927_v11 = vor.u32 %v925_v2, %v923_v49 }
  0xbd   : > { %12180 = vmatmul.msk.bf16.gmra.mxu1 %vm981_vm1, %v13238_v51  ;;  %v1664_v51 = vrot.slane %v13257_v44, 1 }
  0xbe   : > { %v1748_v24 = vpop.f32.mrf.mxu3 }
  0xbf   : > { %v13809_v25 = vadd.f32 %v1748_v24, %v1477_v17  ;;  %v1054_v27 = vpop.f32.mrf.mxu0  ;;  %12198 = vmatmul.msk.bf16.gmra.mxu2 %vm981_vm1, %v1303_v21  ;;  %v1665_v57 = vsel %vm1282_vm2, %v1662_v23, %v1664_v51  ;;  %v1667_v23 = vsel %vm1282_vm2, %v1664_v51, %v1666_v15 }
  0xc0   : > { %v1193_v29 = vadd.f32 %v1192_v12, %v1054_v27  ;;  %v931_v12 = vrot.slane %v929_v3, 1 }
  0xc2   : > { %v1194_v31 = vpop.f32.mrf.mxu1  ;;  %12162 = vmatmul.msk.bf16.gmra.mxu0 %vm981_vm1, %v916_v28  ;;  %v1391_v32 = vpop.f32.mrf.mxu2  ;;  %v932_v20 = vsel %vm832_vm3, %v927_v11, %v931_v12 }
  0xc3   : > { %12284 = vmatmul.msk.bf16.gmra.mxu3 %vm981_vm1, %v1663_v30  ;;  %v1478_v33 = vadd.f32 %v1391_v32, %v1193_v29  ;;  %v13242_v29 = vld [vmem:[%s13695_s20 + $0x68] sm:$0xff] }
  0xc4   : > { %v1308_v39 = vrot.slane %v13242_v29, 1 }
  0xc6   : > { %v1751_v35 = vpop.f32.mrf.mxu3 }
  0xc7   : > { %v13817_v37 = vadd.f32 %v1751_v35, %v1478_v33  ;;  %v1056_v38 = vpop.f32.mrf.mxu0  ;;  %v933_v33 = vshrl.u32 %v13241_v62, 16 }
  0xc8   : > { %v1195_v41 = vadd.f32 %v1194_v31, %v1056_v38 }
  0xc9   : > { %v935_v43 = vor.u32 %v933_v33, %v931_v12 }
  0xca   : > { %v1197_v42 = vpop.f32.mrf.mxu1  ;;  %v1393_v45 = vpop.f32.mrf.mxu2 }
  0xcb   : > { %v1479_v46 = vadd.f32 %v1393_v45, %v1195_v41  ;;  %v1309_v45 = vsel %vm1282_vm2, %v1306_v6, %v1308_v39 }
  0xcd   : > { %12181 = vmatmul.msk.bf16.gmra.mxu1 %vm981_vm1, %v13239_v5 }
  0xce   : > { %v1753_v52 = vpop.f32.mrf.mxu3 }
  0xcf   : > { %v13822_v53 = vadd.f32 %v1753_v52, %v1479_v46  ;;  %v1059_v54 = vpop.f32.mrf.mxu0  ;;  %12199 = vmatmul.msk.bf16.gmra.mxu2 %vm981_vm1, %v1305_v50  ;;  %v1668_v46 = vrot.slane %v13259_v40, 1  ;;  %v13261_v40 = vld [vmem:[%s13695_s20 + $0x80] sm:$0xff] }
  0xd0   : > { %v1198_v56 = vadd.f32 %v1197_v42, %v1059_v54 }
  0xd1   : > { %v1669_v54 = vsel %vm1282_vm2, %v1666_v15, %v1668_v46 }
  0xd2   : > { %v1199_v59 = vpop.f32.mrf.mxu1  ;;  %12163 = vmatmul.msk.bf16.gmra.mxu0 %vm981_vm1, %v924_v55  ;;  %v1396_v60 = vpop.f32.mrf.mxu2 }
  0xd3   : > { %12285 = vmatmul.msk.bf16.gmra.mxu3 %vm981_vm1, %v1665_v57  ;;  %v1480_v61 = vadd.f32 %v1396_v60, %v1198_v56 }
  0xd6   : > { %v1756_v63 = vpop.f32.mrf.mxu3 }
  0xd7   : > { %v13830_v0 = vadd.f32 %v1756_v63, %v1480_v61  ;;  %v1061_v1 = vpop.f32.mrf.mxu0  ;;  %v941_v63 = vshrl.u32 %v13242_v29, 16 }
  0xd8   : > { %v1200_v4 = vadd.f32 %v1199_v59, %v1061_v1  ;;  %v13243_v59 = vld [vmem:[%s13695_s20 + $0x70] sm:$0xff] }
  0xd9   : > { %v945_v1 = vshll.u32 %v13243_v59, 16  ;;  %v949_v33 = vshrl.u32 %v13243_v59, 16 }
  0xda   : > { %v1202_v5 = vpop.f32.mrf.mxu1  ;;  %v1398_v9 = vpop.f32.mrf.mxu2 }
  0xdb   : > { %v1481_v10 = vadd.f32 %v1398_v9, %v1200_v4  ;;  %v1310_v4 = vrot.slane %v13243_v59, 1 }
  0xdd   : > { %12182 = vmatmul.msk.bf16.gmra.mxu1 %vm981_vm1, %v13240_v34  ;;  %v937_v34 = vshll.u32 %v13242_v29, 16  ;;  %v1311_v11 = vsel %vm1282_vm2, %v1308_v39, %v1310_v4 }
  0xde   : > { %v1758_v16 = vpop.f32.mrf.mxu3 }
  0xdf   : > { %v13835_v17 = vadd.f32 %v1758_v16, %v1481_v10  ;;  %v1064_v18 = vpop.f32.mrf.mxu0  ;;  %12200 = vmatmul.msk.bf16.gmra.mxu2 %vm981_vm1, %v1307_v13  ;;  %v939_v44 = vrot.slane %v937_v34, 1  ;;  %v947_v10 = vrot.slane %v945_v1, 1 }
  0xe0   : > { %v1203_v21 = vadd.f32 %v1202_v5, %v1064_v18  ;;  %v13260_v5 = vld [vmem:[%s13695_s20 + $0x78] sm:$0xff] }
  0xe1   : > { %v940_v51 = vsel %vm832_vm3, %v935_v43, %v939_v44  ;;  %v943_v9 = vor.u32 %v941_v63, %v939_v44  ;;  %v1670_v12 = vrot.slane %v13260_v5, 1  ;;  %v951_v43 = vor.u32 %v949_v33, %v947_v10  ;;  %v13895_v33 = vld [vmem:[%s13695_s20 + $0x88] sm:$0xff] }
  0xe2   : > { %v1204_v24 = vpop.f32.mrf.mxu1  ;;  %12164 = vmatmul.msk.bf16.gmra.mxu0 %vm981_vm1, %v932_v20  ;;  %v1401_v27 = vpop.f32.mrf.mxu2 }
  0xe3   : > { %12286 = vmatmul.msk.bf16.gmra.mxu3 %vm981_vm1, %v1667_v23  ;;  %v1482_v28 = vadd.f32 %v1401_v27, %v1203_v21  ;;  %v948_v18 = vsel %vm832_vm3, %v943_v9, %v947_v10  ;;  %v1671_v21 = vsel %vm1282_vm2, %v1668_v46, %v1670_v12  ;;  %v1672_v46 = vrot.slane %v13261_v40, 1 }
  0xe4   : > { %v969_v40 = vshll.u32 %v13895_v33, 16 }
  0xe6   : > { %v1761_v30 = vpop.f32.mrf.mxu3 }
  0xe7   : > { %v13843_v31 = vadd.f32 %v1761_v30, %v1482_v28  ;;  %v1066_v32 = vpop.f32.mrf.mxu0  ;;  %v13244_v28 = vld [vmem:[%s13695_s20 + $0x78] sm:$0xff] }
  0xe8   : > { %v1205_v35 = vadd.f32 %v1204_v24, %v1066_v32  ;;  %v953_v34 = vshll.u32 %v13244_v28, 16  ;;  %v1312_v39 = vrot.slane %v13244_v28, 1 }
  0xea   : > { %v1207_v38 = vpop.f32.mrf.mxu1  ;;  %v1403_v41 = vpop.f32.mrf.mxu2  ;;  %v955_v44 = vrot.slane %v953_v34, 1 }
  0xeb   : > { %v1483_v42 = vadd.f32 %v1403_v41, %v1205_v35 }
  0xed   : > { %12183 = vmatmul.msk.bf16.gmra.mxu1 %vm981_vm1, %v13241_v62 }
  0xee   : > { %v1763_v48 = vpop.f32.mrf.mxu3 }
  0xef   : > { %v13848_v49 = vadd.f32 %v1763_v48, %v1483_v42  ;;  %v1069_v50 = vpop.f32.mrf.mxu0  ;;  %12201 = vmatmul.msk.bf16.gmra.mxu2 %vm981_vm1, %v1309_v45  ;;  %v1313_v45 = vsel %vm1282_vm2, %v1310_v4, %v1312_v39 }
  0xf0   : > { %v1208_v52 = vadd.f32 %v1207_v38, %v1069_v50 }
  0xf2   : > { %v1209_v55 = vpop.f32.mrf.mxu1  ;;  %12165 = vmatmul.msk.bf16.gmra.mxu0 %vm981_vm1, %v940_v51  ;;  %v1406_v56 = vpop.f32.mrf.mxu2 }
  0xf3   : > { %12287 = vmatmul.msk.bf16.gmra.mxu3 %vm981_vm1, %v1669_v54  ;;  %v1484_v57 = vadd.f32 %v1406_v56, %v1208_v52  ;;  %v956_v52 = vsel %vm832_vm3, %v951_v43, %v955_v44  ;;  %v1316_v43 = vrot.slane %v13895_v33, 1 }
  0xf6   : > { %v1766_v60 = vpop.f32.mrf.mxu3 }
  0xf7   : > { %v13856_v61 = vadd.f32 %v1766_v60, %v1484_v57  ;;  %v1071_v62 = vpop.f32.mrf.mxu0  ;;  %v13245_v60 = vld [vmem:[%s13695_s20 + $0x80] sm:$0xff] }
  0xf8   : > { %v1210_v2 = vadd.f32 %v1209_v55, %v1071_v62  ;;  %v1673_v55 = vsel %vm1282_vm2, %v1670_v12, %v1672_v46 }
  0xfa   : > { %v1212_v3 = vpop.f32.mrf.mxu1  ;;  %v1408_v6 = vpop.f32.mrf.mxu2 }
  0xfb   : > { %v1485_v8 = vadd.f32 %v1408_v6, %v1210_v2  ;;  %v957_v2 = vshrl.u32 %v13244_v28, 16  ;;  %v1314_v6 = vrot.slane %v13245_v60, 1 }
  0xfd   : > { %12184 = vmatmul.msk.bf16.gmra.mxu1 %vm981_vm1, %v13242_v29 }
  0xfe   : > { %v1768_v13 = vpop.f32.mrf.mxu3 }
  0xff   : > { %v13861_v15 = vadd.f32 %v1768_v13, %v1485_v8  ;;  %v1074_v16 = vpop.f32.mrf.mxu0  ;;  %12202 = vmatmul.msk.bf16.gmra.mxu2 %vm981_vm1, %v1311_v11  ;;  %v13262_v8 = vld [vmem:[%s13695_s20 + $0x88] sm:$0xff]  ;;  %v959_v11 = vor.u32 %v957_v2, %v955_v44  ;;  %v1315_v13 = vsel %vm1282_vm2, %v1312_v39, %v1314_v6  ;;  %v965_v39 = vshrl.u32 %v13245_v60, 16  ;;  %v13902_v44 = vld [vmem:[%s13695_s20 + $0x90] sm:$0xff] }
 0x100   : > { %v1213_v20 = vadd.f32 %v1212_v3, %v1074_v16  ;;  %v961_v3 = vshll.u32 %v13245_v60, 16  ;;  %v1674_v16 = vrot.slane %v13262_v8, 1 }
 0x102   : > { %v1214_v23 = vpop.f32.mrf.mxu1  ;;  %12166 = vmatmul.msk.bf16.gmra.mxu0 %vm981_vm1, %v948_v18  ;;  %v1411_v24 = vpop.f32.mrf.mxu2  ;;  %v963_v12 = vrot.slane %v961_v3, 1 }
 0x103   : > { %12288 = vmatmul.msk.bf16.gmra.mxu3 %vm981_vm1, %v1671_v21  ;;  %v1486_v27 = vadd.f32 %v1411_v24, %v1213_v20 }
 0x106   : > { %v1771_v29 = vpop.f32.mrf.mxu3 }
 0x107   : > { %v13869_v30 = vadd.f32 %v1771_v29, %v1486_v27  ;;  %v1076_v32 = vpop.f32.mrf.mxu0  ;;  %v1675_v27 = vsel %vm1282_vm2, %v1672_v46, %v1674_v16 }
 0x108   : > { %v1215_v35 = vadd.f32 %v1214_v23, %v1076_v32  ;;  %v964_v23 = vsel %vm832_vm3, %v959_v11, %v963_v12  ;;  %v2241_v11 = vld [vmem:[%s18221_s4 + $0x14] sm:$0xf] }
 0x10a   : > { %v1217_v38 = vpop.f32.mrf.mxu1  ;;  %v1413_v41 = vpop.f32.mrf.mxu2 }
 0x10b   : > { %v1487_v42 = vadd.f32 %v1413_v41, %v1215_v35 }
 0x10d   : > { %12185 = vmatmul.msk.bf16.gmra.mxu1 %vm981_vm1, %v13243_v59 }
 0x10e   : > { %v1773_v48 = vpop.f32.mrf.mxu3 }
 0x10f   : > { %v13874_v50 = vadd.f32 %v1773_v48, %v1487_v42  ;;  %v1079_v51 = vpop.f32.mrf.mxu0  ;;  %12203 = vmatmul.msk.bf16.gmra.mxu2 %vm981_vm1, %v1313_v45  ;;  %v967_v48 = vor.u32 %v965_v39, %v963_v12  ;;  %v1548_v12 = vld [vmem:[%s13695_s20 + $0x98] sm:$0x1] }
 0x110   : > { %v1218_v54 = vadd.f32 %v1217_v38, %v1079_v51  ;;  %v971_v51 = vrot.slane %v969_v40, 1 }
 0x112   : > { %v1219_v56 = vpop.f32.mrf.mxu1  ;;  %12167 = vmatmul.msk.bf16.gmra.mxu0 %vm981_vm1, %v956_v52  ;;  %v1416_v57 = vpop.f32.mrf.mxu2  ;;  %v1873_v52 = vld [vmem:[%s18221_s4 + $0x10] sm:$0xf] }
 0x113   : > { %12289 = vmatmul.msk.bf16.gmra.mxu3 %vm981_vm1, %v1673_v55  ;;  %v1488_v59 = vadd.f32 %v1416_v57, %v1218_v54  ;;  %v1317_v54 = vsel %vm1282_vm2, %v1314_v6, %v1316_v43  ;;  %v1676_v55 = vrot.slane %v13902_v44, 1  ;;  %v2103_v57 = vsel %vm1036_vm0, %v1873_v52, 0  ;;  %v2240_v44 = vld [vmem:[%s13695_s20 + $0x8] sm:$0xc] }
 0x114   : > { %2112 = vmatpush.bf16.msrb.mxu0 %v2103_v57 }
 0x116   : > { %v1776_v62 = vpop.f32.mrf.mxu3 }
 0x117   : > { %v13882_v63 = vadd.f32 %v1776_v62, %v1488_v59  ;;  %v1081_v1 = vpop.f32.mrf.mxu0  ;;  %v2512_v59 = vld [vmem:[%s18221_s4 + $0x18] sm:$0xf] }
 0x118   : > { %v1220_v4 = vadd.f32 %v1219_v56, %v1081_v1  ;;  %v737_v56 = vld [vmem:[%s13695_s20 + $0x90] sm:$0x1]  ;;  %v2698_v62 = vsel %vm1036_vm0, %v2512_v59, 0  ;;  %v2836_v1 = vld [vmem:[%s18221_s4 + $0x1c] sm:$0xf] }
 0x119   : > { %2707 = vmatpush.bf16.msrb.mxu2 %v2698_v62  ;;  %v3066_v6 = vsel %vm1036_vm0, %v2836_v1, 0  ;;  %v2243_v62 = vunpack.c.l.b16 %v2240_v44 }
 0x11a   : > { %v1222_v5 = vpop.f32.mrf.mxu1  ;;  %v1418_v9 = vpop.f32.mrf.mxu2  ;;  %3075 = vmatpush.bf16.msrb.mxu3 %v3066_v6 }
 0x11b   : > { %v1489_v10 = vadd.f32 %v1418_v9, %v1220_v4  ;;  %v972_v4 = vsel %vm832_vm3, %v967_v48, %v971_v51  ;;  %v1677_v9 = vsel %vm1282_vm2, %v1674_v16, %v1676_v55 }
 0x11d   : > { %12186 = vmatmul.msk.bf16.gmra.mxu1 %vm981_vm1, %v13244_v28 }
 0x11e   : > { %v1778_v18 = vpop.f32.mrf.mxu3 }
 0x11f   : > { %v13887_v20 = vadd.f32 %v1778_v18, %v1489_v10  ;;  %v1084_v21 = vpop.f32.mrf.mxu0  ;;  %12204 = vmatmul.msk.bf16.gmra.mxu2 %vm981_vm1, %v1315_v13  ;;  %v2338_v13 = vsel %vm1036_vm0, %v2241_v11, 0  ;;  %v1882_v11 = vshll.u32 %v13713_v26, 16 }
 0x120   : > { %v1223_v24 = vadd.f32 %v1222_v5, %v1084_v21  ;;  %v812_v5 = vunpack.c.l.b16 %v737_v56  ;;  %2347 = vmatpush.bf16.msrb.mxu1 %v2338_v13 }
 0x122   : > { %v1224_v29 = vpop.f32.mrf.mxu1  ;;  %12168 = vmatmul.msk.bf16.gmra.mxu0 %vm981_vm1, %v964_v23  ;;  %v1421_v32 = vpop.f32.mrf.mxu2  ;;  %v831_v16 = vpack.c.b16 %v812_v5, %v812_v5  ;;  %v1623_v23 = vunpack.c.l.b16 %v1548_v12  ;;  %v1887_v12 = vshrl.u32 %v13707_v19, 16 }
 0x123   : > { %12290 = vmatmul.msk.bf16.gmra.mxu3 %vm981_vm1, %v1675_v27  ;;  %v1490_v28 = vadd.f32 %v1421_v32, %v1223_v24  ;;  %v973_v27 = vshrl.u32 %v13895_v33, 16 }
 0x124   : > { %v1318_v39 = vrot.slane %v831_v16, 1  ;;  %v1642_v40 = vpack.c.b16 %v1623_v23, %v1623_v23  ;;  %v2247_v23 = vrot.slane %v13707_v19, 2 }
 0x126   : > { %v1781_v34 = vpop.f32.mrf.mxu3  ;;  %v1319_v57 = vsel %vm1282_vm2, %v1316_v43, %v1318_v39  ;;  %v1678_v59 = vrot.slane %v1642_v40, 1  ;;  %v2244_v43 = vpack.c.b16 %v1588_v22, %v2243_v62 }
 0x127   : > { %v13897_v35 = vadd.f32 %v1781_v34, %v1490_v28  ;;  %v1086_v38 = vpop.f32.mrf.mxu0  ;;  %v977_v28 = vshll.u32 %v831_v16, 16 }
 0x128   : > { %v1225_v41 = vadd.f32 %v1224_v29, %v1086_v38  ;;  %v2246_v22 = vrot.slane %v2244_v43, 2 }
 0x129   : > { %v979_v52 = vrot.slane %v977_v28, 1  ;;  %v1884_v28 = vrot.slane %v1882_v11, 2 }
 0x12a   : > { %v1227_v42 = vpop.f32.mrf.mxu1  ;;  %v1423_v45 = vpop.f32.mrf.mxu2 }
 0x12b   : > { %v1491_v46 = vadd.f32 %v1423_v45, %v1225_v41  ;;  %v2475_v41 = vld [vmem:[%s13695_s20 + $0x10] sm:$0xc] }
 0x12d   : > { %12187 = vmatmul.msk.bf16.gmra.mxu1 %vm981_vm1, %v13245_v60 }
 0x12e   : > { %v1783_v60 = vpop.f32.mrf.mxu3 }
 0x12f   : > { %v13919_v2 = vadd.f32 %v1783_v60, %v1491_v46  ;;  %v1089_v3 = vpop.f32.mrf.mxu0  ;;  %12205 = vmatmul.msk.bf16.gmra.mxu2 %vm981_vm1, %v1317_v54  ;;  %v975_v46 = vor.u32 %v973_v27, %v971_v51  ;;  %v2550_v54 = vunpack.c.l.b16 %v2475_v41 }
 0x130   : > { %v1228_v8 = vadd.f32 %v1227_v42, %v1089_v3  ;;  %v13937_v42 = vld [vmem:[%s13695_s20 + $0x14] sm:$0xf] }
 0x131   : > { %v18132_v56 = vunpack.c.l.b16 %v13937_v42  ;;  %v980_v51 = vsel %vm832_vm3, %v975_v46, %v979_v52 }
 0x132   : > { %v1229_v10 = vpop.f32.mrf.mxu1  ;;  %12169 = vmatmul.msk.bf16.gmra.mxu0 %vm981_vm1, %v972_v4  ;;  %v1426_v18 = vpop.f32.mrf.mxu2 }
 0x133   : > { %12291 = vmatmul.msk.bf16.gmra.mxu3 %vm981_vm1, %v1677_v9  ;;  %v1492_v21 = vadd.f32 %v1426_v18, %v1228_v8  ;;  %v2587_v4 = vpack.c.b16 %v18132_v56, %v2550_v54  ;;  %v13952_v8 = vld [vmem:[%s13695_s20 + $0x18] sm:$0xff] }
 0x134   : > { %v2850_v16 = vshrl.u32 %v13952_v8, 16  ;;  %v2853_v14 = vshll.u32 %v13952_v8, 16  ;;  %v2607_v27 = vrot.slane %v13952_v8, 2 }
 0x135   : > { %v2842_v18 = vshrl.u32 %v2587_v4, 16 }
 0x136   : > { %v1786_v24 = vpop.f32.mrf.mxu3  ;;  %v2855_v52 = vrot.slane %v2853_v14, 3 }
 0x137   : > { %v13933_v29 = vadd.f32 %v1786_v24, %v1492_v21  ;;  %v1091_v32 = vpop.f32.mrf.mxu0  ;;  %v2845_v21 = vshll.u32 %v2587_v4, 16  ;;  %v2606_v24 = vrot.slane %v2587_v4, 2  ;;  %v2844_v41 = vrot.slane %v2842_v18, 2 }
 0x138   : > { %v1230_v34 = vadd.f32 %v1229_v10, %v1091_v32  ;;  %v1879_v10 = vshrl.u32 %v13713_v26, 16 }
 0x139   : > { %v2847_v44 = vrot.slane %v2845_v21, 3 }
 0x13a   : > { %v1232_v38 = vpop.f32.mrf.mxu1  ;;  %v1428_v45 = vpop.f32.mrf.mxu2  ;;  %v1881_v32 = vrot.slane %v1879_v10, 1  ;;  %v13265_v10 = vld [vmem:[%s13695_s20 + $0x20] sm:$0xff] }
 0x13b   : > { %v1493_v48 = vadd.f32 %v1428_v45, %v1230_v34  ;;  %v1889_v34 = vrot.slane %v1887_v12, 1  ;;  %v2859_v18 = vshrl.u32 %v13265_v10, 16  ;;  %v2862_v21 = vshll.u32 %v13265_v10, 16 }
 0x13d   : > { %12188 = vmatmul.msk.bf16.gmra.mxu1 %vm981_vm1, %v13895_v33  ;;  %v1679_v33 = vsel %vm1282_vm2, %v1676_v55, %v1678_v59  ;;  %v1890_v55 = vshll.u32 %v13707_v19, 16  ;;  %v2248_v19 = vsel %vm2245_vm4, %v2246_v22, %v2247_v23  ;;  %v1885_v59 = vor.u32 %v1884_v28, %v1881_v32 }
 0x13e   : > { %v1788_v60 = vpop.f32.mrf.mxu3 }
 0x13f   : > { %v13944_v1 = vadd.f32 %v1788_v60, %v1493_v48  ;;  %v1094_v3 = vpop.f32.mrf.mxu0  ;;  %12206 = vmatmul.msk.bf16.gmra.mxu2 %vm981_vm1, %v1319_v57  ;;  %v1892_v40 = vrot.slane %v1890_v55, 2  ;;  %v2852_v48 = vrot.slane %v2850_v16, 2  ;;  %v2608_v60 = vsel %vm2245_vm4, %v2606_v24, %v2607_v27 }
 0x140   : > { %v1233_v5 = vadd.f32 %v1232_v38, %v1094_v3  ;;  %v2848_v3 = vor.u32 %v2847_v44, %v2844_v41  ;;  %v1899_v55 = vshll.u32 %v13724_v36, 16  ;;  %v2249_v16 = vrot.slane %v13724_v36, 2 }
 0x141   : > { %v1893_v62 = vor.u32 %v1892_v40, %v1889_v34  ;;  %v2861_v40 = vrot.slane %v2859_v18, 2  ;;  %v2864_v41 = vrot.slane %v2862_v21, 3 }
 0x142   : > { %v1234_v6 = vpop.f32.mrf.mxu1  ;;  %12170 = vmatmul.msk.bf16.gmra.mxu0 %vm981_vm1, %v980_v51  ;;  %v1431_v9 = vpop.f32.mrf.mxu2  ;;  %v2856_v51 = vor.u32 %v2855_v52, %v2852_v48  ;;  %v1901_v28 = vrot.slane %v1899_v55, 2  ;;  %v2250_v44 = vsel %vm2245_vm4, %v2247_v23, %v2249_v16 }
 0x143   : > { %12292 = vmatmul.msk.bf16.gmra.mxu3 %vm981_vm1, %v1679_v33  ;;  %v1494_v13 = vadd.f32 %v1431_v9, %v1233_v5  ;;  %v2865_v52 = vor.u32 %v2864_v41, %v2861_v40 }
 0x144   : > { %v2857_v43 = vsel %vm2840_vm6, %v2848_v3, %v2856_v51 }
 0x145   : > { %v2866_v3 = vsel %vm2840_vm6, %v2856_v51, %v2865_v52 }
 0x146   : > { %v1791_v26 = vpop.f32.mrf.mxu3 }
 0x147   : > { %v13966_v38 = vadd.f32 %v1791_v26, %v1494_v13  ;;  %v1096_v39 = vpop.f32.mrf.mxu0  ;;  %v1896_v13 = vshrl.u32 %v13724_v36, 16  ;;  %v2609_v26 = vrot.slane %v13265_v10, 2  ;;  %v2251_v10 = vrot.slane %v13736_v47, 2 }
 0x148   : > { %v1235_v45 = vadd.f32 %v1234_v6, %v1096_v39  ;;  %v1894_v6 = vsel %vm1877_vm5, %v1885_v59, %v1893_v62 }
 0x149   : > { %v1898_v32 = vrot.slane %v1896_v13, 1  ;;  %v2610_v36 = vsel %vm2245_vm4, %v2607_v27, %v2609_v26 }
 0x14a   : > { %v1237_v46 = vpop.f32.mrf.mxu1  ;;  %v1433_v54 = vpop.f32.mrf.mxu2 }
 0x14b   : > { %v1495_v57 = vadd.f32 %v1433_v54, %v1235_v45  ;;  %v1902_v48 = vor.u32 %v1901_v28, %v1898_v32  ;;  %v2252_v32 = vsel %vm2245_vm4, %v2249_v16, %v2251_v10 }
 0x14d   : > { %12311 = vmatmul.msk.bf16.vlgmr.msrb.gmra.mxu1 %vm981_vm1, %v2248_v19  ;;  %v1903_v59 = vsel %vm1877_vm5, %v1893_v62, %v1902_v48 }
 0x14e   : > { %v1793_v4 = vpop.f32.mrf.mxu3 }
 0x14f   : > { %v13971_v5 = vadd.f32 %v1793_v4, %v1495_v57  ;;  %v1099_v33 = vpop.f32.mrf.mxu0  ;;  %12397 = vmatmul.msk.bf16.vlgmr.msrb.gmra.mxu2 %vm981_vm1, %v2608_v60  ;;  %v13266_v4 = vld [vmem:[%s13695_s20 + $0x28] sm:$0xff] }
 0x150   : > { %v1238_v8 = vadd.f32 %v1237_v46, %v1099_v33 }
 0x152   : > { %v1239_v9 = vpop.f32.mrf.mxu1  ;;  %12293 = vmatmul.msk.bf16.vlgmr.msrb.gmra.mxu0 %vm981_vm1, %v1894_v6  ;;  %v1436_v11 = vpop.f32.mrf.mxu2  ;;  %v1905_v6 = vshrl.u32 %v13736_v47, 16 }
 0x153   : > { %12415 = vmatmul.msk.bf16.vlgmr.msrb.gmra.mxu3 %vm981_vm1, %v2857_v43  ;;  %v1496_v12 = vadd.f32 %v1436_v11, %v1238_v8  ;;  %v1908_v8 = vshll.u32 %v13736_v47, 16  ;;  %v2868_v43 = vshrl.u32 %v13266_v4, 16 }
 0x154   : > { %v1907_v13 = vrot.slane %v1905_v6, 1 }
 0x155   : > { %v1910_v55 = vrot.slane %v1908_v8, 2 }
 0x156   : > { %v1796_v14 = vpop.f32.mrf.mxu3 }
 0x157   : > { %v13982_v22 = vadd.f32 %v1796_v14, %v1496_v12  ;;  %v1101_v24 = vpop.f32.mrf.mxu0  ;;  %v2611_v12 = vrot.slane %v13266_v4, 2  ;;  %v2870_v14 = vrot.slane %v2868_v43, 2 }
 0x158   : > { %v1240_v34 = vadd.f32 %v1239_v9, %v1101_v24  ;;  %v2871_v9 = vshll.u32 %v13266_v4, 16  ;;  %v2253_v4 = vrot.slane %v13748_v58, 2 }
 0x159   : > { %v2612_v47 = vsel %vm2245_vm4, %v2609_v26, %v2611_v12 }
 0x15a   : > { %v1242_v39 = vpop.f32.mrf.mxu1  ;;  %v1438_v45 = vpop.f32.mrf.mxu2  ;;  %v2873_v24 = vrot.slane %v2871_v9, 3 }
 0x15b   : > { %v1497_v46 = vadd.f32 %v1438_v45, %v1240_v34 }
 0x15c   : > { %v2874_v40 = vor.u32 %v2873_v24, %v2870_v14 }
 0x15d   : > { %12312 = vmatmul.msk.bf16.gmra.mxu1 %vm981_vm1, %v2250_v44 }
 0x15e   : > { %v1798_v19 = vpop.f32.mrf.mxu3 }
 0x15f   : > { %v13987_v54 = vadd.f32 %v1798_v19, %v1497_v46  ;;  %v1104_v57 = vpop.f32.mrf.mxu0  ;;  %12398 = vmatmul.msk.bf16.gmra.mxu2 %vm981_vm1, %v2610_v36  ;;  %v2875_v19 = vsel %vm2840_vm6, %v2865_v52, %v2874_v40 }
 0x160   : > { %v1243_v60 = vadd.f32 %v1242_v39, %v1104_v57  ;;  %v1911_v39 = vor.u32 %v1910_v55, %v1907_v13  ;;  %v14009_v57 = vld [vmem:[%s13695_s20 + $0x30] sm:$0xff]  ;;  %v2254_v55 = vsel %vm2245_vm4, %v2251_v10, %v2253_v4 }
 0x161   : > { %v2613_v6 = vrot.slane %v14009_v57, 2 }
 0x162   : > { %v1244_v23 = vpop.f32.mrf.mxu1  ;;  %12294 = vmatmul.msk.bf16.gmra.mxu0 %vm981_vm1, %v1903_v59  ;;  %v1441_v33 = vpop.f32.mrf.mxu2  ;;  %v1912_v46 = vsel %vm1877_vm5, %v1902_v48, %v1911_v39  ;;  %v2880_v48 = vshll.u32 %v14009_v57, 16 }
 0x163   : > { %12416 = vmatmul.msk.bf16.gmra.mxu3 %vm981_vm1, %v2866_v3  ;;  %v1498_v27 = vadd.f32 %v1441_v33, %v1243_v60  ;;  %v1914_v60 = vshrl.u32 %v13748_v58, 16  ;;  %v1917_v3 = vshll.u32 %v13748_v58, 16  ;;  %v2614_v58 = vsel %vm2245_vm4, %v2611_v12, %v2613_v6 }
 0x164   : > { %v2882_v13 = vrot.slane %v2880_v48, 3 }
 0x165   : > { %v1916_v8 = vrot.slane %v1914_v60, 1  ;;  %v1919_v43 = vrot.slane %v1917_v3, 2 }
 0x166   : > { %v1801_v62 = vpop.f32.mrf.mxu3 }
 0x167   : > { %v13998_v11 = vadd.f32 %v1801_v62, %v1498_v27  ;;  %v1106_v51 = vpop.f32.mrf.mxu0  ;;  %v1920_v14 = vor.u32 %v1919_v43, %v1916_v8 }
 0x168   : > { %v1245_v18 = vadd.f32 %v1244_v23, %v1106_v51  ;;  %v2877_v23 = vshrl.u32 %v14009_v57, 16 }
 0x16a   : > { %v1247_v21 = vpop.f32.mrf.mxu1  ;;  %v1443_v28 = vpop.f32.mrf.mxu2  ;;  %v2879_v51 = vrot.slane %v2877_v23, 2 }
 0x16b   : > { %v1499_v34 = vadd.f32 %v1443_v28, %v1245_v18 }
 0x16c   : > { %v2883_v24 = vor.u32 %v2882_v13, %v2879_v51 }
 0x16d   : > { %12313 = vmatmul.msk.bf16.gmra.mxu1 %vm981_vm1, %v2252_v32 }
 0x16e   : > { %v1803_v41 = vpop.f32.mrf.mxu3  ;;  %v2884_v10 = vsel %vm2840_vm6, %v2874_v40, %v2883_v24 }
 0x16f   : > { %v14003_v44 = vadd.f32 %v1803_v41, %v1499_v34  ;;  %v1109_v45 = vpop.f32.mrf.mxu0  ;;  %12399 = vmatmul.msk.bf16.gmra.mxu2 %vm981_vm1, %v2612_v47  ;;  %v1921_v47 = vsel %vm1877_vm5, %v1911_v39, %v1920_v14 }
 0x170   : > { %v1248_v36 = vadd.f32 %v1247_v21, %v1109_v45 }
 0x172   : > { %v1249_v16 = vpop.f32.mrf.mxu1  ;;  %12295 = vmatmul.msk.bf16.gmra.mxu0 %vm981_vm1, %v1912_v46  ;;  %v1446_v59 = vpop.f32.mrf.mxu2  ;;  %v14030_v46 = vld [vmem:[%s13695_s20 + $0x38] sm:$0xff] }
 0x173   : > { %12417 = vmatmul.msk.bf16.gmra.mxu3 %vm981_vm1, %v2875_v19  ;;  %v1500_v26 = vadd.f32 %v1446_v59, %v1248_v36  ;;  %v13404_v19 = vld [vmem:[%s13695_s20 + $0x30] sm:$0xff]  ;;  %v2886_v59 = vshrl.u32 %v14030_v46, 16  ;;  %v2615_v23 = vrot.slane %v14030_v46, 2 }
 0x174   : > { %v1926_v57 = vshll.u32 %v13404_v19, 16  ;;  %v2255_v39 = vrot.slane %v13404_v19, 2 }
 0x175   : > { %v2888_v43 = vrot.slane %v2886_v59, 2 }
 0x176   : > { %v1806_v52 = vpop.f32.mrf.mxu3 }
 0x177   : > { %v14018_v33 = vadd.f32 %v1806_v52, %v1500_v26  ;;  %v1111_v27 = vpop.f32.mrf.mxu0  ;;  %v2889_v26 = vshll.u32 %v14030_v46, 16  ;;  %v1928_v52 = vrot.slane %v1926_v57, 2 }
 0x178   : > { %v1250_v9 = vadd.f32 %v1249_v16, %v1111_v27  ;;  %v1923_v16 = vshrl.u32 %v13404_v19, 16 }
 0x17a   : > { %v1252_v62 = vpop.f32.mrf.mxu1  ;;  %v1448_v18 = vpop.f32.mrf.mxu2  ;;  %v1925_v48 = vrot.slane %v1923_v16, 1 }
 0x17b   : > { %v1501_v21 = vadd.f32 %v1448_v18, %v1250_v9  ;;  %v2891_v9 = vrot.slane %v2889_v26, 3  ;;  %v2616_v18 = vsel %vm2245_vm4, %v2613_v6, %v2615_v23 }
 0x17d   : > { %12314 = vmatmul.msk.bf16.gmra.mxu1 %vm981_vm1, %v2254_v55  ;;  %v1929_v55 = vor.u32 %v1928_v52, %v1925_v48 }
 0x17e   : > { %v1808_v32 = vpop.f32.mrf.mxu3 }
 0x17f   : > { %v14024_v28 = vadd.f32 %v1808_v32, %v1501_v21  ;;  %v1114_v34 = vpop.f32.mrf.mxu0  ;;  %12400 = vmatmul.msk.bf16.gmra.mxu2 %vm981_vm1, %v2614_v58  ;;  %v2892_v21 = vor.u32 %v2891_v9, %v2888_v43 }
 0x180   : > { %v1253_v41 = vadd.f32 %v1252_v62, %v1114_v34  ;;  %v2256_v62 = vsel %vm2245_vm4, %v2253_v4, %v2255_v39 }
 0x181   : > { %v2893_v4 = vsel %vm2840_vm6, %v2883_v24, %v2892_v21 }
 0x182   : > { %v1254_v45 = vpop.f32.mrf.mxu1  ;;  %12296 = vmatmul.msk.bf16.gmra.mxu0 %vm981_vm1, %v1921_v47  ;;  %v1451_v36 = vpop.f32.mrf.mxu2  ;;  %v1930_v47 = vsel %vm1877_vm5, %v1920_v14, %v1929_v55 }
 0x183   : > { %12418 = vmatmul.msk.bf16.gmra.mxu3 %vm981_vm1, %v2884_v10  ;;  %v1502_v12 = vadd.f32 %v1451_v36, %v1253_v41  ;;  %v13405_v36 = vld [vmem:[%s13695_s20 + $0x38] sm:$0xff] }
 0x184   : > { %v1935_v19 = vshll.u32 %v13405_v36, 16  ;;  %v2257_v14 = vrot.slane %v13405_v36, 2 }
 0x186   : > { %v1811_v60 = vpop.f32.mrf.mxu3  ;;  %v1937_v48 = vrot.slane %v1935_v19, 2  ;;  %v2258_v9 = vsel %vm2245_vm4, %v2255_v39, %v2257_v14 }
 0x187   : > { %v14037_v3 = vadd.f32 %v1811_v60, %v1502_v12  ;;  %v1116_v40 = vpop.f32.mrf.mxu0  ;;  %v1932_v12 = vshrl.u32 %v13405_v36, 16  ;;  %v13406_v36 = vld [vmem:[%s13695_s20 + $0x40] sm:$0xff] }
 0x188   : > { %v1255_v27 = vadd.f32 %v1254_v45, %v1116_v40  ;;  %v14049_v45 = vld [vmem:[%s13695_s20 + $0x40] sm:$0xff]  ;;  %v1944_v19 = vshll.u32 %v13406_v36, 16 }
 0x189   : > { %v2895_v16 = vshrl.u32 %v14049_v45, 16  ;;  %v2898_v57 = vshll.u32 %v14049_v45, 16  ;;  %v2617_v60 = vrot.slane %v14049_v45, 2  ;;  %v1934_v40 = vrot.slane %v1932_v12, 1 }
 0x18a   : > { %v1257_v8 = vpop.f32.mrf.mxu1  ;;  %v1453_v51 = vpop.f32.mrf.mxu2  ;;  %v1941_v12 = vshrl.u32 %v13406_v36, 16 }
 0x18b   : > { %v1503_v13 = vadd.f32 %v1453_v51, %v1255_v27  ;;  %v2900_v43 = vrot.slane %v2898_v57, 3 }
 0x18d   : > { %12315 = vmatmul.msk.bf16.gmra.mxu1 %vm981_vm1, %v2256_v62 }
 0x18e   : > { %v1813_v58 = vpop.f32.mrf.mxu3 }
 0x18f   : > { %v14043_v32 = vadd.f32 %v1813_v58, %v1503_v13  ;;  %v1119_v34 = vpop.f32.mrf.mxu0  ;;  %12401 = vmatmul.msk.bf16.gmra.mxu2 %vm981_vm1, %v2616_v18  ;;  %v1938_v13 = vor.u32 %v1937_v48, %v1934_v40  ;;  %v2618_v18 = vsel %vm2245_vm4, %v2615_v23, %v2617_v60  ;;  %v1943_v48 = vrot.slane %v1941_v12, 1 }
 0x190   : > { %v1258_v41 = vadd.f32 %v1257_v8, %v1119_v34  ;;  %v2897_v8 = vrot.slane %v2895_v16, 2 }
 0x192   : > { %v1259_v10 = vpop.f32.mrf.mxu1  ;;  %12297 = vmatmul.msk.bf16.gmra.mxu0 %vm981_vm1, %v1930_v47  ;;  %v1456_v46 = vpop.f32.mrf.mxu2  ;;  %v2901_v58 = vor.u32 %v2900_v43, %v2897_v8 }
 0x193   : > { %12419 = vmatmul.msk.bf16.gmra.mxu3 %vm981_vm1, %v2893_v4  ;;  %v1504_v6 = vadd.f32 %v1456_v46, %v1258_v41  ;;  %v1939_v4 = vsel %vm1877_vm5, %v1929_v55, %v1938_v13  ;;  %v14068_v46 = vld [vmem:[%s13695_s20 + $0x48] sm:$0xff]  ;;  %v2259_v55 = vrot.slane %v13406_v36, 2  ;;  %v14087_v36 = vld [vmem:[%s13695_s20 + $0x50] sm:$0xff] }
 0x194   : > { %v2902_v39 = vsel %vm2840_vm6, %v2892_v21, %v2901_v58  ;;  %v2904_v16 = vshrl.u32 %v14068_v46, 16  ;;  %v2907_v57 = vshll.u32 %v14068_v46, 16  ;;  %v2619_v40 = vrot.slane %v14068_v46, 2 }
 0x196   : > { %v1816_v59 = vpop.f32.mrf.mxu3  ;;  %v2906_v43 = vrot.slane %v2904_v16, 2 }
 0x197   : > { %v14056_v26 = vadd.f32 %v1816_v59, %v1504_v6  ;;  %v1121_v24 = vpop.f32.mrf.mxu0 }
 0x198   : > { %v1260_v52 = vadd.f32 %v1259_v10, %v1121_v24 }
 0x19a   : > { %v1262_v27 = vpop.f32.mrf.mxu1  ;;  %v1458_v62 = vpop.f32.mrf.mxu2 }
 0x19b   : > { %v1505_v51 = vadd.f32 %v1458_v62, %v1260_v52  ;;  %v1946_v52 = vrot.slane %v1944_v19, 2  ;;  %v2260_v62 = vsel %vm2245_vm4, %v2257_v14, %v2259_v55  ;;  %v13407_v19 = vld [vmem:[%s13695_s20 + $0x48] sm:$0xff] }
 0x19c   : > { %v1950_v16 = vshrl.u32 %v13407_v19, 16 }
 0x19d   : > { %12316 = vmatmul.msk.bf16.gmra.mxu1 %vm981_vm1, %v2258_v9  ;;  %v2909_v9 = vrot.slane %v2907_v57, 3  ;;  %v1953_v57 = vshll.u32 %v13407_v19, 16 }
 0x19e   : > { %v1818_v34 = vpop.f32.mrf.mxu3 }
 0x19f   : > { %v14062_v47 = vadd.f32 %v1818_v34, %v1505_v51  ;;  %v1124_v41 = vpop.f32.mrf.mxu0  ;;  %12402 = vmatmul.msk.bf16.gmra.mxu2 %vm981_vm1, %v2618_v18  ;;  %v1947_v34 = vor.u32 %v1946_v52, %v1943_v48 }
 0x1a0   : > { %v1263_v10 = vadd.f32 %v1262_v27, %v1124_v41  ;;  %v2620_v41 = vsel %vm2245_vm4, %v2617_v60, %v2619_v40 }
 0x1a2   : > { %v1264_v45 = vpop.f32.mrf.mxu1  ;;  %12298 = vmatmul.msk.bf16.gmra.mxu0 %vm981_vm1, %v1939_v4  ;;  %v1461_v6 = vpop.f32.mrf.mxu2  ;;  %v2910_v4 = vor.u32 %v2909_v9, %v2906_v43  ;;  %v1955_v43 = vrot.slane %v1953_v57, 2  ;;  %v14106_v57 = vld [vmem:[%s13695_s20 + $0x58] sm:$0xff] }
 0x1a3   : > { %12420 = vmatmul.msk.bf16.gmra.mxu3 %vm981_vm1, %v2902_v39  ;;  %v1506_v23 = vadd.f32 %v1461_v6, %v1263_v10 }
 0x1a4   : > { %v2911_v14 = vsel %vm2840_vm6, %v2901_v58, %v2910_v4 }
 0x1a6   : > { %v1821_v59 = vpop.f32.mrf.mxu3 }
 0x1a7   : > { %v14075_v24 = vadd.f32 %v1821_v59, %v1506_v23  ;;  %v1126_v21 = vpop.f32.mrf.mxu0  ;;  %v2913_v59 = vshrl.u32 %v14087_v36, 16 }
 0x1a8   : > { %v1265_v27 = vadd.f32 %v1264_v45, %v1126_v21  ;;  %v1948_v45 = vsel %vm1877_vm5, %v1938_v13, %v1947_v34  ;;  %v2916_v21 = vshll.u32 %v14087_v36, 16  ;;  %v2261_v13 = vrot.slane %v13407_v19, 2 }
 0x1aa   : > { %v1267_v8 = vpop.f32.mrf.mxu1  ;;  %v1463_v51 = vpop.f32.mrf.mxu2 }
 0x1ab   : > { %v1507_v18 = vadd.f32 %v1463_v51, %v1265_v27  ;;  %v2621_v27 = vrot.slane %v14087_v36, 2  ;;  %v2915_v51 = vrot.slane %v2913_v59, 2 }
 0x1ad   : > { %12317 = vmatmul.msk.bf16.gmra.mxu1 %vm981_vm1, %v2260_v62 }
 0x1ae   : > { %v1823_v10 = vpop.f32.mrf.mxu3 }
 0x1af   : > { %v14081_v39 = vadd.f32 %v1823_v10, %v1507_v18  ;;  %v1129_v46 = vpop.f32.mrf.mxu0  ;;  %12403 = vmatmul.msk.bf16.gmra.mxu2 %vm981_vm1, %v2620_v41  ;;  %v2918_v18 = vrot.slane %v2916_v21, 3  ;;  %v2262_v41 = vsel %vm2245_vm4, %v2259_v55, %v2261_v13  ;;  %v13408_v21 = vld [vmem:[%s13695_s20 + $0x50] sm:$0xff] }
 0x1b0   : > { %v1268_v6 = vadd.f32 %v1267_v8, %v1129_v46  ;;  %v1952_v8 = vrot.slane %v1950_v16, 1 }
 0x1b2   : > { %v1269_v23 = vpop.f32.mrf.mxu1  ;;  %12299 = vmatmul.msk.bf16.gmra.mxu0 %vm981_vm1, %v1948_v45  ;;  %v1466_v12 = vpop.f32.mrf.mxu2  ;;  %v1956_v45 = vor.u32 %v1955_v43, %v1952_v8  ;;  %v2922_v8 = vshrl.u32 %v14106_v57, 16  ;;  %v2925_v43 = vshll.u32 %v14106_v57, 16 }
 0x1b3   : > { %12421 = vmatmul.msk.bf16.gmra.mxu3 %vm981_vm1, %v2911_v14  ;;  %v1508_v60 = vadd.f32 %v1466_v12, %v1268_v6  ;;  %v2622_v6 = vsel %vm2245_vm4, %v2619_v40, %v2621_v27  ;;  %v2919_v14 = vor.u32 %v2918_v18, %v2915_v51  ;;  %v2623_v51 = vrot.slane %v14106_v57, 2 }
 0x1b5   : > { %v2920_v55 = vsel %vm2840_vm6, %v2910_v4, %v2919_v14 }
 0x1b6   : > { %v1826_v48 = vpop.f32.mrf.mxu3 }
 0x1b7   : > { %v14094_v52 = vadd.f32 %v1826_v48, %v1508_v60  ;;  %v1131_v58 = vpop.f32.mrf.mxu0  ;;  %v1959_v48 = vshrl.u32 %v13408_v21, 16 }
 0x1b8   : > { %v1270_v9 = vadd.f32 %v1269_v23, %v1131_v58  ;;  %v1957_v23 = vsel %vm1877_vm5, %v1947_v34, %v1956_v45  ;;  %v1962_v58 = vshll.u32 %v13408_v21, 16  ;;  %v2263_v34 = vrot.slane %v13408_v21, 2 }
 0x1b9   : > { %v1961_v18 = vrot.slane %v1959_v48, 1 }
 0x1ba   : > { %v1272_v62 = vpop.f32.mrf.mxu1  ;;  %v1468_v10 = vpop.f32.mrf.mxu2 }
 0x1bb   : > { %v1509_v46 = vadd.f32 %v1468_v10, %v1270_v9 }
 0x1bd   : > { %12318 = vmatmul.msk.bf16.gmra.mxu1 %vm981_vm1, %v2262_v41  ;;  %v1964_v41 = vrot.slane %v1962_v58, 2 }
 0x1be   : > { %v1828_v12 = vpop.f32.mrf.mxu3 }
 0x1bf   : > { %v14100_v36 = vadd.f32 %v1828_v12, %v1509_v46  ;;  %v1134_v60 = vpop.f32.mrf.mxu0  ;;  %12404 = vmatmul.msk.bf16.gmra.mxu2 %vm981_vm1, %v2622_v6  ;;  %v2924_v6 = vrot.slane %v2922_v8, 2  ;;  %v2927_v12 = vrot.slane %v2925_v43, 3  ;;  %v14126_v43 = vld [vmem:[%s13695_s20 + $0x60] sm:$0xff] }
 0x1c0   : > { %v1273_v19 = vadd.f32 %v1272_v62, %v1134_v60  ;;  %v2264_v60 = vsel %vm2245_vm4, %v2261_v13, %v2263_v34 }
 0x1c2   : > { %v1274_v16 = vpop.f32.mrf.mxu1  ;;  %12300 = vmatmul.msk.bf16.gmra.mxu0 %vm981_vm1, %v1957_v23  ;;  %v1471_v59 = vpop.f32.mrf.mxu2 }
 0x1c3   : > { %12422 = vmatmul.msk.bf16.gmra.mxu3 %vm981_vm1, %v2920_v55  ;;  %v1510_v40 = vadd.f32 %v1471_v59, %v1273_v19  ;;  %v1965_v55 = vor.u32 %v1964_v41, %v1961_v18  ;;  %v2624_v59 = vsel %vm2245_vm4, %v2621_v27, %v2623_v51 }
 0x1c6   : > { %v1831_v9 = vpop.f32.mrf.mxu3 }
 0x1c7   : > { %v14113_v62 = vadd.f32 %v1831_v9, %v1510_v40  ;;  %v1136_v4 = vpop.f32.mrf.mxu0  ;;  %v2928_v40 = vor.u32 %v2927_v12, %v2924_v6  ;;  %v2931_v6 = vshrl.u32 %v14126_v43, 16 }
 0x1c8   : > { %v1275_v10 = vadd.f32 %v1274_v16, %v1136_v4  ;;  %v1966_v16 = vsel %vm1877_vm5, %v1956_v45, %v1965_v55  ;;  %v13409_v4 = vld [vmem:[%s13695_s20 + $0x58] sm:$0xff]  ;;  %v2934_v45 = vshll.u32 %v14126_v43, 16 }
 0x1c9   : > { %v2929_v13 = vsel %vm2840_vm6, %v2919_v14, %v2928_v40  ;;  %v1968_v18 = vshrl.u32 %v13409_v4, 16  ;;  %v1971_v41 = vshll.u32 %v13409_v4, 16 }
 0x1ca   : > { %v2349_v46 = vpop.f32.mrf.mxu1  ;;  %v1473_v23 = vpop.f32.mrf.mxu2 }
 0x1cb   : > { %v1511_v19 = vadd.f32 %v1473_v23, %v1275_v10  ;;  %v1970_v23 = vrot.slane %v1968_v18, 1 }
 0x1cd   : > { %12319 = vmatmul.msk.bf16.gmra.mxu1 %vm981_vm1, %v2264_v60 }
 0x1ce   : > { %v1833_v21 = vpop.f32.mrf.mxu3 }
 0x1cf   : > { %v14119_v57 = vadd.f32 %v1833_v21, %v1511_v19  ;;  %v2114_v48 = vpop.f32.mrf.mxu0  ;;  %12405 = vmatmul.msk.bf16.gmra.mxu2 %vm981_vm1, %v2624_v59  ;;  %v1973_v19 = vrot.slane %v1971_v41, 2 }
 0x1d0   : > { %v2204_v58 = vadd.f32 %v2114_v48, %v13804_v7  ;;  %v2265_v7 = vrot.slane %v13409_v4, 2  ;;  %v2933_v48 = vrot.slane %v2931_v6, 2 }
 0x1d2   : > { %v2351_v8 = vpop.f32.mrf.mxu1  ;;  %v2439_v9 = vadd.f32 %v2349_v46, %v2204_v58  ;;  %12301 = vmatmul.msk.bf16.gmra.mxu0 %vm981_vm1, %v1966_v16  ;;  %v2709_v27 = vpop.f32.mrf.mxu2  ;;  %v2625_v46 = vrot.slane %v14126_v43, 2  ;;  %v2936_v16 = vrot.slane %v2934_v45, 3  ;;  %v2266_v58 = vsel %vm2245_vm4, %v2263_v34, %v2265_v7 }
 0x1d3   : > { %12423 = vmatmul.msk.bf16.gmra.mxu3 %vm981_vm1, %v2929_v13 }
 0x1d4   : > { %v2799_v10 = vadd.f32 %v2709_v27, %v2439_v9  ;;  %v1974_v27 = vor.u32 %v1973_v19, %v1970_v23  ;;  %v2937_v43 = vor.u32 %v2936_v16, %v2933_v48  ;;  %v13410_v23 = vld [vmem:[%s13695_s20 + $0x60] sm:$0xff] }
 0x1d5   : > { %v1977_v19 = vshrl.u32 %v13410_v23, 16 }
 0x1d6   : > { %v3077_v12 = vpop.f32.mrf.mxu3  ;;  %v1975_v6 = vsel %vm1877_vm5, %v1965_v55, %v1974_v27 }
 0x1d7   : > { %v14133_v14 = vadd.f32 %v3077_v12, %v2799_v10  ;;  %v2116_v60 = vpop.f32.mrf.mxu0  ;;  %v2626_v10 = vsel %vm2245_vm4, %v2623_v51, %v2625_v46  ;;  %v14147_v12 = vld [vmem:[%s13695_s20 + $0x68] sm:$0xff] }
 0x1d8   : > { %v2205_v59 = vadd.f32 %v2116_v60, %v13809_v25  ;;  %v2940_v16 = vshrl.u32 %v14147_v12, 16  ;;  %v2943_v55 = vshll.u32 %v14147_v12, 16 }
 0x1da   : > { %v2354_v21 = vpop.f32.mrf.mxu1  ;;  %v2440_v13 = vadd.f32 %v2351_v8, %v2205_v59  ;;  %v2711_v9 = vpop.f32.mrf.mxu2  ;;  %v2938_v8 = vsel %vm2840_vm6, %v2928_v40, %v2937_v43  ;;  %v1980_v59 = vshll.u32 %v13410_v23, 16 }
 0x1dc   : > { %v2800_v4 = vadd.f32 %v2711_v9, %v2440_v13  ;;  %v1979_v9 = vrot.slane %v1977_v19, 1 }
 0x1dd   : > { %12320 = vmatmul.msk.bf16.gmra.mxu1 %vm981_vm1, %v2266_v58 }
 0x1de   : > { %v3079_v18 = vpop.f32.mrf.mxu3 }
 0x1df   : > { %v14140_v41 = vadd.f32 %v3079_v18, %v2800_v4  ;;  %v2119_v25 = vpop.f32.mrf.mxu0  ;;  %12406 = vmatmul.msk.bf16.gmra.mxu2 %vm981_vm1, %v2626_v10  ;;  %v1982_v4 = vrot.slane %v1980_v59, 2 }
 0x1e0   : > { %v2206_v34 = vadd.f32 %v2119_v25, %v13817_v37  ;;  %v2267_v37 = vrot.slane %v13410_v23, 2  ;;  %v2942_v25 = vrot.slane %v2940_v16, 2 }
 0x1e2   : > { %v2356_v45 = vpop.f32.mrf.mxu1  ;;  %v2441_v60 = vadd.f32 %v2354_v21, %v2206_v34  ;;  %12302 = vmatmul.msk.bf16.gmra.mxu0 %vm981_vm1, %v1975_v6  ;;  %v2714_v51 = vpop.f32.mrf.mxu2  ;;  %v2627_v21 = vrot.slane %v14147_v12, 2  ;;  %v2945_v6 = vrot.slane %v2943_v55, 3  ;;  %v2268_v34 = vsel %vm2245_vm4, %v2265_v7, %v2267_v37 }
 0x1e3   : > { %12424 = vmatmul.msk.bf16.gmra.mxu3 %vm981_vm1, %v2938_v8 }
 0x1e4   : > { %v2801_v48 = vadd.f32 %v2714_v51, %v2441_v60  ;;  %v1983_v51 = vor.u32 %v1982_v4, %v1979_v9  ;;  %v2946_v12 = vor.u32 %v2945_v6, %v2942_v25  ;;  %v14173_v9 = vld [vmem:[%s13695_s20 + $0x68] sm:$0xff] }
 0x1e5   : > { %v1986_v4 = vshrl.u32 %v14173_v9, 16  ;;  %v2269_v25 = vrot.slane %v14173_v9, 2 }
 0x1e6   : > { %v3082_v58 = vpop.f32.mrf.mxu3  ;;  %v1984_v16 = vsel %vm1877_vm5, %v1974_v27, %v1983_v51 }
 0x1e7   : > { %v14154_v40 = vadd.f32 %v3082_v58, %v2801_v48  ;;  %v2121_v13 = vpop.f32.mrf.mxu0  ;;  %v2628_v48 = vsel %vm2245_vm4, %v2625_v46, %v2627_v21  ;;  %v14168_v58 = vld [vmem:[%s13695_s20 + $0x70] sm:$0xff] }
 0x1e8   : > { %v2207_v10 = vadd.f32 %v2121_v13, %v13822_v53 }
 0x1ea   : > { %v2359_v18 = vpop.f32.mrf.mxu1  ;;  %v2442_v8 = vadd.f32 %v2356_v45, %v2207_v10  ;;  %v2716_v60 = vpop.f32.mrf.mxu2  ;;  %v2947_v45 = vsel %vm2840_vm6, %v2937_v43, %v2946_v12  ;;  %v1989_v10 = vshll.u32 %v14173_v9, 16  ;;  %v2952_v43 = vshll.u32 %v14168_v58, 16 }
 0x1ec   : > { %v2802_v23 = vadd.f32 %v2716_v60, %v2442_v8  ;;  %v18133_v8 = vrot.slane %v14168_v58, 2  ;;  %v1988_v60 = vrot.slane %v1986_v4, 1 }
 0x1ed   : > { %12321 = vmatmul.msk.bf16.gmra.mxu1 %vm981_vm1, %v2268_v34 }
 0x1ee   : > { %v3084_v19 = vpop.f32.mrf.mxu3 }
 0x1ef   : > { %v14161_v59 = vadd.f32 %v3084_v19, %v2802_v23  ;;  %v2124_v53 = vpop.f32.mrf.mxu0  ;;  %12407 = vmatmul.msk.bf16.gmra.mxu2 %vm981_vm1, %v2628_v48  ;;  %v1991_v23 = vrot.slane %v1989_v10, 2 }
 0x1f0   : > { %v2208_v7 = vadd.f32 %v2124_v53, %v13830_v0  ;;  %v2949_v0 = vshrl.u32 %v14168_v58, 16 }
 0x1f1   : > { %v1992_v9 = vor.u32 %v1991_v23, %v1988_v60  ;;  %v14199_v23 = vld [vmem:[%s13695_s20 + $0x78] sm:$0xff] }
 0x1f2   : > { %v2361_v55 = vpop.f32.mrf.mxu1  ;;  %v2443_v13 = vadd.f32 %v2359_v18, %v2208_v7  ;;  %12303 = vmatmul.msk.bf16.gmra.mxu0 %vm981_vm1, %v1984_v16  ;;  %v2719_v46 = vpop.f32.mrf.mxu2  ;;  %v2951_v53 = vrot.slane %v2949_v0, 2  ;;  %v2954_v16 = vrot.slane %v2952_v43, 3  ;;  %v2270_v7 = vsel %vm2245_vm4, %v2267_v37, %v2269_v25 }
 0x1f3   : > { %12425 = vmatmul.msk.bf16.gmra.mxu3 %vm981_vm1, %v2947_v45  ;;  %v1993_v43 = vsel %vm1877_vm5, %v1983_v51, %v1992_v9  ;;  %v655_v51 = vld [vmem:[%s18223_s2 + $0x8] sm:$0xff] }
 0x1f4   : > { %v2803_v27 = vadd.f32 %v2719_v46, %v2443_v13  ;;  %v654_v46 = vld [vmem:[%s18223_s2] sm:$0xff]  ;;  %v2955_v10 = vor.u32 %v2954_v16, %v2951_v53  ;;  %v14204_v53 = vld [vmem:[%s13695_s20 + $0x70] sm:$0xff] }
 0x1f5   : > { %v1995_v16 = vshrl.u32 %v14204_v53, 16 }
 0x1f6   : > { %v3087_v6 = vpop.f32.mrf.mxu3 }
 0x1f7   : > { %v14180_v18 = vadd.f32 %v3087_v6, %v2803_v27  ;;  %v2126_v34 = vpop.f32.mrf.mxu0  ;;  %v13533_v27 = vmov 0  }
 0x1f8   : > { %v2209_v48 = vadd.f32 %v2126_v34, %v13835_v17  ;;  %13396 = vset.pattern.permute.xlu0 %v13533_v27  ;;  %v2630_v17 = vsel %vm2245_vm4, %v2627_v21, %v18133_v8  ;;  %13397 = vset.pattern.permute.xlu1 %v13533_v27  ;;  %v2956_v34 = vsel %vm2840_vm6, %v2946_v12, %v2955_v10 }
 0x1f9   : > { %3516 = vperm.xlu0 %13396, %v654_v46   ;;  %13398 = vset.pattern.permute.xlu2 %v13533_v27 }
 0x1fa   : > { %v2364_v19 = vpop.f32.mrf.mxu1  ;;  %v2444_v45 = vadd.f32 %v2361_v55, %v2209_v48  ;;  %v2721_v13 = vpop.f32.mrf.mxu2 }
 0x1fc   : > { %v2804_v4 = vadd.f32 %v2721_v13, %v2444_v45  ;;  %v2961_v45 = vshll.u32 %v14199_v23, 16  ;;  %v2271_v13 = vrot.slane %v14204_v53, 2 }
 0x1fd   : > { %12322 = vmatmul.msk.bf16.gmra.mxu1 %vm981_vm1, %v2270_v7  ;;  %v1998_v7 = vshll.u32 %v14204_v53, 16  ;;  %v657_v53 = vld [vmem:[%s18223_s2 + $0x18] sm:$0xff] }
 0x1fe   : > { %v3089_v37 = vpop.f32.mrf.mxu3 }
 0x1ff   : > { %v14192_v55 = vadd.f32 %v3089_v37, %v2804_v4  ;;  %v2129_v0 = vpop.f32.mrf.mxu0  ;;  %12408 = vmatmul.msk.bf16.gmra.mxu2 %vm981_vm1, %v2630_v17  ;;  %v2631_v17 = vrot.slane %v14199_v23, 2  ;;  %v1997_v37 = vrot.slane %v1995_v16, 1  ;;  %v18224_v16 = vrot.slane %v14168_v58, 2  ;;  %v14239_v58 = vld [vmem:[%s13695_s20 + $0x80] sm:$0xff] }
 0x200   : > { %v2210_v6 = vadd.f32 %v2129_v0, %v13843_v31  ;;  %v656_v31 = vld [vmem:[%s18223_s2 + $0x10] sm:$0xff]  ;;  %v2000_v0 = vrot.slane %v1998_v7, 2 }
 0x201   : > { %3526 = vperm.xlu1 %13397, %v656_v31   ;;  %3521 = vperm.xlu0 %13396, %v655_v51   ;;  %v660_v31 = vld [vmem:[%s18223_s2 + $0x30] sm:$0xff]  ;;  %v2632_v7 = vsel %vm2245_vm4, %v18224_v16, %v2631_v17 }
 0x202   : > { %v2366_v60 = vpop.f32.mrf.mxu1  ;;  %v2445_v21 = vadd.f32 %v2364_v19, %v2210_v6  ;;  %12304 = vmatmul.msk.bf16.gmra.mxu0 %vm981_vm1, %v1993_v43  ;;  %v2724_v48 = vpop.f32.mrf.mxu2  ;;  %v2958_v19 = vshrl.u32 %v14199_v23, 16  ;;  %v2001_v23 = vor.u32 %v2000_v0, %v1997_v37  ;;  %v14244_v37 = vld [vmem:[%s13695_s20 + $0x78] sm:$0xff] }
 0x203   : > { %12426 = vmatmul.msk.bf16.gmra.mxu3 %vm981_vm1, %v2956_v34  ;;  %v2004_v0 = vshrl.u32 %v14244_v37, 16 }
 0x204   : > { %v2805_v12 = vadd.f32 %v2724_v48, %v2445_v21  ;;  %v2960_v34 = vrot.slane %v2958_v19, 2  ;;  %v2963_v21 = vrot.slane %v2961_v45, 3  ;;  %v2272_v48 = vsel %vm2245_vm4, %v2269_v25, %v2271_v13 }
 0x205   : > { %v2002_v19 = vsel %vm1877_vm5, %v1992_v9, %v2001_v23  ;;  %v663_v9 = vld [vmem:[%s18223_s2 + $0x48] sm:$0xff]  ;;  %v2006_v16 = vrot.slane %v2004_v0, 1 }
 0x206   : > { %v3092_v46 = vpop.f32.mrf.mxu3  ;;  %v2964_v25 = vor.u32 %v2963_v21, %v2960_v34  ;;  %v2970_v34 = vshll.u32 %v14239_v58, 16  ;;  %v2273_v21 = vrot.slane %v14244_v37, 2 }
 0x207   : > { %v14217_v27 = vadd.f32 %v3092_v46, %v2805_v12  ;;  %v2131_v4 = vpop.f32.mrf.mxu0 }
 0x208   : > { %v2211_v43 = vadd.f32 %v2131_v4, %v13848_v49 }
 0x209   : > { %3531 = vperm.xlu1 %13397, %v657_v53   ;;  %3546 = vperm.xlu0 %13396, %v660_v31  }
 0x20a   : > { %v2369_v6 = vpop.f32.mrf.mxu1  ;;  %v2446_v56 = vadd.f32 %v2366_v60, %v2211_v43  ;;  %v2726_v8 = vpop.f32.mrf.mxu2  ;;  %v2007_v43 = vshll.u32 %v14244_v37, 16  ;;  %v664_v37 = vld [vmem:[%s18223_s2 + $0x50] sm:$0xff] }
 0x20c   : > { %v2806_v49 = vadd.f32 %v2726_v8, %v2446_v56  ;;  %v2965_v56 = vsel %vm2840_vm6, %v2955_v10, %v2964_v25 }
 0x20d   : > { %12323 = vmatmul.msk.bf16.gmra.mxu1 %vm981_vm1, %v2272_v48 }
 0x20e   : > { %v3094_v60 = vpop.f32.mrf.mxu3 }
 0x20f   : > { %v14232_v51 = vadd.f32 %v3094_v60, %v2806_v49  ;;  %v2134_v12 = vpop.f32.mrf.mxu0  ;;  %12409 = vmatmul.msk.bf16.gmra.mxu2 %vm981_vm1, %v2632_v7  ;;  %v2633_v49 = vrot.slane %v14239_v58, 2  ;;  %v2009_v7 = vrot.slane %v2007_v43, 2 }
 0x210   : > { %v2212_v45 = vadd.f32 %v2134_v12, %v13856_v61  ;;  %v661_v61 = vld [vmem:[%s18223_s2 + $0x38] sm:$0xff] }
 0x211   : > { %3551 = vperm.xlu1 %13397, %v661_v61   ;;  %3561 = vperm.xlu0 %13396, %v663_v9   ;;  %v666_v61 = vld [vmem:[%s18223_s2 + $0x60] sm:$0xff]  ;;  %v2634_v0 = vsel %vm2245_vm4, %v2631_v17, %v2633_v49 }
 0x212   : > { %v2371_v8 = vpop.f32.mrf.mxu1  ;;  %v2447_v46 = vadd.f32 %v2369_v6, %v2212_v45  ;;  %12305 = vmatmul.msk.bf16.gmra.mxu0 %vm981_vm1, %v2002_v19  ;;  %v2729_v4 = vpop.f32.mrf.mxu2  ;;  %v2967_v6 = vshrl.u32 %v14239_v58, 16  ;;  %v2972_v45 = vrot.slane %v2970_v34, 3  ;;  %v2010_v58 = vor.u32 %v2009_v7, %v2006_v16  ;;  %v14282_v7 = vld [vmem:[%s13695_s20 + $0x80] sm:$0xff] }
 0x213   : > { %12427 = vmatmul.msk.bf16.gmra.mxu3 %vm981_vm1, %v2965_v56  ;;  %v2274_v56 = vsel %vm2245_vm4, %v2271_v13, %v2273_v21 }
 0x214   : > { %v2807_v10 = vadd.f32 %v2729_v4, %v2447_v46  ;;  %v2969_v19 = vrot.slane %v2967_v6, 2 }
 0x216   : > { %v3097_v48 = vpop.f32.mrf.mxu3  ;;  %v2973_v43 = vor.u32 %v2972_v45, %v2969_v19  ;;  %v2016_v19 = vshll.u32 %v14282_v7, 16 }
 0x217   : > { %v14257_v53 = vadd.f32 %v3097_v48, %v2807_v10  ;;  %v2136_v31 = vpop.f32.mrf.mxu0  ;;  %v2011_v10 = vsel %vm1877_vm5, %v2001_v23, %v2010_v58  ;;  %v669_v23 = vld [vmem:[%s18223_s2 + $0x78] sm:$0xff] }
 0x218   : > { %v2213_v60 = vadd.f32 %v2136_v31, %v13861_v15  ;;  %v2974_v34 = vsel %vm2840_vm6, %v2964_v25, %v2973_v43  ;;  %v14277_v31 = vld [vmem:[%s13695_s20 + $0x88] sm:$0xff] }
 0x219   : > { %3566 = vperm.xlu1 %13397, %v664_v37   ;;  %3576 = vperm.xlu0 %13396, %v666_v61   ;;  %v2979_v45 = vshll.u32 %v14277_v31, 16  ;;  %v2635_v61 = vrot.slane %v14277_v31, 2 }
 0x21a   : > { %v2374_v12 = vpop.f32.mrf.mxu1  ;;  %v2448_v46 = vadd.f32 %v2371_v8, %v2213_v60  ;;  %v2731_v4 = vpop.f32.mrf.mxu2  ;;  %v2013_v60 = vshrl.u32 %v14282_v7, 16 }
 0x21c   : > { %v2808_v15 = vadd.f32 %v2731_v4, %v2448_v46 }
 0x21d   : > { %12324 = vmatmul.msk.bf16.gmra.mxu1 %vm981_vm1, %v2274_v56  ;;  %v2275_v56 = vrot.slane %v14282_v7, 2  ;;  %v670_v7 = vld [vmem:[%s18223_s2 + $0x80] sm:$0xff] }
 0x21e   : > { %v3099_v13 = vpop.f32.mrf.mxu3 }
 0x21f   : > { %v14270_v8 = vadd.f32 %v3099_v13, %v2808_v15  ;;  %v2139_v9 = vpop.f32.mrf.mxu0  ;;  %12410 = vmatmul.msk.bf16.gmra.mxu2 %vm981_vm1, %v2634_v0  ;;  %v2015_v15 = vrot.slane %v2013_v60, 1  ;;  %v2018_v0 = vrot.slane %v2016_v19, 2  ;;  %v2636_v19 = vsel %vm2245_vm4, %v2633_v49, %v2635_v61 }
 0x220   : > { %v2214_v6 = vadd.f32 %v2139_v9, %v13869_v30  ;;  %v667_v30 = vld [vmem:[%s18223_s2 + $0x68] sm:$0xff] }
 0x221   : > { %3581 = vperm.xlu1 %13397, %v667_v30   ;;  %3591 = vperm.xlu0 %13396, %v669_v23   ;;  %v672_v30 = vld [vmem:[%s18223_s2 + $0x90] sm:$0xff]  ;;  %v2019_v60 = vor.u32 %v2018_v0, %v2015_v15 }
 0x222   : > { %v2376_v48 = vpop.f32.mrf.mxu1  ;;  %v2449_v17 = vadd.f32 %v2374_v12, %v2214_v6  ;;  %12306 = vmatmul.msk.bf16.gmra.mxu0 %vm981_vm1, %v2011_v10  ;;  %v2734_v16 = vpop.f32.mrf.mxu2  ;;  %v2976_v12 = vshrl.u32 %v14277_v31, 16  ;;  %v2981_v6 = vrot.slane %v2979_v45, 3  ;;  %v14319_v15 = vld [vmem:[%s13695_s20 + $0x90] sm:$0xff] }
 0x223   : > { %12428 = vmatmul.msk.bf16.gmra.mxu3 %vm981_vm1, %v2974_v34  ;;  %v2276_v34 = vsel %vm2245_vm4, %v2273_v21, %v2275_v56 }
 0x224   : > { %v2809_v25 = vadd.f32 %v2734_v16, %v2449_v17  ;;  %v2978_v10 = vrot.slane %v2976_v12, 2  ;;  %v2020_v12 = vsel %vm1877_vm5, %v2010_v58, %v2019_v60 }
 0x226   : > { %v3102_v46 = vpop.f32.mrf.mxu3  ;;  %v2982_v21 = vor.u32 %v2981_v6, %v2978_v10 }
 0x227   : > { %v14295_v4 = vadd.f32 %v3102_v46, %v2809_v25  ;;  %v2141_v37 = vpop.f32.mrf.mxu0 }
 0x228   : > { %v2215_v13 = vadd.f32 %v2141_v37, %v13874_v50  ;;  %v2983_v46 = vsel %vm2840_vm6, %v2973_v43, %v2982_v21  ;;  %v673_v43 = vld [vmem:[%s18223_s2 + $0x98] sm:$0xff] }
 0x229   : > { %3596 = vperm.xlu1 %13397, %v670_v7   ;;  %3606 = vperm.xlu0 %13396, %v672_v30  }
 0x22a   : > { %v2379_v9 = vpop.f32.mrf.mxu1  ;;  %v2450_v17 = vadd.f32 %v2376_v48, %v2215_v13  ;;  %v2736_v16 = vpop.f32.mrf.mxu2  ;;  %v14324_v13 = vld [vmem:[%s13695_s20 + $0x88] sm:$0xff] }
 0x22b   : > { %v2022_v10 = vshrl.u32 %v14324_v13, 16  ;;  %v2025_v58 = vshll.u32 %v14324_v13, 16 }
 0x22c   : > { %v2810_v50 = vadd.f32 %v2736_v16, %v2450_v17  ;;  %v2988_v17 = vshll.u32 %v14319_v15, 16  ;;  %v2277_v16 = vrot.slane %v14324_v13, 2 }
 0x22d   : > { %12325 = vmatmul.msk.bf16.gmra.mxu1 %vm981_vm1, %v2276_v34  ;;  %v2985_v34 = vshrl.u32 %v14319_v15, 16 }
 0x22e   : > { %v3104_v48 = vpop.f32.mrf.mxu3 }
 0x22f   : > { %v14310_v23 = vadd.f32 %v3104_v48, %v2810_v50  ;;  %v2144_v25 = vpop.f32.mrf.mxu0  ;;  %12411 = vmatmul.msk.bf16.gmra.mxu2 %vm981_vm1, %v2636_v19  ;;  %v18134_v19 = vrot.slane %v14319_v15, 2  ;;  %v2024_v48 = vrot.slane %v2022_v10, 1 }
 0x230   : > { %v2216_v45 = vadd.f32 %v2144_v25, %v13882_v63  ;;  %v658_v63 = vld [vmem:[%s18223_s2 + $0x20] sm:$0xff]  ;;  %v2027_v25 = vrot.slane %v2025_v58, 2 }
 0x231   : > { %3536 = vperm.xlu2 %13398, %v658_v63   ;;  %3611 = vperm.xlu1 %13397, %v673_v43   ;;  %v659_v63 = vld [vmem:[%s18223_s2 + $0x28] sm:$0xff]  ;;  %v676_v43 = vld [vmem:[%s18223_s2 + $0xb0] sm:$0xff] }
 0x232   : > { %v14316_v37 = vpop.f32.mrf.mxu1  ;;  %v2451_v49 = vadd.f32 %v2379_v9, %v2216_v45  ;;  %12307 = vmatmul.msk.bf16.gmra.mxu0 %vm981_vm1, %v2020_v12  ;;  %v2739_v0 = vpop.f32.mrf.mxu2  ;;  %v675_v9 = vld [vmem:[%s18223_s2 + $0xa8] sm:$0xff]  ;;  %v14358_v10 = vor.u32 %v2027_v25, %v2024_v48  ;;  %v14384_v25 = vld [vmem:[%s13695_s20 + $0x90] sm:$0xff] }
 0x233   : > { %12429 = vmatmul.msk.bf16.gmra.mxu3 %vm981_vm1, %v2983_v46  ;;  %3621 = vperm.xlu0 %13396, %v675_v9   ;;  %v2987_v46 = vrot.slane %v2985_v34, 2 }
 0x234   : > { %v2811_v6 = vadd.f32 %v2739_v0, %v2451_v49  ;;  %v2990_v49 = vrot.slane %v2988_v17, 3  ;;  %v2278_v0 = vsel %vm2245_vm4, %v2275_v56, %v2277_v16  ;;  %v2638_v56 = vsel %vm2245_vm4, %v2635_v61, %v18134_v19 }
 0x235   : > { %v2029_v34 = vsel %vm1877_vm5, %v2019_v60, %v14358_v10  ;;  %v2034_v60 = vshll.u32 %v14384_v25, 16 }
 0x236   : > { %v3107_v7 = vpop.f32.mrf.mxu3  ;;  %v14366_v58 = vor.u32 %v2990_v49, %v2987_v46  ;;  %v2031_v46 = vshrl.u32 %v14384_v25, 16 }
 0x237   : > { %v14340_v30 = vadd.f32 %v3107_v7, %v2811_v6  ;;  %v2146_v50 = vpop.f32.mrf.mxu0  ;;  %v14379_v7 = vld [vmem:[%s13695_s20 + $0x98] sm:$0xff] }
 0x238   : > { %v14344_v12 = vadd.f32 %v2146_v50, %v13887_v20  ;;  %v678_v20 = vld [vmem:[%s18223_s2 + $0xc0] sm:$0xff]  ;;  %v2992_v31 = vsel %vm2840_vm6, %v2982_v21, %v14366_v58  ;;  %v679_v21 = vld [vmem:[%s18223_s2 + $0xc8] sm:$0xff] }
 0x239   : > { %3541 = vperm.xlu2 %13398, %v659_v63   ;;  %3626 = vperm.xlu1 %13397, %v676_v43   ;;  %v2997_v63 = vshll.u32 %v14379_v7, 16  ;;  %v18135_v43 = vrot.slane %v14384_v25, 2 }
 0x23a   : > { %v2384_v45 = vpop.f32.mrf.mxu1  ;;  %v14347_v13 = vpop.f32.mrf.mxu2 }
 0x23b   : > { %3636 = vperm.xlu0 %13396, %v678_v20  }
 0x23d   : > { %12326 = vmatmul.msk.bf16.gmra.mxu1 %vm981_vm1, %v2278_v0  ;;  %v2994_v0 = vshrl.u32 %v14379_v7, 16 }
 0x23e   : > { %v14368_v9 = vpop.f32.mrf.mxu3 }
 0x23f   : > { %v2149_v6 = vpop.f32.mrf.mxu0  ;;  %12412 = vmatmul.msk.bf16.gmra.mxu2 %vm981_vm1, %v2638_v56  ;;  %v2996_v19 = vrot.slane %v2994_v0, 2 }
 0x240   : > { %v2218_v17 = vadd.f32 %v2149_v6, %v13897_v35  ;;  %v662_v35 = vld [vmem:[%s18223_s2 + $0x40] sm:$0xff] }
 0x241   : > { %3556 = vperm.xlu2 %13398, %v662_v35   ;;  %3641 = vperm.xlu1 %13397, %v679_v21   ;;  %v2280_v35 = vsel %vm2245_vm4, %v2277_v16, %v18135_v43  ;;  %v1872_v21 = vld [vmem:[%s13695_s20 + $0x98] sm:$0x3]  ;;  %v2511_v43 = vld [vmem:[%s13695_s20 + $0xa0] sm:$0x3] }
 0x242   : > { %v14376_v61 = vpop.f32.mrf.mxu1  ;;  %v2453_v50 = vadd.f32 %v2384_v45, %v2218_v17  ;;  %12308 = vmatmul.msk.bf16.gmra.mxu0 %vm981_vm1, %v2029_v34  ;;  %v2744_v48 = vpop.f32.mrf.mxu2  ;;  %v681_v45 = vld [vmem:[%s18223_s2 + $0xd8] sm:$0xff]  ;;  %v18136_v34 = vrot.slane %v14379_v7, 2  ;;  %v2033_v17 = vrot.slane %v2031_v46, 1  ;;  %v1875_v16 = vunpack.c.l.b16 %v1872_v21 }
 0x243   : > { %18225 = vst [vmem:[#allocation15_spill] sm:$0xff] %v14376_v61  ;;  %12430 = vmatmul.msk.bf16.gmra.mxu3 %vm981_vm1, %v2992_v31  ;;  %3651 = vperm.xlu0 %13396, %v681_v45   ;;  %v2036_v31 = vrot.slane %v2034_v60, 2  ;;  %v2999_v61 = vrot.slane %v2997_v63, 3  ;;  %v2835_v45 = vld [vmem:[%s13695_s20 + $0xa0] sm:$0x7]  ;;  %v665_v46 = vld [vmem:[%s18223_s2 + $0x58] sm:$0xff] }
 0x244   : > { %v2813_v49 = vadd.f32 %v2744_v48, %v2453_v50  ;;  %v684_v60 = vld [vmem:[%s18223_s2 + $0xf0] sm:$0xff]  ;;  %v18229_v63 = vrot.slane %v14319_v15, 2 }
 0x245   : > { %v14422_v0 = vor.u32 %v2036_v31, %v2033_v17  ;;  %v3204_v17 = vld [vmem:[%s18221_s4 + $0x20] sm:$0xf] }
 0x246   : > { %v3112_v20 = vpop.f32.mrf.mxu3  ;;  %v3301_v31 = vsel %vm1036_vm0, %v3204_v17, 0 }
 0x247   : > { %v14400_v56 = vadd.f32 %v3112_v20, %v2813_v49  ;;  %v2151_v6 = vpop.f32.mrf.mxu0  ;;  %v2640_v20 = vsel %vm2245_vm4, %v18229_v63, %v18136_v34  ;;  %3310 = vmatpush.bf16.msra.mxu0 %v3301_v31  ;;  %v2038_v15 = vsel %vm1877_vm5, %v14358_v10, %v14422_v0  ;;  %v668_v10 = vld [vmem:[%s18223_s2 + $0x70] sm:$0xff] }
 0x248   : > { %v14404_v50 = vadd.f32 %v2151_v6, %v13919_v2  ;;  %v682_v2 = vld [vmem:[%s18223_s2 + $0xe0] sm:$0xff]  ;;  %v14430_v6 = vor.u32 %v2999_v61, %v2996_v19  ;;  %v2586_v19 = vunpack.c.l.b16 %v2511_v43  ;;  %v1876_v61 = vpack.c.b16 %v1875_v16, %v1875_v16 }
 0x249   : > { %18226 = vst [vmem:[#allocation16_spill] sm:$0xff] %v14400_v56  ;;  %3571 = vperm.xlu2 %13398, %v665_v46   ;;  %3656 = vperm.xlu1 %13397, %v682_v2  }
 0x24a   : > { %18227 = vst [vmem:[#allocation17_spill] sm:$0xff] %v14404_v50  ;;  %v2389_v48 = vpop.f32.mrf.mxu1  ;;  %v14411_v49 = vpop.f32.mrf.mxu2  ;;  %v3001_v46 = vsel %vm2840_vm6, %v14366_v58, %v14430_v6  ;;  %v687_v58 = vld [vmem:[%s18223_s2 + $0x108] sm:$0xff]  ;;  %v2605_v43 = vpack.c.b16 %v2586_v19, %v2586_v19  ;;  %v18232_v50 = vrot.slane %v14384_v25, 2  ;;  %v18234_v25 = vrot.slane %v14379_v7, 2 }
 0x24b   : > { %18228 = vst [vmem:[#allocation18_spill] sm:$0xff] %v14411_v49  ;;  %v2838_v49 = vunpack.c.l.b16 %v2835_v45  ;;  %3666 = vperm.xlu0 %13396, %v684_v60  }
 0x24d   : > { %12327 = vmatmul.msk.bf16.gmra.mxu1 %vm981_vm1, %v2280_v35  ;;  %v14449_v60 = vpack.c.b16 %v2838_v49, %v2838_v49  ;;  %v2040_v49 = vshrl.u32 %v1876_v61, 16 }
 0x24e   : > { %v14437_v35 = vpop.f32.mrf.mxu3 }
 0x24f   : > { %18230 = vst [vmem:[#allocation19_spill] sm:$0xff] %v14437_v35  ;;  %v2154_v21 = vpop.f32.mrf.mxu0  ;;  %12413 = vmatmul.msk.bf16.gmra.mxu2 %vm981_vm1, %v2640_v20  ;;  %v3003_v17 = vshrl.u32 %v14449_v60, 16  ;;  %v3006_v31 = vshll.u32 %v14449_v60, 16  ;;  %v2042_v35 = vrot.slane %v2040_v49, 1 }
 0x250   : > { %v2220_v45 = vadd.f32 %v2154_v21, %v13933_v29  ;;  %v685_v29 = vld [vmem:[%s18223_s2 + $0xf8] sm:$0xff]  ;;  %v2281_v21 = vrot.slane %v1876_v61, 2 }
 0x251   : > { %3586 = vperm.xlu2 %13398, %v668_v10   ;;  %3671 = vperm.xlu1 %13397, %v685_v29   ;;  %v671_v29 = vld [vmem:[%s18223_s2 + $0x88] sm:$0xff] }
 0x252   : > { %v14447_v2 = vpop.f32.mrf.mxu1  ;;  %v2455_v63 = vadd.f32 %v2389_v48, %v2220_v45  ;;  %12309 = vmatmul.msk.bf16.gmra.mxu0 %vm981_vm1, %v2038_v15  ;;  %v2749_v20 = vpop.f32.mrf.mxu2  ;;  %v2043_v48 = vshll.u32 %v1876_v61, 16  ;;  %v2282_v61 = vsel %vm2245_vm4, %v18232_v50, %v2281_v21  ;;  %v674_v21 = vld [vmem:[%s18223_s2 + $0xa0] sm:$0xff] }
 0x253   : > { %18231 = vst [vmem:[#allocation20_spill] sm:$0xff] %v14447_v2  ;;  %12431 = vmatmul.msk.bf16.gmra.mxu3 %vm981_vm1, %v3001_v46  ;;  %3681 = vperm.xlu0 %13396, %v687_v58   ;;  %v2641_v2 = vrot.slane %v2605_v43, 2  ;;  %v688_v58 = vld [vmem:[%s18223_s2 + $0x110] sm:$0xff] }
 0x254   : > { %v2815_v16 = vadd.f32 %v2749_v20, %v2455_v63  ;;  %v2045_v56 = vrot.slane %v2043_v48, 2  ;;  %v3005_v63 = vrot.slane %v3003_v17, 2  ;;  %v3008_v20 = vrot.slane %v3006_v31, 3 }
 0x255   : > { %v2642_v50 = vsel %vm2245_vm4, %v18234_v25, %v2641_v2  ;;  %v3203_v2 = vld [vmem:[%s13695_s20 + $0x10] sm:$0x8]  ;;  %v677_v25 = vld [vmem:[%s18223_s2 + $0xb8] sm:$0xff] }
 0x256   : > { %v3117_v15 = vpop.f32.mrf.mxu3  ;;  %v3009_v43 = vor.u32 %v3008_v20, %v3005_v63 }
 0x257   : > { %v14464_v45 = vadd.f32 %v3117_v15, %v2815_v16  ;;  %v2156_v34 = vpop.f32.mrf.mxu0 }
 0x258   : > { %v14467_v19 = vadd.f32 %v2156_v34, %v13944_v1  ;;  %v693_v1 = vld [vmem:[%s18233_s3 + $0x18] sm:$0xff]  ;;  %v2046_v34 = vor.u32 %v2045_v56, %v2042_v35  ;;  %v3010_v35 = vsel %vm2840_vm6, %v14430_v6, %v3009_v43  ;;  %v3206_v6 = vunpack.c.l.b16 %v3203_v2 }
 0x259   : > { %3601 = vperm.xlu2 %13398, %v671_v29   ;;  %3686 = vperm.xlu1 %13397, %v688_v58  }
 0x25a   : > { %v2394_v46 = vpop.f32.mrf.mxu1  ;;  %v14472_v10 = vpop.f32.mrf.mxu2  ;;  %v2047_v16 = vsel %vm1877_vm5, %v14422_v0, %v2046_v34  ;;  %v690_v0 = vld [vmem:[%s18233_s3] sm:$0xff] }
 0x25b   : > { %11866 = vperm.xlu0 %13396, %v693_v1  }
 0x25d   : > { %12328 = vmatmul.msk.bf16.gmra.mxu1 %vm981_vm1, %v2282_v61  ;;  %v18235_v61 = vunpack.c.l.b16 %v13937_v42 }
 0x25e   : > { %v14487_v49 = vpop.f32.mrf.mxu3 }
 0x25f   : > { %v2159_v48 = vpop.f32.mrf.mxu0  ;;  %12414 = vmatmul.msk.bf16.gmra.mxu2 %vm981_vm1, %v2642_v50  ;;  %v3207_v29 = vpack.c.b16 %v18235_v61, %v3206_v6  ;;  %v692_v50 = vld [vmem:[%s18233_s3 + $0x10] sm:$0xff] }
 0x260   : > { %v2222_v56 = vadd.f32 %v2159_v48, %v13966_v38  ;;  %v696_v38 = vld [vmem:[%s18233_s3 + $0x30] sm:$0xff]  ;;  %v13417_v48 = vld [vmem:[%s13695_s20 + $0x18] sm:$0xff] }
 0x261   : > { %3616 = vperm.xlu2 %13398, %v674_v21   ;;  %11851 = vperm.xlu1 %13397, %v690_v0   ;;  %v3209_v43 = vrot.slane %v3207_v29, 3  ;;  %v680_v21 = vld [vmem:[%s18223_s2 + $0xd0] sm:$0xff]  ;;  %v695_v0 = vld [vmem:[%s18233_s3 + $0x28] sm:$0xff] }
 0x262   : > { %v14495_v7 = vpop.f32.mrf.mxu1  ;;  %v2457_v17 = vadd.f32 %v2394_v46, %v2222_v56  ;;  %12310 = vmatmul.msk.bf16.gmra.mxu0 %vm981_vm1, %v2047_v16  ;;  %v2754_v31 = vpop.f32.mrf.mxu2  ;;  %v3210_v16 = vrot.slane %v13417_v48, 3  ;;  %v683_v29 = vld [vmem:[%s18223_s2 + $0xe8] sm:$0xff] }
 0x263   : > { %12432 = vmatmul.msk.bf16.gmra.mxu3 %vm981_vm1, %v3010_v35  ;;  %11881 = vperm.xlu0 %13396, %v696_v38  }
 0x264   : > { %v2817_v15 = vadd.f32 %v2754_v31, %v2457_v17  ;;  %v3211_v56 = vsel %vm3208_vm7, %v3209_v43, %v3210_v16 }
 0x266   : > { %v3122_v46 = vpop.f32.mrf.mxu3 }
 0x267   : > { %v14509_v63 = vadd.f32 %v3122_v46, %v2817_v15  ;;  %v2161_v20 = vpop.f32.mrf.mxu0 }
 0x268   : > { %v14514_v58 = vadd.f32 %v2161_v20, %v13971_v5 }
 0x269   : > { %3631 = vperm.xlu2 %13398, %v677_v25   ;;  %11861 = vperm.xlu1 %13397, %v692_v50  }
 0x26a   : > { %v2399_v1 = vpop.f32.mrf.mxu1  ;;  %v14516_v34 = vpop.f32.mrf.mxu2 }
 0x26e   : > { %v14525_v42 = vpop.f32.mrf.mxu3 }
 0x26f   : > { %v2164_v5 = vpop.f32.mrf.mxu0 }
 0x270   : > { %v2224_v35 = vadd.f32 %v2164_v5, %v13982_v22 }
 0x271   : > { %3646 = vperm.xlu2 %13398, %v680_v21   ;;  %11876 = vperm.xlu1 %13397, %v695_v0  }
 0x272   : > { %v14529_v2 = vpop.f32.mrf.mxu1  ;;  %v2459_v17 = vadd.f32 %v2399_v1, %v2224_v35  ;;  %12433 = vmatmul.msk.bf16.vlgmr.msra.gmra.mxu0 %vm981_vm1, %v3211_v56  ;;  %v2759_v31 = vpop.f32.mrf.mxu2  ;;  %v13418_v1 = vld [vmem:[%s13695_s20 + $0x20] sm:$0xff] }
 0x273   : > { %v3212_v25 = vrot.slane %v13418_v1, 3 }
 0x274   : > { %v2819_v38 = vadd.f32 %v2759_v31, %v2459_v17  ;;  %v686_v17 = vld [vmem:[%s18223_s2 + $0x100] sm:$0xff] }
 0x275   : > { %v3213_v48 = vsel %vm3208_vm7, %v3210_v16, %v3212_v25 }
 0x276   : > { %v3127_v6 = vpop.f32.mrf.mxu3 }
 0x277   : > { %v14538_v22 = vadd.f32 %v3127_v6, %v2819_v38  ;;  %v2166_v15 = vpop.f32.mrf.mxu0 }
 0x278   : > { %v14541_v46 = vadd.f32 %v2166_v15, %v13987_v54  ;;  %v689_v15 = vld [vmem:[%s18223_s2 + $0x118] sm:$0xff]  ;;  %s11993_s2 = scalar_lea.hbm %s18126_s17, %s13647_s28 }
 0x279   : > { %3661 = vperm.xlu2 %13398, %v683_v29   ;;  %s11997_s21 = sshll.u32 %s11993_s2, 4  ;;  %s11998_s21 = int_to_ptr.hbm [resolvable:$true] %s11997_s21 }
 0x27a   : > { %v2404_v20 = vpop.f32.mrf.mxu1  ;;  %v14543_v61 = vpop.f32.mrf.mxu2  ;;  %s13451_s29 = sshra.s32 %s11998_s21, 4  ;;  %s13452_s29 = int_to_ptr.hbm [resolvable:$true] %s13451_s29 }
 0x27b   : > { %s13453_s26 = scalar_lea.hbm %s13452_s29, 1  ;;  %p13458_p0 = scmp.lt.s32.totalorder %s13452_s29, %s18126_s17 }
 0x27c   : > { %p13454_p11 = scmp.ne.s32.totalorder %s13452_s29, %s13453_s26 }
 0x27e   : > { %v14549_v50 = vpop.f32.mrf.mxu3  ;;  %p13455_p12 = pnand %p13454_p11, %p13664_p5 }
 0x27f   : > { %v2169_v43 = vpop.f32.mrf.mxu0 }
 0x280   : > { %v2226_v5 = vadd.f32 %v2169_v43, %v13998_v11  ;;  %p13456_p13 = pneg %p13455_p12 }
 0x281   : > { %3676 = vperm.xlu2 %13398, %v686_v17   ;;  %v691_v17 = vld [vmem:[%s18233_s3 + $0x8] sm:$0xff] }
 0x282   : > { %v14553_v54 = vpop.f32.mrf.mxu1  ;;  %v2461_v56 = vadd.f32 %v2404_v20, %v2226_v5  ;;  %12434 = vmatmul.msk.bf16.gmra.mxu0 %vm981_vm1, %v3213_v48  ;;  %v2764_v35 = vpop.f32.mrf.mxu2  ;;  %v13419_v20 = vld [vmem:[%s13695_s20 + $0x28] sm:$0xff] }
 0x283   : > { %v3214_v29 = vrot.slane %v13419_v20, 3 }
 0x284   : > { %v2821_v31 = vadd.f32 %v2764_v35, %v2461_v56 }
 0x285   : > { %v3215_v48 = vsel %vm3208_vm7, %v3212_v25, %v3214_v29 }
 0x286   : > { %v3132_v21 = vpop.f32.mrf.mxu3 }
 0x287   : > { %v14559_v0 = vadd.f32 %v3132_v21, %v2821_v31  ;;  %v2171_v38 = vpop.f32.mrf.mxu0 }
 0x288   : > { %v14562_v16 = vadd.f32 %v2171_v38, %v14003_v44 }
 0x289   : > { %3691 = vperm.xlu2 %13398, %v689_v15  }
 0x28a   : > { %v2409_v11 = vpop.f32.mrf.mxu1  ;;  %v14564_v6 = vpop.f32.mrf.mxu2 }
 0x28e   : > { %v14570_v1 = vpop.f32.mrf.mxu3 }
 0x28f   : > { %v2174_v43 = vpop.f32.mrf.mxu0 }
 0x290   : > { %v2228_v5 = vadd.f32 %v2174_v43, %v14018_v33  ;;  %v13420_v43 = vld [vmem:[%s13695_s20 + $0x30] sm:$0xff] }
 0x291   : > { %11856 = vperm.xlu2 %13398, %v691_v17  }
 0x292   : > { %v14574_v44 = vpop.f32.mrf.mxu1  ;;  %v2463_v56 = vadd.f32 %v2409_v11, %v2228_v5  ;;  %12435 = vmatmul.msk.bf16.gmra.mxu0 %vm981_vm1, %v3215_v48  ;;  %v2769_v35 = vpop.f32.mrf.mxu2  ;;  %v694_v11 = vld [vmem:[%s18233_s3 + $0x20] sm:$0xff]  ;;  %v3216_v48 = vrot.slane %v13420_v43, 3 }
 0x293   : > { %18236 = vst [vmem:[#allocation21_spill] sm:$0xff] %v14574_v44 }
 0x294   : > { %v2823_v31 = vadd.f32 %v2769_v35, %v2463_v56  ;;  %v3217_v35 = vsel %vm3208_vm7, %v3214_v29, %v3216_v48  ;;  %v13421_v29 = vld [vmem:[%s13695_s20 + $0x38] sm:$0xff] }
 0x296   : > { %v3137_v21 = vpop.f32.mrf.mxu3 }
 0x297   : > { %v14580_v38 = vadd.f32 %v3137_v21, %v2823_v31  ;;  %v2176_v15 = vpop.f32.mrf.mxu0 }
 0x298   : > { %v14583_v25 = vadd.f32 %v2176_v15, %v14024_v28 }
 0x299   : > { %18237 = vst [vmem:[#allocation22_spill] sm:$0xff] %v14580_v38  ;;  %11871 = vperm.xlu2 %13398, %v694_v11  }
 0x29a   : > { %18238 = vst [vmem:[#allocation23_spill] sm:$0xff] %v14583_v25  ;;  %v2414_v33 = vpop.f32.mrf.mxu1  ;;  %v14585_v20 = vpop.f32.mrf.mxu2  ;;  %v3218_v25 = vrot.slane %v13421_v29, 3 }
 0x29b   : > { %18239 = vst [vmem:[#allocation24_spill] sm:$0xff] %v14585_v20 }
 0x29e   : > { %v14591_v5 = vpop.f32.mrf.mxu3 }
 0x29f   : > { %18240 = vst [vmem:[#allocation25_spill] sm:$0xff] %v14591_v5  ;;  %v2179_v56 = vpop.f32.mrf.mxu0 }
 0x2a0   : > { %v2230_v17 = vadd.f32 %v2179_v56, %v14037_v3  ;;  %v3219_v56 = vsel %vm3208_vm7, %v3216_v48, %v3218_v25  ;;  %v13422_v48 = vld [vmem:[%s13695_s20 + $0x40] sm:$0xff] }
 0x2a2   : > { %v14595_v28 = vpop.f32.mrf.mxu1  ;;  %v2465_v31 = vadd.f32 %v2414_v33, %v2230_v17  ;;  %12436 = vmatmul.msk.bf16.gmra.mxu0 %vm981_vm1, %v3217_v35  ;;  %v2774_v21 = vpop.f32.mrf.mxu2 }
 0x2a4   : > { %v2825_v15 = vadd.f32 %v2774_v21, %v2465_v31 }
 0x2a6   : > { %v3142_v20 = vpop.f32.mrf.mxu3 }
 0x2a7   : > { %v14598_v38 = vadd.f32 %v3142_v20, %v2825_v15  ;;  %v2181_v43 = vpop.f32.mrf.mxu0 }
 0x2a8   : > { %v14601_v11 = vadd.f32 %v2181_v43, %v14043_v32 }
 0x2a9   : > { %18241 = vst [vmem:[#allocation26_spill] sm:$0xff] %v14598_v38  ;;  %v3220_v38 = vrot.slane %v13422_v48, 3 }
 0x2aa   : > { %v2419_v5 = vpop.f32.mrf.mxu1  ;;  %v14603_v44 = vpop.f32.mrf.mxu2 }
 0x2ab   : > { %18242 = vst [vmem:[#allocation27_spill] sm:$0xff] %v14603_v44 }
 0x2ae   : > { %v14606_v3 = vpop.f32.mrf.mxu3 }
 0x2af   : > { %18243 = vst [vmem:[#allocation28_spill] sm:$0xff] %v14606_v3  ;;  %v2184_v33 = vpop.f32.mrf.mxu0 }
 0x2b0   : > { %v2232_v35 = vadd.f32 %v2184_v33, %v14056_v26 }
 0x2b2   : > { %v14610_v17 = vpop.f32.mrf.mxu1  ;;  %v2467_v20 = vadd.f32 %v2419_v5, %v2232_v35  ;;  %12437 = vmatmul.msk.bf16.gmra.mxu0 %vm981_vm1, %v3219_v56  ;;  %v2779_v32 = vpop.f32.mrf.mxu2  ;;  %v3221_v5 = vsel %vm3208_vm7, %v3218_v25, %v3220_v38 }
 0x2b4   : > { %v2827_v31 = vadd.f32 %v2779_v32, %v2467_v20 }
 0x2b6   : > { %v3147_v21 = vpop.f32.mrf.mxu3 }
 0x2b7   : > { %v14613_v15 = vadd.f32 %v3147_v21, %v2827_v31  ;;  %v2186_v43 = vpop.f32.mrf.mxu0 }
 0x2b8   : > { %v14616_v29 = vadd.f32 %v2186_v43, %v14062_v47  ;;  %v18137_v47 = vmov 0.0   ;;  %v13281_v43 = vld [vmem:[%s18244_s6] sm:$0xff] }
 0x2b9   : > { %558 = vst.msk [vmem:[#allocation2] sm:$0xff] %vm557_vm8, %v18137_v47  ;;  %4104 = vmatpush.bf16.msra.mxu2 %v13281_v43 }
 0x2ba   : > { %v2424_v3 = vpop.f32.mrf.mxu1  ;;  %v14618_v44 = vpop.f32.mrf.mxu2  ;;  %559 = vst.msk [vmem:[#allocation2 + $0x8] sm:$0xff] %vm557_vm8, %v18137_v47 }
 0x2bb   : > { %560 = vst.msk [vmem:[#allocation2 + $0x10] sm:$0xff] %vm557_vm8, %v18137_v47 }
 0x2bc   : > { %561 = vst.msk [vmem:[#allocation2 + $0x18] sm:$0xff] %vm557_vm8, %v18137_v47 }
 0x2bd   : > { %562 = vst.msk [vmem:[#allocation2 + $0x20] sm:$0xff] %vm557_vm8, %v18137_v47 }
 0x2be   : > { %v14621_v26 = vpop.f32.mrf.mxu3  ;;  %563 = vst.msk [vmem:[#allocation2 + $0x28] sm:$0xff] %vm557_vm8, %v18137_v47 }
 0x2bf   : > { %v2189_v33 = vpop.f32.mrf.mxu0  ;;  %564 = vst.msk [vmem:[#allocation2 + $0x30] sm:$0xff] %vm557_vm8, %v18137_v47 }
 0x2c0   : > { %v2234_v56 = vadd.f32 %v2189_v33, %v14075_v24  ;;  %v13283_v33 = vld [vmem:[%s18244_s6 + $0x10] sm:$0xff]  ;;  %565 = vst.msk [vmem:[#allocation2 + $0x38] sm:$0xff] %vm557_vm8, %v18137_v47 }
 0x2c1   : > { %566 = vst.msk [vmem:[#allocation2 + $0x40] sm:$0xff] %vm557_vm8, %v18137_v47  ;;  %4319 = vmatpush.bf16.msra.mxu3 %v13283_v33 }
 0x2c2   : > { %v14625_v35 = vpop.f32.mrf.mxu1  ;;  %v2469_v20 = vadd.f32 %v2424_v3, %v2234_v56  ;;  %12438 = vmatmul.msk.bf16.gmra.mxu0 %vm981_vm1, %v3221_v5  ;;  %v2784_v32 = vpop.f32.mrf.mxu2  ;;  %v3766_v5 = vld [vmem:[#allocation2] sm:$0xff]  ;;  %v13423_v56 = vld [vmem:[%s13695_s20 + $0x48] sm:$0xff]  ;;  %567 = vst.msk [vmem:[#allocation2 + $0x48] sm:$0xff] %vm557_vm8, %v18137_v47 }
 0x2c3   : > { %568 = vst.msk [vmem:[#allocation2 + $0x50] sm:$0xff] %vm557_vm8, %v18137_v47 }
 0x2c4   : > { %v2829_v31 = vadd.f32 %v2784_v32, %v2469_v20  ;;  %v3222_v20 = vrot.slane %v13423_v56, 3  ;;  %v3767_v32 = vld [vmem:[#allocation2 + $0x8] sm:$0xff]  ;;  %569 = vst.msk [vmem:[#allocation2 + $0x58] sm:$0xff] %vm557_vm8, %v18137_v47 }
 0x2c5   : > { %570 = vst.msk [vmem:[#allocation2 + $0x60] sm:$0xff] %vm557_vm8, %v18137_v47 }
 0x2c6   : > { %v3152_v24 = vpop.f32.mrf.mxu3  ;;  %v3223_v33 = vsel %vm3208_vm7, %v3220_v38, %v3222_v20  ;;  %571 = vst.msk [vmem:[#allocation2 + $0x68] sm:$0xff] %vm557_vm8, %v18137_v47 }
 0x2c7   : > { %v14636_v25 = vadd.f32 %v3152_v24, %v2829_v31  ;;  %v2191_v3 = vpop.f32.mrf.mxu0  ;;  %v3802_v31 = vpack.c.bf16 %v3767_v32, %v3766_v5  ;;  %v4196_v24 = vld [vmem:[#allocation2 + $0x2] sm:$0xff]  ;;  %572 = vst.msk [vmem:[#allocation2 + $0x70] sm:$0xff] %vm557_vm8, %v18137_v47 }
 0x2c8   : > { %v14641_v21 = vadd.f32 %v2191_v3, %v14081_v39  ;;  %v4197_v3 = vld [vmem:[#allocation2 + $0xa] sm:$0xff]  ;;  %573 = vst.msk [vmem:[#allocation2 + $0x78] sm:$0xff] %vm557_vm8, %v18137_v47 }
 0x2c9   : > { %v4232_v43 = vpack.c.bf16 %v4197_v3, %v4196_v24  ;;  %12477 = vmatmul.msk.bf16.vlgmr.msra.gmra.mxu2 %vm557_vm8, %v3802_v31  ;;  %574 = vst.msk [vmem:[#allocation2 + $0x80] sm:$0xff] %vm557_vm8, %v18137_v47 }
 0x2ca   : > { %v14650_v48 = vpop.f32.mrf.mxu2  ;;  %v2429_v39 = vpop.f32.mrf.mxu1  ;;  %575 = vst.msk [vmem:[#allocation2 + $0x88] sm:$0xff] %vm557_vm8, %v18137_v47 }
 0x2cb   : > { %18245 = vst [vmem:[#allocation29_spill] sm:$0xff] %v14650_v48  ;;  %12499 = vmatmul.msk.bf16.vlgmr.msra.gmra.mxu3 %vm557_vm8, %v4232_v43 }
 0x2cc   : > { %576 = vst.msk [vmem:[#allocation2 + $0x90] sm:$0xff] %vm557_vm8, %v18137_v47 }
 0x2cd   : > { %577 = vst.msk [vmem:[#allocation2 + $0x98] sm:$0xff] %vm557_vm8, %v18137_v47 }
 0x2ce   : > { %v14664_v48 = vpop.f32.mrf.mxu3  ;;  %578 = vst.msk [vmem:[#allocation2 + $0xa0] sm:$0xff] %vm557_vm8, %v18137_v47 }
 0x2cf   : > { %v2194_v56 = vpop.f32.mrf.mxu0  ;;  %579 = vst.msk [vmem:[#allocation2 + $0xa8] sm:$0xff] %vm557_vm8, %v18137_v47 }
 0x2d0   : > { %v2236_v5 = vadd.f32 %v2194_v56, %v14094_v52  ;;  %580 = vst.msk [vmem:[#allocation2 + $0xb0] sm:$0xff] %vm557_vm8, %v18137_v47 }
 0x2d1   : > { %581 = vst.msk [vmem:[#allocation2 + $0xb8] sm:$0xff] %vm557_vm8, %v18137_v47 }
 0x2d2   : > { %v2471_v32 = vadd.f32 %v2429_v39, %v2236_v5  ;;  %12439 = vmatmul.msk.bf16.gmra.mxu0 %vm981_vm1, %v3223_v33  ;;  %v2789_v31 = vpop.f32.mrf.mxu2  ;;  %v14685_v52 = vpop.f32.mrf.mxu1  ;;  %v13424_v33 = vld [vmem:[%s13695_s20 + $0x50] sm:$0xff]  ;;  %582 = vst.msk [vmem:[#allocation2 + $0xc0] sm:$0xff] %vm557_vm8, %v18137_v47 }
 0x2d3   : > { %v3224_v5 = vrot.slane %v13424_v33, 3  ;;  %583 = vst.msk [vmem:[#allocation2 + $0xc8] sm:$0xff] %vm557_vm8, %v18137_v47 }
 0x2d4   : > { %v2831_v38 = vadd.f32 %v2789_v31, %v2471_v32  ;;  %584 = vst.msk [vmem:[#allocation2 + $0xd0] sm:$0xff] %vm557_vm8, %v18137_v47 }
 0x2d5   : > { %585 = vst.msk [vmem:[#allocation2 + $0xd8] sm:$0xff] %vm557_vm8, %v18137_v47 }
 0x2d6   : > { %v3157_v39 = vpop.f32.mrf.mxu3  ;;  %586 = vst.msk [vmem:[#allocation2 + $0xe0] sm:$0xff] %vm557_vm8, %v18137_v47 }
 0x2d7   : > { %v14691_v24 = vadd.f32 %v3157_v39, %v2831_v38  ;;  %v2196_v3 = vpop.f32.mrf.mxu0  ;;  %v3225_v38 = vsel %vm3208_vm7, %v3222_v20, %v3224_v5  ;;  %587 = vst.msk [vmem:[#allocation2 + $0xe8] sm:$0xff] %vm557_vm8, %v18137_v47 }
 0x2d8   : > { %v14696_v43 = vadd.f32 %v2196_v3, %v14100_v36  ;;  %588 = vst.msk [vmem:[#allocation2 + $0xf0] sm:$0xff] %vm557_vm8, %v18137_v47 }
 0x2d9   : > { %18246 = vst [vmem:[#allocation30_spill] sm:$0xff] %v14691_v24 }
 0x2da   : > { %v14702_v56 = vpop.f32.mrf.mxu2  ;;  %v2434_v31 = vpop.f32.mrf.mxu1  ;;  %589 = vst.msk [vmem:[#allocation2 + $0xf8] sm:$0xff] %vm557_vm8, %v18137_v47 }
 0x2db   : > { %18247 = vst [vmem:[#allocation31_spill] sm:$0xff] %v14702_v56 }
 0x2dc   : > { %590 = vst.msk [vmem:[#allocation2 + $0x100] sm:$0xff] %vm557_vm8, %v18137_v47 }
 0x2dd   : > { %591 = vst.msk [vmem:[#allocation2 + $0x108] sm:$0xff] %vm557_vm8, %v18137_v47 }
 0x2de   : > { %v14713_v36 = vpop.f32.mrf.mxu3  ;;  %592 = vst.msk [vmem:[#allocation2 + $0x110] sm:$0xff] %vm557_vm8, %v18137_v47 }
 0x2df   : > { %18248 = vst [vmem:[#allocation32_spill] sm:$0xff] %v14713_v36  ;;  %v2199_v32 = vpop.f32.mrf.mxu0 }
 0x2e0   : > { %v2238_v39 = vadd.f32 %v2199_v32, %v14113_v62  ;;  %593 = vst.msk [vmem:[#allocation2 + $0x118] sm:$0xff] %vm557_vm8, %v18137_v47 }
 0x2e1   : > { %594 = vst.msk [vmem:[#allocation2 + $0x120] sm:$0xff] %vm557_vm8, %v18137_v47 }
 0x2e2   : > { %v2473_v3 = vadd.f32 %v2434_v31, %v2238_v39  ;;  %12440 = vmatmul.msk.bf16.gmra.mxu0 %vm981_vm1, %v3225_v38  ;;  %v2794_v33 = vpop.f32.mrf.mxu2  ;;  %595 = vst.msk [vmem:[#allocation2 + $0x128] sm:$0xff] %vm557_vm8, %v18137_v47  ;;  %v13282_v39 = vld [vmem:[%s18244_s6 + $0x8] sm:$0xff] }
 0x2e3   : > { %596 = vst.msk [vmem:[#allocation2 + $0x130] sm:$0xff] %vm557_vm8, %v18137_v47  ;;  %3945 = vmatpush.bf16.msra.mxu1 %v13282_v39 }
 0x2e4   : > { %v2833_v20 = vadd.f32 %v2794_v33, %v2473_v3  ;;  %597 = vst.msk [vmem:[#allocation2 + $0x138] sm:$0xff] %vm557_vm8, %v18137_v47  ;;  %v3822_v33 = vld [vmem:[#allocation2 + $0x1] sm:$0xff] }
 0x2e5   : > { %598 = vst.msk [vmem:[#allocation2 + $0x140] sm:$0xff] %vm557_vm8, %v18137_v47 }
 0x2e6   : > { %v3162_v62 = vpop.f32.mrf.mxu3  ;;  %599 = vst.msk [vmem:[#allocation3] sm:$0xff] %vm557_vm8, %v18137_v47 }
 0x2e7   : > { %v14736_v32 = vadd.f32 %v3162_v62, %v2833_v20  ;;  %v2201_v31 = vpop.f32.mrf.mxu0  ;;  %v3823_v20 = vld [vmem:[#allocation2 + $0x9] sm:$0xff]  ;;  %600 = vst.msk [vmem:[#allocation3 + $0x8] sm:$0xff] %vm557_vm8, %v18137_v47 }
 0x2e8   : > { %v14741_v38 = vadd.f32 %v2201_v31, %v14119_v57  ;;  %v13425_v57 = vld [vmem:[%s13695_s20 + $0x58] sm:$0xff]  ;;  %v3858_v62 = vpack.c.bf16 %v3823_v20, %v3822_v33  ;;  %601 = vst.msk [vmem:[#allocation3 + $0x10] sm:$0xff] %vm557_vm8, %v18137_v47  ;;  %v14817_v20 = vld [vmem:[%s18251_s5] ss:$0 sm:$0xff] }
 0x2e9   : > { %18249 = vst [vmem:[#allocation33_spill] sm:$0xff] %v14736_v32  ;;  %v3226_v3 = vrot.slane %v13425_v57, 3 }
 0x2ea   : > { %18250 = vst [vmem:[#allocation34_spill] sm:$0xff] %v14741_v38  ;;  %12455 = vmatmul.msk.bf16.vlgmr.msra.gmra.mxu1 %vm557_vm8, %v3858_v62 }
 0x2eb   : > { %602 = vst.msk [vmem:[#allocation3 + $0x18] sm:$0xff] %vm557_vm8, %v18137_v47  ;;  %v3227_v32 = vsel %vm3208_vm7, %v3224_v5, %v3226_v3 }
 0x2ec   : > { %603 = vst.msk [vmem:[#allocation3 + $0x20] sm:$0xff] %vm557_vm8, %v18137_v47 }
 0x2ed   : > { %604 = vst.msk [vmem:[#allocation3 + $0x28] sm:$0xff] %vm557_vm8, %v18137_v47 }
 0x2ee   : > { %605 = vst.msk [vmem:[#allocation3 + $0x30] sm:$0xff] %vm557_vm8, %v18137_v47 }
 0x2ef   : > { %v3312_v31 = vpop.f32.mrf.mxu0  ;;  %606 = vst.msk [vmem:[#allocation3 + $0x38] sm:$0xff] %vm557_vm8, %v18137_v47 }
 0x2f0   : > { %607 = vst.msk [vmem:[#allocation3 + $0x40] sm:$0xff] %vm557_vm8, %v18137_v47 }
 0x2f1   : > { %608 = vst.msk [vmem:[#allocation3 + $0x48] sm:$0xff] %vm557_vm8, %v18137_v47 }
 0x2f2   : > { %12441 = vmatmul.msk.bf16.gmra.mxu0 %vm981_vm1, %v3227_v32  ;;  %609 = vst.msk [vmem:[#allocation3 + $0x50] sm:$0xff] %vm557_vm8, %v18137_v47  ;;  %v13426_v32 = vld [vmem:[%s13695_s20 + $0x60] sm:$0xff] }
 0x2f3   : > { %610 = vst.msk [vmem:[#allocation3 + $0x58] sm:$0xff] %vm557_vm8, %v18137_v47  ;;  %v3228_v39 = vrot.slane %v13426_v32, 3  ;;  %v14822_v32 = vpop.permute.xlu0 %3516 }
 0x2f4   : > { %611 = vst.msk [vmem:[#allocation3 + $0x60] sm:$0xff] %vm557_vm8, %v18137_v47 }
 0x2f5   : > { %612 = vst.msk [vmem:[#allocation3 + $0x68] sm:$0xff] %vm557_vm8, %v18137_v47  ;;  %v3229_v33 = vsel %vm3208_vm7, %v3226_v3, %v3228_v39  ;;  %v3402_v3 = vadd.f32 %v3312_v31, %v14133_v14  ;;  %v14830_v31 = vpop.permute.xlu1 %3526 }
 0x2f6   : > { %613 = vst.msk [vmem:[#allocation3 + $0x70] sm:$0xff] %vm557_vm8, %v18137_v47 }
 0x2f7   : > { %v3314_v5 = vpop.f32.mrf.mxu0  ;;  %614 = vst.msk [vmem:[#allocation3 + $0x78] sm:$0xff] %vm557_vm8, %v18137_v47 }
 0x2f8   : > { %615 = vst.msk [vmem:[#allocation3 + $0x80] sm:$0xff] %vm557_vm8, %v18137_v47  ;;  %v3403_v62 = vadd.f32 %v3314_v5, %v14140_v41  ;;  %v3442_v41 = vadd.f32 %v14817_v20, %v3402_v3 }
 0x2f9   : > { %616 = vst.msk [vmem:[#allocation3 + $0x88] sm:$0xff] %vm557_vm8, %v18137_v47 }
 0x2fa   : > { %617 = vst.msk [vmem:[#allocation3 + $0x90] sm:$0xff] %vm557_vm8, %v18137_v47  ;;  %v3443_v5 = vadd.f32 %v14817_v20, %v3403_v62 }
 0x2fb   : > { %618 = vst.msk [vmem:[#allocation3 + $0x98] sm:$0xff] %vm557_vm8, %v18137_v47  ;;  %v14855_v24 = vpop.permute.xlu0 %3521 }
 0x2fc   : > { %619 = vst.msk [vmem:[#allocation3 + $0xa0] sm:$0xff] %vm557_vm8, %v18137_v47  ;;  %v3479_v3 = vmax.f32 %v3443_v5, 0.0 }
 0x2fd   : > { %620 = vst.msk [vmem:[#allocation3 + $0xa8] sm:$0xff] %vm557_vm8, %v18137_v47 }
 0x2fe   : > { %621 = vst.msk [vmem:[#allocation3 + $0xb0] sm:$0xff] %vm557_vm8, %v18137_v47  ;;  %v3695_v5 = vmul.f32 %v14855_v24, %v3479_v3 }
 0x2ff   : > { %v3317_v57 = vpop.f32.mrf.mxu0  ;;  %622 = vst.msk [vmem:[#allocation3 + $0xb8] sm:$0xff] %vm557_vm8, %v18137_v47 }
 0x300   : > { %623 = vst.msk [vmem:[#allocation3 + $0xc0] sm:$0xff] %vm557_vm8, %v18137_v47 }
 0x301   : > { %624 = vst.msk [vmem:[#allocation3 + $0xc8] sm:$0xff] %vm557_vm8, %v18137_v47 }
 0x302   : > { %12442 = vmatmul.msk.bf16.gmra.mxu0 %vm981_vm1, %v3229_v33  ;;  %625 = vst.msk [vmem:[#allocation3 + $0xd0] sm:$0xff] %vm557_vm8, %v18137_v47  ;;  %v3404_v33 = vadd.f32 %v3317_v57, %v14154_v40  ;;  %v13427_v57 = vld [vmem:[%s13695_s20 + $0x68] sm:$0xff] }
 0x303   : > { %18252 = vst [vmem:[#allocation35_spill] sm:$0xff] %v14822_v32  ;;  %v3230_v36 = vrot.slane %v13427_v57, 3 }
 0x304   : > { %626 = vst.msk [vmem:[#allocation3 + $0xd8] sm:$0xff] %vm557_vm8, %v18137_v47  ;;  %v3444_v40 = vadd.f32 %v14817_v20, %v3404_v33 }
 0x305   : > { %627 = vst.msk [vmem:[#allocation3 + $0xe0] sm:$0xff] %vm557_vm8, %v18137_v47  ;;  %v3231_v57 = vsel %vm3208_vm7, %v3228_v39, %v3230_v36 }
 0x306   : > { %18253 = vst [vmem:[#allocation36_spill] sm:$0xff] %v14830_v31  ;;  %v3480_v62 = vmax.f32 %v3444_v40, 0.0  ;;  %v14865_v40 = vpop.permute.xlu1 %3531 }
 0x307   : > { %v3319_v38 = vpop.f32.mrf.mxu0  ;;  %628 = vst.msk [vmem:[#allocation3 + $0xe8] sm:$0xff] %vm557_vm8, %v18137_v47 }
 0x308   : > { %v3405_v14 = vadd.f32 %v3319_v38, %v14161_v59  ;;  %629 = vst.msk [vmem:[#allocation3 + $0xf0] sm:$0xff] %vm557_vm8, %v18137_v47  ;;  %v3478_v38 = vmax.f32 %v3442_v41, 0.0 }
 0x309   : > { %630 = vst.msk [vmem:[#allocation3 + $0xf8] sm:$0xff] %vm557_vm8, %v18137_v47 }
 0x30a   : > { %631 = vst.msk [vmem:[#allocation3 + $0x100] sm:$0xff] %vm557_vm8, %v18137_v47  ;;  %v3445_v59 = vadd.f32 %v14817_v20, %v3405_v14  ;;  %v3694_v41 = vmul.f32 %v14822_v32, %v3478_v38 }
 0x30b   : > { %632 = vst.msk [vmem:[#allocation3 + $0x108] sm:$0xff] %vm557_vm8, %v18137_v47 }
 0x30c   : > { %633 = vst.msk [vmem:[#allocation3 + $0x110] sm:$0xff] %vm557_vm8, %v18137_v47  ;;  %v3481_v56 = vmax.f32 %v3445_v59, 0.0  ;;  %v3696_v59 = vmul.f32 %v14830_v31, %v3480_v62 }
 0x30d   : > { %634 = vst.msk [vmem:[#allocation3 + $0x118] sm:$0xff] %vm557_vm8, %v18137_v47 }
 0x30e   : > { %635 = vst.msk [vmem:[#allocation3 + $0x120] sm:$0xff] %vm557_vm8, %v18137_v47  ;;  %v3697_v38 = vmul.f32 %v14865_v40, %v3481_v56 }
 0x30f   : > { %v3322_v33 = vpop.f32.mrf.mxu0  ;;  %18254 = vst [vmem:[#allocation37_spill] sm:$0xff] %v14855_v24 }
 0x310   : > { %v3406_v14 = vadd.f32 %v3322_v33, %v14180_v18  ;;  %636 = vst.msk [vmem:[#allocation3 + $0x128] sm:$0xff] %vm557_vm8, %v18137_v47  ;;  %v14867_v18 = vpop.permute.xlu2 %3536 }
 0x311   : > { %637 = vst.msk [vmem:[#allocation3 + $0x130] sm:$0xff] %vm557_vm8, %v18137_v47 }
 0x312   : > { %v3446_v39 = vadd.f32 %v14817_v20, %v3406_v14  ;;  %12443 = vmatmul.msk.bf16.gmra.mxu0 %vm981_vm1, %v3231_v57  ;;  %18255 = vst [vmem:[#allocation38_spill] sm:$0xff] %v14865_v40 }
 0x313   : > { %18256 = vst [vmem:[#allocation39_spill] sm:$0xff] %v14867_v18 }
 0x314   : > { %638 = vst.msk [vmem:[#allocation3 + $0x138] sm:$0xff] %vm557_vm8, %v18137_v47  ;;  %v3482_v3 = vmax.f32 %v3446_v39, 0.0 }
 0x315   : > { %639 = vst.msk [vmem:[#allocation3 + $0x140] sm:$0xff] %vm557_vm8, %v18137_v47  ;;  %v13428_v47 = vld [vmem:[%s13695_s20 + $0x70] sm:$0xff] }
 0x316   : > { %3730 = vst.msk [vmem:[#allocation2 + $0x13] sm:$0xff] %vm557_vm8, %v3694_v41  ;;  %v3698_v33 = vmul.f32 %v14867_v18, %v3482_v3  ;;  %v3232_v56 = vrot.slane %v13428_v47, 3 }
 0x317   : > { %3731 = vst.msk [vmem:[#allocation2 + $0x1b] sm:$0xff] %vm557_vm8, %v3695_v5  ;;  %v3324_v57 = vpop.f32.mrf.mxu0 }
 0x318   : > { %3732 = vst.msk [vmem:[#allocation2 + $0x23] sm:$0xff] %vm557_vm8, %v3696_v59  ;;  %v3407_v14 = vadd.f32 %v3324_v57, %v14192_v55  ;;  %v14884_v5 = vpop.permute.xlu2 %3541  ;;  %v3233_v57 = vsel %vm3208_vm7, %v3230_v36, %v3232_v56 }
 0x319   : > { %3733 = vst.msk [vmem:[#allocation2 + $0x2b] sm:$0xff] %vm557_vm8, %v3697_v38 }
 0x31a   : > { %3734 = vst.msk [vmem:[#allocation2 + $0x33] sm:$0xff] %vm557_vm8, %v3698_v33  ;;  %v3447_v62 = vadd.f32 %v14817_v20, %v3407_v14 }
 0x31b   : > { %18257 = vst [vmem:[#allocation40_spill] sm:$0xff] %v14884_v5 }
 0x31c   : > { %v3483_v31 = vmax.f32 %v3447_v62, 0.0 }
 0x31d   : > { %v3824_v39 = vld [vmem:[#allocation2 + $0x11] sm:$0xff] }
 0x31e   : > { %v3768_v40 = vld [vmem:[#allocation2 + $0x10] sm:$0xff]  ;;  %v3825_v3 = vld [vmem:[#allocation2 + $0x19] sm:$0xff]  ;;  %v3699_v55 = vmul.f32 %v14884_v5, %v3483_v31  ;;  %v14905_v5 = vpop.permute.xlu1 %3551 }
 0x31f   : > { %v4198_v41 = vld [vmem:[#allocation2 + $0x12] sm:$0xff]  ;;  %v4199_v59 = vld [vmem:[#allocation2 + $0x1a] sm:$0xff]  ;;  %v3859_v24 = vpack.c.bf16 %v3825_v3, %v3824_v39  ;;  %v3327_v33 = vpop.f32.mrf.mxu0  ;;  %18259 = vst [vmem:[#allocation42_spill] sm:$0xff] %v14905_v5 }
 0x320   : > { %v3769_v18 = vld [vmem:[#allocation2 + $0x18] sm:$0xff]  ;;  %v14886_v38 = vpack.c.bf16 %v4199_v59, %v4198_v41  ;;  %3735 = vst.msk [vmem:[#allocation2 + $0x3b] sm:$0xff] %vm557_vm8, %v3699_v55  ;;  %v3408_v47 = vadd.f32 %v3327_v33, %v14217_v27  ;;  %v3827_v14 = vld [vmem:[#allocation2 + $0x29] sm:$0xff]  ;;  %v3826_v27 = vld [vmem:[#allocation2 + $0x21] sm:$0xff] }
 0x321   : > { %v3803_v32 = vpack.c.bf16 %v3769_v18, %v3768_v40  ;;  %12456 = vmatmul.msk.bf16.gmra.mxu1 %vm557_vm8, %v3859_v24  ;;  %v14898_v18 = vpop.permute.xlu0 %3546  ;;  %v3771_v62 = vld [vmem:[#allocation2 + $0x28] sm:$0xff]  ;;  %v3770_v3 = vld [vmem:[#allocation2 + $0x20] sm:$0xff]  ;;  %v13429_v59 = vld [vmem:[%s13695_s20 + $0x78] sm:$0xff]  ;;  %v3860_v33 = vpack.c.bf16 %v3827_v14, %v3826_v27 }
 0x322   : > { %12500 = vmatmul.msk.bf16.gmra.mxu3 %vm557_vm8, %v14886_v38  ;;  %12444 = vmatmul.msk.bf16.gmra.mxu0 %vm981_vm1, %v3233_v57  ;;  %v3448_v40 = vadd.f32 %v14817_v20, %v3408_v47  ;;  %18258 = vst [vmem:[#allocation41_spill] sm:$0xff] %v14898_v18  ;;  %v4201_v39 = vld [vmem:[#allocation2 + $0x2a] sm:$0xff]  ;;  %v3234_v55 = vrot.slane %v13429_v59, 3  ;;  %v3804_v57 = vpack.c.bf16 %v3771_v62, %v3770_v3  ;;  %v4200_v47 = vld [vmem:[#allocation2 + $0x22] sm:$0xff] }
 0x323   : > { %12478 = vmatmul.msk.bf16.gmra.mxu2 %vm557_vm8, %v3803_v32 }
 0x324   : > { %v3484_v31 = vmax.f32 %v3448_v40, 0.0 }
 0x326   : > { %v3700_v36 = vmul.f32 %v14898_v18, %v3484_v31  ;;  %v14907_v31 = vpack.c.bf16 %v4201_v39, %v4200_v47  ;;  %v14919_v39 = vpop.permute.xlu2 %3556  ;;  %v3772_v47 = vld [vmem:[#allocation2 + $0x30] sm:$0xff] }
 0x327   : > { %v3329_v24 = vpop.f32.mrf.mxu0  ;;  %18260 = vst [vmem:[#allocation43_spill] sm:$0xff] %v14919_v39  ;;  %v3829_v3 = vld [vmem:[#allocation2 + $0x39] sm:$0xff] }
 0x328   : > { %v3409_v32 = vadd.f32 %v3329_v24, %v14232_v51  ;;  %3736 = vst.msk [vmem:[#allocation2 + $0x43] sm:$0xff] %vm557_vm8, %v3700_v36  ;;  %v3235_v36 = vsel %vm3208_vm7, %v3232_v56, %v3234_v55  ;;  %v4203_v59 = vld [vmem:[#allocation2 + $0x3a] sm:$0xff] }
 0x32a   : > { %v3449_v41 = vadd.f32 %v14817_v20, %v3409_v32 }
 0x32c   : > { %v3485_v40 = vmax.f32 %v3449_v41, 0.0 }
 0x32e   : > { %v3701_v51 = vmul.f32 %v14905_v5, %v3485_v40  ;;  %v13430_v40 = vld [vmem:[%s13695_s20 + $0x80] sm:$0xff]  ;;  %v14926_v5 = vpop.permute.xlu0 %3561 }
 0x32f   : > { %v3332_v24 = vpop.f32.mrf.mxu0  ;;  %18261 = vst [vmem:[#allocation44_spill] sm:$0xff] %v14926_v5 }
 0x330   : > { %3737 = vst.msk [vmem:[#allocation2 + $0x4b] sm:$0xff] %vm557_vm8, %v3701_v51  ;;  %v3410_v32 = vadd.f32 %v3332_v24, %v14257_v53  ;;  %v3773_v53 = vld [vmem:[#allocation2 + $0x38] sm:$0xff]  ;;  %v3236_v51 = vrot.slane %v13430_v40, 3 }
 0x331   : > { %12457 = vmatmul.msk.bf16.gmra.mxu1 %vm557_vm8, %v3860_v33 }
 0x332   : > { %12501 = vmatmul.msk.bf16.gmra.mxu3 %vm557_vm8, %v14907_v31  ;;  %v3450_v14 = vadd.f32 %v14817_v20, %v3410_v32  ;;  %12445 = vmatmul.msk.bf16.gmra.mxu0 %vm981_vm1, %v3235_v36  ;;  %v3805_v36 = vpack.c.bf16 %v3773_v53, %v3772_v47  ;;  %v4202_v32 = vld [vmem:[#allocation2 + $0x32] sm:$0xff] }
 0x333   : > { %12479 = vmatmul.msk.bf16.gmra.mxu2 %vm557_vm8, %v3804_v57  ;;  %v3828_v57 = vld [vmem:[#allocation2 + $0x31] sm:$0xff] }
 0x334   : > { %v3486_v62 = vmax.f32 %v3450_v14, 0.0  ;;  %v3861_v24 = vpack.c.bf16 %v3829_v3, %v3828_v57 }
 0x336   : > { %v3702_v56 = vmul.f32 %v14919_v39, %v3486_v62  ;;  %v14928_v62 = vpack.c.bf16 %v4203_v59, %v4202_v32  ;;  %v14940_v59 = vpop.permute.xlu1 %3566  ;;  %v3774_v32 = vld [vmem:[#allocation2 + $0x40] sm:$0xff] }
 0x337   : > { %v3334_v41 = vpop.f32.mrf.mxu0  ;;  %18262 = vst [vmem:[#allocation45_spill] sm:$0xff] %v14940_v59  ;;  %v3831_v47 = vld [vmem:[#allocation2 + $0x49] sm:$0xff] }
 0x338   : > { %3738 = vst.msk [vmem:[#allocation2 + $0x53] sm:$0xff] %vm557_vm8, %v3702_v56  ;;  %v3411_v27 = vadd.f32 %v3334_v41, %v14270_v8  ;;  %v3237_v41 = vsel %vm3208_vm7, %v3234_v55, %v3236_v51  ;;  %v4205_v40 = vld [vmem:[#allocation2 + $0x4a] sm:$0xff] }
 0x33a   : > { %v3451_v33 = vadd.f32 %v14817_v20, %v3411_v27 }
 0x33c   : > { %v3487_v14 = vmax.f32 %v3451_v33, 0.0 }
 0x33e   : > { %v3703_v56 = vmul.f32 %v14926_v5, %v3487_v14  ;;  %v13431_v14 = vld [vmem:[%s13695_s20 + $0x88] sm:$0xff]  ;;  %v14947_v5 = vpop.permute.xlu2 %3571 }
 0x33f   : > { %v3337_v8 = vpop.f32.mrf.mxu0  ;;  %18263 = vst [vmem:[#allocation46_spill] sm:$0xff] %v14947_v5 }
 0x340   : > { %3739 = vst.msk [vmem:[#allocation2 + $0x5b] sm:$0xff] %vm557_vm8, %v3703_v56  ;;  %v3412_v27 = vadd.f32 %v3337_v8, %v14295_v4  ;;  %v3775_v4 = vld [vmem:[#allocation2 + $0x48] sm:$0xff]  ;;  %v3238_v56 = vrot.slane %v13431_v14, 3 }
 0x341   : > { %12458 = vmatmul.msk.bf16.gmra.mxu1 %vm557_vm8, %v3861_v24 }
 0x342   : > { %12502 = vmatmul.msk.bf16.gmra.mxu3 %vm557_vm8, %v14928_v62  ;;  %v3452_v3 = vadd.f32 %v14817_v20, %v3412_v27  ;;  %12446 = vmatmul.msk.bf16.gmra.mxu0 %vm981_vm1, %v3237_v41  ;;  %v3806_v41 = vpack.c.bf16 %v3775_v4, %v3774_v32  ;;  %v4204_v27 = vld [vmem:[#allocation2 + $0x42] sm:$0xff] }
 0x343   : > { %12480 = vmatmul.msk.bf16.gmra.mxu2 %vm557_vm8, %v3805_v36  ;;  %v3830_v36 = vld [vmem:[#allocation2 + $0x41] sm:$0xff] }
 0x344   : > { %v3488_v53 = vmax.f32 %v3452_v3, 0.0  ;;  %v3862_v8 = vpack.c.bf16 %v3831_v47, %v3830_v36 }
 0x346   : > { %v3704_v55 = vmul.f32 %v14940_v59, %v3488_v53  ;;  %v14949_v53 = vpack.c.bf16 %v4205_v40, %v4204_v27  ;;  %v3776_v27 = vld [vmem:[#allocation2 + $0x50] sm:$0xff] }
 0x347   : > { %v3339_v33 = vpop.f32.mrf.mxu0  ;;  %v3833_v32 = vld [vmem:[#allocation2 + $0x59] sm:$0xff] }
 0x348   : > { %3740 = vst.msk [vmem:[#allocation2 + $0x63] sm:$0xff] %vm557_vm8, %v3704_v55  ;;  %v3413_v57 = vadd.f32 %v3339_v33, %v14310_v23  ;;  %v2452_v23 = vadd.f32 %v14316_v37, %v14344_v12  ;;  %v3777_v14 = vld [vmem:[#allocation2 + $0x58] sm:$0xff] }
 0x34a   : > { %v3453_v24 = vadd.f32 %v14817_v20, %v3413_v57  ;;  %v3239_v57 = vsel %vm3208_vm7, %v3236_v51, %v3238_v56  ;;  %v2812_v4 = vadd.f32 %v14347_v13, %v2452_v23  ;;  %v14964_v51 = vpop.permute.xlu0 %3576 }
 0x34b   : > { %18264 = vst [vmem:[#allocation47_spill] sm:$0xff] %v14964_v51 }
 0x34c   : > { %v3489_v3 = vmax.f32 %v3453_v24, 0.0  ;;  %v3180_v40 = vadd.f32 %v14368_v9, %v2812_v4  ;;  %v14971_v9 = vpop.permute.xlu1 %3581 }
 0x34d   : > { %18265 = vst [vmem:[#allocation48_spill] sm:$0xff] %v14971_v9 }
 0x34e   : > { %v3705_v55 = vmul.f32 %v14947_v5, %v3489_v3  ;;  %v13432_v3 = vld [vmem:[%s13695_s20 + $0x90] sm:$0xff] }
 0x34f   : > { %v3342_v33 = vpop.f32.mrf.mxu0  ;;  %v3240_v23 = vrot.slane %v13432_v3, 3 }
 0x350   : > { %3741 = vst.msk [vmem:[#allocation2 + $0x6b] sm:$0xff] %vm557_vm8, %v3705_v55  ;;  %v3414_v47 = vadd.f32 %v3342_v33, %v14340_v30  ;;  %v3807_v33 = vpack.c.bf16 %v3777_v14, %v3776_v27  ;;  %v14988_v27 = vpop.f32.mrf.mxu1 }
 0x351   : > { %12459 = vmatmul.msk.bf16.gmra.mxu1 %vm557_vm8, %v3862_v8  ;;  %v4207_v8 = vld [vmem:[#allocation2 + $0x5a] sm:$0xff] }
 0x352   : > { %12503 = vmatmul.msk.bf16.gmra.mxu3 %vm557_vm8, %v14949_v53  ;;  %v3454_v37 = vadd.f32 %v14817_v20, %v3414_v47  ;;  %12447 = vmatmul.msk.bf16.gmra.mxu0 %vm981_vm1, %v3239_v57  ;;  %v4206_v57 = vld [vmem:[#allocation2 + $0x52] sm:$0xff] }
 0x353   : > { %12481 = vmatmul.msk.bf16.gmra.mxu2 %vm557_vm8, %v3806_v41  ;;  %v3832_v41 = vld [vmem:[#allocation2 + $0x51] sm:$0xff]  ;;  %v14973_v4 = vpack.c.bf16 %v4207_v8, %v4206_v57 }
 0x354   : > { %v3490_v12 = vmax.f32 %v3454_v37, 0.0  ;;  %v3863_v55 = vpack.c.bf16 %v3833_v32, %v3832_v41  ;;  %v18266_v37 = vld [vmem:[#allocation17_spill] sm:$0xff]  ;;  %v18268_v32 = vld [vmem:[#allocation16_spill] sm:$0xff]  ;;  %v18269_v8 = vld [vmem:[#allocation18_spill] sm:$0xff] }
 0x356   : > { %v3706_v24 = vmul.f32 %v14964_v51, %v3490_v12  ;;  %v18267_v12 = vld [vmem:[#allocation15_spill] sm:$0xff] }
 0x357   : > { %v3344_v36 = vpop.f32.mrf.mxu0 }
 0x358   : > { %3742 = vst.msk [vmem:[#allocation2 + $0x73] sm:$0xff] %vm557_vm8, %v3706_v24  ;;  %v3415_v30 = vadd.f32 %v3344_v36, %v3180_v40  ;;  %v2454_v40 = vadd.f32 %v18267_v12, %v18266_v37 }
 0x35a   : > { %v3455_v13 = vadd.f32 %v14817_v20, %v3415_v30  ;;  %v3241_v30 = vsel %vm3208_vm7, %v3238_v56, %v3240_v23  ;;  %v14990_v56 = vpop.f32.mrf.mxu2 }
 0x35b   : > { %18270 = vst [vmem:[#allocation17_spill] sm:$0xff] %v14990_v56 }
 0x35c   : > { %v3491_v47 = vmax.f32 %v3455_v13, 0.0  ;;  %v2814_v13 = vadd.f32 %v18269_v8, %v2454_v40  ;;  %v3778_v8 = vld [vmem:[#allocation2 + $0x60] sm:$0xff] }
 0x35e   : > { %v3707_v24 = vmul.f32 %v14971_v9, %v3491_v47  ;;  %v14995_v47 = vpop.f32.mrf.mxu3 }
 0x35f   : > { %v3347_v36 = vpop.f32.mrf.mxu0  ;;  %18273 = vst [vmem:[#allocation16_spill] sm:$0xff] %v14995_v47 }
 0x360   : > { %3743 = vst.msk [vmem:[#allocation2 + $0x7b] sm:$0xff] %vm557_vm8, %v3707_v24  ;;  %v3416_v14 = vadd.f32 %v3347_v36, %v18268_v32  ;;  %v3835_v24 = vld [vmem:[#allocation2 + $0x69] sm:$0xff] }
 0x361   : > { %12460 = vmatmul.msk.bf16.gmra.mxu1 %vm557_vm8, %v3863_v55  ;;  %v14992_v55 = vpop.permute.xlu2 %3586  ;;  %v3779_v36 = vld [vmem:[#allocation2 + $0x68] sm:$0xff] }
 0x362   : > { %12504 = vmatmul.msk.bf16.gmra.mxu3 %vm557_vm8, %v14973_v4  ;;  %v3456_v41 = vadd.f32 %v14817_v20, %v3416_v14  ;;  %12448 = vmatmul.msk.bf16.gmra.mxu0 %vm981_vm1, %v3241_v30  ;;  %18271 = vst [vmem:[#allocation15_spill] sm:$0xff] %v14992_v55  ;;  %v4209_v30 = vld [vmem:[#allocation2 + $0x6a] sm:$0xff]  ;;  %v3834_v14 = vld [vmem:[#allocation2 + $0x61] sm:$0xff]  ;;  %v3808_v5 = vpack.c.bf16 %v3779_v36, %v3778_v8  ;;  %v4106_v39 = vpop.f32.mrf.mxu2 }
 0x363   : > { %12482 = vmatmul.msk.bf16.gmra.mxu2 %vm557_vm8, %v3807_v33  ;;  %v18272_v33 = vld [vmem:[#allocation19_spill] sm:$0xff]  ;;  %v3864_v51 = vpack.c.bf16 %v3835_v24, %v3834_v14  ;;  %v3836_v14 = vld [vmem:[#allocation2 + $0x71] sm:$0xff] }
 0x364   : > { %v3492_v3 = vmax.f32 %v3456_v41, 0.0  ;;  %v3182_v57 = vadd.f32 %v18272_v33, %v2814_v13  ;;  %v13433_v41 = vld [vmem:[%s13695_s20 + $0x98] sm:$0xff]  ;;  %v4208_v13 = vld [vmem:[#allocation2 + $0x62] sm:$0xff]  ;;  %v3780_v8 = vld [vmem:[#allocation2 + $0x70] sm:$0xff]  ;;  %s11995_s20 = sshll.u32 %s550_s19, 4  ;;  %s11996_s20 = int_to_ptr.vmem [resolvable:$true] %s11995_s20 }
 0x365   : > { %v3242_v9 = vrot.slane %v13433_v41, 3  ;;  %v3244_v41 = vrot.slane %v14449_v60, 3 }
 0x366   : > { %v3708_v37 = vmul.f32 %v14992_v55, %v3492_v3  ;;  %v15001_v3 = vpop.permute.xlu0 %3591  ;;  %v15003_v55 = vpack.c.bf16 %v4209_v30, %v4208_v13  ;;  %v4321_v18 = vpop.f32.mrf.mxu3 }
 0x367   : > { %v3349_v12 = vpop.f32.mrf.mxu0  ;;  %v3947_v59 = vpop.f32.mrf.mxu1  ;;  %18274 = vst [vmem:[#allocation18_spill] sm:$0xff] %v15001_v3  ;;  %v3243_v24 = vsel %vm3208_vm7, %v3240_v23, %v3242_v9  ;;  %v3781_v30 = vld [vmem:[#allocation2 + $0x78] sm:$0xff] }
 0x368   : > { %3744 = vst.msk [vmem:[#allocation2 + $0x83] sm:$0xff] %vm557_vm8, %v3708_v37  ;;  %v3417_v40 = vadd.f32 %v3349_v12, %v3182_v57  ;;  %v4107_v57 = vadd.f32 %v4106_v39, %v3947_v59  ;;  %v18275_v37 = vld [vmem:[#allocation20_spill] sm:$0xff]  ;;  %v15020_v59 = vpop.permute.xlu1 %3596 }
 0x369   : > { %v2456_v12 = vadd.f32 %v18275_v37, %v14467_v19  ;;  %18276 = vst [vmem:[#allocation19_spill] sm:$0xff] %v15020_v59 }
 0x36a   : > { %v3457_v32 = vadd.f32 %v14817_v20, %v3417_v40  ;;  %v15008_v56 = vadd.f32 %v4321_v18, %v4107_v57  ;;  %v4210_v57 = vld [vmem:[#allocation2 + $0x72] sm:$0xff] }
 0x36b   : > { %v2816_v19 = vadd.f32 %v14472_v10, %v2456_v12 }
 0x36c   : > { %v3493_v33 = vmax.f32 %v3457_v32, 0.0  ;;  %v4211_v32 = vld [vmem:[#allocation2 + $0x7a] sm:$0xff] }
 0x36d   : > { %v15029_v12 = vpack.c.bf16 %v4211_v32, %v4210_v57  ;;  %v2460_v57 = vadd.f32 %v14529_v2, %v14541_v46 }
 0x36e   : > { %v3709_v40 = vmul.f32 %v15001_v3, %v3493_v33  ;;  %v3809_v33 = vpack.c.bf16 %v3781_v30, %v3780_v8 }
 0x36f   : > { %v3352_v47 = vpop.f32.mrf.mxu0  ;;  %v3838_v32 = vld [vmem:[#allocation2 + $0x81] sm:$0xff] }
 0x370   : > { %3745 = vst.msk [vmem:[#allocation2 + $0x8b] sm:$0xff] %vm557_vm8, %v3709_v40  ;;  %v3418_v36 = vadd.f32 %v3352_v47, %v14464_v45  ;;  %v3837_v47 = vld [vmem:[#allocation2 + $0x79] sm:$0xff]  ;;  %v2458_v40 = vadd.f32 %v14495_v7, %v14514_v58  ;;  %v4212_v8 = vld [vmem:[#allocation2 + $0x82] sm:$0xff] }
 0x371   : > { %12461 = vmatmul.msk.bf16.gmra.mxu1 %vm557_vm8, %v3864_v51  ;;  %v3184_v51 = vadd.f32 %v14487_v49, %v2816_v19  ;;  %v3865_v13 = vpack.c.bf16 %v3837_v47, %v3836_v14  ;;  %v15027_v49 = vpop.permute.xlu2 %3601  ;;  %v3245_v19 = vsel %vm3208_vm7, %v3242_v9, %v3244_v41 }
 0x372   : > { %12505 = vmatmul.msk.bf16.gmra.mxu3 %vm557_vm8, %v15003_v55  ;;  %v3458_v39 = vadd.f32 %v14817_v20, %v3418_v36  ;;  %12449 = vmatmul.msk.bf16.gmra.mxu0 %vm981_vm1, %v3243_v24  ;;  %18277 = vst [vmem:[#allocation20_spill] sm:$0xff] %v15027_v49 }
 0x373   : > { %12483 = vmatmul.msk.bf16.gmra.mxu2 %vm557_vm8, %v3808_v5 }
 0x374   : > { %v3494_v18 = vmax.f32 %v3458_v39, 0.0  ;;  %v2818_v39 = vadd.f32 %v14516_v34, %v2458_v40 }
 0x376   : > { %v3710_v5 = vmul.f32 %v15020_v59, %v3494_v18  ;;  %v15044_v18 = vpop.permute.xlu0 %3606  ;;  %v3186_v9 = vadd.f32 %v14525_v42, %v2818_v39 }
 0x377   : > { %v3354_v23 = vpop.f32.mrf.mxu0  ;;  %18278 = vst [vmem:[#allocation49_spill] sm:$0xff] %v15044_v18  ;;  %v3839_v34 = vld [vmem:[#allocation2 + $0x89] sm:$0xff] }
 0x378   : > { %3746 = vst.msk [vmem:[#allocation2 + $0x93] sm:$0xff] %vm557_vm8, %v3710_v5  ;;  %v3419_v45 = vadd.f32 %v3354_v23, %v3184_v51  ;;  %v4213_v47 = vld [vmem:[#allocation2 + $0x8a] sm:$0xff]  ;;  %v3866_v14 = vpack.c.bf16 %v3839_v34, %v3838_v32  ;;  %v15080_v34 = vpop.f32.mrf.mxu3 }
 0x379   : > { %v15070_v46 = vpop.permute.xlu2 %3616 }
 0x37a   : > { %v3459_v10 = vadd.f32 %v14817_v20, %v3419_v45  ;;  %v3783_v45 = vld [vmem:[#allocation2 + $0x88] sm:$0xff]  ;;  %18280 = vst [vmem:[#allocation51_spill] sm:$0xff] %v15070_v46 }
 0x37c   : > { %v3495_v37 = vmax.f32 %v3459_v10, 0.0  ;;  %v3782_v10 = vld [vmem:[#allocation2 + $0x80] sm:$0xff] }
 0x37d   : > { %v3810_v42 = vpack.c.bf16 %v3783_v45, %v3782_v10 }
 0x37e   : > { %v3711_v24 = vmul.f32 %v15027_v49, %v3495_v37  ;;  %v15082_v32 = vpop.permute.xlu0 %3621 }
 0x37f   : > { %v3357_v36 = vpop.f32.mrf.mxu0  ;;  %18281 = vst [vmem:[#allocation52_spill] sm:$0xff] %v15082_v32 }
 0x380   : > { %3747 = vst.msk [vmem:[#allocation2 + $0x9b] sm:$0xff] %vm557_vm8, %v3711_v24  ;;  %v3420_v60 = vadd.f32 %v3357_v36, %v14509_v63  ;;  %v13284_v63 = vld [vmem:[%s18244_s6 + $0x18] sm:$0xff]  ;;  %v2820_v36 = vadd.f32 %v14543_v61, %v2460_v57 }
 0x381   : > { %12462 = vmatmul.msk.bf16.gmra.mxu1 %vm557_vm8, %v3865_v13  ;;  %4570 = vmatpush.bf16.msrb.mxu0 %v13284_v63  ;;  %v15053_v13 = vpop.permute.xlu1 %3611 }
 0x382   : > { %12506 = vmatmul.msk.bf16.gmra.mxu3 %vm557_vm8, %v15029_v12  ;;  %v3460_v7 = vadd.f32 %v14817_v20, %v3420_v60  ;;  %12450 = vmatmul.msk.bf16.gmra.mxu0 %vm981_vm1, %v3245_v19  ;;  %18279 = vst [vmem:[#allocation50_spill] sm:$0xff] %v15053_v13  ;;  %v15072_v60 = vpop.f32.mrf.mxu1  ;;  %v3188_v39 = vadd.f32 %v14549_v50, %v2820_v36  ;;  %v4214_v50 = vld [vmem:[#allocation2 + $0x92] sm:$0xff] }
 0x383   : > { %12484 = vmatmul.msk.bf16.gmra.mxu2 %vm557_vm8, %v3809_v33  ;;  %v15055_v33 = vpack.c.bf16 %v4213_v47, %v4212_v8 }
 0x384   : > { %v3496_v58 = vmax.f32 %v3460_v7, 0.0 }
 0x386   : > { %v3712_v51 = vmul.f32 %v15044_v18, %v3496_v58 }
 0x387   : > { %v3359_v5 = vpop.f32.mrf.mxu0  ;;  %v3785_v61 = vld [vmem:[#allocation2 + $0x98] sm:$0xff] }
 0x388   : > { %3748 = vst.msk [vmem:[#allocation2 + $0xa3] sm:$0xff] %vm557_vm8, %v3712_v51  ;;  %v3421_v23 = vadd.f32 %v3359_v5, %v3186_v9  ;;  %v3841_v9 = vld [vmem:[#allocation2 + $0x99] sm:$0xff]  ;;  %v15078_v5 = vpop.f32.mrf.mxu2 }
 0x389   : > { %v4215_v51 = vld [vmem:[#allocation2 + $0x9a] sm:$0xff] }
 0x38a   : > { %v3461_v30 = vadd.f32 %v14817_v20, %v3421_v23  ;;  %v3784_v23 = vld [vmem:[#allocation2 + $0x90] sm:$0xff] }
 0x38b   : > { %v3811_v47 = vpack.c.bf16 %v3785_v61, %v3784_v23 }
 0x38c   : > { %v3497_v41 = vmax.f32 %v3461_v30, 0.0 }
 0x38e   : > { %v3713_v37 = vmul.f32 %v15053_v13, %v3497_v41 }
 0x38f   : > { %v3362_v40 = vpop.f32.mrf.mxu0 }
 0x390   : > { %3749 = vst.msk [vmem:[#allocation2 + $0xab] sm:$0xff] %vm557_vm8, %v3713_v37  ;;  %v3422_v24 = vadd.f32 %v3362_v40, %v14538_v22 }
 0x391   : > { %12463 = vmatmul.msk.bf16.gmra.mxu1 %vm557_vm8, %v3866_v14  ;;  %v15084_v14 = vpack.c.bf16 %v4215_v51, %v4214_v50  ;;  %v4216_v50 = vld [vmem:[#allocation2 + $0xa2] sm:$0xff] }
 0x392   : > { %12507 = vmatmul.msk.bf16.gmra.mxu3 %vm557_vm8, %v15055_v33  ;;  %v3462_v19 = vadd.f32 %v14817_v20, %v3422_v24  ;;  %12521 = vmatmul.msk.bf16.vlgmr.msrb.gmra.mxu0 %vm557_vm8, %v14886_v38  ;;  %v3840_v38 = vld [vmem:[#allocation2 + $0x91] sm:$0xff] }
 0x393   : > { %12485 = vmatmul.msk.bf16.gmra.mxu2 %vm557_vm8, %v3810_v42  ;;  %v3867_v45 = vpack.c.bf16 %v3841_v9, %v3840_v38  ;;  %v2462_v42 = vadd.f32 %v14553_v54, %v14562_v16  ;;  %v3786_v38 = vld [vmem:[#allocation2 + $0xa0] sm:$0xff] }
 0x394   : > { %v3498_v2 = vmax.f32 %v3462_v19, 0.0  ;;  %v15099_v19 = vpop.permute.xlu1 %3626 }
 0x395   : > { %v2822_v37 = vadd.f32 %v14564_v6, %v2462_v42  ;;  %18282 = vst [vmem:[#allocation53_spill] sm:$0xff] %v15099_v19 }
 0x396   : > { %v3714_v7 = vmul.f32 %v15070_v46, %v3498_v2 }
 0x397   : > { %v3364_v22 = vpop.f32.mrf.mxu0  ;;  %v3787_v9 = vld [vmem:[#allocation2 + $0xa8] sm:$0xff] }
 0x398   : > { %3750 = vst.msk [vmem:[#allocation2 + $0xb3] sm:$0xff] %vm557_vm8, %v3714_v7  ;;  %v3423_v58 = vadd.f32 %v3364_v22, %v3188_v39  ;;  %v3190_v39 = vadd.f32 %v14570_v1, %v2822_v37  ;;  %v3812_v1 = vpack.c.bf16 %v3787_v9, %v3786_v38 }
 0x39a   : > { %v3463_v63 = vadd.f32 %v14817_v20, %v3423_v58  ;;  %v3843_v58 = vld [vmem:[#allocation2 + $0xa9] sm:$0xff] }
 0x39c   : > { %v3499_v30 = vmax.f32 %v3463_v63, 0.0  ;;  %v3842_v63 = vld [vmem:[#allocation2 + $0xa1] sm:$0xff] }
 0x39e   : > { %v3952_v10 = vpop.f32.mrf.mxu1  ;;  %v3715_v8 = vmul.f32 %v15082_v32, %v3499_v30 }
 0x39f   : > { %v3367_v41 = vpop.f32.mrf.mxu0 }
 0x3a0   : > { %3751 = vst.msk [vmem:[#allocation2 + $0xbb] sm:$0xff] %vm557_vm8, %v3715_v8  ;;  %v3424_v57 = vadd.f32 %v3367_v41, %v14559_v0  ;;  %v18284_v41 = vld [vmem:[#allocation23_spill] sm:$0xff] }
 0x3a1   : > { %12464 = vmatmul.msk.bf16.gmra.mxu1 %vm557_vm8, %v3867_v45 }
 0x3a2   : > { %12508 = vmatmul.msk.bf16.gmra.mxu3 %vm557_vm8, %v15084_v14  ;;  %v3464_v40 = vadd.f32 %v14817_v20, %v3424_v57  ;;  %12522 = vmatmul.msk.bf16.gmra.mxu0 %vm557_vm8, %v14907_v31  ;;  %v4217_v31 = vld [vmem:[#allocation2 + $0xaa] sm:$0xff] }
 0x3a3   : > { %12486 = vmatmul.msk.bf16.gmra.mxu2 %vm557_vm8, %v3811_v47  ;;  %v3868_v47 = vpack.c.bf16 %v3843_v58, %v3842_v63  ;;  %v15109_v8 = vpack.c.bf16 %v4217_v31, %v4216_v50  ;;  %v18285_v57 = vld [vmem:[#allocation21_spill] sm:$0xff]  ;;  %v15126_v31 = vpop.permute.xlu0 %3636 }
 0x3a4   : > { %v3500_v36 = vmax.f32 %v3464_v40, 0.0  ;;  %v2464_v37 = vadd.f32 %v18285_v57, %v18284_v41  ;;  %18288 = vst [vmem:[#allocation23_spill] sm:$0xff] %v15126_v31  ;;  %v3844_v41 = vld [vmem:[#allocation2 + $0xb1] sm:$0xff] }
 0x3a5   : > { %v4326_v24 = vpop.f32.mrf.mxu3  ;;  %v3788_v57 = vld [vmem:[#allocation2 + $0xb0] sm:$0xff] }
 0x3a6   : > { %v4111_v54 = vpop.f32.mrf.mxu2  ;;  %v3954_v2 = vpop.f32.mrf.mxu1  ;;  %v3716_v7 = vmul.f32 %v15099_v19, %v3500_v36 }
 0x3a7   : > { %v4112_v16 = vadd.f32 %v4111_v54, %v3952_v10  ;;  %v3369_v22 = vpop.f32.mrf.mxu0  ;;  %v15107_v10 = vpop.permute.xlu2 %3631  ;;  %v3789_v50 = vld [vmem:[#allocation2 + $0xb8] sm:$0xff] }
 0x3a8   : > { %3752 = vst.msk [vmem:[#allocation2 + $0xc3] sm:$0xff] %vm557_vm8, %v3716_v7  ;;  %v3425_v6 = vadd.f32 %v3369_v22, %v3190_v39 }
 0x3a9   : > { %v15102_v0 = vadd.f32 %v4326_v24, %v4112_v16  ;;  %18283 = vst [vmem:[#allocation54_spill] sm:$0xff] %v15107_v10  ;;  %v18286_v24 = vld [vmem:[#allocation22_spill] sm:$0xff] }
 0x3aa   : > { %v3465_v61 = vadd.f32 %v14817_v20, %v3425_v6 }
 0x3ac   : > { %v3501_v30 = vmax.f32 %v3465_v61, 0.0 }
 0x3ad   : > { %v4328_v45 = vpop.f32.mrf.mxu3 }
 0x3ae   : > { %v4113_v51 = vpop.f32.mrf.mxu2  ;;  %v3957_v42 = vpop.f32.mrf.mxu1  ;;  %v3717_v54 = vmul.f32 %v15107_v10, %v3501_v30  ;;  %v5216_v10 = vld [vmem:[#allocation2 + $0xa4] sm:$0xff] }
 0x3af   : > { %v4114_v23 = vadd.f32 %v4113_v51, %v3954_v2  ;;  %v3372_v16 = vpop.f32.mrf.mxu0  ;;  %v18287_v2 = vld [vmem:[#allocation24_spill] sm:$0xff]  ;;  %v18289_v51 = vld [vmem:[#allocation25_spill] sm:$0xff] }
 0x3b0   : > { %3753 = vst.msk [vmem:[#allocation2 + $0xcb] sm:$0xff] %vm557_vm8, %v3717_v54  ;;  %v3426_v36 = vadd.f32 %v3372_v16, %v18286_v24  ;;  %v2824_v39 = vadd.f32 %v18287_v2, %v2464_v37  ;;  %v3813_v24 = vpack.c.bf16 %v3789_v50, %v3788_v57 }
 0x3b1   : > { %v15113_v40 = vadd.f32 %v4328_v45, %v4114_v23  ;;  %12465 = vmatmul.msk.bf16.gmra.mxu1 %vm557_vm8, %v3868_v47 }
 0x3b2   : > { %12509 = vmatmul.msk.bf16.gmra.mxu3 %vm557_vm8, %v15109_v8  ;;  %v3466_v7 = vadd.f32 %v14817_v20, %v3426_v36  ;;  %12523 = vmatmul.msk.bf16.gmra.mxu0 %vm557_vm8, %v14928_v62  ;;  %v3192_v63 = vadd.f32 %v18289_v51, %v2824_v39  ;;  %v4219_v62 = vld [vmem:[#allocation2 + $0xba] sm:$0xff]  ;;  %v4218_v36 = vld [vmem:[#allocation2 + $0xb2] sm:$0xff]  ;;  %v15134_v39 = vpop.permute.xlu1 %3641 }
 0x3b3   : > { %12487 = vmatmul.msk.bf16.gmra.mxu2 %vm557_vm8, %v3812_v1  ;;  %v3845_v1 = vld [vmem:[#allocation2 + $0xb9] sm:$0xff]  ;;  %18290 = vst [vmem:[#allocation21_spill] sm:$0xff] %v15134_v39 }
 0x3b4   : > { %v3502_v9 = vmax.f32 %v3466_v7, 0.0  ;;  %v3869_v16 = vpack.c.bf16 %v3845_v1, %v3844_v41 }
 0x3b5   : > { %v4331_v58 = vpop.f32.mrf.mxu3 }
 0x3b6   : > { %v4116_v22 = vpop.f32.mrf.mxu2  ;;  %v3959_v61 = vpop.f32.mrf.mxu1  ;;  %v3718_v23 = vmul.f32 %v15126_v31, %v3502_v9 }
 0x3b7   : > { %v4117_v6 = vadd.f32 %v4116_v22, %v3957_v42  ;;  %v3374_v45 = vpop.f32.mrf.mxu0  ;;  %v15136_v22 = vpack.c.bf16 %v4219_v62, %v4218_v36  ;;  %v15153_v62 = vpop.permute.xlu2 %3646  ;;  %v3791_v36 = vld [vmem:[#allocation2 + $0xc8] sm:$0xff] }
 0x3b8   : > { %3754 = vst.msk [vmem:[#allocation2 + $0xd3] sm:$0xff] %vm557_vm8, %v3718_v23  ;;  %v3427_v47 = vadd.f32 %v3374_v45, %v3192_v63  ;;  %v18292_v23 = vld [vmem:[#allocation27_spill] sm:$0xff] }
 0x3b9   : > { %v15129_v38 = vadd.f32 %v4331_v58, %v4117_v6  ;;  %v2466_v6 = vadd.f32 %v14595_v28, %v14601_v11  ;;  %18293 = vst [vmem:[#allocation22_spill] sm:$0xff] %v15153_v62 }
 0x3ba   : > { %v3467_v30 = vadd.f32 %v14817_v20, %v3427_v47 }
 0x3bb   : > { %v2826_v45 = vadd.f32 %v18292_v23, %v2466_v6  ;;  %v3846_v6 = vld [vmem:[#allocation2 + $0xc1] sm:$0xff] }
 0x3bc   : > { %v3503_v2 = vmax.f32 %v3467_v30, 0.0 }
 0x3bd   : > { %v4333_v54 = vpop.f32.mrf.mxu3 }
 0x3be   : > { %v4118_v42 = vpop.f32.mrf.mxu2  ;;  %v3962_v7 = vpop.f32.mrf.mxu1  ;;  %v3719_v9 = vmul.f32 %v15134_v39, %v3503_v2 }
 0x3bf   : > { %v4119_v37 = vadd.f32 %v4118_v42, %v3959_v61  ;;  %v3377_v51 = vpop.f32.mrf.mxu0  ;;  %v18291_v61 = vld [vmem:[#allocation26_spill] sm:$0xff]  ;;  %v18294_v42 = vld [vmem:[#allocation28_spill] sm:$0xff] }
 0x3c0   : > { %3755 = vst.msk [vmem:[#allocation2 + $0xdb] sm:$0xff] %vm557_vm8, %v3719_v9  ;;  %v3428_v63 = vadd.f32 %v3377_v51, %v18291_v61  ;;  %v3194_v41 = vadd.f32 %v18294_v42, %v2826_v45  ;;  %v3790_v9 = vld [vmem:[#allocation2 + $0xc0] sm:$0xff] }
 0x3c1   : > { %v15140_v58 = vadd.f32 %v4333_v54, %v4119_v37  ;;  %12466 = vmatmul.msk.bf16.gmra.mxu1 %vm557_vm8, %v3869_v16  ;;  %v3814_v23 = vpack.c.bf16 %v3791_v36, %v3790_v9  ;;  %v4220_v45 = vld [vmem:[#allocation2 + $0xc2] sm:$0xff] }
 0x3c2   : > { %12510 = vmatmul.msk.bf16.gmra.mxu3 %vm557_vm8, %v15136_v22  ;;  %v3468_v28 = vadd.f32 %v14817_v20, %v3428_v63  ;;  %12524 = vmatmul.msk.bf16.gmra.mxu0 %vm557_vm8, %v14949_v53  ;;  %v4221_v53 = vld [vmem:[#allocation2 + $0xca] sm:$0xff] }
 0x3c3   : > { %12488 = vmatmul.msk.bf16.gmra.mxu2 %vm557_vm8, %v3813_v24  ;;  %v3847_v24 = vld [vmem:[#allocation2 + $0xc9] sm:$0xff] }
 0x3c4   : > { %v3504_v50 = vmax.f32 %v3468_v28, 0.0  ;;  %v3870_v63 = vpack.c.bf16 %v3847_v24, %v3846_v6 }
 0x3c5   : > { %v4336_v1 = vpop.f32.mrf.mxu3 }
 0x3c6   : > { %v4121_v11 = vpop.f32.mrf.mxu2  ;;  %v3964_v30 = vpop.f32.mrf.mxu1  ;;  %v3720_v37 = vmul.f32 %v15153_v62, %v3504_v50  ;;  %v2468_v50 = vadd.f32 %v14610_v17, %v14616_v29  ;;  %v5212_v62 = vld [vmem:[#allocation2 + $0x84] sm:$0xff] }
 0x3c7   : > { %v4122_v47 = vadd.f32 %v4121_v11, %v3962_v7  ;;  %v3379_v54 = vpop.f32.mrf.mxu0  ;;  %v15161_v11 = vpop.permute.xlu0 %3651 }
 0x3c8   : > { %3756 = vst.msk [vmem:[#allocation2 + $0xe3] sm:$0xff] %vm557_vm8, %v3720_v37  ;;  %v3429_v16 = vadd.f32 %v3379_v54, %v3194_v41  ;;  %v2828_v54 = vadd.f32 %v14618_v44, %v2468_v50 }
 0x3c9   : > { %v15156_v57 = vadd.f32 %v4336_v1, %v4122_v47  ;;  %18295 = vst [vmem:[#allocation24_spill] sm:$0xff] %v15161_v11  ;;  %v15163_v1 = vpack.c.bf16 %v4221_v53, %v4220_v45  ;;  %v15180_v53 = vpop.permute.xlu1 %3656  ;;  %v3848_v45 = vld [vmem:[#allocation2 + $0xd1] sm:$0xff] }
 0x3ca   : > { %v3469_v2 = vadd.f32 %v14817_v20, %v3429_v16  ;;  %18296 = vst [vmem:[#allocation25_spill] sm:$0xff] %v15180_v53 }
 0x3cc   : > { %v3505_v28 = vmax.f32 %v3469_v2, 0.0 }
 0x3cd   : > { %v4338_v61 = vpop.f32.mrf.mxu3 }
 0x3ce   : > { %v4123_v7 = vpop.f32.mrf.mxu2  ;;  %v3967_v47 = vpop.f32.mrf.mxu1  ;;  %v3721_v41 = vmul.f32 %v15161_v11, %v3505_v28  ;;  %v3792_v28 = vld [vmem:[#allocation2 + $0xd0] sm:$0xff] }
 0x3cf   : > { %v4124_v51 = vadd.f32 %v4123_v7, %v3964_v30  ;;  %v3382_v37 = vpop.f32.mrf.mxu0  ;;  %v3196_v7 = vadd.f32 %v14621_v26, %v2828_v54  ;;  %v15188_v54 = vpop.permute.xlu2 %3661  ;;  %v5210_v11 = vld [vmem:[#allocation2 + $0x74] sm:$0xff] }
 0x3d0   : > { %3757 = vst.msk [vmem:[#allocation2 + $0xeb] sm:$0xff] %vm557_vm8, %v3721_v41  ;;  %v3430_v30 = vadd.f32 %v3382_v37, %v14613_v15  ;;  %v4222_v37 = vld [vmem:[#allocation2 + $0xd2] sm:$0xff] }
 0x3d1   : > { %v15167_v42 = vadd.f32 %v4338_v61, %v4124_v51  ;;  %12467 = vmatmul.msk.bf16.gmra.mxu1 %vm557_vm8, %v3870_v63  ;;  %v3849_v51 = vld [vmem:[#allocation2 + $0xd9] sm:$0xff]  ;;  %18297 = vst [vmem:[#allocation26_spill] sm:$0xff] %v15188_v54 }
 0x3d2   : > { %12511 = vmatmul.msk.bf16.gmra.mxu3 %vm557_vm8, %v15163_v1  ;;  %v3470_v17 = vadd.f32 %v14817_v20, %v3430_v30  ;;  %12525 = vmatmul.msk.bf16.gmra.mxu0 %vm557_vm8, %v14973_v4  ;;  %v3793_v61 = vld [vmem:[#allocation2 + $0xd8] sm:$0xff]  ;;  %v3871_v41 = vpack.c.bf16 %v3849_v51, %v3848_v45 }
 0x3d3   : > { %12489 = vmatmul.msk.bf16.gmra.mxu2 %vm557_vm8, %v3814_v23  ;;  %v4223_v4 = vld [vmem:[#allocation2 + $0xda] sm:$0xff]  ;;  %v3815_v26 = vpack.c.bf16 %v3793_v61, %v3792_v28 }
 0x3d4   : > { %v3506_v36 = vmax.f32 %v3470_v17, 0.0 }
 0x3d5   : > { %v4341_v24 = vpop.f32.mrf.mxu3 }
 0x3d6   : > { %v4126_v29 = vpop.f32.mrf.mxu2  ;;  %v3969_v2 = vpop.f32.mrf.mxu1  ;;  %v3722_v6 = vmul.f32 %v15180_v53, %v3506_v36  ;;  %v5208_v53 = vld [vmem:[#allocation2 + $0x64] sm:$0xff] }
 0x3d7   : > { %v4127_v16 = vadd.f32 %v4126_v29, %v3967_v47  ;;  %v3384_v9 = vpop.f32.mrf.mxu0  ;;  %v15190_v29 = vpack.c.bf16 %v4223_v4, %v4222_v37  ;;  %v15207_v4 = vpop.permute.xlu0 %3666 }
 0x3d8   : > { %3758 = vst.msk [vmem:[#allocation2 + $0xf3] sm:$0xff] %vm557_vm8, %v3722_v6  ;;  %v3431_v44 = vadd.f32 %v3384_v9, %v3196_v7  ;;  %v18298_v6 = vld [vmem:[#allocation29_spill] sm:$0xff] }
 0x3d9   : > { %v15183_v15 = vadd.f32 %v4341_v24, %v4127_v16  ;;  %v2470_v16 = vadd.f32 %v14625_v35, %v14641_v21  ;;  %18299 = vst [vmem:[#allocation27_spill] sm:$0xff] %v15207_v4 }
 0x3da   : > { %v3471_v63 = vadd.f32 %v14817_v20, %v3431_v44 }
 0x3db   : > { %v2830_v9 = vadd.f32 %v18298_v6, %v2470_v16 }
 0x3dc   : > { %v3507_v30 = vmax.f32 %v3471_v63, 0.0 }
 0x3dd   : > { %v4343_v50 = vpop.f32.mrf.mxu3 }
 0x3de   : > { %v4128_v23 = vpop.f32.mrf.mxu2  ;;  %v3972_v17 = vpop.f32.mrf.mxu1  ;;  %v3723_v36 = vmul.f32 %v15188_v54, %v3507_v30  ;;  %v3850_v30 = vld [vmem:[#allocation2 + $0xe1] sm:$0xff]  ;;  %v5206_v54 = vld [vmem:[#allocation2 + $0x54] sm:$0xff] }
 0x3df   : > { %v4129_v47 = vadd.f32 %v4128_v23, %v3969_v2  ;;  %v3387_v7 = vpop.f32.mrf.mxu0  ;;  %v3198_v23 = vadd.f32 %v14664_v48, %v2830_v9  ;;  %v15215_v9 = vpop.permute.xlu1 %3671 }
 0x3e0   : > { %3759 = vst.msk [vmem:[#allocation2 + $0xfb] sm:$0xff] %vm557_vm8, %v3723_v36  ;;  %v3432_v2 = vadd.f32 %v3387_v7, %v14636_v25 }
 0x3e1   : > { %v15194_v24 = vadd.f32 %v4343_v50, %v4129_v47  ;;  %12468 = vmatmul.msk.bf16.gmra.mxu1 %vm557_vm8, %v3871_v41  ;;  %v3851_v50 = vld [vmem:[#allocation2 + $0xe9] sm:$0xff]  ;;  %18300 = vst [vmem:[#allocation28_spill] sm:$0xff] %v15215_v9 }
 0x3e2   : > { %12512 = vmatmul.msk.bf16.gmra.mxu3 %vm557_vm8, %v15190_v29  ;;  %v3472_v35 = vadd.f32 %v14817_v20, %v3432_v2  ;;  %12526 = vmatmul.msk.bf16.gmra.mxu0 %vm557_vm8, %v15003_v55  ;;  %v3795_v41 = vld [vmem:[#allocation2 + $0xe8] sm:$0xff]  ;;  %v3872_v7 = vpack.c.bf16 %v3851_v50, %v3850_v30 }
 0x3e3   : > { %12490 = vmatmul.msk.bf16.gmra.mxu2 %vm557_vm8, %v3815_v26  ;;  %v4225_v55 = vld [vmem:[#allocation2 + $0xea] sm:$0xff]  ;;  %v4224_v2 = vld [vmem:[#allocation2 + $0xe2] sm:$0xff] }
 0x3e4   : > { %v3508_v61 = vmax.f32 %v3472_v35, 0.0  ;;  %v18304_v30 = vld [vmem:[#allocation32_spill] sm:$0xff] }
 0x3e5   : > { %v4346_v51 = vpop.f32.mrf.mxu3 }
 0x3e6   : > { %v4131_v21 = vpop.f32.mrf.mxu2  ;;  %v3974_v63 = vpop.f32.mrf.mxu1  ;;  %v3724_v45 = vmul.f32 %v15207_v4, %v3508_v61  ;;  %v5204_v4 = vld [vmem:[#allocation2 + $0x44] sm:$0xff] }
 0x3e7   : > { %v4132_v44 = vadd.f32 %v4131_v21, %v3972_v17  ;;  %v3389_v28 = vpop.f32.mrf.mxu0  ;;  %v3794_v17 = vld [vmem:[#allocation2 + $0xe0] sm:$0xff]  ;;  %v15217_v21 = vpack.c.bf16 %v4225_v55, %v4224_v2 }
 0x3e8   : > { %3760 = vst.msk [vmem:[#allocation2 + $0x103] sm:$0xff] %vm557_vm8, %v3724_v45  ;;  %v3433_v47 = vadd.f32 %v3389_v28, %v3198_v23  ;;  %v3816_v48 = vpack.c.bf16 %v3795_v41, %v3794_v17  ;;  %v18302_v45 = vld [vmem:[#allocation31_spill] sm:$0xff] }
 0x3e9   : > { %v15210_v25 = vadd.f32 %v4346_v51, %v4132_v44  ;;  %v2472_v44 = vadd.f32 %v14685_v52, %v14696_v43  ;;  %v13434_v52 = vld [vmem:[%s18251_s5] ss:$0 sm:$0xff]  ;;  %s13457_s5 = scalar_lea.hbm %s18126_s17, 2 }
 0x3ea   : > { %v3473_v26 = vadd.f32 %v14817_v20, %v3433_v47  ;;  %v3853_v2 = vld [vmem:[#allocation2 + $0xf9] sm:$0xff]  ;;  %p13459_p1 = scmp.lt.s32.totalorder %s13457_s5, %s13453_s26 }
 0x3eb   : > { %v2832_v28 = vadd.f32 %v18302_v45, %v2472_v44 }
 0x3ec   : > { %v3509_v6 = vmax.f32 %v3473_v26, 0.0  ;;  %v15236_v26 = vpop.permute.xlu2 %3676  ;;  %p13460_p2 = por %p13459_p1, %p13458_p0 }
 0x3ed   : > { %v4348_v36 = vpop.f32.mrf.mxu3  ;;  %18303 = vst [vmem:[#allocation29_spill] sm:$0xff] %v15236_v26  ;;  %v3200_v17 = vadd.f32 %v18304_v30, %v2832_v28  ;;  %v4226_v28 = vld [vmem:[#allocation2 + $0xf2] sm:$0xff] }
 0x3ee   : > { %v4133_v37 = vpop.f32.mrf.mxu2  ;;  %v3977_v35 = vpop.f32.mrf.mxu1  ;;  %v3725_v20 = vmul.f32 %v15215_v9, %v3509_v6  ;;  %v3797_v6 = vld [vmem:[#allocation2 + $0xf8] sm:$0xff]  ;;  %p13461_p3 = pnand %p13460_p2, %p13456_p13 }
 0x3ef   : > { %v4134_v16 = vadd.f32 %v4133_v37, %v3974_v63  ;;  %v3392_v61 = vpop.f32.mrf.mxu0  ;;  %v18301_v63 = vld [vmem:[#allocation30_spill] sm:$0xff] }
 0x3f0   : > { %3761 = vst.msk [vmem:[#allocation2 + $0x10b] sm:$0xff] %vm557_vm8, %v3725_v20  ;;  %v3434_v23 = vadd.f32 %v3392_v61, %v18301_v63  ;;  %v3852_v20 = vld [vmem:[#allocation2 + $0xf1] sm:$0xff] }
 0x3f1   : > { %v15221_v51 = vadd.f32 %v4348_v36, %v4134_v16  ;;  %12469 = vmatmul.msk.bf16.gmra.mxu1 %vm557_vm8, %v3872_v7  ;;  %v3796_v61 = vld [vmem:[#allocation2 + $0xf0] sm:$0xff]  ;;  %v3873_v45 = vpack.c.bf16 %v3853_v2, %v3852_v20 }
 0x3f2   : > { %12513 = vmatmul.msk.bf16.gmra.mxu3 %vm557_vm8, %v15217_v21  ;;  %v3474_v43 = vadd.f32 %v13434_v52, %v3434_v23  ;;  %12527 = vmatmul.msk.bf16.gmra.mxu0 %vm557_vm8, %v15029_v12  ;;  %v4227_v12 = vld [vmem:[#allocation2 + $0xfa] sm:$0xff] }
 0x3f3   : > { %12491 = vmatmul.msk.bf16.gmra.mxu2 %vm557_vm8, %v3816_v48  ;;  %v18306_v30 = vld [vmem:[#allocation34_spill] sm:$0xff] }
 0x3f4   : > { %v3510_v55 = vmax.f32 %v3474_v43, 0.0  ;;  %v3817_v43 = vpack.c.bf16 %v3797_v6, %v3796_v61  ;;  %v18308_v6 = vld [vmem:[#allocation17_spill] sm:$0xff]  ;;  %v5202_v9 = vld [vmem:[#allocation2 + $0x34] sm:$0xff] }
 0x3f5   : > { %v4351_v41 = vpop.f32.mrf.mxu3 }
 0x3f6   : > { %v4136_v47 = vpop.f32.mrf.mxu2  ;;  %v3979_v37 = vpop.f32.mrf.mxu1  ;;  %v3726_v36 = vmul.f32 %v15236_v26, %v3510_v55  ;;  %v15245_v55 = vpack.c.bf16 %v4227_v12, %v4226_v28 }
 0x3f7   : > { %v4137_v50 = vadd.f32 %v4136_v47, %v3977_v35  ;;  %v3394_v7 = vpop.f32.mrf.mxu0 }
 0x3f8   : > { %3762 = vst.msk [vmem:[#allocation2 + $0x113] sm:$0xff] %vm557_vm8, %v3726_v36  ;;  %v3435_v48 = vadd.f32 %v3394_v7, %v3200_v17  ;;  %v2474_v17 = vadd.f32 %v14988_v27, %v18306_v30  ;;  %v13285_v30 = vld [vmem:[%s18244_s6 + $0x20] sm:$0xff] }
 0x3f9   : > { %v15239_v16 = vadd.f32 %v4351_v41, %v4137_v50  ;;  %v15243_v50 = vpop.permute.xlu0 %3681  ;;  %4821 = vmatpush.bf16.msrb.mxu1 %v13285_v30 }
 0x3fa   : > { %v3475_v44 = vadd.f32 %v13434_v52, %v3435_v48  ;;  %18305 = vst [vmem:[#allocation30_spill] sm:$0xff] %v15243_v50  ;;  %v2834_v12 = vadd.f32 %v18308_v6, %v2474_v17  ;;  %v3854_v6 = vld [vmem:[#allocation2 + $0x101] sm:$0xff] }
 0x3fc   : > { %v3511_v47 = vmax.f32 %v3475_v44, 0.0 }
 0x3fd   : > { %v4353_v23 = vpop.f32.mrf.mxu3 }
 0x3fe   : > { %v4138_v35 = vpop.f32.mrf.mxu2  ;;  %v3982_v41 = vpop.f32.mrf.mxu1  ;;  %v3727_v7 = vmul.f32 %v15243_v50, %v3511_v47 }
 0x3ff   : > { %v4139_v63 = vadd.f32 %v4138_v35, %v3979_v37  ;;  %v3397_v48 = vpop.f32.mrf.mxu0  ;;  %v18307_v37 = vld [vmem:[#allocation33_spill] sm:$0xff] }
 0x400   : > { %3763 = vst.msk [vmem:[#allocation2 + $0x11b] sm:$0xff] %vm557_vm8, %v3727_v7  ;;  %v3436_v2 = vadd.f32 %v3397_v48, %v18307_v37  ;;  %v3799_v7 = vld [vmem:[#allocation2 + $0x108] sm:$0xff] }
 0x401   : > { %v15249_v36 = vadd.f32 %v4353_v23, %v4139_v63  ;;  %12470 = vmatmul.msk.bf16.gmra.mxu1 %vm557_vm8, %v3873_v45  ;;  %v15261_v63 = vpop.permute.xlu1 %3686  ;;  %v18310_v45 = vld [vmem:[#allocation16_spill] sm:$0xff] }
 0x402   : > { %12514 = vmatmul.msk.bf16.gmra.mxu3 %vm557_vm8, %v15245_v55  ;;  %v3476_v44 = vadd.f32 %v13434_v52, %v3436_v2  ;;  %12528 = vmatmul.msk.bf16.gmra.mxu0 %vm557_vm8, %v15055_v33  ;;  %18309 = vst [vmem:[#allocation31_spill] sm:$0xff] %v15261_v63  ;;  %v4229_v48 = vld [vmem:[#allocation2 + $0x10a] sm:$0xff] }
 0x403   : > { %12492 = vmatmul.msk.bf16.gmra.mxu2 %vm557_vm8, %v3817_v43  ;;  %v3202_v43 = vadd.f32 %v18310_v45, %v2834_v12  ;;  %v3798_v12 = vld [vmem:[#allocation2 + $0x100] sm:$0xff] }
 0x404   : > { %v3512_v61 = vmax.f32 %v3476_v44, 0.0 }
 0x405   : > { %v4356_v20 = vpop.f32.mrf.mxu3 }
 0x406   : > { %v4141_v27 = vpop.f32.mrf.mxu2  ;;  %v3984_v23 = vpop.f32.mrf.mxu1  ;;  %v3728_v47 = vmul.f32 %v15261_v63, %v3512_v61  ;;  %v4228_v61 = vld [vmem:[#allocation2 + $0x102] sm:$0xff] }
 0x407   : > { %v4142_v35 = vadd.f32 %v4141_v27, %v3982_v41  ;;  %v3399_v17 = vpop.f32.mrf.mxu0  ;;  %v3855_v41 = vld [vmem:[#allocation2 + $0x109] sm:$0xff]  ;;  %v15271_v63 = vpop.permute.xlu2 %3691  ;;  %v15273_v26 = vpack.c.bf16 %v4229_v48, %v4228_v61 }
 0x408   : > { %3764 = vst.msk [vmem:[#allocation2 + $0x123] sm:$0xff] %vm557_vm8, %v3728_v47  ;;  %v3437_v33 = vadd.f32 %v3399_v17, %v3202_v43 }
 0x409   : > { %v15264_v28 = vadd.f32 %v4356_v20, %v4142_v35  ;;  %v3874_v35 = vpack.c.bf16 %v3855_v41, %v3854_v6  ;;  %v3818_v20 = vpack.c.bf16 %v3799_v7, %v3798_v12  ;;  %18311 = vst [vmem:[#allocation32_spill] sm:$0xff] %v15271_v63  ;;  %v3857_v6 = vld [vmem:[#allocation2 + $0x119] sm:$0xff] }
 0x40a   : > { %v3477_v37 = vadd.f32 %v13434_v52, %v3437_v33  ;;  %v13286_v52 = vld [vmem:[%s18244_s6 + $0x28] sm:$0xff]  ;;  %v3801_v12 = vld [vmem:[#allocation2 + $0x118] sm:$0xff] }
 0x40b   : > { %5072 = vmatpush.bf16.msrb.mxu2 %v13286_v52 }
 0x40c   : > { %v3513_v45 = vmax.f32 %v3477_v37, 0.0 }
 0x40d   : > { %v4358_v27 = vpop.f32.mrf.mxu3 }
 0x40e   : > { %v4143_v2 = vpop.f32.mrf.mxu2  ;;  %v3987_v50 = vpop.f32.mrf.mxu1  ;;  %v3729_v47 = vmul.f32 %v15271_v63, %v3513_v45  ;;  %v5200_v63 = vld [vmem:[#allocation2 + $0x24] sm:$0xff] }
 0x40f   : > { %v4144_v44 = vadd.f32 %v4143_v2, %v3984_v23  ;;  %v13287_v23 = vld [vmem:[%s18244_s6 + $0x30] sm:$0xff]  ;;  %v4572_v30 = vpop.f32.mrf.mxu0 }
 0x410   : > { %3765 = vst.msk [vmem:[#allocation2 + $0x12b] sm:$0xff] %vm557_vm8, %v3729_v47  ;;  %v15288_v17 = vadd.f32 %v4572_v30, %v15008_v56  ;;  %5323 = vmatpush.bf16.msrb.mxu3 %v13287_v23  ;;  %v4231_v56 = vld [vmem:[#allocation2 + $0x11a] sm:$0xff] }
 0x411   : > { %v15275_v43 = vadd.f32 %v4358_v27, %v4144_v44  ;;  %12471 = vmatmul.msk.bf16.gmra.mxu1 %vm557_vm8, %v3874_v35  ;;  %v3856_v27 = vld [vmem:[#allocation2 + $0x111] sm:$0xff] }
 0x412   : > { %12515 = vmatmul.msk.bf16.gmra.mxu3 %vm557_vm8, %v15273_v26  ;;  %12529 = vmatmul.msk.bf16.gmra.mxu0 %vm557_vm8, %v15084_v14  ;;  %v3800_v35 = vld [vmem:[#allocation2 + $0x110] sm:$0xff]  ;;  %v3875_v45 = vpack.c.bf16 %v3857_v6, %v3856_v27 }
 0x413   : > { %12493 = vmatmul.msk.bf16.gmra.mxu2 %vm557_vm8, %v3818_v20  ;;  %v3819_v47 = vpack.c.bf16 %v3801_v12, %v3800_v35  ;;  %v4230_v14 = vld [vmem:[#allocation2 + $0x112] sm:$0xff]  ;;  %v4699_v35 = vld [vmem:[#allocation2 + $0x1b] sm:$0xff] }
 0x414   : > { %v15298_v23 = vpack.c.bf16 %v4231_v56, %v4230_v14  ;;  %v4698_v14 = vld [vmem:[#allocation2 + $0x13] sm:$0xff] }
 0x415   : > { %v4361_v7 = vpop.f32.mrf.mxu3 }
 0x416   : > { %v4146_v33 = vpop.f32.mrf.mxu2  ;;  %v3989_v48 = vpop.f32.mrf.mxu1 }
 0x417   : > { %v4147_v41 = vadd.f32 %v4146_v33, %v3987_v50  ;;  %v15296_v2 = vpop.f32.mrf.mxu0 }
 0x419   : > { %v15294_v37 = vadd.f32 %v4361_v7, %v4147_v41 }
 0x41d   : > { %v4363_v61 = vpop.f32.mrf.mxu3 }
 0x41e   : > { %v4148_v44 = vpop.f32.mrf.mxu2  ;;  %v3992_v52 = vpop.f32.mrf.mxu1 }
 0x41f   : > { %v4149_v20 = vadd.f32 %v4148_v44, %v3989_v48  ;;  %v4577_v30 = vpop.f32.mrf.mxu0 }
 0x420   : > { %v15305_v33 = vadd.f32 %v4577_v30, %v15102_v0  ;;  %v4950_v0 = vld [vmem:[#allocation2 + $0x1c] sm:$0xff]  ;;  %v4949_v30 = vld [vmem:[#allocation2 + $0x14] sm:$0xff] }
 0x421   : > { %v15300_v50 = vadd.f32 %v4363_v61, %v4149_v20  ;;  %12472 = vmatmul.msk.bf16.gmra.mxu1 %vm557_vm8, %v3875_v45  ;;  %v5201_v45 = vld [vmem:[#allocation2 + $0x2c] sm:$0xff] }
 0x422   : > { %12516 = vmatmul.msk.bf16.gmra.mxu3 %vm557_vm8, %v15298_v23  ;;  %12530 = vmatmul.msk.bf16.gmra.mxu0 %vm557_vm8, %v15109_v8 }
 0x423   : > { %12494 = vmatmul.msk.bf16.gmra.mxu2 %vm557_vm8, %v3819_v47 }
 0x425   : > { %v4366_v48 = vpop.f32.mrf.mxu3 }
 0x426   : > { %v4151_v41 = vpop.f32.mrf.mxu2  ;;  %v3994_v6 = vpop.f32.mrf.mxu1 }
 0x427   : > { %v4152_v7 = vadd.f32 %v4151_v41, %v3992_v52  ;;  %v4579_v56 = vpop.f32.mrf.mxu0  ;;  %v4734_v52 = vpack.c.bf16 %v4699_v35, %v4698_v14  ;;  %v4985_v41 = vpack.c.bf16 %v4950_v0, %v4949_v30  ;;  %v5203_v30 = vld [vmem:[#allocation2 + $0x3c] sm:$0xff] }
 0x428   : > { %v15314_v44 = vadd.f32 %v4579_v56, %v15113_v40 }
 0x429   : > { %v15311_v12 = vadd.f32 %v4366_v48, %v4152_v7  ;;  %v5236_v7 = vpack.c.bf16 %v5201_v45, %v5200_v63  ;;  %v4701_v45 = vld [vmem:[#allocation2 + $0x2b] sm:$0xff] }
 0x42d   : > { %v4368_v61 = vpop.f32.mrf.mxu3 }
 0x42e   : > { %v4153_v27 = vpop.f32.mrf.mxu2  ;;  %v3997_v47 = vpop.f32.mrf.mxu1 }
 0x42f   : > { %v4154_v20 = vadd.f32 %v4153_v27, %v3994_v6  ;;  %v4582_v48 = vpop.f32.mrf.mxu0 }
 0x430   : > { %v15321_v40 = vadd.f32 %v4582_v48, %v15129_v38 }
 0x431   : > { %v15316_v8 = vadd.f32 %v4368_v61, %v4154_v20  ;;  %12543 = vmatmul.msk.bf16.vlgmr.msrb.gmra.mxu1 %vm557_vm8, %v4734_v52 }
 0x432   : > { %12587 = vmatmul.msk.bf16.vlgmr.msrb.gmra.mxu3 %vm557_vm8, %v5236_v7  ;;  %12531 = vmatmul.msk.bf16.gmra.mxu0 %vm557_vm8, %v15136_v22 }
 0x433   : > { %12565 = vmatmul.msk.bf16.vlgmr.msrb.gmra.mxu2 %vm557_vm8, %v4985_v41  ;;  %v4700_v41 = vld [vmem:[#allocation2 + $0x23] sm:$0xff] }
 0x434   : > { %v4735_v22 = vpack.c.bf16 %v4701_v45, %v4700_v41 }
 0x435   : > { %v4371_v27 = vpop.f32.mrf.mxu3 }
 0x436   : > { %v4156_v6 = vpop.f32.mrf.mxu2  ;;  %v3999_v35 = vpop.f32.mrf.mxu1 }
 0x437   : > { %v4157_v56 = vadd.f32 %v4156_v6, %v3997_v47  ;;  %v4584_v63 = vpop.f32.mrf.mxu0  ;;  %v5237_v47 = vpack.c.bf16 %v5203_v30, %v5202_v9  ;;  %v5205_v30 = vld [vmem:[#allocation2 + $0x4c] sm:$0xff] }
 0x438   : > { %v15329_v20 = vadd.f32 %v4584_v63, %v15140_v58 }
 0x439   : > { %v15326_v0 = vadd.f32 %v4371_v27, %v4157_v56 }
 0x43d   : > { %v4373_v38 = vpop.f32.mrf.mxu3 }
 0x43e   : > { %v4158_v61 = vpop.f32.mrf.mxu2  ;;  %v4002_v52 = vpop.f32.mrf.mxu1 }
 0x43f   : > { %v4159_v14 = vadd.f32 %v4158_v61, %v3999_v35  ;;  %v4587_v6 = vpop.f32.mrf.mxu0 }
 0x440   : > { %v15336_v58 = vadd.f32 %v4587_v6, %v15156_v57 }
 0x441   : > { %v15331_v48 = vadd.f32 %v4373_v38, %v4159_v14  ;;  %12544 = vmatmul.msk.bf16.gmra.mxu1 %vm557_vm8, %v4735_v22  ;;  %v4702_v22 = vld [vmem:[#allocation2 + $0x33] sm:$0xff] }
 0x442   : > { %12588 = vmatmul.msk.bf16.gmra.mxu3 %vm557_vm8, %v5237_v47  ;;  %12532 = vmatmul.msk.bf16.gmra.mxu0 %vm557_vm8, %v15163_v1 }
 0x443   : > { %12566 = vmatmul.msk.bf16.gmra.mxu2 %vm557_vm8, %v5236_v7  ;;  %v4703_v7 = vld [vmem:[#allocation2 + $0x3b] sm:$0xff] }
 0x444   : > { %v4736_v1 = vpack.c.bf16 %v4703_v7, %v4702_v22 }
 0x445   : > { %v4376_v35 = vpop.f32.mrf.mxu3 }
 0x446   : > { %v4161_v56 = vpop.f32.mrf.mxu2  ;;  %v4004_v63 = vpop.f32.mrf.mxu1 }
 0x447   : > { %v4162_v27 = vadd.f32 %v4161_v56, %v4002_v52  ;;  %v4589_v9 = vpop.f32.mrf.mxu0  ;;  %v5238_v52 = vpack.c.bf16 %v5205_v30, %v5204_v4  ;;  %v5207_v30 = vld [vmem:[#allocation2 + $0x5c] sm:$0xff] }
 0x448   : > { %v15344_v45 = vadd.f32 %v4589_v9, %v15167_v42 }
 0x449   : > { %v15341_v61 = vadd.f32 %v4376_v35, %v4162_v27 }
 0x44d   : > { %v4378_v57 = vpop.f32.mrf.mxu3 }
 0x44e   : > { %v4163_v14 = vpop.f32.mrf.mxu2  ;;  %v4007_v41 = vpop.f32.mrf.mxu1 }
 0x44f   : > { %v4164_v38 = vadd.f32 %v4163_v14, %v4004_v63  ;;  %v4592_v56 = vpop.f32.mrf.mxu0 }
 0x450   : > { %v15351_v42 = vadd.f32 %v4592_v56, %v15183_v15 }
 0x451   : > { %v15346_v6 = vadd.f32 %v4378_v57, %v4164_v38  ;;  %12545 = vmatmul.msk.bf16.gmra.mxu1 %vm557_vm8, %v4736_v1  ;;  %v4704_v1 = vld [vmem:[#allocation2 + $0x43] sm:$0xff] }
 0x452   : > { %12589 = vmatmul.msk.bf16.gmra.mxu3 %vm557_vm8, %v5238_v52  ;;  %12533 = vmatmul.msk.bf16.gmra.mxu0 %vm557_vm8, %v15190_v29 }
 0x453   : > { %12567 = vmatmul.msk.bf16.gmra.mxu2 %vm557_vm8, %v5237_v47  ;;  %v4705_v47 = vld [vmem:[#allocation2 + $0x4b] sm:$0xff] }
 0x454   : > { %v4737_v29 = vpack.c.bf16 %v4705_v47, %v4704_v1 }
 0x455   : > { %v4381_v63 = vpop.f32.mrf.mxu3 }
 0x456   : > { %v4166_v27 = vpop.f32.mrf.mxu2  ;;  %v4009_v9 = vpop.f32.mrf.mxu1 }
 0x457   : > { %v4167_v35 = vadd.f32 %v4166_v27, %v4007_v41  ;;  %v4594_v4 = vpop.f32.mrf.mxu0  ;;  %v5239_v41 = vpack.c.bf16 %v5207_v30, %v5206_v54  ;;  %v5209_v30 = vld [vmem:[#allocation2 + $0x6c] sm:$0xff] }
 0x458   : > { %v15359_v7 = vadd.f32 %v4594_v4, %v15194_v24 }
 0x459   : > { %v15356_v14 = vadd.f32 %v4381_v63, %v4167_v35 }
 0x45d   : > { %v4383_v15 = vpop.f32.mrf.mxu3 }
 0x45e   : > { %v4168_v38 = vpop.f32.mrf.mxu2  ;;  %v4012_v22 = vpop.f32.mrf.mxu1 }
 0x45f   : > { %v4169_v57 = vadd.f32 %v4168_v38, %v4009_v9  ;;  %v4597_v27 = vpop.f32.mrf.mxu0 }
 0x460   : > { %v15366_v24 = vadd.f32 %v4597_v27, %v15210_v25 }
 0x461   : > { %v15361_v56 = vadd.f32 %v4383_v15, %v4169_v57  ;;  %12546 = vmatmul.msk.bf16.gmra.mxu1 %vm557_vm8, %v4737_v29  ;;  %v4706_v29 = vld [vmem:[#allocation2 + $0x53] sm:$0xff] }
 0x462   : > { %12590 = vmatmul.msk.bf16.gmra.mxu3 %vm557_vm8, %v5239_v41  ;;  %12534 = vmatmul.msk.bf16.gmra.mxu0 %vm557_vm8, %v15217_v21 }
 0x463   : > { %12568 = vmatmul.msk.bf16.gmra.mxu2 %vm557_vm8, %v5238_v52  ;;  %v4707_v52 = vld [vmem:[#allocation2 + $0x5b] sm:$0xff] }
 0x464   : > { %v4738_v21 = vpack.c.bf16 %v4707_v52, %v4706_v29 }
 0x465   : > { %v4386_v9 = vpop.f32.mrf.mxu3 }
 0x466   : > { %v4171_v35 = vpop.f32.mrf.mxu2  ;;  %v4014_v4 = vpop.f32.mrf.mxu1 }
 0x467   : > { %v4172_v63 = vadd.f32 %v4171_v35, %v4012_v22  ;;  %v4599_v54 = vpop.f32.mrf.mxu0  ;;  %v5240_v22 = vpack.c.bf16 %v5209_v30, %v5208_v53  ;;  %v5211_v30 = vld [vmem:[#allocation2 + $0x7c] sm:$0xff] }
 0x468   : > { %v15374_v47 = vadd.f32 %v4599_v54, %v15221_v51 }
 0x469   : > { %v15371_v38 = vadd.f32 %v4386_v9, %v4172_v63 }
 0x46d   : > { %v4388_v25 = vpop.f32.mrf.mxu3 }
 0x46e   : > { %v4173_v57 = vpop.f32.mrf.mxu2  ;;  %v4017_v1 = vpop.f32.mrf.mxu1 }
 0x46f   : > { %v4174_v15 = vadd.f32 %v4173_v57, %v4014_v4  ;;  %v4602_v35 = vpop.f32.mrf.mxu0 }
 0x470   : > { %v15381_v51 = vadd.f32 %v4602_v35, %v15239_v16 }
 0x471   : > { %v15376_v27 = vadd.f32 %v4388_v25, %v4174_v15  ;;  %12547 = vmatmul.msk.bf16.gmra.mxu1 %vm557_vm8, %v4738_v21  ;;  %v4708_v21 = vld [vmem:[#allocation2 + $0x63] sm:$0xff] }
 0x472   : > { %12591 = vmatmul.msk.bf16.gmra.mxu3 %vm557_vm8, %v5240_v22  ;;  %12535 = vmatmul.msk.bf16.gmra.mxu0 %vm557_vm8, %v15245_v55 }
 0x473   : > { %12569 = vmatmul.msk.bf16.gmra.mxu2 %vm557_vm8, %v5239_v41  ;;  %v4709_v41 = vld [vmem:[#allocation2 + $0x6b] sm:$0xff] }
 0x474   : > { %v4739_v55 = vpack.c.bf16 %v4709_v41, %v4708_v21 }
 0x475   : > { %v4391_v4 = vpop.f32.mrf.mxu3 }
 0x476   : > { %v4176_v63 = vpop.f32.mrf.mxu2  ;;  %v4019_v54 = vpop.f32.mrf.mxu1 }
 0x477   : > { %v4177_v9 = vadd.f32 %v4176_v63, %v4017_v1  ;;  %v4604_v53 = vpop.f32.mrf.mxu0  ;;  %v5241_v1 = vpack.c.bf16 %v5211_v30, %v5210_v11  ;;  %v5213_v30 = vld [vmem:[#allocation2 + $0x8c] sm:$0xff] }
 0x478   : > { %v15389_v52 = vadd.f32 %v4604_v53, %v15249_v36 }
 0x479   : > { %v15386_v57 = vadd.f32 %v4391_v4, %v4177_v9 }
 0x47d   : > { %v4393_v16 = vpop.f32.mrf.mxu3 }
 0x47e   : > { %v4178_v15 = vpop.f32.mrf.mxu2  ;;  %v4022_v29 = vpop.f32.mrf.mxu1 }
 0x47f   : > { %v4179_v25 = vadd.f32 %v4178_v15, %v4019_v54  ;;  %v4607_v63 = vpop.f32.mrf.mxu0 }
 0x480   : > { %v15396_v36 = vadd.f32 %v4607_v63, %v15264_v28 }
 0x481   : > { %v15391_v35 = vadd.f32 %v4393_v16, %v4179_v25  ;;  %12548 = vmatmul.msk.bf16.gmra.mxu1 %vm557_vm8, %v4739_v55  ;;  %v4710_v55 = vld [vmem:[#allocation2 + $0x73] sm:$0xff] }
 0x482   : > { %12592 = vmatmul.msk.bf16.gmra.mxu3 %vm557_vm8, %v5241_v1  ;;  %12536 = vmatmul.msk.bf16.gmra.mxu0 %vm557_vm8, %v15273_v26 }
 0x483   : > { %12570 = vmatmul.msk.bf16.gmra.mxu2 %vm557_vm8, %v5240_v22  ;;  %v4711_v22 = vld [vmem:[#allocation2 + $0x7b] sm:$0xff] }
 0x484   : > { %v4740_v26 = vpack.c.bf16 %v4711_v22, %v4710_v55 }
 0x485   : > { %v4396_v54 = vpop.f32.mrf.mxu3 }
 0x486   : > { %v4181_v9 = vpop.f32.mrf.mxu2  ;;  %v4024_v53 = vpop.f32.mrf.mxu1 }
 0x487   : > { %v4182_v4 = vadd.f32 %v4181_v9, %v4022_v29  ;;  %v4609_v11 = vpop.f32.mrf.mxu0  ;;  %v5242_v29 = vpack.c.bf16 %v5213_v30, %v5212_v62  ;;  %v5215_v30 = vld [vmem:[#allocation2 + $0x9c] sm:$0xff] }
 0x488   : > { %v15404_v41 = vadd.f32 %v4609_v11, %v15275_v43 }
 0x489   : > { %v15401_v15 = vadd.f32 %v4396_v54, %v4182_v4 }
 0x48d   : > { %v4398_v28 = vpop.f32.mrf.mxu3 }
 0x48e   : > { %v4183_v25 = vpop.f32.mrf.mxu2  ;;  %v4027_v21 = vpop.f32.mrf.mxu1 }
 0x48f   : > { %v4184_v16 = vadd.f32 %v4183_v25, %v4024_v53  ;;  %v4612_v9 = vpop.f32.mrf.mxu0 }
 0x490   : > { %v15411_v43 = vadd.f32 %v4612_v9, %v15294_v37  ;;  %v4482_v9 = vld [vmem:[#allocation2 + $0x12a] sm:$0xff] }
 0x491   : > { %v15406_v63 = vadd.f32 %v4398_v28, %v4184_v16  ;;  %12549 = vmatmul.msk.bf16.gmra.mxu1 %vm557_vm8, %v4740_v26  ;;  %v4712_v26 = vld [vmem:[#allocation2 + $0x83] sm:$0xff] }
 0x492   : > { %12593 = vmatmul.msk.bf16.gmra.mxu3 %vm557_vm8, %v5242_v29  ;;  %12537 = vmatmul.msk.bf16.gmra.mxu0 %vm557_vm8, %v15298_v23 }
 0x493   : > { %12571 = vmatmul.msk.bf16.gmra.mxu2 %vm557_vm8, %v5241_v1  ;;  %v4713_v1 = vld [vmem:[#allocation2 + $0x8b] sm:$0xff] }
 0x494   : > { %v4741_v23 = vpack.c.bf16 %v4713_v1, %v4712_v26 }
 0x495   : > { %v4401_v53 = vpop.f32.mrf.mxu3 }
 0x496   : > { %v4186_v4 = vpop.f32.mrf.mxu2  ;;  %v4029_v11 = vpop.f32.mrf.mxu1 }
 0x497   : > { %v4187_v54 = vadd.f32 %v4186_v4, %v4027_v21  ;;  %v4614_v62 = vpop.f32.mrf.mxu0  ;;  %v5214_v21 = vld [vmem:[#allocation2 + $0x94] sm:$0xff] }
 0x498   : > { %v15419_v22 = vadd.f32 %v4614_v62, %v15300_v50  ;;  %v5243_v4 = vpack.c.bf16 %v5215_v30, %v5214_v21 }
 0x499   : > { %v15416_v25 = vadd.f32 %v4401_v53, %v4187_v54  ;;  %v4481_v54 = vld [vmem:[#allocation2 + $0x122] sm:$0xff] }
 0x49a   : > { %v4500_v53 = vpack.c.bf16 %v4482_v9, %v4481_v54  ;;  %v5452_v54 = vld [vmem:[#allocation2 + $0x2d] sm:$0xff] }
 0x49d   : > { %v4403_v37 = vpop.f32.mrf.mxu3 }
 0x49e   : > { %v4188_v16 = vpop.f32.mrf.mxu2  ;;  %v4032_v55 = vpop.f32.mrf.mxu1 }
 0x49f   : > { %v4189_v28 = vadd.f32 %v4188_v16, %v4029_v11  ;;  %v4617_v31 = vpop.f32.mrf.mxu0 }
 0x4a0   : > { %v15426_v50 = vadd.f32 %v4617_v31, %v15311_v12  ;;  %v4715_v12 = vld [vmem:[#allocation2 + $0x9b] sm:$0xff] }
 0x4a1   : > { %v15421_v39 = vadd.f32 %v4403_v37, %v4189_v28  ;;  %12550 = vmatmul.msk.bf16.gmra.mxu1 %vm557_vm8, %v4741_v23  ;;  %v13288_v37 = vld [vmem:[%s18244_s6 + $0x38] sm:$0xff]  ;;  %v5217_v23 = vld [vmem:[#allocation2 + $0xac] sm:$0xff] }
 0x4a2   : > { %12594 = vmatmul.msk.bf16.gmra.mxu3 %vm557_vm8, %v5243_v4  ;;  %12538 = vmatmul.msk.bf16.gmra.mxu0 %vm557_vm8, %v4500_v53  ;;  %v4109_v53 = vadd.f32 %v15078_v5, %v15072_v60 }
 0x4a3   : > { %12572 = vmatmul.msk.bf16.gmra.mxu2 %vm557_vm8, %v5242_v29  ;;  %5574 = vmatpush.bf16.msra.mxu0 %v13288_v37  ;;  %v5451_v37 = vld [vmem:[#allocation2 + $0x25] sm:$0xff] }
 0x4a4   : > { %v4412_v60 = vadd.f32 %v15080_v34, %v4109_v53  ;;  %v5219_v34 = vld [vmem:[#allocation2 + $0xbc] sm:$0xff] }
 0x4a5   : > { %v4406_v16 = vpop.f32.mrf.mxu3 }
 0x4a6   : > { %v4191_v11 = vpop.f32.mrf.mxu2  ;;  %v4034_v1 = vpop.f32.mrf.mxu1 }
 0x4a7   : > { %v4192_v62 = vadd.f32 %v4191_v11, %v4032_v55  ;;  %v4619_v30 = vpop.f32.mrf.mxu0  ;;  %v4714_v55 = vld [vmem:[#allocation2 + $0x93] sm:$0xff] }
 0x4a8   : > { %v15436_v29 = vadd.f32 %v4619_v30, %v15316_v8  ;;  %v5244_v8 = vpack.c.bf16 %v5217_v23, %v5216_v10 }
 0x4a9   : > { %v15430_v28 = vadd.f32 %v4406_v16, %v4192_v62  ;;  %v4742_v16 = vpack.c.bf16 %v4715_v12, %v4714_v55  ;;  %v4717_v55 = vld [vmem:[#allocation2 + $0xab] sm:$0xff] }
 0x4ad   : > { %v4408_v9 = vpop.f32.mrf.mxu3 }
 0x4ae   : > { %v4193_v31 = vpop.f32.mrf.mxu2  ;;  %v4823_v21 = vpop.f32.mrf.mxu1 }
 0x4af   : > { %v4194_v26 = vadd.f32 %v4193_v31, %v4034_v1  ;;  %v4913_v62 = vadd.f32 %v4823_v21, %v15288_v17  ;;  %v4622_v30 = vpop.f32.mrf.mxu0  ;;  %v5487_v31 = vpack.c.bf16 %v5452_v54, %v5451_v37  ;;  %v4663_v17 = vadd.f32 %v15296_v2, %v4412_v60  ;;  %v5454_v37 = vld [vmem:[#allocation2 + $0x3d] sm:$0xff]  ;;  %v5218_v60 = vld [vmem:[#allocation2 + $0xb4] sm:$0xff] }
 0x4b0   : > { %v15446_v1 = vadd.f32 %v4622_v30, %v15326_v0  ;;  %v4716_v30 = vld [vmem:[#allocation2 + $0xa3] sm:$0xff] }
 0x4b1   : > { %v15440_v11 = vadd.f32 %v4408_v9, %v4194_v26  ;;  %12551 = vmatmul.msk.bf16.gmra.mxu1 %vm557_vm8, %v4742_v16 }
 0x4b2   : > { %12595 = vmatmul.msk.bf16.gmra.mxu3 %vm557_vm8, %v5244_v8  ;;  %12609 = vmatmul.msk.bf16.vlgmr.msra.gmra.mxu0 %vm557_vm8, %v5487_v31 }
 0x4b3   : > { %12573 = vmatmul.msk.bf16.gmra.mxu2 %vm557_vm8, %v5243_v4 }
 0x4b5   : > { %v5325_v12 = vpop.f32.mrf.mxu3 }
 0x4b6   : > { %v5074_v5 = vpop.f32.mrf.mxu2  ;;  %v4825_v26 = vpop.f32.mrf.mxu1 }
 0x4b7   : > { %v5164_v10 = vadd.f32 %v5074_v5, %v4913_v62  ;;  %v4914_v23 = vadd.f32 %v4825_v26, %v4663_v17  ;;  %v4624_v4 = vpop.f32.mrf.mxu0  ;;  %v4743_v62 = vpack.c.bf16 %v4717_v55, %v4716_v30  ;;  %v5245_v5 = vpack.c.bf16 %v5219_v34, %v5218_v60  ;;  %v5221_v30 = vld [vmem:[#allocation2 + $0xcc] sm:$0xff] }
 0x4b8   : > { %v15455_v0 = vadd.f32 %v4624_v4, %v15331_v48  ;;  %v5456_v60 = vld [vmem:[#allocation2 + $0x4d] sm:$0xff] }
 0x4b9   : > { %v15452_v9 = vadd.f32 %v5325_v12, %v5164_v10  ;;  %v5453_v10 = vld [vmem:[#allocation2 + $0x35] sm:$0xff] }
 0x4ba   : > { %v5488_v12 = vpack.c.bf16 %v5454_v37, %v5453_v10 }
 0x4bd   : > { %v5327_v16 = vpop.f32.mrf.mxu3 }
 0x4be   : > { %v5076_v21 = vpop.f32.mrf.mxu2  ;;  %v4828_v53 = vpop.f32.mrf.mxu1 }
 0x4bf   : > { %v5165_v54 = vadd.f32 %v5076_v21, %v4914_v23  ;;  %v4915_v2 = vadd.f32 %v4828_v53, %v15305_v33  ;;  %v4627_v17 = vpop.f32.mrf.mxu0 }
 0x4c0   : > { %v15463_v48 = vadd.f32 %v4627_v17, %v15341_v61  ;;  %v4719_v61 = vld [vmem:[#allocation2 + $0xbb] sm:$0xff] }
 0x4c1   : > { %v15457_v31 = vadd.f32 %v5327_v16, %v5165_v54  ;;  %12552 = vmatmul.msk.bf16.gmra.mxu1 %vm557_vm8, %v4743_v62  ;;  %v4718_v62 = vld [vmem:[#allocation2 + $0xb3] sm:$0xff] }
 0x4c2   : > { %12596 = vmatmul.msk.bf16.gmra.mxu3 %vm557_vm8, %v5245_v5  ;;  %12610 = vmatmul.msk.bf16.gmra.mxu0 %vm557_vm8, %v5488_v12  ;;  %v4744_v10 = vpack.c.bf16 %v4719_v61, %v4718_v62  ;;  %v5220_v12 = vld [vmem:[#allocation2 + $0xc4] sm:$0xff]  ;;  %v5223_v62 = vld [vmem:[#allocation2 + $0xdc] sm:$0xff] }
 0x4c3   : > { %12574 = vmatmul.msk.bf16.gmra.mxu2 %vm557_vm8, %v5244_v8 }
 0x4c5   : > { %v5330_v33 = vpop.f32.mrf.mxu3 }
 0x4c6   : > { %v5079_v26 = vpop.f32.mrf.mxu2  ;;  %v4830_v4 = vpop.f32.mrf.mxu1 }
 0x4c7   : > { %v5166_v23 = vadd.f32 %v5079_v26, %v4915_v2  ;;  %v4916_v55 = vadd.f32 %v4830_v4, %v15314_v44  ;;  %v4629_v54 = vpop.f32.mrf.mxu0  ;;  %v5246_v26 = vpack.c.bf16 %v5221_v30, %v5220_v12  ;;  %v5458_v12 = vld [vmem:[#allocation2 + $0x5d] sm:$0xff] }
 0x4c8   : > { %v15471_v16 = vadd.f32 %v4629_v54, %v15346_v6 }
 0x4c9   : > { %v15467_v21 = vadd.f32 %v5330_v33, %v5166_v23  ;;  %v5455_v23 = vld [vmem:[#allocation2 + $0x45] sm:$0xff] }
 0x4ca   : > { %v5489_v33 = vpack.c.bf16 %v5456_v60, %v5455_v23 }
 0x4cd   : > { %v5332_v53 = vpop.f32.mrf.mxu3 }
 0x4ce   : > { %v5081_v8 = vpop.f32.mrf.mxu2  ;;  %v4833_v37 = vpop.f32.mrf.mxu1 }
 0x4cf   : > { %v5167_v34 = vadd.f32 %v5081_v8, %v4916_v55  ;;  %v4917_v2 = vadd.f32 %v4833_v37, %v15321_v40  ;;  %v4632_v44 = vpop.f32.mrf.mxu0 }
 0x4d0   : > { %v15479_v6 = vadd.f32 %v4632_v44, %v15356_v14  ;;  %v4721_v14 = vld [vmem:[#allocation2 + $0xcb] sm:$0xff] }
 0x4d1   : > { %v15473_v17 = vadd.f32 %v5332_v53, %v5167_v34  ;;  %12553 = vmatmul.msk.bf16.gmra.mxu1 %vm557_vm8, %v4744_v10  ;;  %v4720_v10 = vld [vmem:[#allocation2 + $0xc3] sm:$0xff] }
 0x4d2   : > { %12597 = vmatmul.msk.bf16.gmra.mxu3 %vm557_vm8, %v5246_v26  ;;  %12611 = vmatmul.msk.bf16.gmra.mxu0 %vm557_vm8, %v5489_v33  ;;  %v4745_v23 = vpack.c.bf16 %v4721_v14, %v4720_v10  ;;  %v5222_v33 = vld [vmem:[#allocation2 + $0xd4] sm:$0xff]  ;;  %v5225_v10 = vld [vmem:[#allocation2 + $0xec] sm:$0xff] }
 0x4d3   : > { %12575 = vmatmul.msk.bf16.gmra.mxu2 %vm557_vm8, %v5245_v5 }
 0x4d5   : > { %v5335_v40 = vpop.f32.mrf.mxu3 }
 0x4d6   : > { %v5084_v4 = vpop.f32.mrf.mxu2  ;;  %v4835_v54 = vpop.f32.mrf.mxu1 }
 0x4d7   : > { %v5168_v55 = vadd.f32 %v5084_v4, %v4917_v2  ;;  %v4918_v61 = vadd.f32 %v4835_v54, %v15329_v20  ;;  %v4634_v34 = vpop.f32.mrf.mxu0  ;;  %v5247_v4 = vpack.c.bf16 %v5223_v62, %v5222_v33  ;;  %v5460_v33 = vld [vmem:[#allocation2 + $0x6d] sm:$0xff] }
 0x4d8   : > { %v15487_v53 = vadd.f32 %v4634_v34, %v15361_v56 }
 0x4d9   : > { %v15483_v8 = vadd.f32 %v5335_v40, %v5168_v55  ;;  %v5457_v55 = vld [vmem:[#allocation2 + $0x55] sm:$0xff] }
 0x4da   : > { %v5490_v40 = vpack.c.bf16 %v5458_v12, %v5457_v55 }
 0x4dd   : > { %v5337_v37 = vpop.f32.mrf.mxu3 }
 0x4de   : > { %v5086_v5 = vpop.f32.mrf.mxu2  ;;  %v4838_v60 = vpop.f32.mrf.mxu1 }
 0x4df   : > { %v5169_v30 = vadd.f32 %v5086_v5, %v4918_v61  ;;  %v4919_v2 = vadd.f32 %v4838_v60, %v15336_v58  ;;  %v4637_v20 = vpop.f32.mrf.mxu0 }
 0x4e0   : > { %v15495_v56 = vadd.f32 %v4637_v20, %v15371_v38  ;;  %v4723_v38 = vld [vmem:[#allocation2 + $0xdb] sm:$0xff] }
 0x4e1   : > { %v15489_v44 = vadd.f32 %v5337_v37, %v5169_v30  ;;  %12554 = vmatmul.msk.bf16.gmra.mxu1 %vm557_vm8, %v4745_v23  ;;  %v4722_v23 = vld [vmem:[#allocation2 + $0xd3] sm:$0xff] }
 0x4e2   : > { %12598 = vmatmul.msk.bf16.gmra.mxu3 %vm557_vm8, %v5247_v4  ;;  %12612 = vmatmul.msk.bf16.gmra.mxu0 %vm557_vm8, %v5490_v40  ;;  %v4746_v55 = vpack.c.bf16 %v4723_v38, %v4722_v23  ;;  %v5224_v40 = vld [vmem:[#allocation2 + $0xe4] sm:$0xff]  ;;  %v5227_v23 = vld [vmem:[#allocation2 + $0xfc] sm:$0xff] }
 0x4e3   : > { %12576 = vmatmul.msk.bf16.gmra.mxu2 %vm557_vm8, %v5246_v26 }
 0x4e5   : > { %v5340_v58 = vpop.f32.mrf.mxu3 }
 0x4e6   : > { %v5089_v54 = vpop.f32.mrf.mxu2  ;;  %v4840_v34 = vpop.f32.mrf.mxu1 }
 0x4e7   : > { %v5170_v61 = vadd.f32 %v5089_v54, %v4919_v2  ;;  %v4920_v14 = vadd.f32 %v4840_v34, %v15344_v45  ;;  %v4639_v30 = vpop.f32.mrf.mxu0  ;;  %v5248_v54 = vpack.c.bf16 %v5225_v10, %v5224_v40  ;;  %v5462_v40 = vld [vmem:[#allocation2 + $0x7d] sm:$0xff] }
 0x4e8   : > { %v15503_v37 = vadd.f32 %v4639_v30, %v15376_v27 }
 0x4e9   : > { %v15499_v5 = vadd.f32 %v5340_v58, %v5170_v61  ;;  %v5459_v61 = vld [vmem:[#allocation2 + $0x65] sm:$0xff] }
 0x4ea   : > { %v5491_v58 = vpack.c.bf16 %v5460_v33, %v5459_v61 }
 0x4ed   : > { %v5342_v60 = vpop.f32.mrf.mxu3 }
 0x4ee   : > { %v5091_v26 = vpop.f32.mrf.mxu2  ;;  %v4843_v12 = vpop.f32.mrf.mxu1 }
 0x4ef   : > { %v5171_v62 = vadd.f32 %v5091_v26, %v4920_v14  ;;  %v4921_v2 = vadd.f32 %v4843_v12, %v15351_v42  ;;  %v4642_v45 = vpop.f32.mrf.mxu0 }
 0x4f0   : > { %v15511_v27 = vadd.f32 %v4642_v45, %v15386_v57  ;;  %v4725_v57 = vld [vmem:[#allocation2 + $0xeb] sm:$0xff] }
 0x4f1   : > { %v15505_v20 = vadd.f32 %v5342_v60, %v5171_v62  ;;  %12555 = vmatmul.msk.bf16.gmra.mxu1 %vm557_vm8, %v4746_v55  ;;  %v4724_v55 = vld [vmem:[#allocation2 + $0xe3] sm:$0xff] }
 0x4f2   : > { %12599 = vmatmul.msk.bf16.gmra.mxu3 %vm557_vm8, %v5248_v54  ;;  %12613 = vmatmul.msk.bf16.gmra.mxu0 %vm557_vm8, %v5491_v58  ;;  %v4747_v61 = vpack.c.bf16 %v4725_v57, %v4724_v55  ;;  %v5226_v58 = vld [vmem:[#allocation2 + $0xf4] sm:$0xff]  ;;  %v5229_v55 = vld [vmem:[#allocation2 + $0x10c] sm:$0xff] }
 0x4f3   : > { %12577 = vmatmul.msk.bf16.gmra.mxu2 %vm557_vm8, %v5247_v4 }
 0x4f5   : > { %v5345_v42 = vpop.f32.mrf.mxu3 }
 0x4f6   : > { %v5094_v34 = vpop.f32.mrf.mxu2  ;;  %v4845_v30 = vpop.f32.mrf.mxu1 }
 0x4f7   : > { %v5172_v14 = vadd.f32 %v5094_v34, %v4921_v2  ;;  %v4922_v38 = vadd.f32 %v4845_v30, %v15359_v7  ;;  %v4644_v62 = vpop.f32.mrf.mxu0  ;;  %v5249_v34 = vpack.c.bf16 %v5227_v23, %v5226_v58  ;;  %v5464_v58 = vld [vmem:[#allocation2 + $0x8d] sm:$0xff] }
 0x4f8   : > { %v15519_v60 = vadd.f32 %v4644_v62, %v15391_v35 }
 0x4f9   : > { %v15515_v26 = vadd.f32 %v5345_v42, %v5172_v14  ;;  %v5461_v14 = vld [vmem:[#allocation2 + $0x75] sm:$0xff] }
 0x4fa   : > { %v5492_v42 = vpack.c.bf16 %v5462_v40, %v5461_v14 }
 0x4fd   : > { %v5347_v12 = vpop.f32.mrf.mxu3 }
 0x4fe   : > { %v5096_v4 = vpop.f32.mrf.mxu2  ;;  %v4848_v33 = vpop.f32.mrf.mxu1 }
 0x4ff   : > { %v5173_v10 = vadd.f32 %v5096_v4, %v4922_v38  ;;  %v4923_v2 = vadd.f32 %v4848_v33, %v15366_v24  ;;  %v4647_v7 = vpop.f32.mrf.mxu0 }
 0x500   : > { %v15527_v35 = vadd.f32 %v4647_v7, %v15401_v15  ;;  %v4727_v15 = vld [vmem:[#allocation2 + $0xfb] sm:$0xff] }
 0x501   : > { %v15521_v45 = vadd.f32 %v5347_v12, %v5173_v10  ;;  %12556 = vmatmul.msk.bf16.gmra.mxu1 %vm557_vm8, %v4747_v61  ;;  %v4726_v61 = vld [vmem:[#allocation2 + $0xf3] sm:$0xff] }
 0x502   : > { %12600 = vmatmul.msk.bf16.gmra.mxu3 %vm557_vm8, %v5249_v34  ;;  %12614 = vmatmul.msk.bf16.gmra.mxu0 %vm557_vm8, %v5492_v42  ;;  %v4748_v14 = vpack.c.bf16 %v4727_v15, %v4726_v61  ;;  %v5228_v42 = vld [vmem:[#allocation2 + $0x104] sm:$0xff] }
 0x503   : > { %12578 = vmatmul.msk.bf16.gmra.mxu2 %vm557_vm8, %v5248_v54 }
 0x505   : > { %v5350_v24 = vpop.f32.mrf.mxu3 }
 0x506   : > { %v5099_v30 = vpop.f32.mrf.mxu2  ;;  %v4850_v62 = vpop.f32.mrf.mxu1 }
 0x507   : > { %v5174_v38 = vadd.f32 %v5099_v30, %v4923_v2  ;;  %v4924_v57 = vadd.f32 %v4850_v62, %v15374_v47  ;;  %v4649_v10 = vpop.f32.mrf.mxu0  ;;  %v5250_v30 = vpack.c.bf16 %v5229_v55, %v5228_v42 }
 0x508   : > { %v15535_v12 = vadd.f32 %v4649_v10, %v15406_v63 }
 0x509   : > { %v15531_v4 = vadd.f32 %v5350_v24, %v5174_v38  ;;  %v5463_v38 = vld [vmem:[#allocation2 + $0x85] sm:$0xff] }
 0x50a   : > { %v5493_v24 = vpack.c.bf16 %v5464_v58, %v5463_v38  ;;  %v4728_v58 = vld [vmem:[#allocation2 + $0x103] sm:$0xff] }
 0x50d   : > { %v5352_v33 = vpop.f32.mrf.mxu3 }
 0x50e   : > { %v5101_v54 = vpop.f32.mrf.mxu2  ;;  %v4853_v40 = vpop.f32.mrf.mxu1 }
 0x50f   : > { %v5175_v23 = vadd.f32 %v5101_v54, %v4924_v57  ;;  %v4925_v2 = vadd.f32 %v4853_v40, %v15381_v51  ;;  %v4652_v47 = vpop.f32.mrf.mxu0  ;;  %v5231_v40 = vld [vmem:[#allocation2 + $0x11c] sm:$0xff] }
 0x510   : > { %v15543_v63 = vadd.f32 %v4652_v47, %v15416_v25  ;;  %v5230_v47 = vld [vmem:[#allocation2 + $0x114] sm:$0xff] }
 0x511   : > { %v15537_v7 = vadd.f32 %v5352_v33, %v5175_v23  ;;  %12557 = vmatmul.msk.bf16.gmra.mxu1 %vm557_vm8, %v4748_v14  ;;  %v4729_v33 = vld [vmem:[#allocation2 + $0x10b] sm:$0xff]  ;;  %v5251_v38 = vpack.c.bf16 %v5231_v40, %v5230_v47 }
 0x512   : > { %12601 = vmatmul.msk.bf16.gmra.mxu3 %vm557_vm8, %v5250_v30  ;;  %12615 = vmatmul.msk.bf16.gmra.mxu0 %vm557_vm8, %v5493_v24  ;;  %v4749_v42 = vpack.c.bf16 %v4729_v33, %v4728_v58  ;;  %v5465_v24 = vld [vmem:[#allocation2 + $0x95] sm:$0xff] }
 0x513   : > { %12579 = vmatmul.msk.bf16.gmra.mxu2 %vm557_vm8, %v5249_v34  ;;  %v4731_v58 = vld [vmem:[#allocation2 + $0x11b] sm:$0xff] }
 0x515   : > { %v5355_v51 = vpop.f32.mrf.mxu3 }
 0x516   : > { %v5104_v62 = vpop.f32.mrf.mxu2  ;;  %v4855_v10 = vpop.f32.mrf.mxu1 }
 0x517   : > { %v5176_v57 = vadd.f32 %v5104_v62, %v4925_v2  ;;  %v15550_v15 = vadd.f32 %v4855_v10, %v15389_v52  ;;  %v4654_v23 = vpop.f32.mrf.mxu0  ;;  %v5466_v2 = vld [vmem:[#allocation2 + $0x9d] sm:$0xff] }
 0x518   : > { %v15553_v34 = vadd.f32 %v4654_v23, %v15421_v39  ;;  %v5494_v62 = vpack.c.bf16 %v5466_v2, %v5465_v24 }
 0x519   : > { %v15547_v54 = vadd.f32 %v5355_v51, %v5176_v57 }
 0x51d   : > { %v15557_v55 = vpop.f32.mrf.mxu3 }
 0x51e   : > { %v15555_v25 = vpop.f32.mrf.mxu2  ;;  %v4858_v61 = vpop.f32.mrf.mxu1 }
 0x51f   : > { %v4927_v14 = vadd.f32 %v4858_v61, %v15396_v36  ;;  %v4657_v52 = vpop.f32.mrf.mxu0 }
 0x520   : > { %v15563_v39 = vadd.f32 %v4657_v52, %v15430_v28  ;;  %v4730_v52 = vld [vmem:[#allocation2 + $0x113] sm:$0xff] }
 0x521   : > { %12558 = vmatmul.msk.bf16.gmra.mxu1 %vm557_vm8, %v4749_v42  ;;  %v5233_v42 = vld [vmem:[#allocation2 + $0x12c] sm:$0xff] }
 0x522   : > { %12602 = vmatmul.msk.bf16.gmra.mxu3 %vm557_vm8, %v5251_v38  ;;  %12616 = vmatmul.msk.bf16.gmra.mxu0 %vm557_vm8, %v5494_v62  ;;  %v4750_v62 = vpack.c.bf16 %v4731_v58, %v4730_v52 }
 0x523   : > { %12580 = vmatmul.msk.bf16.gmra.mxu2 %vm557_vm8, %v5250_v30  ;;  %v13289_v30 = vld [vmem:[%s18244_s6 + $0x40] sm:$0xff] }
 0x524   : > { %5825 = vmatpush.bf16.msra.mxu1 %v13289_v30 }
 0x525   : > { %v5360_v36 = vpop.f32.mrf.mxu3 }
 0x526   : > { %v5109_v57 = vpop.f32.mrf.mxu2  ;;  %v4860_v10 = vpop.f32.mrf.mxu1 }
 0x527   : > { %v5178_v51 = vadd.f32 %v5109_v57, %v4927_v14  ;;  %v15570_v33 = vadd.f32 %v4860_v10, %v15404_v41  ;;  %v4659_v28 = vpop.f32.mrf.mxu0  ;;  %v5232_v14 = vld [vmem:[#allocation2 + $0x124] sm:$0xff]  ;;  %v5468_v41 = vld [vmem:[#allocation2 + $0xad] sm:$0xff] }
 0x528   : > { %v15576_v40 = vadd.f32 %v4659_v28, %v15440_v11  ;;  %v5252_v57 = vpack.c.bf16 %v5233_v42, %v5232_v14 }
 0x529   : > { %v15567_v23 = vadd.f32 %v5360_v36, %v5178_v51  ;;  %v5467_v36 = vld [vmem:[#allocation2 + $0xa5] sm:$0xff] }
 0x52a   : > { %v5495_v10 = vpack.c.bf16 %v5468_v41, %v5467_v36  ;;  %v4733_v41 = vld [vmem:[#allocation2 + $0x12b] sm:$0xff] }
 0x52d   : > { %v15580_v2 = vpop.f32.mrf.mxu3 }
 0x52e   : > { %v15578_v61 = vpop.f32.mrf.mxu2  ;;  %v4863_v47 = vpop.f32.mrf.mxu1 }
 0x52f   : > { %v4929_v24 = vadd.f32 %v4863_v47, %v15411_v43  ;;  %v5576_v51 = vpop.f32.mrf.mxu0  ;;  %v5235_v47 = vld [vmem:[#allocation2 + $0x13c] sm:$0xff] }
 0x530   : > { %v15586_v11 = vadd.f32 %v5576_v51, %v15452_v9  ;;  %v5234_v9 = vld [vmem:[#allocation2 + $0x134] sm:$0xff] }
 0x531   : > { %12559 = vmatmul.msk.bf16.gmra.mxu1 %vm557_vm8, %v4750_v62  ;;  %v5253_v36 = vpack.c.bf16 %v5235_v47, %v5234_v9 }
 0x532   : > { %12603 = vmatmul.msk.bf16.gmra.mxu3 %vm557_vm8, %v5252_v57  ;;  %12617 = vmatmul.msk.bf16.gmra.mxu0 %vm557_vm8, %v5495_v10  ;;  %v5470_v10 = vld [vmem:[#allocation2 + $0xbd] sm:$0xff] }
 0x533   : > { %12581 = vmatmul.msk.bf16.gmra.mxu2 %vm557_vm8, %v5251_v38 }
 0x535   : > { %v5365_v19 = vpop.f32.mrf.mxu3 }
 0x536   : > { %v5114_v30 = vpop.f32.mrf.mxu2  ;;  %v4865_v43 = vpop.f32.mrf.mxu1 }
 0x537   : > { %v5180_v28 = vadd.f32 %v5114_v30, %v4929_v24  ;;  %v15593_v14 = vadd.f32 %v4865_v43, %v15419_v22  ;;  %v5578_v42 = vpop.f32.mrf.mxu0  ;;  %v4732_v24 = vld [vmem:[#allocation2 + $0x123] sm:$0xff] }
 0x538   : > { %v15596_v38 = vadd.f32 %v5578_v42, %v15457_v31  ;;  %v4751_v30 = vpack.c.bf16 %v4733_v41, %v4732_v24  ;;  %v5703_v24 = vld [vmem:[#allocation2 + $0x2e] sm:$0xff] }
 0x539   : > { %v15590_v58 = vadd.f32 %v5365_v19, %v5180_v28  ;;  %v5469_v28 = vld [vmem:[#allocation2 + $0xb5] sm:$0xff] }
 0x53a   : > { %v5496_v43 = vpack.c.bf16 %v5470_v10, %v5469_v28 }
 0x53d   : > { %v15600_v62 = vpop.f32.mrf.mxu3 }
 0x53e   : > { %v15598_v52 = vpop.f32.mrf.mxu2  ;;  %v4868_v51 = vpop.f32.mrf.mxu1 }
 0x53f   : > { %v4931_v19 = vadd.f32 %v4868_v51, %v15426_v50  ;;  %v5581_v22 = vpop.f32.mrf.mxu0 }
 0x540   : > { %v15606_v31 = vadd.f32 %v5581_v22, %v15467_v21  ;;  %v5472_v22 = vld [vmem:[#allocation2 + $0xcd] sm:$0xff] }
 0x541   : > { %12560 = vmatmul.msk.bf16.gmra.mxu1 %vm557_vm8, %v4751_v30  ;;  %v5702_v30 = vld [vmem:[#allocation2 + $0x26] sm:$0xff] }
 0x542   : > { %12604 = vmatmul.msk.bf16.gmra.mxu3 %vm557_vm8, %v5253_v36  ;;  %12618 = vmatmul.msk.bf16.gmra.mxu0 %vm557_vm8, %v5496_v43  ;;  %v5738_v28 = vpack.c.bf16 %v5703_v24, %v5702_v30 }
 0x543   : > { %12582 = vmatmul.msk.bf16.gmra.mxu2 %vm557_vm8, %v5252_v57 }
 0x545   : > { %v5370_v47 = vpop.f32.mrf.mxu3 }
 0x546   : > { %v5119_v42 = vpop.f32.mrf.mxu2  ;;  %v4870_v32 = vpop.f32.mrf.mxu1 }
 0x547   : > { %v5182_v9 = vadd.f32 %v5119_v42, %v4931_v19  ;;  %v15613_v41 = vadd.f32 %v4870_v32, %v15436_v29  ;;  %v5583_v51 = vpop.f32.mrf.mxu0  ;;  %v5471_v42 = vld [vmem:[#allocation2 + $0xc5] sm:$0xff] }
 0x548   : > { %v15616_v57 = vadd.f32 %v5583_v51, %v15473_v17  ;;  %v5497_v29 = vpack.c.bf16 %v5472_v22, %v5471_v42 }
 0x549   : > { %v15610_v50 = vadd.f32 %v5370_v47, %v5182_v9 }
 0x54d   : > { %v15620_v10 = vpop.f32.mrf.mxu3 }
 0x54e   : > { %v15618_v21 = vpop.f32.mrf.mxu2  ;;  %v4873_v36 = vpop.f32.mrf.mxu1 }
 0x54f   : > { %v4933_v19 = vadd.f32 %v4873_v36, %v15446_v1  ;;  %v5586_v43 = vpop.f32.mrf.mxu0 }
 0x550   : > { %v15625_v32 = vadd.f32 %v5586_v43, %v15483_v8  ;;  %v5705_v8 = vld [vmem:[#allocation2 + $0x3e] sm:$0xff] }
 0x551   : > { %12631 = vmatmul.msk.bf16.vlgmr.msra.gmra.mxu1 %vm557_vm8, %v5738_v28  ;;  %v5704_v28 = vld [vmem:[#allocation2 + $0x36] sm:$0xff] }
 0x552   : > { %12619 = vmatmul.msk.bf16.gmra.mxu0 %vm557_vm8, %v5497_v29  ;;  %v5474_v43 = vld [vmem:[#allocation2 + $0xdd] sm:$0xff]  ;;  %v5739_v42 = vpack.c.bf16 %v5705_v8, %v5704_v28 }
 0x555   : > { %v5375_v47 = vpop.f32.mrf.mxu3 }
 0x556   : > { %v5124_v17 = vpop.f32.mrf.mxu2  ;;  %v4875_v51 = vpop.f32.mrf.mxu1 }
 0x557   : > { %v5184_v9 = vadd.f32 %v5124_v17, %v4933_v19  ;;  %v15631_v13 = vadd.f32 %v4875_v51, %v15455_v0  ;;  %v5588_v1 = vpop.f32.mrf.mxu0  ;;  %v5473_v17 = vld [vmem:[#allocation2 + $0xd5] sm:$0xff] }
 0x558   : > { %v15634_v24 = vadd.f32 %v5588_v1, %v15489_v44  ;;  %v5498_v44 = vpack.c.bf16 %v5474_v43, %v5473_v17 }
 0x559   : > { %v15628_v46 = vadd.f32 %v5375_v47, %v5184_v9 }
 0x55d   : > { %v15638_v30 = vpop.f32.mrf.mxu3 }
 0x55e   : > { %v15636_v36 = vpop.f32.mrf.mxu2  ;;  %18313 = vst [vmem:[#allocation33_spill] sm:$0xff] %v15638_v30  ;;  %v4878_v22 = vpop.f32.mrf.mxu1 }
 0x55f   : > { %18312 = vst [vmem:[#allocation34_spill] sm:$0xff] %v15636_v36  ;;  %v4935_v19 = vadd.f32 %v4878_v22, %v15463_v48  ;;  %v5591_v29 = vpop.f32.mrf.mxu0 }
 0x560   : > { %v15643_v0 = vadd.f32 %v5591_v29, %v15499_v5  ;;  %v5707_v5 = vld [vmem:[#allocation2 + $0x4e] sm:$0xff] }
 0x561   : > { %12632 = vmatmul.msk.bf16.gmra.mxu1 %vm557_vm8, %v5739_v42  ;;  %v5706_v42 = vld [vmem:[#allocation2 + $0x46] sm:$0xff] }
 0x562   : > { %12620 = vmatmul.msk.bf16.gmra.mxu0 %vm557_vm8, %v5498_v44  ;;  %v5476_v29 = vld [vmem:[#allocation2 + $0xed] sm:$0xff]  ;;  %v5740_v17 = vpack.c.bf16 %v5707_v5, %v5706_v42 }
 0x565   : > { %v5380_v51 = vpop.f32.mrf.mxu3 }
 0x566   : > { %v5129_v9 = vpop.f32.mrf.mxu2  ;;  %v4880_v1 = vpop.f32.mrf.mxu1 }
 0x567   : > { %v5186_v47 = vadd.f32 %v5129_v9, %v4935_v19  ;;  %v15649_v36 = vadd.f32 %v4880_v1, %v15471_v16  ;;  %v5593_v48 = vpop.f32.mrf.mxu0  ;;  %v5475_v9 = vld [vmem:[#allocation2 + $0xe5] sm:$0xff] }
 0x568   : > { %v15652_v8 = vadd.f32 %v5593_v48, %v15505_v20  ;;  %v5499_v20 = vpack.c.bf16 %v5476_v29, %v5475_v9 }
 0x569   : > { %v15646_v30 = vadd.f32 %v5380_v51, %v5186_v47 }
 0x56d   : > { %v15656_v28 = vpop.f32.mrf.mxu3 }
 0x56e   : > { %v15654_v22 = vpop.f32.mrf.mxu2  ;;  %18315 = vst [vmem:[#allocation16_spill] sm:$0xff] %v15656_v28  ;;  %v4883_v43 = vpop.f32.mrf.mxu1 }
 0x56f   : > { %18314 = vst [vmem:[#allocation17_spill] sm:$0xff] %v15654_v22  ;;  %v4937_v19 = vadd.f32 %v4883_v43, %v15479_v6  ;;  %v5596_v44 = vpop.f32.mrf.mxu0 }
 0x570   : > { %v15661_v16 = vadd.f32 %v5596_v44, %v15515_v26  ;;  %v5709_v26 = vld [vmem:[#allocation2 + $0x5e] sm:$0xff] }
 0x571   : > { %12633 = vmatmul.msk.bf16.gmra.mxu1 %vm557_vm8, %v5740_v17  ;;  %v5708_v17 = vld [vmem:[#allocation2 + $0x56] sm:$0xff] }
 0x572   : > { %12621 = vmatmul.msk.bf16.gmra.mxu0 %vm557_vm8, %v5499_v20  ;;  %v5478_v44 = vld [vmem:[#allocation2 + $0xfd] sm:$0xff]  ;;  %v5741_v9 = vpack.c.bf16 %v5709_v26, %v5708_v17 }
 0x575   : > { %v5385_v1 = vpop.f32.mrf.mxu3 }
 0x576   : > { %v5134_v47 = vpop.f32.mrf.mxu2  ;;  %v4885_v48 = vpop.f32.mrf.mxu1 }
 0x577   : > { %v5188_v51 = vadd.f32 %v5134_v47, %v4937_v19  ;;  %v15667_v22 = vadd.f32 %v4885_v48, %v15487_v53  ;;  %v5598_v6 = vpop.f32.mrf.mxu0  ;;  %v5477_v47 = vld [vmem:[#allocation2 + $0xf5] sm:$0xff] }
 0x578   : > { %v15670_v5 = vadd.f32 %v5598_v6, %v15521_v45  ;;  %v5500_v45 = vpack.c.bf16 %v5478_v44, %v5477_v47 }
 0x579   : > { %v15664_v28 = vadd.f32 %v5385_v1, %v5188_v51 }
 0x57d   : > { %v15674_v42 = vpop.f32.mrf.mxu3 }
 0x57e   : > { %v15672_v43 = vpop.f32.mrf.mxu2  ;;  %18317 = vst [vmem:[#allocation56_spill] sm:$0xff] %v15674_v42  ;;  %v4888_v29 = vpop.f32.mrf.mxu1 }
 0x57f   : > { %18316 = vst [vmem:[#allocation55_spill] sm:$0xff] %v15672_v43  ;;  %v4939_v19 = vadd.f32 %v4888_v29, %v15495_v56  ;;  %v5601_v20 = vpop.f32.mrf.mxu0 }
 0x580   : > { %v15679_v53 = vadd.f32 %v5601_v20, %v15531_v4  ;;  %v5711_v4 = vld [vmem:[#allocation2 + $0x6e] sm:$0xff] }
 0x581   : > { %12634 = vmatmul.msk.bf16.gmra.mxu1 %vm557_vm8, %v5741_v9  ;;  %v5710_v9 = vld [vmem:[#allocation2 + $0x66] sm:$0xff] }
 0x582   : > { %12622 = vmatmul.msk.bf16.gmra.mxu0 %vm557_vm8, %v5500_v45  ;;  %v5480_v20 = vld [vmem:[#allocation2 + $0x10d] sm:$0xff]  ;;  %v5742_v47 = vpack.c.bf16 %v5711_v4, %v5710_v9 }
 0x585   : > { %v5390_v48 = vpop.f32.mrf.mxu3 }
 0x586   : > { %v5139_v51 = vpop.f32.mrf.mxu2  ;;  %v4890_v6 = vpop.f32.mrf.mxu1 }
 0x587   : > { %v5190_v1 = vadd.f32 %v5139_v51, %v4939_v19  ;;  %v15685_v43 = vadd.f32 %v4890_v6, %v15503_v37  ;;  %v5603_v56 = vpop.f32.mrf.mxu0  ;;  %v5479_v51 = vld [vmem:[#allocation2 + $0x105] sm:$0xff] }
 0x588   : > { %v15688_v26 = vadd.f32 %v5603_v56, %v15537_v7  ;;  %v5501_v7 = vpack.c.bf16 %v5480_v20, %v5479_v51 }
 0x589   : > { %v15682_v42 = vadd.f32 %v5390_v48, %v5190_v1  ;;  %v5177_v1 = vadd.f32 %v15555_v25, %v15550_v15 }
 0x58d   : > { %v15692_v17 = vpop.f32.mrf.mxu3 }
 0x58e   : > { %v15690_v29 = vpop.f32.mrf.mxu2  ;;  %18318 = vst [vmem:[#allocation57_spill] sm:$0xff] %v15692_v17  ;;  %v4893_v44 = vpop.f32.mrf.mxu1 }
 0x58f   : > { %v4941_v19 = vadd.f32 %v4893_v44, %v15511_v27  ;;  %v5606_v45 = vpop.f32.mrf.mxu0  ;;  %v5428_v27 = vadd.f32 %v15557_v55, %v5177_v1  ;;  %v5481_v1 = vld [vmem:[#allocation2 + $0x115] sm:$0xff] }
 0x590   : > { %v15697_v37 = vadd.f32 %v5606_v45, %v15547_v54  ;;  %v5712_v45 = vld [vmem:[#allocation2 + $0x76] sm:$0xff] }
 0x591   : > { %12635 = vmatmul.msk.bf16.gmra.mxu1 %vm557_vm8, %v5742_v47  ;;  %v5713_v47 = vld [vmem:[#allocation2 + $0x7e] sm:$0xff] }
 0x592   : > { %12623 = vmatmul.msk.bf16.gmra.mxu0 %vm557_vm8, %v5501_v7  ;;  %v5743_v7 = vpack.c.bf16 %v5713_v47, %v5712_v45 }
 0x595   : > { %v5395_v56 = vpop.f32.mrf.mxu3 }
 0x596   : > { %v5144_v48 = vpop.f32.mrf.mxu2  ;;  %v4895_v17 = vpop.f32.mrf.mxu1 }
 0x597   : > { %v5192_v6 = vadd.f32 %v5144_v48, %v4941_v19  ;;  %v15706_v44 = vadd.f32 %v4895_v17, %v15519_v60  ;;  %v5608_v9 = vpop.f32.mrf.mxu0  ;;  %v5482_v19 = vld [vmem:[#allocation2 + $0x11d] sm:$0xff] }
 0x598   : > { %v15708_v54 = vadd.f32 %v5608_v9, %v5428_v27  ;;  %v5502_v17 = vpack.c.bf16 %v5482_v19, %v5481_v1  ;;  %v5714_v19 = vld [vmem:[#allocation2 + $0x86] sm:$0xff] }
 0x599   : > { %v15703_v4 = vadd.f32 %v5395_v56, %v5192_v6 }
 0x59d   : > { %v15712_v15 = vpop.f32.mrf.mxu3 }
 0x59e   : > { %v15710_v20 = vpop.f32.mrf.mxu2  ;;  %18320 = vst [vmem:[#allocation59_spill] sm:$0xff] %v15712_v15  ;;  %v4898_v25 = vpop.f32.mrf.mxu1 }
 0x59f   : > { %18319 = vst [vmem:[#allocation58_spill] sm:$0xff] %v15710_v20  ;;  %v4943_v51 = vadd.f32 %v4898_v25, %v15527_v35  ;;  %v5611_v55 = vpop.f32.mrf.mxu0  ;;  %v5715_v25 = vld [vmem:[#allocation2 + $0x8e] sm:$0xff]  ;;  %v5486_v20 = vld [vmem:[#allocation2 + $0x13d] sm:$0xff] }
 0x5a0   : > { %v15717_v60 = vadd.f32 %v5611_v55, %v15567_v23  ;;  %v5484_v55 = vld [vmem:[#allocation2 + $0x12d] sm:$0xff]  ;;  %v5744_v1 = vpack.c.bf16 %v5715_v25, %v5714_v19 }
 0x5a1   : > { %12636 = vmatmul.msk.bf16.gmra.mxu1 %vm557_vm8, %v5743_v7  ;;  %v5483_v7 = vld [vmem:[#allocation2 + $0x125] sm:$0xff]  ;;  %v6194_v19 = vld [vmem:[#allocation3 + $0x9] sm:$0xff] }
 0x5a2   : > { %12624 = vmatmul.msk.bf16.gmra.mxu0 %vm557_vm8, %v5502_v17  ;;  %v6193_v25 = vld [vmem:[#allocation3 + $0x1] sm:$0xff] }
 0x5a5   : > { %v5400_v56 = vpop.f32.mrf.mxu3 }
 0x5a6   : > { %v5149_v48 = vpop.f32.mrf.mxu2  ;;  %v4900_v27 = vpop.f32.mrf.mxu1 }
 0x5a7   : > { %v5194_v6 = vadd.f32 %v5149_v48, %v4943_v51  ;;  %v15723_v15 = vadd.f32 %v4900_v27, %v15535_v12  ;;  %v15725_v35 = vpop.f32.mrf.mxu0  ;;  %v5503_v48 = vpack.c.bf16 %v5484_v55, %v5483_v7  ;;  %v6137_v7 = vld [vmem:[#allocation3] sm:$0xff]  ;;  %v6138_v55 = vld [vmem:[#allocation3 + $0x8] sm:$0xff] }
 0x5a9   : > { %v15720_v9 = vadd.f32 %v5400_v56, %v5194_v6  ;;  %18321 = vst [vmem:[#allocation60_spill] sm:$0xff] %v15723_v15 }
 0x5ad   : > { %v15729_v45 = vpop.f32.mrf.mxu3 }
 0x5ae   : > { %v15727_v47 = vpop.f32.mrf.mxu2  ;;  %18323 = vst [vmem:[#allocation62_spill] sm:$0xff] %v15729_v45  ;;  %v4903_v23 = vpop.f32.mrf.mxu1 }
 0x5af   : > { %18322 = vst [vmem:[#allocation61_spill] sm:$0xff] %v15727_v47  ;;  %v4945_v51 = vadd.f32 %v4903_v23, %v15543_v63  ;;  %v5616_v17 = vpop.f32.mrf.mxu0  ;;  %v13291_v63 = vld [vmem:[%s18117_s8 + $0x8] sm:$0xff] }
 0x5b0   : > { %v15734_v12 = vadd.f32 %v5616_v17, %v15590_v58  ;;  %v13290_v58 = vld [vmem:[%s18117_s8] sm:$0xff]  ;;  %6316 = vmatpush.bf16.msra.mxu2 %v13291_v63 }
 0x5b1   : > { %12637 = vmatmul.msk.bf16.gmra.mxu1 %vm557_vm8, %v5744_v1  ;;  %6475 = vmatpush.bf16.msra.mxu3 %v13290_v58  ;;  %v6173_v1 = vpack.c.bf16 %v6138_v55, %v6137_v7 }
 0x5b2   : > { %12625 = vmatmul.msk.bf16.gmra.mxu0 %vm557_vm8, %v5503_v48 }
 0x5b4   : > { %12675 = vmatmul.msk.bf16.vlgmr.msra.gmra.mxu3 %vm557_vm8, %v6173_v1 }
 0x5b5   : > { %v5405_v27 = vpop.f32.mrf.mxu3 }
 0x5b6   : > { %v5154_v6 = vpop.f32.mrf.mxu2  ;;  %v4905_v45 = vpop.f32.mrf.mxu1 }
 0x5b7   : > { %v5196_v56 = vadd.f32 %v5154_v6, %v4945_v51  ;;  %v15740_v15 = vadd.f32 %v4905_v45, %v15553_v34  ;;  %v15748_v23 = vpop.f32.mrf.mxu0  ;;  %v6229_v51 = vpack.c.bf16 %v6194_v19, %v6193_v25  ;;  %v5717_v45 = vld [vmem:[#allocation2 + $0x9e] sm:$0xff]  ;;  %v5716_v6 = vld [vmem:[#allocation2 + $0x96] sm:$0xff] }
 0x5b9   : > { %v15737_v47 = vadd.f32 %v5405_v27, %v5196_v56  ;;  %18324 = vst [vmem:[#allocation63_spill] sm:$0xff] %v15740_v15  ;;  %12653 = vmatmul.msk.bf16.vlgmr.msra.gmra.mxu2 %vm557_vm8, %v6229_v51  ;;  %v5745_v27 = vpack.c.bf16 %v5717_v45, %v5716_v6  ;;  %v5485_v15 = vld [vmem:[#allocation2 + $0x135] sm:$0xff] }
 0x5ba   : > { %v5504_v58 = vpack.c.bf16 %v5486_v20, %v5485_v15  ;;  %v15772_v20 = vld [vmem:[%s18328_s7] ss:$0 sm:$0xff]  ;;  %v5718_v15 = vld [vmem:[#allocation2 + $0xa6] sm:$0xff] }
 0x5bd   : > { %v15754_v17 = vpop.f32.mrf.mxu3 }
 0x5be   : > { %v15750_v34 = vpop.f32.mrf.mxu2  ;;  %18326 = vst [vmem:[#allocation65_spill] sm:$0xff] %v15754_v17  ;;  %v4908_v48 = vpop.f32.mrf.mxu1 }
 0x5bf   : > { %18325 = vst [vmem:[#allocation64_spill] sm:$0xff] %v15750_v34  ;;  %v4947_v56 = vadd.f32 %v4908_v48, %v15563_v39  ;;  %v5621_v63 = vpop.f32.mrf.mxu0  ;;  %v5719_v48 = vld [vmem:[#allocation2 + $0xae] sm:$0xff] }
 0x5c0   : > { %v15759_v25 = vadd.f32 %v5621_v63, %v15610_v50  ;;  %v6568_v63 = vld [vmem:[#allocation3 + $0xa] sm:$0xff] }
 0x5c1   : > { %12638 = vmatmul.msk.bf16.gmra.mxu1 %vm557_vm8, %v5745_v27  ;;  %v6567_v27 = vld [vmem:[#allocation3 + $0x2] sm:$0xff] }
 0x5c2   : > { %12626 = vmatmul.msk.bf16.gmra.mxu0 %vm557_vm8, %v5504_v58 }
 0x5c5   : > { %v5410_v55 = vpop.f32.mrf.mxu3 }
 0x5c6   : > { %v5159_v19 = vpop.f32.mrf.mxu2  ;;  %v4910_v51 = vpop.f32.mrf.mxu1 }
 0x5c7   : > { %v5198_v7 = vadd.f32 %v5159_v19, %v4947_v56  ;;  %v15763_v1 = vadd.f32 %v4910_v51, %v15576_v40  ;;  %v15767_v45 = vpop.f32.mrf.mxu0  ;;  %v5746_v56 = vpack.c.bf16 %v5719_v48, %v5718_v15  ;;  %v13292_v40 = vld [vmem:[%s18117_s8 + $0x10] sm:$0xff]  ;;  %v6603_v19 = vpack.c.bf16 %v6568_v63, %v6567_v27 }
 0x5c8   : > { %6690 = vmatpush.bf16.msrb.mxu0 %v13292_v40  ;;  %v18330_v63 = vld [vmem:[#allocation37_spill] sm:$0xff]  ;;  %v5720_v40 = vld [vmem:[#allocation2 + $0xb6] sm:$0xff] }
 0x5c9   : > { %18327 = vst [vmem:[#allocation66_spill] sm:$0xff] %v15763_v1  ;;  %v15765_v39 = vadd.f32 %v5410_v55, %v5198_v7 }
 0x5ce   : > { %v5827_v50 = vpop.f32.mrf.mxu1 }
 0x5cf   : > { %v5917_v6 = vadd.f32 %v5827_v50, %v15586_v11  ;;  %v5626_v58 = vpop.f32.mrf.mxu0  ;;  %v18329_v11 = vld [vmem:[#allocation35_spill] sm:$0xff] }
 0x5d0   : > { %v15781_v55 = vadd.f32 %v5626_v58, %v15628_v46 }
 0x5d1   : > { %v5957_v7 = vadd.f32 %v15772_v20, %v5917_v6  ;;  %12639 = vmatmul.msk.bf16.gmra.mxu1 %vm557_vm8, %v5746_v56  ;;  %v5721_v56 = vld [vmem:[#allocation2 + $0xbe] sm:$0xff] }
 0x5d2   : > { %12697 = vmatmul.msk.bf16.vlgmr.msrb.gmra.mxu0 %vm557_vm8, %v6603_v19 }
 0x5d3   : > { %v5993_v51 = vmax.f32 %v5957_v7, 0.0  ;;  %v5747_v7 = vpack.c.bf16 %v5721_v56, %v5720_v40 }
 0x5d5   : > { %v6029_v48 = vmul.f32 %v5993_v51, %v18329_v11 }
 0x5d6   : > { %v5829_v50 = vpop.f32.mrf.mxu1 }
 0x5d7   : > { %6065 = vst.msk [vmem:[#allocation3 + $0x13] sm:$0xff] %vm557_vm8, %v6029_v48  ;;  %v5918_v15 = vadd.f32 %v5829_v50, %v15596_v38  ;;  %v15787_v1 = vpop.f32.mrf.mxu0 }
 0x5d9   : > { %v5958_v6 = vadd.f32 %v15772_v20, %v5918_v15  ;;  %v18331_v15 = vld [vmem:[#allocation36_spill] sm:$0xff] }
 0x5db   : > { %v5994_v27 = vmax.f32 %v5958_v6, 0.0 }
 0x5dd   : > { %v6030_v46 = vmul.f32 %v5994_v27, %v18330_v63 }
 0x5de   : > { %v5832_v58 = vpop.f32.mrf.mxu1  ;;  %v6195_v11 = vld [vmem:[#allocation3 + $0x11] sm:$0xff] }
 0x5df   : > { %6066 = vst.msk [vmem:[#allocation3 + $0x1b] sm:$0xff] %vm557_vm8, %v6030_v46  ;;  %v5919_v19 = vadd.f32 %v5832_v58, %v15606_v31  ;;  %v5631_v51 = vpop.f32.mrf.mxu0  ;;  %v6139_v27 = vld [vmem:[#allocation3 + $0x10] sm:$0xff] }
 0x5e0   : > { %v15796_v38 = vadd.f32 %v5631_v51, %v15646_v30  ;;  %v6569_v40 = vld [vmem:[#allocation3 + $0x12] sm:$0xff] }
 0x5e1   : > { %v5959_v48 = vadd.f32 %v15772_v20, %v5919_v19  ;;  %12640 = vmatmul.msk.bf16.gmra.mxu1 %vm557_vm8, %v5747_v7 }
 0x5e3   : > { %v5995_v50 = vmax.f32 %v5959_v48, 0.0  ;;  %v5723_v48 = vld [vmem:[#allocation2 + $0xce] sm:$0xff] }
 0x5e5   : > { %v6031_v6 = vmul.f32 %v5995_v50, %v18331_v15  ;;  %v18332_v50 = vld [vmem:[#allocation38_spill] sm:$0xff] }
 0x5e6   : > { %v5834_v63 = vpop.f32.mrf.mxu1  ;;  %v6196_v17 = vld [vmem:[#allocation3 + $0x19] sm:$0xff] }
 0x5e7   : > { %v6140_v34 = vld [vmem:[#allocation3 + $0x18] sm:$0xff]  ;;  %6067 = vst.msk [vmem:[#allocation3 + $0x23] sm:$0xff] %vm557_vm8, %v6031_v6  ;;  %v5920_v31 = vadd.f32 %v5834_v63, %v15616_v57  ;;  %v6230_v56 = vpack.c.bf16 %v6196_v17, %v6195_v11  ;;  %v15803_v30 = vpop.f32.mrf.mxu0 }
 0x5e8   : > { %v6570_v46 = vld [vmem:[#allocation3 + $0x1a] sm:$0xff]  ;;  %v6174_v58 = vpack.c.bf16 %v6140_v34, %v6139_v27 }
 0x5e9   : > { %v15801_v19 = vpack.c.bf16 %v6570_v46, %v6569_v40  ;;  %v5960_v7 = vadd.f32 %v15772_v20, %v5920_v31  ;;  %12654 = vmatmul.msk.bf16.gmra.mxu2 %vm557_vm8, %v6230_v56  ;;  %v5722_v34 = vld [vmem:[#allocation2 + $0xc6] sm:$0xff]  ;;  %v18333_v56 = vld [vmem:[#allocation39_spill] sm:$0xff] }
 0x5ea   : > { %12676 = vmatmul.msk.bf16.gmra.mxu3 %vm557_vm8, %v6174_v58  ;;  %v5748_v63 = vpack.c.bf16 %v5723_v48, %v5722_v34 }
 0x5eb   : > { %12698 = vmatmul.msk.bf16.gmra.mxu0 %vm557_vm8, %v15801_v19  ;;  %v5996_v51 = vmax.f32 %v5960_v7, 0.0 }
 0x5ed   : > { %v6032_v57 = vmul.f32 %v5996_v51, %v18332_v50 }
 0x5ee   : > { %v5837_v17 = vpop.f32.mrf.mxu1  ;;  %v6197_v40 = vld [vmem:[#allocation3 + $0x21] sm:$0xff] }
 0x5ef   : > { %6068 = vst.msk [vmem:[#allocation3 + $0x2b] sm:$0xff] %vm557_vm8, %v6032_v57  ;;  %v5921_v11 = vadd.f32 %v5837_v17, %v15625_v32  ;;  %v5636_v6 = vpop.f32.mrf.mxu0  ;;  %v6141_v7 = vld [vmem:[#allocation3 + $0x20] sm:$0xff] }
 0x5f0   : > { %v15816_v46 = vadd.f32 %v5636_v6, %v15664_v28  ;;  %v6571_v34 = vld [vmem:[#allocation3 + $0x22] sm:$0xff] }
 0x5f1   : > { %v5961_v27 = vadd.f32 %v15772_v20, %v5921_v11  ;;  %12641 = vmatmul.msk.bf16.gmra.mxu1 %vm557_vm8, %v5748_v63 }
 0x5f3   : > { %v5997_v31 = vmax.f32 %v5961_v27, 0.0  ;;  %v5725_v27 = vld [vmem:[#allocation2 + $0xde] sm:$0xff] }
 0x5f5   : > { %v6033_v58 = vmul.f32 %v5997_v31, %v18333_v56  ;;  %v18334_v31 = vld [vmem:[#allocation40_spill] sm:$0xff] }
 0x5f6   : > { %v5839_v51 = vpop.f32.mrf.mxu1  ;;  %v6198_v50 = vld [vmem:[#allocation3 + $0x29] sm:$0xff] }
 0x5f7   : > { %v6142_v15 = vld [vmem:[#allocation3 + $0x28] sm:$0xff]  ;;  %6069 = vst.msk [vmem:[#allocation3 + $0x33] sm:$0xff] %vm557_vm8, %v6033_v58  ;;  %v5922_v32 = vadd.f32 %v5839_v51, %v15634_v24  ;;  %v6231_v48 = vpack.c.bf16 %v6198_v50, %v6197_v40  ;;  %v15823_v28 = vpop.f32.mrf.mxu0 }
 0x5f8   : > { %v6572_v57 = vld [vmem:[#allocation3 + $0x2a] sm:$0xff]  ;;  %v6175_v17 = vpack.c.bf16 %v6142_v15, %v6141_v7 }
 0x5f9   : > { %v15821_v11 = vpack.c.bf16 %v6572_v57, %v6571_v34  ;;  %v5962_v63 = vadd.f32 %v15772_v20, %v5922_v32  ;;  %12655 = vmatmul.msk.bf16.gmra.mxu2 %vm557_vm8, %v6231_v48  ;;  %v5724_v15 = vld [vmem:[#allocation2 + $0xd6] sm:$0xff]  ;;  %v18335_v48 = vld [vmem:[#allocation41_spill] sm:$0xff] }
 0x5fa   : > { %12677 = vmatmul.msk.bf16.gmra.mxu3 %vm557_vm8, %v6175_v17  ;;  %v5749_v40 = vpack.c.bf16 %v5725_v27, %v5724_v15 }
 0x5fb   : > { %12699 = vmatmul.msk.bf16.gmra.mxu0 %vm557_vm8, %v15821_v11  ;;  %v5998_v6 = vmax.f32 %v5962_v63, 0.0 }
 0x5fd   : > { %v6034_v24 = vmul.f32 %v5998_v6, %v18334_v31 }
 0x5fe   : > { %v5842_v50 = vpop.f32.mrf.mxu1  ;;  %v6199_v34 = vld [vmem:[#allocation3 + $0x31] sm:$0xff] }
 0x5ff   : > { %6070 = vst.msk [vmem:[#allocation3 + $0x3b] sm:$0xff] %vm557_vm8, %v6034_v24  ;;  %v5923_v58 = vadd.f32 %v5842_v50, %v15643_v0  ;;  %v5641_v7 = vpop.f32.mrf.mxu0  ;;  %v6143_v63 = vld [vmem:[#allocation3 + $0x30] sm:$0xff] }
 0x600   : > { %v15836_v57 = vadd.f32 %v5641_v7, %v15682_v42  ;;  %v6573_v15 = vld [vmem:[#allocation3 + $0x32] sm:$0xff] }
 0x601   : > { %v5963_v51 = vadd.f32 %v15772_v20, %v5923_v58  ;;  %12642 = vmatmul.msk.bf16.gmra.mxu1 %vm557_vm8, %v5749_v40 }
 0x603   : > { %v5999_v32 = vmax.f32 %v5963_v51, 0.0  ;;  %v5727_v51 = vld [vmem:[#allocation2 + $0xee] sm:$0xff] }
 0x605   : > { %v6035_v17 = vmul.f32 %v5999_v32, %v18335_v48  ;;  %v18336_v32 = vld [vmem:[#allocation42_spill] sm:$0xff] }
 0x606   : > { %v5844_v6 = vpop.f32.mrf.mxu1  ;;  %v6200_v31 = vld [vmem:[#allocation3 + $0x39] sm:$0xff] }
 0x607   : > { %v6144_v56 = vld [vmem:[#allocation3 + $0x38] sm:$0xff]  ;;  %6071 = vst.msk [vmem:[#allocation3 + $0x43] sm:$0xff] %vm557_vm8, %v6035_v17  ;;  %v5924_v0 = vadd.f32 %v5844_v6, %v15652_v8  ;;  %v6232_v27 = vpack.c.bf16 %v6200_v31, %v6199_v34  ;;  %v15843_v42 = vpop.f32.mrf.mxu0 }
 0x608   : > { %v6574_v24 = vld [vmem:[#allocation3 + $0x3a] sm:$0xff]  ;;  %v6176_v50 = vpack.c.bf16 %v6144_v56, %v6143_v63 }
 0x609   : > { %v15841_v58 = vpack.c.bf16 %v6574_v24, %v6573_v15  ;;  %v5964_v40 = vadd.f32 %v15772_v20, %v5924_v0  ;;  %12656 = vmatmul.msk.bf16.gmra.mxu2 %vm557_vm8, %v6232_v27  ;;  %v5726_v56 = vld [vmem:[#allocation2 + $0xe6] sm:$0xff]  ;;  %v18337_v27 = vld [vmem:[#allocation43_spill] sm:$0xff] }
 0x60a   : > { %12678 = vmatmul.msk.bf16.gmra.mxu3 %vm557_vm8, %v6176_v50  ;;  %v5750_v34 = vpack.c.bf16 %v5727_v51, %v5726_v56 }
 0x60b   : > { %12700 = vmatmul.msk.bf16.gmra.mxu0 %vm557_vm8, %v15841_v58  ;;  %v6000_v7 = vmax.f32 %v5964_v40, 0.0 }
 0x60d   : > { %v6036_v8 = vmul.f32 %v6000_v7, %v18336_v32 }
 0x60e   : > { %v5847_v31 = vpop.f32.mrf.mxu1  ;;  %v6201_v15 = vld [vmem:[#allocation3 + $0x41] sm:$0xff] }
 0x60f   : > { %6072 = vst.msk [vmem:[#allocation3 + $0x4b] sm:$0xff] %vm557_vm8, %v6036_v8  ;;  %v5925_v17 = vadd.f32 %v5847_v31, %v15661_v16  ;;  %v5646_v63 = vpop.f32.mrf.mxu0  ;;  %v6145_v40 = vld [vmem:[#allocation3 + $0x40] sm:$0xff] }
 0x610   : > { %v15856_v24 = vadd.f32 %v5646_v63, %v15703_v4  ;;  %v6575_v56 = vld [vmem:[#allocation3 + $0x42] sm:$0xff] }
 0x611   : > { %v5965_v6 = vadd.f32 %v15772_v20, %v5925_v17  ;;  %12643 = vmatmul.msk.bf16.gmra.mxu1 %vm557_vm8, %v5750_v34 }
 0x613   : > { %v6001_v0 = vmax.f32 %v5965_v6, 0.0  ;;  %v5729_v6 = vld [vmem:[#allocation2 + $0xfe] sm:$0xff] }
 0x615   : > { %v6037_v50 = vmul.f32 %v6001_v0, %v18337_v27  ;;  %v18338_v0 = vld [vmem:[#allocation44_spill] sm:$0xff] }
 0x616   : > { %v5849_v7 = vpop.f32.mrf.mxu1  ;;  %v6202_v32 = vld [vmem:[#allocation3 + $0x49] sm:$0xff] }
 0x617   : > { %v6146_v48 = vld [vmem:[#allocation3 + $0x48] sm:$0xff]  ;;  %6073 = vst.msk [vmem:[#allocation3 + $0x53] sm:$0xff] %vm557_vm8, %v6037_v50  ;;  %v5926_v16 = vadd.f32 %v5849_v7, %v15670_v5  ;;  %v6233_v51 = vpack.c.bf16 %v6202_v32, %v6201_v15  ;;  %v15863_v4 = vpop.f32.mrf.mxu0 }
 0x618   : > { %v6576_v8 = vld [vmem:[#allocation3 + $0x4a] sm:$0xff]  ;;  %v6177_v31 = vpack.c.bf16 %v6146_v48, %v6145_v40 }
 0x619   : > { %v15861_v17 = vpack.c.bf16 %v6576_v8, %v6575_v56  ;;  %v5966_v34 = vadd.f32 %v15772_v20, %v5926_v16  ;;  %12657 = vmatmul.msk.bf16.gmra.mxu2 %vm557_vm8, %v6233_v51  ;;  %v5728_v48 = vld [vmem:[#allocation2 + $0xf6] sm:$0xff]  ;;  %v18339_v51 = vld [vmem:[#allocation45_spill] sm:$0xff] }
 0x61a   : > { %12679 = vmatmul.msk.bf16.gmra.mxu3 %vm557_vm8, %v6177_v31  ;;  %v5751_v15 = vpack.c.bf16 %v5729_v6, %v5728_v48 }
 0x61b   : > { %12701 = vmatmul.msk.bf16.gmra.mxu0 %vm557_vm8, %v15861_v17  ;;  %v6002_v63 = vmax.f32 %v5966_v34, 0.0 }
 0x61d   : > { %v6038_v5 = vmul.f32 %v6002_v63, %v18338_v0 }
 0x61e   : > { %v5852_v32 = vpop.f32.mrf.mxu1  ;;  %v6203_v56 = vld [vmem:[#allocation3 + $0x51] sm:$0xff] }
 0x61f   : > { %6074 = vst.msk [vmem:[#allocation3 + $0x5b] sm:$0xff] %vm557_vm8, %v6038_v5  ;;  %v5927_v50 = vadd.f32 %v5852_v32, %v15679_v53  ;;  %v5651_v40 = vpop.f32.mrf.mxu0  ;;  %v6147_v34 = vld [vmem:[#allocation3 + $0x50] sm:$0xff] }
 0x620   : > { %v15876_v8 = vadd.f32 %v5651_v40, %v15720_v9  ;;  %v6577_v48 = vld [vmem:[#allocation3 + $0x52] sm:$0xff] }
 0x621   : > { %v5967_v7 = vadd.f32 %v15772_v20, %v5927_v50  ;;  %12644 = vmatmul.msk.bf16.gmra.mxu1 %vm557_vm8, %v5751_v15 }
 0x623   : > { %v6003_v16 = vmax.f32 %v5967_v7, 0.0  ;;  %v5731_v7 = vld [vmem:[#allocation2 + $0x10e] sm:$0xff] }
 0x625   : > { %v6039_v31 = vmul.f32 %v6003_v16, %v18339_v51  ;;  %v18341_v16 = vld [vmem:[#allocation46_spill] sm:$0xff] }
 0x626   : > { %v5854_v63 = vpop.f32.mrf.mxu1  ;;  %v6204_v0 = vld [vmem:[#allocation3 + $0x59] sm:$0xff] }
 0x627   : > { %v6148_v27 = vld [vmem:[#allocation3 + $0x58] sm:$0xff]  ;;  %6075 = vst.msk [vmem:[#allocation3 + $0x63] sm:$0xff] %vm557_vm8, %v6039_v31  ;;  %v5928_v53 = vadd.f32 %v5854_v63, %v15688_v26  ;;  %v6234_v6 = vpack.c.bf16 %v6204_v0, %v6203_v56  ;;  %v15883_v9 = vpop.f32.mrf.mxu0 }
 0x628   : > { %v6578_v5 = vld [vmem:[#allocation3 + $0x5a] sm:$0xff]  ;;  %v6178_v32 = vpack.c.bf16 %v6148_v27, %v6147_v34  ;;  %18340 = vst [vmem:[#allocation67_spill] sm:$0xff] %v15883_v9  ;;  %v15899_v9 = vpop.f32.mrf.mxu2 }
 0x629   : > { %v15881_v50 = vpack.c.bf16 %v6578_v5, %v6577_v48  ;;  %v5968_v15 = vadd.f32 %v15772_v20, %v5928_v53  ;;  %12658 = vmatmul.msk.bf16.gmra.mxu2 %vm557_vm8, %v6234_v6  ;;  %v5730_v27 = vld [vmem:[#allocation2 + $0x106] sm:$0xff]  ;;  %v18342_v6 = vld [vmem:[#allocation47_spill] sm:$0xff] }
 0x62a   : > { %12680 = vmatmul.msk.bf16.gmra.mxu3 %vm557_vm8, %v6178_v32  ;;  %v5752_v56 = vpack.c.bf16 %v5731_v7, %v5730_v27 }
 0x62b   : > { %12702 = vmatmul.msk.bf16.gmra.mxu0 %vm557_vm8, %v15881_v50  ;;  %v6004_v40 = vmax.f32 %v5968_v15, 0.0 }
 0x62d   : > { %v6040_v26 = vmul.f32 %v6004_v40, %v18341_v16 }
 0x62e   : > { %v5857_v0 = vpop.f32.mrf.mxu1  ;;  %v6205_v48 = vld [vmem:[#allocation3 + $0x61] sm:$0xff] }
 0x62f   : > { %6076 = vst.msk [vmem:[#allocation3 + $0x6b] sm:$0xff] %vm557_vm8, %v6040_v26  ;;  %v5929_v31 = vadd.f32 %v5857_v0, %v15697_v37  ;;  %v5656_v34 = vpop.f32.mrf.mxu0  ;;  %v6149_v15 = vld [vmem:[#allocation3 + $0x60] sm:$0xff]  ;;  %v15901_v37 = vpop.f32.mrf.mxu3 }
 0x630   : > { %v15896_v5 = vadd.f32 %v5656_v34, %v15737_v47  ;;  %v6579_v27 = vld [vmem:[#allocation3 + $0x62] sm:$0xff] }
 0x631   : > { %v5969_v63 = vadd.f32 %v15772_v20, %v5929_v31  ;;  %12645 = vmatmul.msk.bf16.gmra.mxu1 %vm557_vm8, %v5752_v56 }
 0x633   : > { %v6005_v53 = vmax.f32 %v5969_v63, 0.0 }
 0x635   : > { %v6041_v32 = vmul.f32 %v6005_v53, %v18342_v6  ;;  %v5733_v53 = vld [vmem:[#allocation2 + $0x11e] sm:$0xff] }
 0x636   : > { %v5859_v40 = vpop.f32.mrf.mxu1  ;;  %v6206_v16 = vld [vmem:[#allocation3 + $0x69] sm:$0xff] }
 0x637   : > { %v6150_v51 = vld [vmem:[#allocation3 + $0x68] sm:$0xff]  ;;  %6077 = vst.msk [vmem:[#allocation3 + $0x73] sm:$0xff] %vm557_vm8, %v6041_v32  ;;  %v5930_v7 = vadd.f32 %v5859_v40, %v15708_v54  ;;  %v6235_v0 = vpack.c.bf16 %v6206_v16, %v6205_v48  ;;  %v15907_v56 = vpop.f32.mrf.mxu0  ;;  %v18343_v32 = vld [vmem:[#allocation48_spill] sm:$0xff]  ;;  %v5179_v48 = vadd.f32 %v15578_v61, %v15570_v33  ;;  %v18344_v61 = vld [vmem:[#allocation15_spill] sm:$0xff] }
 0x638   : > { %v6580_v26 = vld [vmem:[#allocation3 + $0x6a] sm:$0xff]  ;;  %v6179_v47 = vpack.c.bf16 %v6150_v51, %v6149_v15 }
 0x639   : > { %v15905_v31 = vpack.c.bf16 %v6580_v26, %v6579_v27  ;;  %v5970_v34 = vadd.f32 %v15772_v20, %v5930_v7  ;;  %12659 = vmatmul.msk.bf16.gmra.mxu2 %vm557_vm8, %v6235_v0  ;;  %v5732_v51 = vld [vmem:[#allocation2 + $0x116] sm:$0xff]  ;;  %v6477_v7 = vpop.f32.mrf.mxu3 }
 0x63a   : > { %12681 = vmatmul.msk.bf16.gmra.mxu3 %vm557_vm8, %v6179_v47  ;;  %v5753_v40 = vpack.c.bf16 %v5733_v53, %v5732_v51 }
 0x63b   : > { %12703 = vmatmul.msk.bf16.gmra.mxu0 %vm557_vm8, %v15905_v31  ;;  %v6006_v63 = vmax.f32 %v5970_v34, 0.0 }
 0x63c   : > { %v6318_v26 = vpop.f32.mrf.mxu2 }
 0x63d   : > { %v6042_v54 = vmul.f32 %v6006_v63, %v18343_v32  ;;  %v6478_v0 = vadd.f32 %v6477_v7, %v6318_v26  ;;  %v5430_v63 = vadd.f32 %v15580_v2, %v5179_v48  ;;  %v5734_v48 = vld [vmem:[#allocation2 + $0x126] sm:$0xff] }
 0x63e   : > { %v5862_v16 = vpop.f32.mrf.mxu1  ;;  %v6151_v53 = vld [vmem:[#allocation3 + $0x70] sm:$0xff] }
 0x63f   : > { %6078 = vst.msk [vmem:[#allocation3 + $0x7b] sm:$0xff] %vm557_vm8, %v6042_v54  ;;  %v5931_v15 = vadd.f32 %v5862_v16, %v15717_v60  ;;  %v5661_v47 = vpop.f32.mrf.mxu0  ;;  %v5681_v33 = vadd.f32 %v15725_v35, %v5430_v63  ;;  %v6207_v60 = vld [vmem:[#allocation3 + $0x71] sm:$0xff] }
 0x640   : > { %v15922_v34 = vadd.f32 %v5661_v47, %v15765_v39  ;;  %v6581_v39 = vld [vmem:[#allocation3 + $0x72] sm:$0xff] }
 0x641   : > { %v5971_v27 = vadd.f32 %v15772_v20, %v5931_v15  ;;  %12646 = vmatmul.msk.bf16.gmra.mxu1 %vm557_vm8, %v5753_v40 }
 0x643   : > { %v6007_v32 = vmax.f32 %v5971_v27, 0.0  ;;  %v5735_v27 = vld [vmem:[#allocation2 + $0x12e] sm:$0xff] }
 0x645   : > { %v6043_v54 = vmul.f32 %v6007_v32, %v18344_v61 }
 0x646   : > { %v5864_v16 = vpop.f32.mrf.mxu1  ;;  %v6208_v51 = vld [vmem:[#allocation3 + $0x79] sm:$0xff] }
 0x647   : > { %v6152_v26 = vld [vmem:[#allocation3 + $0x78] sm:$0xff]  ;;  %6079 = vst.msk [vmem:[#allocation3 + $0x83] sm:$0xff] %vm557_vm8, %v6043_v54  ;;  %v5932_v15 = vadd.f32 %v5864_v16, %v5681_v33  ;;  %v6236_v40 = vpack.c.bf16 %v6208_v51, %v6207_v60  ;;  %v15930_v2 = vpop.f32.mrf.mxu0  ;;  %v5181_v54 = vadd.f32 %v15598_v52, %v15593_v14 }
 0x648   : > { %v6582_v7 = vld [vmem:[#allocation3 + $0x7a] sm:$0xff]  ;;  %v6180_v6 = vpack.c.bf16 %v6152_v26, %v6151_v53  ;;  %v5754_v53 = vpack.c.bf16 %v5735_v27, %v5734_v48 }
 0x649   : > { %v15928_v47 = vpack.c.bf16 %v6582_v7, %v6581_v39  ;;  %v5972_v35 = vadd.f32 %v15772_v20, %v5932_v15  ;;  %12660 = vmatmul.msk.bf16.gmra.mxu2 %vm557_vm8, %v6236_v40  ;;  %v5432_v26 = vadd.f32 %v15600_v62, %v5181_v54  ;;  %v13293_v62 = vld [vmem:[%s18117_s8 + $0x18] sm:$0xff] }
 0x64a   : > { %12682 = vmatmul.msk.bf16.gmra.mxu3 %vm557_vm8, %v6180_v6  ;;  %v5736_v54 = vld [vmem:[#allocation2 + $0x136] sm:$0xff]  ;;  %6941 = vmatpush.bf16.msrb.mxu1 %v13293_v62 }
 0x64b   : > { %12704 = vmatmul.msk.bf16.gmra.mxu0 %vm557_vm8, %v15928_v47  ;;  %v6008_v32 = vmax.f32 %v5972_v35, 0.0  ;;  %v5683_v15 = vadd.f32 %v15748_v23, %v5432_v26 }
 0x64d   : > { %v6044_v63 = vmul.f32 %v6008_v32, %v15001_v3 }
 0x64e   : > { %v5867_v33 = vpop.f32.mrf.mxu1  ;;  %v6209_v14 = vld [vmem:[#allocation3 + $0x81] sm:$0xff] }
 0x64f   : > { %6080 = vst.msk [vmem:[#allocation3 + $0x8b] sm:$0xff] %vm557_vm8, %v6044_v63  ;;  %v5933_v60 = vadd.f32 %v5867_v33, %v15734_v12  ;;  %v6692_v6 = vpop.f32.mrf.mxu0  ;;  %v6153_v52 = vld [vmem:[#allocation3 + $0x80] sm:$0xff] }
 0x650   : > { %v15944_v51 = vadd.f32 %v6692_v6, %v6478_v0  ;;  %v6583_v0 = vld [vmem:[#allocation3 + $0x82] sm:$0xff] }
 0x651   : > { %v5973_v16 = vadd.f32 %v15772_v20, %v5933_v60  ;;  %12647 = vmatmul.msk.bf16.gmra.mxu1 %vm557_vm8, %v5754_v53  ;;  %v5737_v60 = vld [vmem:[#allocation2 + $0x13e] sm:$0xff] }
 0x652   : > { %v5755_v6 = vpack.c.bf16 %v5737_v60, %v5736_v54 }
 0x653   : > { %v6009_v7 = vmax.f32 %v5973_v16, 0.0 }
 0x655   : > { %v6045_v40 = vmul.f32 %v6009_v7, %v15020_v59 }
 0x656   : > { %v5869_v39 = vpop.f32.mrf.mxu1  ;;  %v6210_v35 = vld [vmem:[#allocation3 + $0x89] sm:$0xff] }
 0x657   : > { %v6154_v12 = vld [vmem:[#allocation3 + $0x88] sm:$0xff]  ;;  %6081 = vst.msk [vmem:[#allocation3 + $0x93] sm:$0xff] %vm557_vm8, %v6045_v40  ;;  %v5934_v48 = vadd.f32 %v5869_v39, %v5683_v15  ;;  %v6237_v27 = vpack.c.bf16 %v6210_v35, %v6209_v14  ;;  %v15961_v26 = vpop.f32.mrf.mxu0  ;;  %v5183_v15 = vadd.f32 %v15618_v21, %v15613_v41  ;;  %v15970_v35 = vpop.f32.mrf.mxu2 }
 0x658   : > { %v6584_v32 = vld [vmem:[#allocation3 + $0x8a] sm:$0xff]  ;;  %v6181_v63 = vpack.c.bf16 %v6154_v12, %v6153_v52  ;;  %v15972_v12 = vpop.f32.mrf.mxu3 }
 0x659   : > { %v15953_v33 = vpack.c.bf16 %v6584_v32, %v6583_v0  ;;  %v5974_v23 = vadd.f32 %v15772_v20, %v5934_v48  ;;  %12661 = vmatmul.msk.bf16.gmra.mxu2 %vm557_vm8, %v6237_v27  ;;  %v5434_v52 = vadd.f32 %v15620_v10, %v5183_v15  ;;  %v18345_v15 = vld [vmem:[#allocation50_spill] sm:$0xff] }
 0x65a   : > { %12683 = vmatmul.msk.bf16.gmra.mxu3 %vm557_vm8, %v6181_v63 }
 0x65b   : > { %12705 = vmatmul.msk.bf16.gmra.mxu0 %vm557_vm8, %v15953_v33  ;;  %v6010_v53 = vmax.f32 %v5974_v23, 0.0  ;;  %v5685_v32 = vadd.f32 %v15767_v45, %v5434_v52 }
 0x65d   : > { %v6046_v16 = vmul.f32 %v6010_v53, %v15027_v49 }
 0x65e   : > { %v5872_v7 = vpop.f32.mrf.mxu1  ;;  %v6211_v41 = vld [vmem:[#allocation3 + $0x91] sm:$0xff] }
 0x65f   : > { %6082 = vst.msk [vmem:[#allocation3 + $0x9b] sm:$0xff] %vm557_vm8, %v6046_v16  ;;  %v5935_v40 = vadd.f32 %v5872_v7, %v15759_v25  ;;  %v6155_v21 = vld [vmem:[#allocation3 + $0x90] sm:$0xff] }
 0x660   : > { %v6585_v60 = vld [vmem:[#allocation3 + $0x92] sm:$0xff] }
 0x661   : > { %v5975_v14 = vadd.f32 %v15772_v20, %v5935_v40  ;;  %12648 = vmatmul.msk.bf16.gmra.mxu1 %vm557_vm8, %v5755_v6 }
 0x663   : > { %v6011_v39 = vmax.f32 %v5975_v14, 0.0 }
 0x665   : > { %v6047_v48 = vmul.f32 %v6011_v39, %v15044_v18  ;;  %v18346_v39 = vld [vmem:[#allocation34_spill] sm:$0xff] }
 0x666   : > { %v5874_v27 = vpop.f32.mrf.mxu1  ;;  %v6212_v63 = vld [vmem:[#allocation3 + $0x99] sm:$0xff] }
 0x667   : > { %v6156_v25 = vld [vmem:[#allocation3 + $0x98] sm:$0xff]  ;;  %6083 = vst.msk [vmem:[#allocation3 + $0xa3] sm:$0xff] %vm557_vm8, %v6047_v48  ;;  %v5936_v62 = vadd.f32 %v5874_v27, %v5685_v32  ;;  %v6238_v23 = vpack.c.bf16 %v6212_v63, %v6211_v41  ;;  %v5185_v32 = vadd.f32 %v18346_v39, %v15631_v13  ;;  %v18347_v63 = vld [vmem:[#allocation33_spill] sm:$0xff] }
 0x668   : > { %v6586_v0 = vld [vmem:[#allocation3 + $0x9a] sm:$0xff]  ;;  %v6182_v10 = vpack.c.bf16 %v6156_v25, %v6155_v21  ;;  %v6697_v54 = vpop.f32.mrf.mxu0 }
 0x669   : > { %v15977_v53 = vpack.c.bf16 %v6586_v0, %v6585_v60  ;;  %v5976_v16 = vadd.f32 %v15772_v20, %v5936_v62  ;;  %12662 = vmatmul.msk.bf16.gmra.mxu2 %vm557_vm8, %v6238_v23  ;;  %v5436_v25 = vadd.f32 %v18347_v63, %v5185_v32  ;;  %v18348_v13 = vld [vmem:[#allocation51_spill] sm:$0xff] }
 0x66a   : > { %12684 = vmatmul.msk.bf16.gmra.mxu3 %vm557_vm8, %v6182_v10 }
 0x66b   : > { %12706 = vmatmul.msk.bf16.gmra.mxu0 %vm557_vm8, %v15977_v53  ;;  %v6012_v45 = vmax.f32 %v5976_v16, 0.0  ;;  %v5687_v10 = vadd.f32 %v15787_v1, %v5436_v25 }
 0x66c   : > { %v6323_v6 = vpop.f32.mrf.mxu2 }
 0x66d   : > { %v6482_v7 = vpop.f32.mrf.mxu3  ;;  %v6048_v40 = vmul.f32 %v6012_v45, %v18345_v15 }
 0x66e   : > { %v6483_v14 = vadd.f32 %v6482_v7, %v6323_v6  ;;  %v5877_v52 = vpop.f32.mrf.mxu1  ;;  %v6213_v45 = vld [vmem:[#allocation3 + $0xa1] sm:$0xff] }
 0x66f   : > { %6084 = vst.msk [vmem:[#allocation3 + $0xab] sm:$0xff] %vm557_vm8, %v6048_v40  ;;  %v5937_v48 = vadd.f32 %v5877_v52, %v15781_v55  ;;  %v6157_v55 = vld [vmem:[#allocation3 + $0xa0] sm:$0xff] }
 0x670   : > { %v15989_v41 = vadd.f32 %v6697_v54, %v6483_v14  ;;  %v6699_v21 = vpop.f32.mrf.mxu0 }
 0x671   : > { %v5977_v27 = vadd.f32 %v15772_v20, %v5937_v48  ;;  %12719 = vmatmul.msk.bf16.vlgmr.msrb.gmra.mxu1 %vm557_vm8, %v15801_v19  ;;  %v6587_v48 = vld [vmem:[#allocation3 + $0xa2] sm:$0xff] }
 0x673   : > { %v6013_v0 = vmax.f32 %v5977_v27, 0.0 }
 0x674   : > { %v6325_v62 = vpop.f32.mrf.mxu2 }
 0x675   : > { %v6484_v23 = vpop.f32.mrf.mxu3  ;;  %v6049_v60 = vmul.f32 %v6013_v0, %v18348_v13 }
 0x676   : > { %v6485_v16 = vadd.f32 %v6484_v23, %v6325_v62  ;;  %v5879_v54 = vpop.f32.mrf.mxu1  ;;  %v6214_v6 = vld [vmem:[#allocation3 + $0xa9] sm:$0xff]  ;;  %v18349_v62 = vld [vmem:[#allocation52_spill] sm:$0xff] }
 0x677   : > { %v6158_v7 = vld [vmem:[#allocation3 + $0xa8] sm:$0xff]  ;;  %6085 = vst.msk [vmem:[#allocation3 + $0xb3] sm:$0xff] %vm557_vm8, %v6049_v60  ;;  %v5938_v14 = vadd.f32 %v5879_v54, %v5687_v10  ;;  %v6239_v19 = vpack.c.bf16 %v6214_v6, %v6213_v45 }
 0x678   : > { %v6588_v40 = vld [vmem:[#allocation3 + $0xaa] sm:$0xff]  ;;  %v6183_v52 = vpack.c.bf16 %v6158_v7, %v6157_v55  ;;  %v15998_v39 = vadd.f32 %v6699_v21, %v6485_v16  ;;  %v6702_v32 = vpop.f32.mrf.mxu0  ;;  %v18351_v7 = vld [vmem:[#allocation16_spill] sm:$0xff] }
 0x679   : > { %v16000_v27 = vpack.c.bf16 %v6588_v40, %v6587_v48  ;;  %v5978_v1 = vadd.f32 %v15772_v20, %v5938_v14  ;;  %12663 = vmatmul.msk.bf16.gmra.mxu2 %vm557_vm8, %v6239_v19  ;;  %v18350_v60 = vld [vmem:[#allocation17_spill] sm:$0xff] }
 0x67a   : > { %12685 = vmatmul.msk.bf16.gmra.mxu3 %vm557_vm8, %v6183_v52  ;;  %v5187_v16 = vadd.f32 %v18350_v60, %v15649_v36  ;;  %v18352_v36 = vld [vmem:[#allocation53_spill] sm:$0xff] }
 0x67b   : > { %12707 = vmatmul.msk.bf16.gmra.mxu0 %vm557_vm8, %v16000_v27  ;;  %v6014_v63 = vmax.f32 %v5978_v1, 0.0 }
 0x67c   : > { %v6328_v25 = vpop.f32.mrf.mxu2  ;;  %v5438_v40 = vadd.f32 %v18351_v7, %v5187_v16 }
 0x67d   : > { %v6487_v0 = vpop.f32.mrf.mxu3  ;;  %v6050_v23 = vmul.f32 %v6014_v63, %v18349_v62 }
 0x67e   : > { %v6488_v21 = vadd.f32 %v6487_v0, %v6328_v25  ;;  %v5882_v10 = vpop.f32.mrf.mxu1  ;;  %v5689_v48 = vadd.f32 %v15803_v30, %v5438_v40  ;;  %v6215_v25 = vld [vmem:[#allocation3 + $0xb1] sm:$0xff] }
 0x67f   : > { %6086 = vst.msk [vmem:[#allocation3 + $0xbb] sm:$0xff] %vm557_vm8, %v6050_v23  ;;  %v5939_v45 = vadd.f32 %v5882_v10, %v15796_v38  ;;  %v6159_v38 = vld [vmem:[#allocation3 + $0xb0] sm:$0xff] }
 0x680   : > { %v16012_v55 = vadd.f32 %v6702_v32, %v6488_v21  ;;  %v6704_v54 = vpop.f32.mrf.mxu0 }
 0x681   : > { %v5979_v6 = vadd.f32 %v15772_v20, %v5939_v45  ;;  %12720 = vmatmul.msk.bf16.gmra.mxu1 %vm557_vm8, %v15821_v11 }
 0x683   : > { %v6015_v14 = vmax.f32 %v5979_v6, 0.0  ;;  %v6589_v6 = vld [vmem:[#allocation3 + $0xb2] sm:$0xff] }
 0x684   : > { %v6330_v19 = vpop.f32.mrf.mxu2 }
 0x685   : > { %v6489_v52 = vpop.f32.mrf.mxu3  ;;  %v6051_v1 = vmul.f32 %v6015_v14, %v18352_v36  ;;  %v7836_v36 = vld [vmem:[#allocation3 + $0x95] sm:$0xff] }
 0x686   : > { %v6490_v63 = vadd.f32 %v6489_v52, %v6330_v19  ;;  %v5884_v32 = vpop.f32.mrf.mxu1  ;;  %v6216_v0 = vld [vmem:[#allocation3 + $0xb9] sm:$0xff]  ;;  %v18353_v52 = vld [vmem:[#allocation54_spill] sm:$0xff] }
 0x687   : > { %v6160_v23 = vld [vmem:[#allocation3 + $0xb8] sm:$0xff]  ;;  %6087 = vst.msk [vmem:[#allocation3 + $0xc3] sm:$0xff] %vm557_vm8, %v6051_v1  ;;  %v5940_v10 = vadd.f32 %v5884_v32, %v5689_v48  ;;  %v6240_v11 = vpack.c.bf16 %v6216_v0, %v6215_v25 }
 0x688   : > { %v6590_v21 = vld [vmem:[#allocation3 + $0xba] sm:$0xff]  ;;  %v6184_v60 = vpack.c.bf16 %v6160_v23, %v6159_v38  ;;  %v16021_v16 = vadd.f32 %v6704_v54, %v6490_v63  ;;  %v6707_v45 = vpop.f32.mrf.mxu0 }
 0x689   : > { %v16023_v7 = vpack.c.bf16 %v6590_v21, %v6589_v6  ;;  %v5980_v30 = vadd.f32 %v15772_v20, %v5940_v10  ;;  %12664 = vmatmul.msk.bf16.gmra.mxu2 %vm557_vm8, %v6240_v11  ;;  %v18354_v63 = vld [vmem:[#allocation55_spill] sm:$0xff]  ;;  %v18355_v21 = vld [vmem:[#allocation56_spill] sm:$0xff] }
 0x68a   : > { %12686 = vmatmul.msk.bf16.gmra.mxu3 %vm557_vm8, %v6184_v60  ;;  %v5189_v25 = vadd.f32 %v18354_v63, %v15667_v22  ;;  %v18356_v22 = vld [vmem:[#allocation23_spill] sm:$0xff] }
 0x68b   : > { %12708 = vmatmul.msk.bf16.gmra.mxu0 %vm557_vm8, %v16023_v7  ;;  %v6016_v40 = vmax.f32 %v5980_v30, 0.0 }
 0x68c   : > { %v6333_v14 = vpop.f32.mrf.mxu2  ;;  %v5440_v10 = vadd.f32 %v18355_v21, %v5189_v25 }
 0x68d   : > { %v6492_v19 = vpop.f32.mrf.mxu3  ;;  %v6052_v48 = vmul.f32 %v6016_v40, %v18353_v52 }
 0x68e   : > { %v6493_v54 = vadd.f32 %v6492_v19, %v6333_v14  ;;  %v5887_v1 = vpop.f32.mrf.mxu1  ;;  %v5691_v30 = vadd.f32 %v15823_v28, %v5440_v10  ;;  %v6217_v19 = vld [vmem:[#allocation3 + $0xc1] sm:$0xff] }
 0x68f   : > { %6088 = vst.msk [vmem:[#allocation3 + $0xcb] sm:$0xff] %vm557_vm8, %v6052_v48  ;;  %v5941_v38 = vadd.f32 %v5887_v1, %v15816_v46  ;;  %v6161_v46 = vld [vmem:[#allocation3 + $0xc0] sm:$0xff] }
 0x690   : > { %v16035_v32 = vadd.f32 %v6707_v45, %v6493_v54  ;;  %v6709_v0 = vpop.f32.mrf.mxu0  ;;  %v6591_v21 = vld [vmem:[#allocation3 + $0xc2] sm:$0xff] }
 0x691   : > { %v5981_v23 = vadd.f32 %v15772_v20, %v5941_v38  ;;  %12721 = vmatmul.msk.bf16.gmra.mxu1 %vm557_vm8, %v15841_v58 }
 0x693   : > { %v6017_v11 = vmax.f32 %v5981_v23, 0.0 }
 0x694   : > { %v6335_v60 = vpop.f32.mrf.mxu2 }
 0x695   : > { %v6494_v6 = vpop.f32.mrf.mxu3  ;;  %v6053_v40 = vmul.f32 %v6017_v11, %v18356_v22 }
 0x696   : > { %v6495_v14 = vadd.f32 %v6494_v6, %v6335_v60  ;;  %v5889_v45 = vpop.f32.mrf.mxu1  ;;  %v6218_v48 = vld [vmem:[#allocation3 + $0xc9] sm:$0xff] }
 0x697   : > { %v6162_v54 = vld [vmem:[#allocation3 + $0xc8] sm:$0xff]  ;;  %6089 = vst.msk [vmem:[#allocation3 + $0xd3] sm:$0xff] %vm557_vm8, %v6053_v40  ;;  %v5942_v63 = vadd.f32 %v5889_v45, %v5691_v30  ;;  %v6241_v58 = vpack.c.bf16 %v6218_v48, %v6217_v19 }
 0x698   : > { %v6592_v1 = vld [vmem:[#allocation3 + $0xca] sm:$0xff]  ;;  %v6185_v38 = vpack.c.bf16 %v6162_v54, %v6161_v46  ;;  %v16044_v25 = vadd.f32 %v6709_v0, %v6495_v14  ;;  %v6712_v23 = vpop.f32.mrf.mxu0  ;;  %v5191_v14 = vadd.f32 %v15690_v29, %v15685_v43 }
 0x699   : > { %v16046_v52 = vpack.c.bf16 %v6592_v1, %v6591_v21  ;;  %v5982_v28 = vadd.f32 %v15772_v20, %v5942_v63  ;;  %12665 = vmatmul.msk.bf16.gmra.mxu2 %vm557_vm8, %v6241_v58  ;;  %v18357_v6 = vld [vmem:[#allocation21_spill] sm:$0xff]  ;;  %v18359_v43 = vld [vmem:[#allocation22_spill] sm:$0xff] }
 0x69a   : > { %12687 = vmatmul.msk.bf16.gmra.mxu3 %vm557_vm8, %v6185_v38  ;;  %v18358_v54 = vld [vmem:[#allocation57_spill] sm:$0xff] }
 0x69b   : > { %12709 = vmatmul.msk.bf16.gmra.mxu0 %vm557_vm8, %v16046_v52  ;;  %v6018_v10 = vmax.f32 %v5982_v28, 0.0  ;;  %v5442_v1 = vadd.f32 %v18358_v54, %v5191_v14 }
 0x69c   : > { %v6338_v11 = vpop.f32.mrf.mxu2 }
 0x69d   : > { %v6497_v60 = vpop.f32.mrf.mxu3  ;;  %v6054_v30 = vmul.f32 %v6018_v10, %v18357_v6  ;;  %v5693_v21 = vadd.f32 %v15843_v42, %v5442_v1  ;;  %v7341_v6 = vld [vmem:[#allocation3 + $0xbc] sm:$0xff] }
 0x69e   : > { %v6498_v0 = vadd.f32 %v6497_v60, %v6338_v11  ;;  %v5892_v40 = vpop.f32.mrf.mxu1  ;;  %v6219_v10 = vld [vmem:[#allocation3 + $0xd1] sm:$0xff] }
 0x69f   : > { %6090 = vst.msk [vmem:[#allocation3 + $0xdb] sm:$0xff] %vm557_vm8, %v6054_v30  ;;  %v5943_v19 = vadd.f32 %v5892_v40, %v15836_v57  ;;  %v6163_v57 = vld [vmem:[#allocation3 + $0xd0] sm:$0xff] }
 0x6a0   : > { %v16058_v46 = vadd.f32 %v6712_v23, %v6498_v0  ;;  %v6714_v45 = vpop.f32.mrf.mxu0 }
 0x6a1   : > { %v5983_v48 = vadd.f32 %v15772_v20, %v5943_v19  ;;  %12722 = vmatmul.msk.bf16.gmra.mxu1 %vm557_vm8, %v15861_v17 }
 0x6a3   : > { %v6019_v63 = vmax.f32 %v5983_v48, 0.0  ;;  %v6593_v48 = vld [vmem:[#allocation3 + $0xd2] sm:$0xff] }
 0x6a4   : > { %v6340_v58 = vpop.f32.mrf.mxu2 }
 0x6a5   : > { %v6499_v38 = vpop.f32.mrf.mxu3  ;;  %v6055_v29 = vmul.f32 %v6019_v63, %v18359_v43 }
 0x6a6   : > { %v6500_v28 = vadd.f32 %v6499_v38, %v6340_v58  ;;  %v5894_v23 = vpop.f32.mrf.mxu1  ;;  %v6220_v11 = vld [vmem:[#allocation3 + $0xd9] sm:$0xff] }
 0x6a7   : > { %v6164_v60 = vld [vmem:[#allocation3 + $0xd8] sm:$0xff]  ;;  %6091 = vst.msk [vmem:[#allocation3 + $0xe3] sm:$0xff] %vm557_vm8, %v6055_v29  ;;  %v5944_v0 = vadd.f32 %v5894_v23, %v5693_v21  ;;  %v6242_v17 = vpack.c.bf16 %v6220_v11, %v6219_v10 }
 0x6a8   : > { %v6594_v30 = vld [vmem:[#allocation3 + $0xda] sm:$0xff]  ;;  %v6186_v40 = vpack.c.bf16 %v6164_v60, %v6163_v57  ;;  %v16067_v14 = vadd.f32 %v6714_v45, %v6500_v28  ;;  %v6717_v19 = vpop.f32.mrf.mxu0  ;;  %v18361_v28 = vld [vmem:[#allocation58_spill] sm:$0xff] }
 0x6a9   : > { %v16069_v54 = vpack.c.bf16 %v6594_v30, %v6593_v48  ;;  %v5984_v42 = vadd.f32 %v15772_v20, %v5944_v0  ;;  %12666 = vmatmul.msk.bf16.gmra.mxu2 %vm557_vm8, %v6242_v17  ;;  %v18360_v38 = vld [vmem:[#allocation24_spill] sm:$0xff]  ;;  %v5193_v10 = vadd.f32 %v18361_v28, %v15706_v44  ;;  %v18362_v30 = vld [vmem:[#allocation59_spill] sm:$0xff]  ;;  %v18363_v44 = vld [vmem:[#allocation25_spill] sm:$0xff] }
 0x6aa   : > { %12688 = vmatmul.msk.bf16.gmra.mxu3 %vm557_vm8, %v6186_v40 }
 0x6ab   : > { %12710 = vmatmul.msk.bf16.gmra.mxu0 %vm557_vm8, %v16069_v54  ;;  %v6020_v1 = vmax.f32 %v5984_v42, 0.0  ;;  %v5444_v0 = vadd.f32 %v18362_v30, %v5193_v10 }
 0x6ac   : > { %v6343_v63 = vpop.f32.mrf.mxu2 }
 0x6ad   : > { %v6502_v58 = vpop.f32.mrf.mxu3  ;;  %v6056_v21 = vmul.f32 %v6020_v1, %v18360_v38  ;;  %v5695_v42 = vadd.f32 %v15863_v4, %v5444_v0 }
 0x6ae   : > { %v6503_v45 = vadd.f32 %v6502_v58, %v6343_v63  ;;  %v5897_v29 = vpop.f32.mrf.mxu1  ;;  %v6221_v58 = vld [vmem:[#allocation3 + $0xe1] sm:$0xff] }
 0x6af   : > { %6092 = vst.msk [vmem:[#allocation3 + $0xeb] sm:$0xff] %vm557_vm8, %v6056_v21  ;;  %v5945_v57 = vadd.f32 %v5897_v29, %v15856_v24  ;;  %v6165_v24 = vld [vmem:[#allocation3 + $0xe0] sm:$0xff] }
 0x6b0   : > { %v16081_v23 = vadd.f32 %v6717_v19, %v6503_v45  ;;  %v6719_v11 = vpop.f32.mrf.mxu0  ;;  %v6595_v30 = vld [vmem:[#allocation3 + $0xe2] sm:$0xff] }
 0x6b1   : > { %v5985_v60 = vadd.f32 %v15772_v20, %v5945_v57  ;;  %12723 = vmatmul.msk.bf16.gmra.mxu1 %vm557_vm8, %v15881_v50 }
 0x6b3   : > { %v6021_v17 = vmax.f32 %v5985_v60, 0.0 }
 0x6b4   : > { %v6345_v40 = vpop.f32.mrf.mxu2 }
 0x6b5   : > { %v6504_v48 = vpop.f32.mrf.mxu3  ;;  %v6057_v1 = vmul.f32 %v6021_v17, %v18363_v44 }
 0x6b6   : > { %v6505_v63 = vadd.f32 %v6504_v48, %v6345_v40  ;;  %v5899_v19 = vpop.f32.mrf.mxu1  ;;  %v6222_v21 = vld [vmem:[#allocation3 + $0xe9] sm:$0xff] }
 0x6b7   : > { %v6166_v45 = vld [vmem:[#allocation3 + $0xe8] sm:$0xff]  ;;  %6093 = vst.msk [vmem:[#allocation3 + $0xf3] sm:$0xff] %vm557_vm8, %v6057_v1  ;;  %v5946_v28 = vadd.f32 %v5899_v19, %v5695_v42  ;;  %v6243_v50 = vpack.c.bf16 %v6222_v21, %v6221_v58 }
 0x6b8   : > { %v6596_v29 = vld [vmem:[#allocation3 + $0xea] sm:$0xff]  ;;  %v6187_v57 = vpack.c.bf16 %v6166_v45, %v6165_v24  ;;  %v16090_v10 = vadd.f32 %v6719_v11, %v6505_v63  ;;  %v6722_v60 = vpop.f32.mrf.mxu0  ;;  %v18365_v63 = vld [vmem:[#allocation60_spill] sm:$0xff]  ;;  %v16109_v45 = vld [vmem:[%s18328_s7] ss:$0 sm:$0xff] }
 0x6b9   : > { %v16092_v38 = vpack.c.bf16 %v6596_v29, %v6595_v30  ;;  %v5986_v4 = vadd.f32 %v15772_v20, %v5946_v28  ;;  %12667 = vmatmul.msk.bf16.gmra.mxu2 %vm557_vm8, %v6243_v50  ;;  %v18364_v48 = vld [vmem:[#allocation26_spill] sm:$0xff]  ;;  %v18366_v58 = vld [vmem:[#allocation61_spill] sm:$0xff] }
 0x6ba   : > { %12689 = vmatmul.msk.bf16.gmra.mxu3 %vm557_vm8, %v6187_v57  ;;  %v5195_v24 = vadd.f32 %v18366_v58, %v18365_v63  ;;  %v18367_v28 = vld [vmem:[#allocation62_spill] sm:$0xff] }
 0x6bb   : > { %12711 = vmatmul.msk.bf16.gmra.mxu0 %vm557_vm8, %v16092_v38  ;;  %v6022_v0 = vmax.f32 %v5986_v4, 0.0 }
 0x6bc   : > { %v6348_v17 = vpop.f32.mrf.mxu2  ;;  %v5446_v50 = vadd.f32 %v18367_v28, %v5195_v24 }
 0x6bd   : > { %v6507_v40 = vpop.f32.mrf.mxu3  ;;  %v6058_v42 = vmul.f32 %v6022_v0, %v18364_v48  ;;  %v18368_v0 = vld [vmem:[#allocation67_spill] sm:$0xff] }
 0x6be   : > { %v6508_v11 = vadd.f32 %v6507_v40, %v6348_v17  ;;  %v5902_v1 = vpop.f32.mrf.mxu1  ;;  %v6597_v28 = vld [vmem:[#allocation3 + $0xf2] sm:$0xff] }
 0x6bf   : > { %6094 = vst.msk [vmem:[#allocation3 + $0xfb] sm:$0xff] %vm557_vm8, %v6058_v42  ;;  %v5947_v20 = vadd.f32 %v5902_v1, %v15876_v8  ;;  %v5697_v8 = vadd.f32 %v18368_v0, %v5446_v50  ;;  %v6223_v42 = vld [vmem:[#allocation3 + $0xf1] sm:$0xff]  ;;  %v18370_v0 = vld [vmem:[#allocation28_spill] sm:$0xff] }
 0x6c0   : > { %v16104_v19 = vadd.f32 %v6722_v60, %v6508_v11  ;;  %v6724_v21 = vpop.f32.mrf.mxu0  ;;  %v18369_v60 = vld [vmem:[#allocation27_spill] sm:$0xff] }
 0x6c1   : > { %v5987_v29 = vadd.f32 %v16109_v45, %v5947_v20  ;;  %12724 = vmatmul.msk.bf16.gmra.mxu1 %vm557_vm8, %v15905_v31  ;;  %v6167_v11 = vld [vmem:[#allocation3 + $0xf0] sm:$0xff] }
 0x6c3   : > { %v6023_v57 = vmax.f32 %v5987_v29, 0.0 }
 0x6c4   : > { %v6350_v30 = vpop.f32.mrf.mxu2 }
 0x6c5   : > { %v6509_v4 = vpop.f32.mrf.mxu3  ;;  %v6059_v17 = vmul.f32 %v6023_v57, %v18369_v60 }
 0x6c6   : > { %v6510_v40 = vadd.f32 %v6509_v4, %v6350_v30  ;;  %v5904_v1 = vpop.f32.mrf.mxu1  ;;  %v6224_v63 = vld [vmem:[#allocation3 + $0xf9] sm:$0xff] }
 0x6c7   : > { %v6168_v58 = vld [vmem:[#allocation3 + $0xf8] sm:$0xff]  ;;  %6095 = vst.msk [vmem:[#allocation3 + $0x103] sm:$0xff] %vm557_vm8, %v6059_v17  ;;  %v5948_v20 = vadd.f32 %v5904_v1, %v5697_v8  ;;  %v6244_v31 = vpack.c.bf16 %v6224_v63, %v6223_v42 }
 0x6c8   : > { %v6598_v48 = vld [vmem:[#allocation3 + $0xfa] sm:$0xff]  ;;  %v6188_v44 = vpack.c.bf16 %v6168_v58, %v6167_v11  ;;  %v16118_v24 = vadd.f32 %v6724_v21, %v6510_v40  ;;  %v6727_v29 = vpop.f32.mrf.mxu0 }
 0x6c9   : > { %v16120_v43 = vpack.c.bf16 %v6598_v48, %v6597_v28  ;;  %v5988_v50 = vadd.f32 %v16109_v45, %v5948_v20  ;;  %12668 = vmatmul.msk.bf16.gmra.mxu2 %vm557_vm8, %v6244_v31  ;;  %v18371_v40 = vld [vmem:[#allocation63_spill] sm:$0xff]  ;;  %v18372_v42 = vld [vmem:[#allocation64_spill] sm:$0xff]  ;;  %v18373_v20 = vld [vmem:[#allocation65_spill] sm:$0xff] }
 0x6ca   : > { %12690 = vmatmul.msk.bf16.gmra.mxu3 %vm557_vm8, %v6188_v44  ;;  %v5197_v48 = vadd.f32 %v18372_v42, %v18371_v40  ;;  %v13294_v58 = vld [vmem:[%s18117_s8 + $0x20] sm:$0xff] }
 0x6cb   : > { %12712 = vmatmul.msk.bf16.gmra.mxu0 %vm557_vm8, %v16120_v43  ;;  %v6024_v57 = vmax.f32 %v5988_v50, 0.0  ;;  %7192 = vmatpush.bf16.msrb.mxu2 %v13294_v58 }
 0x6cc   : > { %v6353_v30 = vpop.f32.mrf.mxu2  ;;  %v5448_v31 = vadd.f32 %v18373_v20, %v5197_v48 }
 0x6cd   : > { %v6512_v4 = vpop.f32.mrf.mxu3  ;;  %v6060_v8 = vmul.f32 %v6024_v57, %v18370_v0 }
 0x6ce   : > { %v6513_v21 = vadd.f32 %v6512_v4, %v6353_v30  ;;  %v5907_v17 = vpop.f32.mrf.mxu1  ;;  %v6599_v20 = vld [vmem:[#allocation3 + $0x102] sm:$0xff] }
 0x6cf   : > { %6096 = vst.msk [vmem:[#allocation3 + $0x10b] sm:$0xff] %vm557_vm8, %v6060_v8  ;;  %v5949_v11 = vadd.f32 %v5907_v17, %v15896_v5  ;;  %v5699_v5 = vadd.f32 %v15907_v56, %v5448_v31  ;;  %v6225_v8 = vld [vmem:[#allocation3 + $0x101] sm:$0xff] }
 0x6d0   : > { %v16132_v1 = vadd.f32 %v6727_v29, %v6513_v21  ;;  %v6729_v44 = vpop.f32.mrf.mxu0  ;;  %v18374_v29 = vld [vmem:[#allocation29_spill] sm:$0xff] }
 0x6d1   : > { %v5989_v63 = vadd.f32 %v16109_v45, %v5949_v11  ;;  %12725 = vmatmul.msk.bf16.gmra.mxu1 %vm557_vm8, %v15928_v47  ;;  %v6169_v21 = vld [vmem:[#allocation3 + $0x100] sm:$0xff] }
 0x6d2   : > { %v13295_v56 = vld [vmem:[%s18117_s8 + $0x28] sm:$0xff] }
 0x6d3   : > { %v6025_v28 = vmax.f32 %v5989_v63, 0.0  ;;  %7443 = vmatpush.bf16.msrb.mxu3 %v13295_v56 }
 0x6d4   : > { %v6355_v50 = vpop.f32.mrf.mxu2 }
 0x6d5   : > { %v6514_v57 = vpop.f32.mrf.mxu3  ;;  %v6061_v30 = vmul.f32 %v6025_v28, %v18374_v29 }
 0x6d6   : > { %v6515_v4 = vadd.f32 %v6514_v57, %v6355_v50  ;;  %v5909_v17 = vpop.f32.mrf.mxu1  ;;  %v6226_v40 = vld [vmem:[#allocation3 + $0x109] sm:$0xff] }
 0x6d7   : > { %v6170_v47 = vld [vmem:[#allocation3 + $0x108] sm:$0xff]  ;;  %6097 = vst.msk [vmem:[#allocation3 + $0x113] sm:$0xff] %vm557_vm8, %v6061_v30  ;;  %v5950_v11 = vadd.f32 %v5909_v17, %v5699_v5  ;;  %v6245_v0 = vpack.c.bf16 %v6226_v40, %v6225_v8 }
 0x6d8   : > { %v6600_v42 = vld [vmem:[#allocation3 + $0x10a] sm:$0xff]  ;;  %v6189_v48 = vpack.c.bf16 %v6170_v47, %v6169_v21  ;;  %v16144_v63 = vadd.f32 %v6729_v44, %v6515_v4  ;;  %v6732_v58 = vpop.f32.mrf.mxu0 }
 0x6d9   : > { %v16149_v31 = vpack.c.bf16 %v6600_v42, %v6599_v20  ;;  %v5990_v28 = vadd.f32 %v16109_v45, %v5950_v11  ;;  %12669 = vmatmul.msk.bf16.gmra.mxu2 %vm557_vm8, %v6245_v0  ;;  %v18375_v5 = vld [vmem:[#allocation30_spill] sm:$0xff] }
 0x6da   : > { %12691 = vmatmul.msk.bf16.gmra.mxu3 %vm557_vm8, %v6189_v48  ;;  %v18376_v21 = vld [vmem:[#allocation66_spill] sm:$0xff] }
 0x6db   : > { %12713 = vmatmul.msk.bf16.gmra.mxu0 %vm557_vm8, %v16149_v31  ;;  %v6026_v44 = vmax.f32 %v5990_v28, 0.0  ;;  %v5199_v17 = vadd.f32 %v15899_v9, %v18376_v21  ;;  %v18377_v9 = vld [vmem:[#allocation31_spill] sm:$0xff] }
 0x6dc   : > { %v6358_v50 = vpop.f32.mrf.mxu2 }
 0x6dd   : > { %v6517_v57 = vpop.f32.mrf.mxu3  ;;  %v6062_v30 = vmul.f32 %v6026_v44, %v18375_v5  ;;  %v5450_v11 = vadd.f32 %v15901_v37, %v5199_v17 }
 0x6de   : > { %v6518_v4 = vadd.f32 %v6517_v57, %v6358_v50  ;;  %v5912_v8 = vpop.f32.mrf.mxu1  ;;  %v6227_v57 = vld [vmem:[#allocation3 + $0x111] sm:$0xff] }
 0x6df   : > { %6098 = vst.msk [vmem:[#allocation3 + $0x11b] sm:$0xff] %vm557_vm8, %v6062_v30  ;;  %v5951_v0 = vadd.f32 %v5912_v8, %v15922_v34  ;;  %v5701_v28 = vadd.f32 %v15930_v2, %v5450_v11  ;;  %v6171_v34 = vld [vmem:[#allocation3 + $0x110] sm:$0xff]  ;;  %v13296_v2 = vld [vmem:[%s18117_s8 + $0x30] sm:$0xff] }
 0x6e0   : > { %v16161_v40 = vadd.f32 %v6732_v58, %v6518_v4  ;;  %v6734_v47 = vpop.f32.mrf.mxu0  ;;  %7694 = vmatpush.bf16.msra.mxu0 %v13296_v2  ;;  %v7323_v2 = vld [vmem:[#allocation3 + $0x2c] sm:$0xff] }
 0x6e1   : > { %v5991_v42 = vadd.f32 %v16109_v45, %v5951_v0  ;;  %12726 = vmatmul.msk.bf16.gmra.mxu1 %vm557_vm8, %v15953_v33 }
 0x6e3   : > { %v6027_v48 = vmax.f32 %v5991_v42, 0.0  ;;  %v6601_v42 = vld [vmem:[#allocation3 + $0x112] sm:$0xff] }
 0x6e4   : > { %v6360_v20 = vpop.f32.mrf.mxu2 }
 0x6e5   : > { %v6519_v56 = vpop.f32.mrf.mxu3  ;;  %v6063_v44 = vmul.f32 %v6027_v48, %v18377_v9 }
 0x6e6   : > { %v6520_v50 = vadd.f32 %v6519_v56, %v6360_v20  ;;  %v5914_v58 = vpop.f32.mrf.mxu1  ;;  %v6228_v30 = vld [vmem:[#allocation3 + $0x119] sm:$0xff] }
 0x6e7   : > { %v6172_v4 = vld [vmem:[#allocation3 + $0x118] sm:$0xff]  ;;  %6099 = vst.msk [vmem:[#allocation3 + $0x123] sm:$0xff] %vm557_vm8, %v6063_v44  ;;  %v5952_v21 = vadd.f32 %v5914_v58, %v5701_v28  ;;  %v6246_v33 = vpack.c.bf16 %v6228_v30, %v6227_v57  ;;  %v6480_v30 = vadd.f32 %v15972_v12, %v15970_v35 }
 0x6e8   : > { %v6602_v8 = vld [vmem:[#allocation3 + $0x11a] sm:$0xff]  ;;  %v6190_v0 = vpack.c.bf16 %v6172_v4, %v6171_v34  ;;  %v16170_v37 = vadd.f32 %v6734_v47, %v6520_v50  ;;  %v6737_v17 = vpop.f32.mrf.mxu0 }
 0x6e9   : > { %v16175_v11 = vpack.c.bf16 %v6602_v8, %v6601_v42  ;;  %v5992_v48 = vadd.f32 %v16109_v45, %v5952_v21  ;;  %12670 = vmatmul.msk.bf16.gmra.mxu2 %vm557_vm8, %v6246_v33  ;;  %v18378_v28 = vld [vmem:[#allocation32_spill] sm:$0xff] }
 0x6ea   : > { %12692 = vmatmul.msk.bf16.gmra.mxu3 %vm557_vm8, %v6190_v0  ;;  %v7070_v21 = vld [vmem:[#allocation3 + $0x1b] sm:$0xff]  ;;  %v6783_v0 = vadd.f32 %v15961_v26, %v6480_v30 }
 0x6eb   : > { %12714 = vmatmul.msk.bf16.gmra.mxu0 %vm557_vm8, %v16175_v11  ;;  %v6028_v20 = vmax.f32 %v5992_v48, 0.0  ;;  %v7321_v33 = vld [vmem:[#allocation3 + $0x1c] sm:$0xff] }
 0x6ec   : > { %v6363_v47 = vpop.f32.mrf.mxu2 }
 0x6ed   : > { %v6522_v56 = vpop.f32.mrf.mxu3  ;;  %v6064_v44 = vmul.f32 %v6028_v20, %v18378_v28  ;;  %v7320_v20 = vld [vmem:[#allocation3 + $0x14] sm:$0xff] }
 0x6ee   : > { %v6523_v50 = vadd.f32 %v6522_v56, %v6363_v47  ;;  %v6943_v57 = vpop.f32.mrf.mxu1  ;;  %v7356_v56 = vpack.c.bf16 %v7321_v33, %v7320_v20 }
 0x6ef   : > { %6100 = vst.msk [vmem:[#allocation3 + $0x12b] sm:$0xff] %vm557_vm8, %v6064_v44  ;;  %v16185_v34 = vadd.f32 %v6943_v57, %v15944_v51  ;;  %v7069_v51 = vld [vmem:[#allocation3 + $0x13] sm:$0xff] }
 0x6f0   : > { %v16187_v45 = vadd.f32 %v6737_v17, %v6523_v50  ;;  %v6739_v58 = vpop.f32.mrf.mxu0  ;;  %v7105_v47 = vpack.c.bf16 %v7070_v21, %v7069_v51  ;;  %v7322_v50 = vld [vmem:[#allocation3 + $0x24] sm:$0xff] }
 0x6f1   : > { %12727 = vmatmul.msk.bf16.gmra.mxu1 %vm557_vm8, %v15977_v53  ;;  %v7357_v35 = vpack.c.bf16 %v7323_v2, %v7322_v50  ;;  %v7325_v2 = vld [vmem:[#allocation3 + $0x3c] sm:$0xff] }
 0x6f2   : > { %v7071_v51 = vld [vmem:[#allocation3 + $0x23] sm:$0xff] }
 0x6f4   : > { %v6365_v4 = vpop.f32.mrf.mxu2 }
 0x6f5   : > { %v6524_v8 = vpop.f32.mrf.mxu3 }
 0x6f6   : > { %v6525_v42 = vadd.f32 %v6524_v8, %v6365_v4  ;;  %v6945_v48 = vpop.f32.mrf.mxu1  ;;  %v7104_v13 = vld [vmem:[#allocation3 + $0x12b] sm:$0xff] }
 0x6f7   : > { %v16194_v17 = vadd.f32 %v6945_v48, %v6783_v0  ;;  %v7072_v0 = vld [vmem:[#allocation3 + $0x2b] sm:$0xff] }
 0x6f8   : > { %v16196_v44 = vadd.f32 %v6739_v58, %v6525_v42  ;;  %v6742_v53 = vpop.f32.mrf.mxu0 }
 0x6f9   : > { %12741 = vmatmul.msk.bf16.vlgmr.msrb.gmra.mxu2 %vm557_vm8, %v7105_v47  ;;  %v7106_v47 = vpack.c.bf16 %v7072_v0, %v7071_v51  ;;  %v7074_v0 = vld [vmem:[#allocation3 + $0x3b] sm:$0xff] }
 0x6fa   : > { %12763 = vmatmul.msk.bf16.vlgmr.msrb.gmra.mxu3 %vm557_vm8, %v7356_v56 }
 0x6fb   : > { %12785 = vmatmul.msk.bf16.vlgmr.msra.gmra.mxu0 %vm557_vm8, %v7357_v35 }
 0x6fc   : > { %v6368_v26 = vpop.f32.mrf.mxu2 }
 0x6fd   : > { %v6527_v12 = vpop.f32.mrf.mxu3 }
 0x6fe   : > { %v6528_v57 = vadd.f32 %v6527_v12, %v6368_v26  ;;  %v6948_v30 = vpop.f32.mrf.mxu1 }
 0x6ff   : > { %v16202_v4 = vadd.f32 %v6948_v30, %v15989_v41 }
 0x700   : > { %v16204_v8 = vadd.f32 %v6742_v53, %v6528_v57  ;;  %v6744_v58 = vpop.f32.mrf.mxu0  ;;  %v7324_v53 = vld [vmem:[#allocation3 + $0x34] sm:$0xff] }
 0x701   : > { %12728 = vmatmul.msk.bf16.gmra.mxu1 %vm557_vm8, %v16000_v27  ;;  %v7358_v50 = vpack.c.bf16 %v7325_v2, %v7324_v53 }
 0x704   : > { %v6370_v21 = vpop.f32.mrf.mxu2 }
 0x705   : > { %v6529_v33 = vpop.f32.mrf.mxu3 }
 0x706   : > { %v6530_v42 = vadd.f32 %v6529_v33, %v6370_v21  ;;  %v6950_v48 = vpop.f32.mrf.mxu1 }
 0x707   : > { %v16209_v20 = vadd.f32 %v6950_v48, %v15998_v39  ;;  %v7073_v48 = vld [vmem:[#allocation3 + $0x33] sm:$0xff] }
 0x708   : > { %v16211_v56 = vadd.f32 %v6744_v58, %v6530_v42  ;;  %v6747_v41 = vpop.f32.mrf.mxu0 }
 0x709   : > { %12742 = vmatmul.msk.bf16.gmra.mxu2 %vm557_vm8, %v7106_v47  ;;  %v7107_v47 = vpack.c.bf16 %v7074_v0, %v7073_v48  ;;  %v7075_v48 = vld [vmem:[#allocation3 + $0x43] sm:$0xff] }
 0x70a   : > { %12764 = vmatmul.msk.bf16.gmra.mxu3 %vm557_vm8, %v7357_v35  ;;  %v7327_v35 = vld [vmem:[#allocation3 + $0x4c] sm:$0xff] }
 0x70b   : > { %12786 = vmatmul.msk.bf16.gmra.mxu0 %vm557_vm8, %v7358_v50 }
 0x70c   : > { %v6373_v27 = vpop.f32.mrf.mxu2 }
 0x70d   : > { %v6532_v26 = vpop.f32.mrf.mxu3 }
 0x70e   : > { %v6533_v12 = vadd.f32 %v6532_v26, %v6373_v27  ;;  %v6953_v57 = vpop.f32.mrf.mxu1 }
 0x70f   : > { %v16217_v30 = vadd.f32 %v6953_v57, %v16012_v55 }
 0x710   : > { %v16219_v39 = vadd.f32 %v6747_v41, %v6533_v12  ;;  %v6749_v58 = vpop.f32.mrf.mxu0  ;;  %v7326_v41 = vld [vmem:[#allocation3 + $0x44] sm:$0xff] }
 0x711   : > { %12729 = vmatmul.msk.bf16.gmra.mxu1 %vm557_vm8, %v16023_v7  ;;  %v7359_v27 = vpack.c.bf16 %v7327_v35, %v7326_v41 }
 0x714   : > { %v6375_v21 = vpop.f32.mrf.mxu2 }
 0x715   : > { %v6534_v33 = vpop.f32.mrf.mxu3 }
 0x716   : > { %v6535_v42 = vadd.f32 %v6534_v33, %v6375_v21  ;;  %v6955_v2 = vpop.f32.mrf.mxu1 }
 0x717   : > { %v16224_v51 = vadd.f32 %v6955_v2, %v16021_v16 }
 0x718   : > { %v16226_v53 = vadd.f32 %v6749_v58, %v6535_v42  ;;  %v6752_v55 = vpop.f32.mrf.mxu0  ;;  %v7076_v42 = vld [vmem:[#allocation3 + $0x4b] sm:$0xff] }
 0x719   : > { %12743 = vmatmul.msk.bf16.gmra.mxu2 %vm557_vm8, %v7107_v47  ;;  %v7108_v41 = vpack.c.bf16 %v7076_v42, %v7075_v48 }
 0x71a   : > { %12765 = vmatmul.msk.bf16.gmra.mxu3 %vm557_vm8, %v7358_v50  ;;  %v7329_v50 = vld [vmem:[#allocation3 + $0x5c] sm:$0xff] }
 0x71b   : > { %12787 = vmatmul.msk.bf16.gmra.mxu0 %vm557_vm8, %v7359_v27 }
 0x71c   : > { %v6378_v7 = vpop.f32.mrf.mxu2 }
 0x71d   : > { %v6537_v26 = vpop.f32.mrf.mxu3 }
 0x71e   : > { %v6538_v12 = vadd.f32 %v6537_v26, %v6378_v7  ;;  %v6958_v57 = vpop.f32.mrf.mxu1 }
 0x71f   : > { %v16232_v21 = vadd.f32 %v6958_v57, %v16035_v32 }
 0x720   : > { %v16234_v16 = vadd.f32 %v6752_v55, %v6538_v12  ;;  %v6754_v58 = vpop.f32.mrf.mxu0  ;;  %v7328_v55 = vld [vmem:[#allocation3 + $0x54] sm:$0xff] }
 0x721   : > { %12730 = vmatmul.msk.bf16.gmra.mxu1 %vm557_vm8, %v16046_v52  ;;  %v7360_v26 = vpack.c.bf16 %v7329_v50, %v7328_v55  ;;  %v7078_v50 = vld [vmem:[#allocation3 + $0x5b] sm:$0xff] }
 0x724   : > { %v6380_v33 = vpop.f32.mrf.mxu2 }
 0x725   : > { %v6539_v0 = vpop.f32.mrf.mxu3 }
 0x726   : > { %v6540_v35 = vadd.f32 %v6539_v0, %v6380_v33  ;;  %v6960_v2 = vpop.f32.mrf.mxu1 }
 0x727   : > { %v16239_v47 = vadd.f32 %v6960_v2, %v16044_v25 }
 0x728   : > { %v16241_v7 = vadd.f32 %v6754_v58, %v6540_v35  ;;  %v6757_v32 = vpop.f32.mrf.mxu0 }
 0x729   : > { %12744 = vmatmul.msk.bf16.gmra.mxu2 %vm557_vm8, %v7108_v41  ;;  %v7077_v41 = vld [vmem:[#allocation3 + $0x53] sm:$0xff] }
 0x72a   : > { %12766 = vmatmul.msk.bf16.gmra.mxu3 %vm557_vm8, %v7359_v27  ;;  %v7331_v27 = vld [vmem:[#allocation3 + $0x6c] sm:$0xff] }
 0x72b   : > { %12788 = vmatmul.msk.bf16.gmra.mxu0 %vm557_vm8, %v7360_v26 }
 0x72c   : > { %v6383_v52 = vpop.f32.mrf.mxu2 }
 0x72d   : > { %v6542_v12 = vpop.f32.mrf.mxu3 }
 0x72e   : > { %v6543_v57 = vadd.f32 %v6542_v12, %v6383_v52  ;;  %v6963_v33 = vpop.f32.mrf.mxu1  ;;  %v7109_v52 = vpack.c.bf16 %v7078_v50, %v7077_v41 }
 0x72f   : > { %v16247_v0 = vadd.f32 %v6963_v33, %v16058_v46 }
 0x730   : > { %v16249_v25 = vadd.f32 %v6757_v32, %v6543_v57  ;;  %v6759_v58 = vpop.f32.mrf.mxu0  ;;  %v7330_v32 = vld [vmem:[#allocation3 + $0x64] sm:$0xff] }
 0x731   : > { %12731 = vmatmul.msk.bf16.gmra.mxu1 %vm557_vm8, %v16069_v54  ;;  %v7361_v57 = vpack.c.bf16 %v7331_v27, %v7330_v32  ;;  %v7080_v27 = vld [vmem:[#allocation3 + $0x6b] sm:$0xff] }
 0x734   : > { %v6385_v42 = vpop.f32.mrf.mxu2 }
 0x735   : > { %v6544_v35 = vpop.f32.mrf.mxu3 }
 0x736   : > { %v6545_v2 = vadd.f32 %v6544_v35, %v6385_v42  ;;  %v6965_v48 = vpop.f32.mrf.mxu1 }
 0x737   : > { %v16254_v55 = vadd.f32 %v6965_v48, %v16067_v14 }
 0x738   : > { %v16256_v12 = vadd.f32 %v6759_v58, %v6545_v2  ;;  %v6762_v46 = vpop.f32.mrf.mxu0 }
 0x739   : > { %12745 = vmatmul.msk.bf16.gmra.mxu2 %vm557_vm8, %v7109_v52  ;;  %v7079_v52 = vld [vmem:[#allocation3 + $0x63] sm:$0xff] }
 0x73a   : > { %12767 = vmatmul.msk.bf16.gmra.mxu3 %vm557_vm8, %v7360_v26  ;;  %v7333_v26 = vld [vmem:[#allocation3 + $0x7c] sm:$0xff] }
 0x73b   : > { %12789 = vmatmul.msk.bf16.gmra.mxu0 %vm557_vm8, %v7361_v57 }
 0x73c   : > { %v6388_v54 = vpop.f32.mrf.mxu2 }
 0x73d   : > { %v6547_v33 = vpop.f32.mrf.mxu3 }
 0x73e   : > { %v6548_v42 = vadd.f32 %v6547_v33, %v6388_v54  ;;  %v6968_v35 = vpop.f32.mrf.mxu1  ;;  %v7110_v54 = vpack.c.bf16 %v7080_v27, %v7079_v52 }
 0x73f   : > { %v16262_v28 = vadd.f32 %v6968_v35, %v16081_v23 }
 0x740   : > { %v16264_v14 = vadd.f32 %v6762_v46, %v6548_v42  ;;  %v6764_v58 = vpop.f32.mrf.mxu0  ;;  %v7332_v46 = vld [vmem:[#allocation3 + $0x74] sm:$0xff] }
 0x741   : > { %12732 = vmatmul.msk.bf16.gmra.mxu1 %vm557_vm8, %v16092_v38  ;;  %v7362_v42 = vpack.c.bf16 %v7333_v26, %v7332_v46  ;;  %v7082_v26 = vld [vmem:[#allocation3 + $0x7b] sm:$0xff] }
 0x744   : > { %v6390_v50 = vpop.f32.mrf.mxu2 }
 0x745   : > { %v6549_v2 = vpop.f32.mrf.mxu3 }
 0x746   : > { %v6550_v48 = vadd.f32 %v6549_v2, %v6390_v50  ;;  %v6970_v41 = vpop.f32.mrf.mxu1 }
 0x747   : > { %v16269_v32 = vadd.f32 %v6970_v41, %v16090_v10 }
 0x748   : > { %v16271_v33 = vadd.f32 %v6764_v58, %v6550_v48  ;;  %v6767_v23 = vpop.f32.mrf.mxu0 }
 0x749   : > { %12746 = vmatmul.msk.bf16.gmra.mxu2 %vm557_vm8, %v7110_v54  ;;  %v7081_v54 = vld [vmem:[#allocation3 + $0x73] sm:$0xff] }
 0x74a   : > { %12768 = vmatmul.msk.bf16.gmra.mxu3 %vm557_vm8, %v7361_v57  ;;  %v7335_v57 = vld [vmem:[#allocation3 + $0x8c] sm:$0xff] }
 0x74b   : > { %12790 = vmatmul.msk.bf16.gmra.mxu0 %vm557_vm8, %v7362_v42 }
 0x74c   : > { %v6393_v38 = vpop.f32.mrf.mxu2 }
 0x74d   : > { %v6552_v35 = vpop.f32.mrf.mxu3 }
 0x74e   : > { %v6553_v50 = vadd.f32 %v6552_v35, %v6393_v38  ;;  %v6973_v2 = vpop.f32.mrf.mxu1  ;;  %v7111_v38 = vpack.c.bf16 %v7082_v26, %v7081_v54 }
 0x74f   : > { %v16277_v9 = vadd.f32 %v6973_v2, %v16104_v19 }
 0x750   : > { %v16279_v10 = vadd.f32 %v6767_v23, %v6553_v50  ;;  %v6769_v58 = vpop.f32.mrf.mxu0  ;;  %v7334_v23 = vld [vmem:[#allocation3 + $0x84] sm:$0xff] }
 0x751   : > { %12733 = vmatmul.msk.bf16.gmra.mxu1 %vm557_vm8, %v16120_v43  ;;  %v7363_v50 = vpack.c.bf16 %v7335_v57, %v7334_v23  ;;  %v7084_v57 = vld [vmem:[#allocation3 + $0x8b] sm:$0xff] }
 0x754   : > { %v6395_v27 = vpop.f32.mrf.mxu2 }
 0x755   : > { %v6554_v48 = vpop.f32.mrf.mxu3 }
 0x756   : > { %v6555_v41 = vadd.f32 %v6554_v48, %v6395_v27  ;;  %v6975_v52 = vpop.f32.mrf.mxu1 }
 0x757   : > { %v16284_v46 = vadd.f32 %v6975_v52, %v16118_v24 }
 0x758   : > { %v16286_v35 = vadd.f32 %v6769_v58, %v6555_v41  ;;  %v6772_v19 = vpop.f32.mrf.mxu0 }
 0x759   : > { %12747 = vmatmul.msk.bf16.gmra.mxu2 %vm557_vm8, %v7111_v38  ;;  %v7083_v38 = vld [vmem:[#allocation3 + $0x83] sm:$0xff] }
 0x75a   : > { %12769 = vmatmul.msk.bf16.gmra.mxu3 %vm557_vm8, %v7362_v42  ;;  %v7337_v42 = vld [vmem:[#allocation3 + $0x9c] sm:$0xff] }
 0x75b   : > { %12791 = vmatmul.msk.bf16.gmra.mxu0 %vm557_vm8, %v7363_v50 }
 0x75c   : > { %v6398_v43 = vpop.f32.mrf.mxu2 }
 0x75d   : > { %v6557_v2 = vpop.f32.mrf.mxu3 }
 0x75e   : > { %v6558_v27 = vadd.f32 %v6557_v2, %v6398_v43  ;;  %v6978_v48 = vpop.f32.mrf.mxu1  ;;  %v7112_v43 = vpack.c.bf16 %v7084_v57, %v7083_v38  ;;  %v13297_v57 = vld [vmem:[%s18117_s8 + $0x38] sm:$0xff] }
 0x75f   : > { %v16292_v5 = vadd.f32 %v6978_v48, %v16132_v1  ;;  %7945 = vmatpush.bf16.msra.mxu1 %v13297_v57  ;;  %v7339_v38 = vld [vmem:[#allocation3 + $0xac] sm:$0xff] }
 0x760   : > { %v16294_v24 = vadd.f32 %v6772_v19, %v6558_v27  ;;  %v6774_v58 = vpop.f32.mrf.mxu0  ;;  %v7336_v19 = vld [vmem:[#allocation3 + $0x94] sm:$0xff] }
 0x761   : > { %12734 = vmatmul.msk.bf16.gmra.mxu1 %vm557_vm8, %v16149_v31  ;;  %v7364_v27 = vpack.c.bf16 %v7337_v42, %v7336_v19  ;;  %v7086_v42 = vld [vmem:[#allocation3 + $0x9b] sm:$0xff]  ;;  %v7085_v19 = vld [vmem:[#allocation3 + $0x93] sm:$0xff] }
 0x764   : > { %v6400_v26 = vpop.f32.mrf.mxu2 }
 0x765   : > { %v6559_v41 = vpop.f32.mrf.mxu3 }
 0x766   : > { %v6560_v52 = vadd.f32 %v6559_v41, %v6400_v26  ;;  %v6980_v54 = vpop.f32.mrf.mxu1 }
 0x767   : > { %v16299_v23 = vadd.f32 %v6980_v54, %v16144_v63 }
 0x768   : > { %v16301_v2 = vadd.f32 %v6774_v58, %v6560_v52  ;;  %v6777_v1 = vpop.f32.mrf.mxu0 }
 0x769   : > { %12748 = vmatmul.msk.bf16.gmra.mxu2 %vm557_vm8, %v7112_v43 }
 0x76a   : > { %12770 = vmatmul.msk.bf16.gmra.mxu3 %vm557_vm8, %v7363_v50 }
 0x76b   : > { %12792 = vmatmul.msk.bf16.gmra.mxu0 %vm557_vm8, %v7364_v27 }
 0x76c   : > { %v6403_v31 = vpop.f32.mrf.mxu2 }
 0x76d   : > { %v6562_v48 = vpop.f32.mrf.mxu3 }
 0x76e   : > { %v6563_v26 = vadd.f32 %v6562_v48, %v6403_v31  ;;  %v6983_v41 = vpop.f32.mrf.mxu1 }
 0x76f   : > { %v16307_v29 = vadd.f32 %v6983_v41, %v16161_v40 }
 0x770   : > { %v16309_v63 = vadd.f32 %v6777_v1, %v6563_v26  ;;  %v6779_v58 = vpop.f32.mrf.mxu0  ;;  %v7113_v1 = vpack.c.bf16 %v7086_v42, %v7085_v19  ;;  %v7338_v26 = vld [vmem:[#allocation3 + $0xa4] sm:$0xff] }
 0x771   : > { %12735 = vmatmul.msk.bf16.gmra.mxu1 %vm557_vm8, %v16175_v11  ;;  %v7365_v41 = vpack.c.bf16 %v7339_v38, %v7338_v26 }
 0x774   : > { %v6405_v50 = vpop.f32.mrf.mxu2 }
 0x775   : > { %v6564_v52 = vpop.f32.mrf.mxu3 }
 0x776   : > { %v6565_v54 = vadd.f32 %v6564_v52, %v6405_v50  ;;  %v6985_v43 = vpop.f32.mrf.mxu1  ;;  %v6853_v50 = vld [vmem:[#allocation3 + $0x12a] sm:$0xff] }
 0x777   : > { %v16317_v40 = vadd.f32 %v6985_v43, %v16170_v37  ;;  %v6852_v37 = vld [vmem:[#allocation3 + $0x122] sm:$0xff] }
 0x778   : > { %v16319_v31 = vadd.f32 %v6779_v58, %v6565_v54  ;;  %v7696_v48 = vpop.f32.mrf.mxu0  ;;  %v6871_v42 = vpack.c.bf16 %v6853_v50, %v6852_v37  ;;  %v7340_v50 = vld [vmem:[#allocation3 + $0xb4] sm:$0xff] }
 0x779   : > { %12749 = vmatmul.msk.bf16.gmra.mxu2 %vm557_vm8, %v7113_v1  ;;  %v7088_v1 = vld [vmem:[#allocation3 + $0xab] sm:$0xff] }
 0x77a   : > { %12771 = vmatmul.msk.bf16.gmra.mxu3 %vm557_vm8, %v7364_v27 }
 0x77b   : > { %12793 = vmatmul.msk.bf16.gmra.mxu0 %vm557_vm8, %v7365_v41 }
 0x77c   : > { %v7194_v11 = vpop.f32.mrf.mxu2 }
 0x77d   : > { %v7445_v57 = vpop.f32.mrf.mxu3  ;;  %v7284_v52 = vadd.f32 %v7194_v11, %v16185_v34  ;;  %v7087_v34 = vld [vmem:[#allocation3 + $0xa3] sm:$0xff] }
 0x77e   : > { %v6988_v60 = vpop.f32.mrf.mxu1 }
 0x77f   : > { %v7535_v43 = vadd.f32 %v7445_v57, %v7284_v52  ;;  %v16326_v58 = vadd.f32 %v6988_v60, %v16187_v45  ;;  %v7114_v60 = vpack.c.bf16 %v7088_v1, %v7087_v34  ;;  %v7366_v52 = vpack.c.bf16 %v7341_v6, %v7340_v50  ;;  %v7090_v34 = vld [vmem:[#allocation3 + $0xbb] sm:$0xff] }
 0x780   : > { %v7698_v54 = vpop.f32.mrf.mxu0 }
 0x781   : > { %12736 = vmatmul.msk.bf16.gmra.mxu1 %vm557_vm8, %v6871_v42  ;;  %v16329_v38 = vadd.f32 %v7696_v48, %v7535_v43  ;;  %v7823_v43 = vld [vmem:[#allocation3 + $0x2d] sm:$0xff] }
 0x784   : > { %v7196_v27 = vpop.f32.mrf.mxu2 }
 0x785   : > { %v7447_v19 = vpop.f32.mrf.mxu3  ;;  %v7285_v26 = vadd.f32 %v7196_v27, %v16194_v17 }
 0x786   : > { %v6990_v22 = vpop.f32.mrf.mxu1 }
 0x787   : > { %v7536_v11 = vadd.f32 %v7447_v19, %v7285_v26  ;;  %v16333_v57 = vadd.f32 %v6990_v22, %v16196_v44  ;;  %v7822_v22 = vld [vmem:[#allocation3 + $0x25] sm:$0xff] }
 0x788   : > { %v7701_v45 = vpop.f32.mrf.mxu0  ;;  %v7858_v6 = vpack.c.bf16 %v7823_v43, %v7822_v22  ;;  %v7342_v43 = vld [vmem:[#allocation3 + $0xc4] sm:$0xff] }
 0x789   : > { %12750 = vmatmul.msk.bf16.gmra.mxu2 %vm557_vm8, %v7114_v60  ;;  %v16337_v48 = vadd.f32 %v7698_v54, %v7536_v11  ;;  %v7343_v60 = vld [vmem:[#allocation3 + $0xcc] sm:$0xff] }
 0x78a   : > { %12772 = vmatmul.msk.bf16.gmra.mxu3 %vm557_vm8, %v7365_v41 }
 0x78b   : > { %12794 = vmatmul.msk.bf16.gmra.mxu0 %vm557_vm8, %v7366_v52 }
 0x78c   : > { %v7199_v17 = vpop.f32.mrf.mxu2 }
 0x78d   : > { %v7450_v37 = vpop.f32.mrf.mxu3  ;;  %v7286_v42 = vadd.f32 %v7199_v17, %v16202_v4  ;;  %v7089_v4 = vld [vmem:[#allocation3 + $0xb3] sm:$0xff] }
 0x78e   : > { %v6993_v27 = vpop.f32.mrf.mxu1 }
 0x78f   : > { %v7537_v44 = vadd.f32 %v7450_v37, %v7286_v42  ;;  %v16342_v19 = vadd.f32 %v6993_v27, %v16204_v8  ;;  %v7115_v8 = vpack.c.bf16 %v7090_v34, %v7089_v4  ;;  %v7367_v27 = vpack.c.bf16 %v7343_v60, %v7342_v43  ;;  %v7092_v4 = vld [vmem:[#allocation3 + $0xcb] sm:$0xff] }
 0x790   : > { %v7703_v1 = vpop.f32.mrf.mxu0 }
 0x791   : > { %12807 = vmatmul.msk.bf16.vlgmr.msra.gmra.mxu1 %vm557_vm8, %v7858_v6  ;;  %v16345_v41 = vadd.f32 %v7701_v45, %v7537_v44  ;;  %v7825_v44 = vld [vmem:[#allocation3 + $0x3d] sm:$0xff] }
 0x794   : > { %v7201_v54 = vpop.f32.mrf.mxu2 }
 0x795   : > { %v7452_v26 = vpop.f32.mrf.mxu3  ;;  %v7287_v11 = vadd.f32 %v7201_v54, %v16209_v20 }
 0x796   : > { %v6995_v50 = vpop.f32.mrf.mxu1 }
 0x797   : > { %v7538_v17 = vadd.f32 %v7452_v26, %v7287_v11  ;;  %v16349_v37 = vadd.f32 %v6995_v50, %v16211_v56  ;;  %v7824_v56 = vld [vmem:[#allocation3 + $0x35] sm:$0xff] }
 0x798   : > { %v7706_v42 = vpop.f32.mrf.mxu0  ;;  %v7859_v11 = vpack.c.bf16 %v7825_v44, %v7824_v56  ;;  %v7344_v44 = vld [vmem:[#allocation3 + $0xd4] sm:$0xff] }
 0x799   : > { %12751 = vmatmul.msk.bf16.gmra.mxu2 %vm557_vm8, %v7115_v8  ;;  %v16353_v45 = vadd.f32 %v7703_v1, %v7538_v17  ;;  %v7345_v8 = vld [vmem:[#allocation3 + $0xdc] sm:$0xff] }
 0x79a   : > { %12773 = vmatmul.msk.bf16.gmra.mxu3 %vm557_vm8, %v7366_v52 }
 0x79b   : > { %12795 = vmatmul.msk.bf16.gmra.mxu0 %vm557_vm8, %v7367_v27 }
 0x79c   : > { %v7204_v20 = vpop.f32.mrf.mxu2 }
 0x79d   : > { %v7455_v22 = vpop.f32.mrf.mxu3  ;;  %v7288_v6 = vadd.f32 %v7204_v20, %v16217_v30  ;;  %v7091_v30 = vld [vmem:[#allocation3 + $0xc3] sm:$0xff] }
 0x79e   : > { %v6998_v54 = vpop.f32.mrf.mxu1 }
 0x79f   : > { %v7539_v26 = vadd.f32 %v7455_v22, %v7288_v6  ;;  %v16358_v34 = vadd.f32 %v6998_v54, %v16219_v39  ;;  %v7116_v39 = vpack.c.bf16 %v7092_v4, %v7091_v30  ;;  %v7368_v54 = vpack.c.bf16 %v7345_v8, %v7344_v44  ;;  %v7094_v30 = vld [vmem:[#allocation3 + $0xdb] sm:$0xff] }
 0x7a0   : > { %v7708_v60 = vpop.f32.mrf.mxu0 }
 0x7a1   : > { %12808 = vmatmul.msk.bf16.gmra.mxu1 %vm557_vm8, %v7859_v11  ;;  %v16361_v52 = vadd.f32 %v7706_v42, %v7539_v26  ;;  %v7827_v26 = vld [vmem:[#allocation3 + $0x4d] sm:$0xff] }
 0x7a4   : > { %v7206_v1 = vpop.f32.mrf.mxu2 }
 0x7a5   : > { %v7457_v50 = vpop.f32.mrf.mxu3  ;;  %v7289_v17 = vadd.f32 %v7206_v1, %v16224_v51 }
 0x7a6   : > { %v7000_v43 = vpop.f32.mrf.mxu1 }
 0x7a7   : > { %v7540_v20 = vadd.f32 %v7457_v50, %v7289_v17  ;;  %v16365_v22 = vadd.f32 %v7000_v43, %v16226_v53  ;;  %v7826_v53 = vld [vmem:[#allocation3 + $0x45] sm:$0xff] }
 0x7a8   : > { %v7711_v6 = vpop.f32.mrf.mxu0  ;;  %v7860_v17 = vpack.c.bf16 %v7827_v26, %v7826_v53  ;;  %v7346_v26 = vld [vmem:[#allocation3 + $0xe4] sm:$0xff] }
 0x7a9   : > { %12752 = vmatmul.msk.bf16.gmra.mxu2 %vm557_vm8, %v7116_v39  ;;  %v16369_v42 = vadd.f32 %v7708_v60, %v7540_v20  ;;  %v7347_v39 = vld [vmem:[#allocation3 + $0xec] sm:$0xff] }
 0x7aa   : > { %12774 = vmatmul.msk.bf16.gmra.mxu3 %vm557_vm8, %v7367_v27 }
 0x7ab   : > { %12796 = vmatmul.msk.bf16.gmra.mxu0 %vm557_vm8, %v7368_v54 }
 0x7ac   : > { %v7209_v51 = vpop.f32.mrf.mxu2 }
 0x7ad   : > { %v7460_v56 = vpop.f32.mrf.mxu3  ;;  %v7290_v11 = vadd.f32 %v7209_v51, %v16232_v21  ;;  %v7093_v21 = vld [vmem:[#allocation3 + $0xd3] sm:$0xff] }
 0x7ae   : > { %v7003_v1 = vpop.f32.mrf.mxu1 }
 0x7af   : > { %v7541_v50 = vadd.f32 %v7460_v56, %v7290_v11  ;;  %v16374_v4 = vadd.f32 %v7003_v1, %v16234_v16  ;;  %v7117_v16 = vpack.c.bf16 %v7094_v30, %v7093_v21  ;;  %v7369_v1 = vpack.c.bf16 %v7347_v39, %v7346_v26  ;;  %v7096_v21 = vld [vmem:[#allocation3 + $0xeb] sm:$0xff] }
 0x7b0   : > { %v7713_v8 = vpop.f32.mrf.mxu0 }
 0x7b1   : > { %12809 = vmatmul.msk.bf16.gmra.mxu1 %vm557_vm8, %v7860_v17  ;;  %v16377_v27 = vadd.f32 %v7711_v6, %v7541_v50  ;;  %v7829_v50 = vld [vmem:[#allocation3 + $0x5d] sm:$0xff] }
 0x7b4   : > { %v7211_v60 = vpop.f32.mrf.mxu2 }
 0x7b5   : > { %v7462_v43 = vpop.f32.mrf.mxu3  ;;  %v7291_v20 = vadd.f32 %v7211_v60, %v16239_v47 }
 0x7b6   : > { %v7005_v44 = vpop.f32.mrf.mxu1 }
 0x7b7   : > { %v7542_v51 = vadd.f32 %v7462_v43, %v7291_v20  ;;  %v16381_v56 = vadd.f32 %v7005_v44, %v16241_v7  ;;  %v7828_v7 = vld [vmem:[#allocation3 + $0x55] sm:$0xff] }
 0x7b8   : > { %v7716_v11 = vpop.f32.mrf.mxu0  ;;  %v7861_v20 = vpack.c.bf16 %v7829_v50, %v7828_v7  ;;  %v7348_v50 = vld [vmem:[#allocation3 + $0xf4] sm:$0xff] }
 0x7b9   : > { %12753 = vmatmul.msk.bf16.gmra.mxu2 %vm557_vm8, %v7117_v16  ;;  %v16385_v6 = vadd.f32 %v7713_v8, %v7542_v51  ;;  %v7349_v16 = vld [vmem:[#allocation3 + $0xfc] sm:$0xff] }
 0x7ba   : > { %12775 = vmatmul.msk.bf16.gmra.mxu3 %vm557_vm8, %v7368_v54 }
 0x7bb   : > { %12797 = vmatmul.msk.bf16.gmra.mxu0 %vm557_vm8, %v7369_v1 }
 0x7bc   : > { %v7214_v47 = vpop.f32.mrf.mxu2 }
 0x7bd   : > { %v7465_v53 = vpop.f32.mrf.mxu3  ;;  %v7292_v17 = vadd.f32 %v7214_v47, %v16247_v0  ;;  %v7095_v0 = vld [vmem:[#allocation3 + $0xe3] sm:$0xff] }
 0x7be   : > { %v7008_v60 = vpop.f32.mrf.mxu1 }
 0x7bf   : > { %v7543_v43 = vadd.f32 %v7465_v53, %v7292_v17  ;;  %v16390_v30 = vadd.f32 %v7008_v60, %v16249_v25  ;;  %v7118_v25 = vpack.c.bf16 %v7096_v21, %v7095_v0  ;;  %v7370_v60 = vpack.c.bf16 %v7349_v16, %v7348_v50  ;;  %v7098_v0 = vld [vmem:[#allocation3 + $0xfb] sm:$0xff] }
 0x7c0   : > { %v7718_v39 = vpop.f32.mrf.mxu0 }
 0x7c1   : > { %12810 = vmatmul.msk.bf16.gmra.mxu1 %vm557_vm8, %v7861_v20  ;;  %v16393_v54 = vadd.f32 %v7716_v11, %v7543_v43  ;;  %v7831_v43 = vld [vmem:[#allocation3 + $0x6d] sm:$0xff] }
 0x7c4   : > { %v7216_v8 = vpop.f32.mrf.mxu2 }
 0x7c5   : > { %v7467_v44 = vpop.f32.mrf.mxu3  ;;  %v7293_v51 = vadd.f32 %v7216_v8, %v16254_v55 }
 0x7c6   : > { %v7010_v26 = vpop.f32.mrf.mxu1 }
 0x7c7   : > { %v7544_v47 = vadd.f32 %v7467_v44, %v7293_v51  ;;  %v16397_v53 = vadd.f32 %v7010_v26, %v16256_v12  ;;  %v7830_v12 = vld [vmem:[#allocation3 + $0x65] sm:$0xff] }
 0x7c8   : > { %v7721_v17 = vpop.f32.mrf.mxu0  ;;  %v7862_v51 = vpack.c.bf16 %v7831_v43, %v7830_v12  ;;  %v7350_v43 = vld [vmem:[#allocation3 + $0x104] sm:$0xff] }
 0x7c9   : > { %12754 = vmatmul.msk.bf16.gmra.mxu2 %vm557_vm8, %v7118_v25  ;;  %v16401_v11 = vadd.f32 %v7718_v39, %v7544_v47  ;;  %v7351_v25 = vld [vmem:[#allocation3 + $0x10c] sm:$0xff] }
 0x7ca   : > { %12776 = vmatmul.msk.bf16.gmra.mxu3 %vm557_vm8, %v7369_v1 }
 0x7cb   : > { %12798 = vmatmul.msk.bf16.gmra.mxu0 %vm557_vm8, %v7370_v60 }
 0x7cc   : > { %v7219_v55 = vpop.f32.mrf.mxu2 }
 0x7cd   : > { %v7470_v7 = vpop.f32.mrf.mxu3  ;;  %v7294_v20 = vadd.f32 %v7219_v55, %v16262_v28  ;;  %v7097_v28 = vld [vmem:[#allocation3 + $0xf3] sm:$0xff] }
 0x7ce   : > { %v7013_v8 = vpop.f32.mrf.mxu1 }
 0x7cf   : > { %v7545_v44 = vadd.f32 %v7470_v7, %v7294_v20  ;;  %v16406_v21 = vadd.f32 %v7013_v8, %v16264_v14  ;;  %v7119_v14 = vpack.c.bf16 %v7098_v0, %v7097_v28  ;;  %v7371_v8 = vpack.c.bf16 %v7351_v25, %v7350_v43  ;;  %v7100_v28 = vld [vmem:[#allocation3 + $0x10b] sm:$0xff]  ;;  %v7099_v43 = vld [vmem:[#allocation3 + $0x103] sm:$0xff] }
 0x7d0   : > { %v7723_v16 = vpop.f32.mrf.mxu0 }
 0x7d1   : > { %12811 = vmatmul.msk.bf16.gmra.mxu1 %vm557_vm8, %v7862_v51  ;;  %v16409_v1 = vadd.f32 %v7721_v17, %v7545_v44  ;;  %v7833_v44 = vld [vmem:[#allocation3 + $0x7d] sm:$0xff] }
 0x7d4   : > { %v7221_v39 = vpop.f32.mrf.mxu2 }
 0x7d5   : > { %v7472_v26 = vpop.f32.mrf.mxu3  ;;  %v7295_v47 = vadd.f32 %v7221_v39, %v16269_v32 }
 0x7d6   : > { %v7015_v50 = vpop.f32.mrf.mxu1 }
 0x7d7   : > { %v7546_v55 = vadd.f32 %v7472_v26, %v7295_v47  ;;  %v16413_v7 = vadd.f32 %v7015_v50, %v16271_v33  ;;  %v7832_v33 = vld [vmem:[#allocation3 + $0x75] sm:$0xff] }
 0x7d8   : > { %v7726_v20 = vpop.f32.mrf.mxu0  ;;  %v7863_v47 = vpack.c.bf16 %v7833_v44, %v7832_v33  ;;  %v7352_v44 = vld [vmem:[#allocation3 + $0x114] sm:$0xff] }
 0x7d9   : > { %12755 = vmatmul.msk.bf16.gmra.mxu2 %vm557_vm8, %v7119_v14  ;;  %v16417_v17 = vadd.f32 %v7723_v16, %v7546_v55 }
 0x7da   : > { %12777 = vmatmul.msk.bf16.gmra.mxu3 %vm557_vm8, %v7370_v60 }
 0x7db   : > { %12799 = vmatmul.msk.bf16.gmra.mxu0 %vm557_vm8, %v7371_v8 }
 0x7dc   : > { %v7224_v32 = vpop.f32.mrf.mxu2 }
 0x7dd   : > { %v7475_v12 = vpop.f32.mrf.mxu3  ;;  %v7296_v51 = vadd.f32 %v7224_v32, %v16277_v9  ;;  %v7353_v9 = vld [vmem:[#allocation3 + $0x11c] sm:$0xff]  ;;  %v7120_v32 = vpack.c.bf16 %v7100_v28, %v7099_v43 }
 0x7de   : > { %v7018_v39 = vpop.f32.mrf.mxu1 }
 0x7df   : > { %v7547_v26 = vadd.f32 %v7475_v12, %v7296_v51  ;;  %v16422_v0 = vadd.f32 %v7018_v39, %v16279_v10  ;;  %v7372_v51 = vpack.c.bf16 %v7353_v9, %v7352_v44 }
 0x7e0   : > { %v16424_v25 = vpop.f32.mrf.mxu0 }
 0x7e1   : > { %12812 = vmatmul.msk.bf16.gmra.mxu1 %vm557_vm8, %v7863_v47  ;;  %v16427_v60 = vadd.f32 %v7726_v20, %v7547_v26  ;;  %v7834_v47 = vld [vmem:[#allocation3 + $0x85] sm:$0xff] }
 0x7e4   : > { %v7226_v16 = vpop.f32.mrf.mxu2 }
 0x7e5   : > { %v16429_v50 = vpop.f32.mrf.mxu3  ;;  %v16432_v55 = vadd.f32 %v7226_v16, %v16284_v46  ;;  %v7835_v46 = vld [vmem:[#allocation3 + $0x8d] sm:$0xff] }
 0x7e6   : > { %v7020_v14 = vpop.f32.mrf.mxu1  ;;  %v7864_v28 = vpack.c.bf16 %v7835_v46, %v7834_v47  ;;  %v7101_v46 = vld [vmem:[#allocation3 + $0x113] sm:$0xff] }
 0x7e7   : > { %v16435_v10 = vadd.f32 %v7020_v14, %v16286_v35 }
 0x7e8   : > { %v7731_v12 = vpop.f32.mrf.mxu0 }
 0x7e9   : > { %12756 = vmatmul.msk.bf16.gmra.mxu2 %vm557_vm8, %v7120_v32  ;;  %v7102_v32 = vld [vmem:[#allocation3 + $0x11b] sm:$0xff] }
 0x7ea   : > { %12778 = vmatmul.msk.bf16.gmra.mxu3 %vm557_vm8, %v7371_v8  ;;  %v13298_v8 = vld [vmem:[%s18117_s8 + $0x40] sm:$0xff] }
 0x7eb   : > { %12800 = vmatmul.msk.bf16.gmra.mxu0 %vm557_vm8, %v7372_v51  ;;  %8196 = vmatpush.bf16.msra.mxu2 %v13298_v8 }
 0x7ec   : > { %v7229_v20 = vpop.f32.mrf.mxu2 }
 0x7ed   : > { %v7480_v39 = vpop.f32.mrf.mxu3  ;;  %v7298_v33 = vadd.f32 %v7229_v20, %v16292_v5  ;;  %v7355_v20 = vld [vmem:[#allocation3 + $0x12c] sm:$0xff] }
 0x7ee   : > { %v7023_v26 = vpop.f32.mrf.mxu1 }
 0x7ef   : > { %v7549_v16 = vadd.f32 %v7480_v39, %v7298_v33  ;;  %v16442_v35 = vadd.f32 %v7023_v26, %v16294_v24  ;;  %v7354_v24 = vld [vmem:[#allocation3 + $0x124] sm:$0xff] }
 0x7f0   : > { %v16444_v14 = vpop.f32.mrf.mxu0  ;;  %v7373_v47 = vpack.c.bf16 %v7355_v20, %v7354_v24  ;;  %v7606_v20 = vld [vmem:[#allocation3 + $0x13c] sm:$0xff] }
 0x7f1   : > { %12813 = vmatmul.msk.bf16.gmra.mxu1 %vm557_vm8, %v7864_v28  ;;  %v16447_v9 = vadd.f32 %v7731_v12, %v7549_v16  ;;  %v7121_v12 = vpack.c.bf16 %v7102_v32, %v7101_v46 }
 0x7f4   : > { %v7231_v43 = vpop.f32.mrf.mxu2 }
 0x7f5   : > { %v16452_v5 = vpop.f32.mrf.mxu3  ;;  %v16455_v44 = vadd.f32 %v7231_v43, %v16299_v23  ;;  %v7837_v23 = vld [vmem:[#allocation3 + $0x9d] sm:$0xff] }
 0x7f6   : > { %v7025_v39 = vpop.f32.mrf.mxu1  ;;  %v7865_v32 = vpack.c.bf16 %v7837_v23, %v7836_v36 }
 0x7f7   : > { %v16458_v33 = vadd.f32 %v7025_v39, %v16301_v2 }
 0x7f8   : > { %v7736_v26 = vpop.f32.mrf.mxu0 }
 0x7f9   : > { %12757 = vmatmul.msk.bf16.gmra.mxu2 %vm557_vm8, %v7121_v12 }
 0x7fa   : > { %12779 = vmatmul.msk.bf16.gmra.mxu3 %vm557_vm8, %v7372_v51  ;;  %v7605_v51 = vld [vmem:[#allocation3 + $0x134] sm:$0xff] }
 0x7fb   : > { %12801 = vmatmul.msk.bf16.gmra.mxu0 %vm557_vm8, %v7373_v47 }
 0x7fc   : > { %v7234_v16 = vpop.f32.mrf.mxu2 }
 0x7fd   : > { %v7485_v28 = vpop.f32.mrf.mxu3  ;;  %v7300_v8 = vadd.f32 %v7234_v16, %v16307_v29 }
 0x7fe   : > { %v7028_v43 = vpop.f32.mrf.mxu1 }
 0x7ff   : > { %v7551_v62 = vadd.f32 %v7485_v28, %v7300_v8  ;;  %v16465_v2 = vadd.f32 %v7028_v43, %v16309_v63  ;;  %v7103_v28 = vld [vmem:[#allocation3 + $0x123] sm:$0xff]  ;;  %v7624_v63 = vpack.c.bf16 %v7606_v20, %v7605_v51  ;;  %v7839_v43 = vld [vmem:[#allocation3 + $0xad] sm:$0xff] }
 0x800   : > { %v16467_v39 = vpop.f32.mrf.mxu0  ;;  %v7122_v23 = vpack.c.bf16 %v7104_v13, %v7103_v28  ;;  %v8074_v28 = vld [vmem:[#allocation3 + $0x2e] sm:$0xff] }
 0x801   : > { %12814 = vmatmul.msk.bf16.gmra.mxu1 %vm557_vm8, %v7865_v32  ;;  %v16470_v24 = vadd.f32 %v7736_v26, %v7551_v62 }
 0x804   : > { %v7236_v46 = vpop.f32.mrf.mxu2 }
 0x805   : > { %v16472_v12 = vpop.f32.mrf.mxu3  ;;  %v16475_v29 = vadd.f32 %v7236_v46, %v16317_v40  ;;  %v7838_v46 = vld [vmem:[#allocation3 + $0xa5] sm:$0xff] }
 0x806   : > { %v7030_v16 = vpop.f32.mrf.mxu1 }
 0x807   : > { %v16478_v36 = vadd.f32 %v7030_v16, %v16319_v31  ;;  %v7866_v31 = vpack.c.bf16 %v7839_v43, %v7838_v46  ;;  %v7840_v46 = vld [vmem:[#allocation3 + $0xb5] sm:$0xff] }
 0x808   : > { %v7741_v8 = vpop.f32.mrf.mxu0 }
 0x809   : > { %12758 = vmatmul.msk.bf16.gmra.mxu2 %vm557_vm8, %v7122_v23  ;;  %v8073_v23 = vld [vmem:[#allocation3 + $0x26] sm:$0xff] }
 0x80a   : > { %12780 = vmatmul.msk.bf16.gmra.mxu3 %vm557_vm8, %v7373_v47 }
 0x80b   : > { %12802 = vmatmul.msk.bf16.gmra.mxu0 %vm557_vm8, %v7624_v63 }
 0x80c   : > { %v7239_v62 = vpop.f32.mrf.mxu2 }
 0x80d   : > { %v7490_v26 = vpop.f32.mrf.mxu3  ;;  %v7302_v40 = vadd.f32 %v7239_v62, %v16326_v58 }
 0x80e   : > { %v7947_v32 = vpop.f32.mrf.mxu1 }
 0x80f   : > { %v7553_v15 = vadd.f32 %v7490_v26, %v7302_v40  ;;  %v16485_v51 = vadd.f32 %v7947_v32, %v16329_v38  ;;  %v8109_v38 = vpack.c.bf16 %v8074_v28, %v8073_v23  ;;  %v8076_v23 = vld [vmem:[#allocation3 + $0x3e] sm:$0xff] }
 0x810   : > { %v16487_v13 = vpop.f32.mrf.mxu0 }
 0x811   : > { %12815 = vmatmul.msk.bf16.gmra.mxu1 %vm557_vm8, %v7866_v31  ;;  %v16490_v20 = vadd.f32 %v7741_v8, %v7553_v15  ;;  %v7841_v15 = vld [vmem:[#allocation3 + $0xbd] sm:$0xff] }
 0x814   : > { %v7241_v47 = vpop.f32.mrf.mxu2 }
 0x815   : > { %v16492_v16 = vpop.f32.mrf.mxu3  ;;  %v16495_v63 = vadd.f32 %v7241_v47, %v16333_v57  ;;  %v7867_v47 = vpack.c.bf16 %v7841_v15, %v7840_v46 }
 0x816   : > { %v7949_v58 = vpop.f32.mrf.mxu1 }
 0x817   : > { %v16498_v62 = vadd.f32 %v7949_v58, %v16337_v48 }
 0x818   : > { %v7746_v26 = vpop.f32.mrf.mxu0 }
 0x819   : > { %12829 = vmatmul.msk.bf16.vlgmr.msra.gmra.mxu2 %vm557_vm8, %v8109_v38 }
 0x81c   : > { %v7244_v43 = vpop.f32.mrf.mxu2 }
 0x81d   : > { %v7495_v40 = vpop.f32.mrf.mxu3  ;;  %v7304_v8 = vadd.f32 %v7244_v43, %v16342_v19  ;;  %v8075_v43 = vld [vmem:[#allocation3 + $0x36] sm:$0xff] }
 0x81e   : > { %v7952_v32 = vpop.f32.mrf.mxu1 }
 0x81f   : > { %v7555_v31 = vadd.f32 %v7495_v40, %v7304_v8  ;;  %v16503_v57 = vadd.f32 %v7952_v32, %v16345_v41  ;;  %v8110_v41 = vpack.c.bf16 %v8076_v23, %v8075_v43  ;;  %v8078_v43 = vld [vmem:[#allocation3 + $0x4e] sm:$0xff] }
 0x820   : > { %v16505_v18 = vpop.f32.mrf.mxu0 }
 0x821   : > { %12816 = vmatmul.msk.bf16.gmra.mxu1 %vm557_vm8, %v7867_v47  ;;  %v16508_v48 = vadd.f32 %v7746_v26, %v7555_v31  ;;  %v7843_v26 = vld [vmem:[#allocation3 + $0xcd] sm:$0xff]  ;;  %v7842_v47 = vld [vmem:[#allocation3 + $0xc5] sm:$0xff] }
 0x824   : > { %v7246_v28 = vpop.f32.mrf.mxu2 }
 0x825   : > { %v16510_v58 = vpop.f32.mrf.mxu3  ;;  %v16513_v38 = vadd.f32 %v7246_v28, %v16349_v37  ;;  %v7868_v28 = vpack.c.bf16 %v7843_v26, %v7842_v47 }
 0x826   : > { %v7954_v19 = vpop.f32.mrf.mxu1 }
 0x827   : > { %v16516_v40 = vadd.f32 %v7954_v19, %v16353_v45 }
 0x828   : > { %v7751_v15 = vpop.f32.mrf.mxu0 }
 0x829   : > { %12830 = vmatmul.msk.bf16.gmra.mxu2 %vm557_vm8, %v8110_v41 }
 0x82c   : > { %v7249_v8 = vpop.f32.mrf.mxu2 }
 0x82d   : > { %v7500_v32 = vpop.f32.mrf.mxu3  ;;  %v7306_v46 = vadd.f32 %v7249_v8, %v16358_v34  ;;  %v8077_v8 = vld [vmem:[#allocation3 + $0x46] sm:$0xff] }
 0x82e   : > { %v7957_v31 = vpop.f32.mrf.mxu1 }
 0x82f   : > { %v7557_v49 = vadd.f32 %v7500_v32, %v7306_v46  ;;  %v16521_v37 = vadd.f32 %v7957_v31, %v16361_v52  ;;  %v8111_v52 = vpack.c.bf16 %v8078_v43, %v8077_v8  ;;  %v8080_v8 = vld [vmem:[#allocation3 + $0x5e] sm:$0xff] }
 0x830   : > { %v16523_v59 = vpop.f32.mrf.mxu0 }
 0x831   : > { %12817 = vmatmul.msk.bf16.gmra.mxu1 %vm557_vm8, %v7868_v28  ;;  %v16526_v45 = vadd.f32 %v7751_v15, %v7557_v49  ;;  %v7845_v49 = vld [vmem:[#allocation3 + $0xdd] sm:$0xff]  ;;  %v7844_v28 = vld [vmem:[#allocation3 + $0xd5] sm:$0xff] }
 0x834   : > { %v7251_v23 = vpop.f32.mrf.mxu2 }
 0x835   : > { %v16528_v19 = vpop.f32.mrf.mxu3  ;;  %v16531_v41 = vadd.f32 %v7251_v23, %v16365_v22  ;;  %v7869_v23 = vpack.c.bf16 %v7845_v49, %v7844_v28 }
 0x836   : > { %v7959_v34 = vpop.f32.mrf.mxu1 }
 0x837   : > { %v16534_v32 = vadd.f32 %v7959_v34, %v16369_v42 }
 0x838   : > { %v7756_v26 = vpop.f32.mrf.mxu0 }
 0x839   : > { %12831 = vmatmul.msk.bf16.gmra.mxu2 %vm557_vm8, %v8111_v52 }
 0x83c   : > { %v7254_v46 = vpop.f32.mrf.mxu2 }
 0x83d   : > { %v7505_v31 = vpop.f32.mrf.mxu3  ;;  %v7308_v15 = vadd.f32 %v7254_v46, %v16374_v4  ;;  %v8079_v46 = vld [vmem:[#allocation3 + $0x56] sm:$0xff] }
 0x83e   : > { %v7962_v47 = vpop.f32.mrf.mxu1 }
 0x83f   : > { %v7559_v3 = vadd.f32 %v7505_v31, %v7308_v15  ;;  %v16539_v22 = vadd.f32 %v7962_v47, %v16377_v27  ;;  %v8112_v27 = vpack.c.bf16 %v8080_v8, %v8079_v46  ;;  %v8082_v46 = vld [vmem:[#allocation3 + $0x6e] sm:$0xff] }
 0x840   : > { %v16541_v61 = vpop.f32.mrf.mxu0 }
 0x841   : > { %18379 = vst [vmem:[#allocation34_spill] sm:$0xff] %v16541_v61  ;;  %12818 = vmatmul.msk.bf16.gmra.mxu1 %vm557_vm8, %v7869_v23  ;;  %v16544_v42 = vadd.f32 %v7756_v26, %v7559_v3  ;;  %v7847_v3 = vld [vmem:[#allocation3 + $0xed] sm:$0xff]  ;;  %v7846_v23 = vld [vmem:[#allocation3 + $0xe5] sm:$0xff] }
 0x844   : > { %v7256_v43 = vpop.f32.mrf.mxu2 }
 0x845   : > { %v16546_v34 = vpop.f32.mrf.mxu3  ;;  %v16549_v52 = vadd.f32 %v7256_v43, %v16381_v56  ;;  %v7870_v43 = vpack.c.bf16 %v7847_v3, %v7846_v23 }
 0x846   : > { %18380 = vst [vmem:[#allocation33_spill] sm:$0xff] %v16546_v34  ;;  %v7964_v4 = vpop.f32.mrf.mxu1 }
 0x847   : > { %v16552_v31 = vadd.f32 %v7964_v4, %v16385_v6 }
 0x848   : > { %v7761_v49 = vpop.f32.mrf.mxu0 }
 0x849   : > { %12832 = vmatmul.msk.bf16.gmra.mxu2 %vm557_vm8, %v8112_v27 }
 0x84c   : > { %v7259_v15 = vpop.f32.mrf.mxu2 }
 0x84d   : > { %v7510_v47 = vpop.f32.mrf.mxu3  ;;  %v7310_v26 = vadd.f32 %v7259_v15, %v16390_v30  ;;  %v8081_v15 = vld [vmem:[#allocation3 + $0x66] sm:$0xff] }
 0x84e   : > { %v7967_v28 = vpop.f32.mrf.mxu1 }
 0x84f   : > { %v7561_v61 = vadd.f32 %v7510_v47, %v7310_v26  ;;  %v16557_v56 = vadd.f32 %v7967_v28, %v16393_v54  ;;  %v8113_v54 = vpack.c.bf16 %v8082_v46, %v8081_v15  ;;  %v8084_v15 = vld [vmem:[#allocation3 + $0x7e] sm:$0xff] }
 0x850   : > { %v16559_v34 = vpop.f32.mrf.mxu0 }
 0x851   : > { %18381 = vst [vmem:[#allocation17_spill] sm:$0xff] %v16559_v34  ;;  %12819 = vmatmul.msk.bf16.gmra.mxu1 %vm557_vm8, %v7870_v43  ;;  %v16562_v6 = vadd.f32 %v7761_v49, %v7561_v61  ;;  %v7849_v61 = vld [vmem:[#allocation3 + $0xfd] sm:$0xff]  ;;  %v7848_v43 = vld [vmem:[#allocation3 + $0xf5] sm:$0xff] }
 0x854   : > { %v7261_v8 = vpop.f32.mrf.mxu2 }
 0x855   : > { %v16564_v4 = vpop.f32.mrf.mxu3  ;;  %v16567_v27 = vadd.f32 %v7261_v8, %v16397_v53  ;;  %v7871_v8 = vpack.c.bf16 %v7849_v61, %v7848_v43 }
 0x856   : > { %18382 = vst [vmem:[#allocation16_spill] sm:$0xff] %v16564_v4  ;;  %v7969_v30 = vpop.f32.mrf.mxu1 }
 0x857   : > { %v16570_v47 = vadd.f32 %v7969_v30, %v16401_v11 }
 0x858   : > { %v7766_v3 = vpop.f32.mrf.mxu0 }
 0x859   : > { %12833 = vmatmul.msk.bf16.gmra.mxu2 %vm557_vm8, %v8113_v54 }
 0x85c   : > { %v7264_v26 = vpop.f32.mrf.mxu2 }
 0x85d   : > { %v7515_v28 = vpop.f32.mrf.mxu3  ;;  %v7312_v49 = vadd.f32 %v7264_v26, %v16406_v21  ;;  %v8083_v26 = vld [vmem:[#allocation3 + $0x76] sm:$0xff] }
 0x85e   : > { %v7972_v23 = vpop.f32.mrf.mxu1 }
 0x85f   : > { %v7563_v34 = vadd.f32 %v7515_v28, %v7312_v49  ;;  %v16575_v53 = vadd.f32 %v7972_v23, %v16409_v1  ;;  %v8114_v1 = vpack.c.bf16 %v8084_v15, %v8083_v26  ;;  %v7548_v15 = vadd.f32 %v16429_v50, %v16432_v55  ;;  %v7853_v50 = vld [vmem:[#allocation3 + $0x11d] sm:$0xff] }
 0x860   : > { %v16577_v4 = vpop.f32.mrf.mxu0 }
 0x861   : > { %18383 = vst [vmem:[#allocation55_spill] sm:$0xff] %v16577_v4  ;;  %12820 = vmatmul.msk.bf16.gmra.mxu1 %vm557_vm8, %v7871_v8  ;;  %v16580_v11 = vadd.f32 %v7766_v3, %v7563_v34  ;;  %v7851_v34 = vld [vmem:[#allocation3 + $0x10d] sm:$0xff]  ;;  %v7850_v8 = vld [vmem:[#allocation3 + $0x105] sm:$0xff] }
 0x864   : > { %v7266_v46 = vpop.f32.mrf.mxu2 }
 0x865   : > { %v16582_v30 = vpop.f32.mrf.mxu3  ;;  %v16585_v54 = vadd.f32 %v7266_v46, %v16413_v7  ;;  %v7872_v46 = vpack.c.bf16 %v7851_v34, %v7850_v8 }
 0x866   : > { %18384 = vst [vmem:[#allocation56_spill] sm:$0xff] %v16582_v30  ;;  %v7974_v21 = vpop.f32.mrf.mxu1 }
 0x867   : > { %v16588_v28 = vadd.f32 %v7974_v21, %v16417_v17 }
 0x868   : > { %v7771_v61 = vpop.f32.mrf.mxu0 }
 0x869   : > { %12834 = vmatmul.msk.bf16.gmra.mxu2 %vm557_vm8, %v8114_v1  ;;  %v7799_v1 = vadd.f32 %v16424_v25, %v7548_v15 }
 0x86c   : > { %v7269_v49 = vpop.f32.mrf.mxu2 }
 0x86d   : > { %v7520_v23 = vpop.f32.mrf.mxu3  ;;  %v7314_v3 = vadd.f32 %v7269_v49, %v16422_v0  ;;  %v8086_v0 = vld [vmem:[#allocation3 + $0x8e] sm:$0xff] }
 0x86e   : > { %v7977_v43 = vpop.f32.mrf.mxu1 }
 0x86f   : > { %v7565_v4 = vadd.f32 %v7520_v23, %v7314_v3  ;;  %v16593_v7 = vadd.f32 %v7977_v43, %v16427_v60  ;;  %v8085_v23 = vld [vmem:[#allocation3 + $0x86] sm:$0xff] }
 0x870   : > { %v16595_v30 = vpop.f32.mrf.mxu0  ;;  %v8115_v3 = vpack.c.bf16 %v8086_v0, %v8085_v23 }
 0x871   : > { %18385 = vst [vmem:[#allocation57_spill] sm:$0xff] %v16595_v30  ;;  %12821 = vmatmul.msk.bf16.gmra.mxu1 %vm557_vm8, %v7872_v46  ;;  %v16598_v17 = vadd.f32 %v7771_v61, %v7565_v4  ;;  %v7852_v46 = vld [vmem:[#allocation3 + $0x115] sm:$0xff] }
 0x874   : > { %v7271_v21 = vpop.f32.mrf.mxu2 }
 0x875   : > { %v16602_v26 = vpop.f32.mrf.mxu3  ;;  %v16606_v49 = vadd.f32 %v7271_v21, %v16435_v10  ;;  %v7873_v10 = vpack.c.bf16 %v7853_v50, %v7852_v46  ;;  %v7550_v21 = vadd.f32 %v16452_v5, %v16455_v44  ;;  %v13300_v5 = vld [vmem:[%s18119_s10 + $0x8] sm:$0xff] }
 0x876   : > { %v7979_v60 = vpop.f32.mrf.mxu1  ;;  %v8564_v44 = vld [vmem:[#allocation2 + $0x1] sm:$0xff]  ;;  %8687 = vmatpush.bf16.msra.mxu3 %v13300_v5 }
 0x877   : > { %v16608_v34 = vadd.f32 %v7979_v60, %v7799_v1  ;;  %v7801_v23 = vadd.f32 %v16444_v14, %v7550_v21  ;;  %v7854_v14 = vld [vmem:[#allocation3 + $0x125] sm:$0xff] }
 0x878   : > { %v7776_v4 = vpop.f32.mrf.mxu0 }
 0x879   : > { %12835 = vmatmul.msk.bf16.gmra.mxu2 %vm557_vm8, %v8115_v3 }
 0x87c   : > { %v7274_v61 = vpop.f32.mrf.mxu2 }
 0x87d   : > { %v7525_v43 = vpop.f32.mrf.mxu3  ;;  %v7316_v55 = vadd.f32 %v7274_v61, %v16442_v35  ;;  %v8088_v35 = vld [vmem:[#allocation3 + $0x9e] sm:$0xff]  ;;  %v8087_v61 = vld [vmem:[#allocation3 + $0x96] sm:$0xff] }
 0x87e   : > { %v7982_v8 = vpop.f32.mrf.mxu1 }
 0x87f   : > { %v7567_v30 = vadd.f32 %v7525_v43, %v7316_v55  ;;  %v16613_v25 = vadd.f32 %v7982_v8, %v16447_v9  ;;  %v7855_v8 = vld [vmem:[#allocation3 + $0x12d] sm:$0xff] }
 0x880   : > { %v16620_v0 = vpop.f32.mrf.mxu0 }
 0x881   : > { %12822 = vmatmul.msk.bf16.gmra.mxu1 %vm557_vm8, %v7873_v10  ;;  %v16616_v15 = vadd.f32 %v7776_v4, %v7567_v30  ;;  %v8116_v30 = vpack.c.bf16 %v8088_v35, %v8087_v61  ;;  %v8565_v4 = vld [vmem:[#allocation2 + $0x9] sm:$0xff]  ;;  %v8508_v61 = vld [vmem:[#allocation2] sm:$0xff] }
 0x882   : > { %v8600_v50 = vpack.c.bf16 %v8565_v4, %v8564_v44 }
 0x884   : > { %v7276_v1 = vpop.f32.mrf.mxu2  ;;  %12851 = vmatmul.msk.bf16.vlgmr.msra.gmra.mxu3 %vm557_vm8, %v8600_v50  ;;  %v8090_v50 = vld [vmem:[#allocation3 + $0xae] sm:$0xff] }
 0x885   : > { %v16622_v60 = vpop.f32.mrf.mxu3  ;;  %v16626_v3 = vadd.f32 %v7276_v1, %v16458_v33 }
 0x886   : > { %v7984_v9 = vpop.f32.mrf.mxu1 }
 0x887   : > { %v16628_v43 = vadd.f32 %v7984_v9, %v7801_v23  ;;  %v7874_v23 = vpack.c.bf16 %v7855_v8, %v7854_v14  ;;  %v13299_v9 = vld [vmem:[%s18119_s10] sm:$0xff]  ;;  %v8089_v8 = vld [vmem:[#allocation3 + $0xa6] sm:$0xff] }
 0x888   : > { %v7781_v46 = vpop.f32.mrf.mxu0  ;;  %8846 = vmatpush.bf16.msrb.mxu0 %v13299_v9 }
 0x889   : > { %12836 = vmatmul.msk.bf16.gmra.mxu2 %vm557_vm8, %v8116_v30  ;;  %v8509_v30 = vld [vmem:[#allocation2 + $0x8] sm:$0xff] }
 0x88a   : > { %v8544_v5 = vpack.c.bf16 %v8509_v30, %v8508_v61  ;;  %v6101_v30 = vld [vmem:[#allocation2 + $0x13] sm:$0xff] }
 0x88c   : > { %v7279_v55 = vpop.f32.mrf.mxu2  ;;  %12873 = vmatmul.msk.bf16.vlgmr.msrb.gmra.mxu0 %vm557_vm8, %v8544_v5 }
 0x88d   : > { %v7318_v33 = vadd.f32 %v7279_v55, %v16465_v2  ;;  %v7530_v10 = vpop.f32.mrf.mxu3  ;;  %v7552_v2 = vadd.f32 %v16472_v12, %v16475_v29  ;;  %v7856_v12 = vld [vmem:[#allocation3 + $0x135] sm:$0xff]  ;;  %v7857_v29 = vld [vmem:[#allocation3 + $0x13d] sm:$0xff] }
 0x88e   : > { %v7987_v21 = vpop.f32.mrf.mxu1 }
 0x88f   : > { %v7569_v1 = vadd.f32 %v7530_v10, %v7318_v33  ;;  %v16637_v35 = vadd.f32 %v7987_v21, %v16470_v24  ;;  %v7803_v24 = vadd.f32 %v16467_v39, %v7552_v2  ;;  %v8117_v10 = vpack.c.bf16 %v8090_v50, %v8089_v8  ;;  %v16661_v39 = vld [vmem:[%s18118_s9] ss:$0 sm:$0xff] }
 0x890   : > { %v7554_v2 = vadd.f32 %v16492_v16, %v16495_v63  ;;  %v8938_v63 = vld [vmem:[#allocation2 + $0x2] sm:$0xff] }
 0x891   : > { %12823 = vmatmul.msk.bf16.gmra.mxu1 %vm557_vm8, %v7874_v23  ;;  %v16643_v44 = vadd.f32 %v7781_v46, %v7569_v1  ;;  %v13301_v46 = vld [vmem:[%s18119_s10 + $0x10] sm:$0xff]  ;;  %v7875_v1 = vpack.c.bf16 %v7857_v29, %v7856_v12  ;;  %v8091_v12 = vld [vmem:[#allocation3 + $0xb6] sm:$0xff] }
 0x892   : > { %9061 = vmatpush.bf16.msrb.mxu1 %v13301_v46 }
 0x894   : > { %v7281_v4 = vpop.f32.mrf.mxu2 }
 0x895   : > { %v16650_v55 = vadd.f32 %v7281_v4, %v16478_v36 }
 0x896   : > { %v7989_v14 = vpop.f32.mrf.mxu1 }
 0x897   : > { %v16652_v33 = vadd.f32 %v7989_v14, %v7803_v24  ;;  %v8092_v24 = vld [vmem:[#allocation3 + $0xbe] sm:$0xff]  ;;  %v7805_v14 = vadd.f32 %v16487_v13, %v7554_v2 }
 0x899   : > { %12837 = vmatmul.msk.bf16.gmra.mxu2 %vm557_vm8, %v8117_v10 }
 0x89c   : > { %v8198_v36 = vpop.f32.mrf.mxu2 }
 0x89d   : > { %v8288_v21 = vadd.f32 %v8198_v36, %v16485_v51  ;;  %v18386_v51 = vld [vmem:[#allocation35_spill] sm:$0xff]  ;;  %v8118_v36 = vpack.c.bf16 %v8092_v24, %v8091_v12  ;;  %v18388_v12 = vld [vmem:[#allocation36_spill] sm:$0xff] }
 0x89e   : > { %v7992_v23 = vpop.f32.mrf.mxu1  ;;  %v6103_v24 = vld [vmem:[#allocation2 + $0x23] sm:$0xff] }
 0x89f   : > { %v8328_v9 = vadd.f32 %v16661_v39, %v8288_v21  ;;  %v16666_v61 = vadd.f32 %v7992_v23, %v16490_v20  ;;  %v6102_v21 = vld [vmem:[#allocation2 + $0x1b] sm:$0xff] }
 0x8a1   : > { %v8364_v5 = vadd.f32 %v8328_v9, %v6101_v30  ;;  %12824 = vmatmul.msk.bf16.gmra.mxu1 %vm557_vm8, %v7875_v1  ;;  %v8939_v1 = vld [vmem:[#allocation2 + $0xa] sm:$0xff] }
 0x8a2   : > { %v18387_v9 = vld [vmem:[#allocation37_spill] sm:$0xff] }
 0x8a3   : > { %v8400_v4 = vmax.f32 %v8364_v5, 0.0  ;;  %v8974_v5 = vpack.c.bf16 %v8939_v1, %v8938_v63 }
 0x8a4   : > { %v8200_v50 = vpop.f32.mrf.mxu2 }
 0x8a5   : > { %v8436_v8 = vmul.f32 %v8400_v4, %v18386_v51  ;;  %v8289_v10 = vadd.f32 %v8200_v50, %v16498_v62  ;;  %v7556_v51 = vadd.f32 %v16510_v58, %v16513_v38 }
 0x8a6   : > { %v7994_v46 = vpop.f32.mrf.mxu1 }
 0x8a7   : > { %8472 = vst.msk [vmem:[#allocation2 + $0x13] sm:$0xff] %vm557_vm8, %v8436_v8  ;;  %v8329_v20 = vadd.f32 %v16661_v39, %v8289_v10  ;;  %v16676_v29 = vadd.f32 %v7994_v46, %v7805_v14  ;;  %v8094_v10 = vld [vmem:[#allocation3 + $0xce] sm:$0xff] }
 0x8a9   : > { %v8365_v16 = vadd.f32 %v8329_v20, %v6102_v21  ;;  %12838 = vmatmul.msk.bf16.gmra.mxu2 %vm557_vm8, %v8118_v36  ;;  %v8093_v21 = vld [vmem:[#allocation3 + $0xc6] sm:$0xff] }
 0x8aa   : > { %v8119_v63 = vpack.c.bf16 %v8094_v10, %v8093_v21  ;;  %v8096_v21 = vld [vmem:[#allocation3 + $0xde] sm:$0xff] }
 0x8ab   : > { %v8401_v13 = vmax.f32 %v8365_v16, 0.0 }
 0x8ac   : > { %v8203_v23 = vpop.f32.mrf.mxu2 }
 0x8ad   : > { %v8437_v30 = vmul.f32 %v8401_v13, %v18387_v9  ;;  %v8290_v62 = vadd.f32 %v8203_v23, %v16503_v57  ;;  %v7807_v57 = vadd.f32 %v16505_v18, %v7556_v51  ;;  %v6104_v18 = vld [vmem:[#allocation2 + $0x2b] sm:$0xff] }
 0x8ae   : > { %v7997_v2 = vpop.f32.mrf.mxu1  ;;  %v8566_v16 = vld [vmem:[#allocation2 + $0x11] sm:$0xff] }
 0x8af   : > { %8473 = vst.msk [vmem:[#allocation2 + $0x1b] sm:$0xff] %vm557_vm8, %v8437_v30  ;;  %v8330_v4 = vadd.f32 %v16661_v39, %v8290_v62  ;;  %v16684_v50 = vadd.f32 %v7997_v2, %v16508_v48  ;;  %v8510_v13 = vld [vmem:[#allocation2 + $0x10] sm:$0xff] }
 0x8b1   : > { %v8366_v14 = vadd.f32 %v8330_v4, %v6103_v24  ;;  %12895 = vmatmul.msk.bf16.vlgmr.msrb.gmra.mxu1 %vm557_vm8, %v8974_v5  ;;  %v18389_v4 = vld [vmem:[#allocation38_spill] sm:$0xff] }
 0x8b3   : > { %v8402_v8 = vmax.f32 %v8366_v14, 0.0 }
 0x8b4   : > { %v8205_v46 = vpop.f32.mrf.mxu2 }
 0x8b5   : > { %v8438_v20 = vmul.f32 %v8402_v8, %v18388_v12  ;;  %v8291_v36 = vadd.f32 %v8205_v46, %v16516_v40  ;;  %v8940_v8 = vld [vmem:[#allocation2 + $0x12] sm:$0xff] }
 0x8b6   : > { %v7999_v48 = vpop.f32.mrf.mxu1  ;;  %v8567_v1 = vld [vmem:[#allocation2 + $0x19] sm:$0xff] }
 0x8b7   : > { %v8511_v23 = vld [vmem:[#allocation2 + $0x18] sm:$0xff]  ;;  %8474 = vst.msk [vmem:[#allocation2 + $0x23] sm:$0xff] %vm557_vm8, %v8438_v20  ;;  %v8331_v58 = vadd.f32 %v16661_v39, %v8291_v36  ;;  %v16694_v38 = vadd.f32 %v7999_v48, %v7807_v57  ;;  %v8601_v9 = vpack.c.bf16 %v8567_v1, %v8566_v16  ;;  %v7558_v36 = vadd.f32 %v16528_v19, %v16531_v41 }
 0x8b8   : > { %v8545_v30 = vpack.c.bf16 %v8511_v23, %v8510_v13  ;;  %v8941_v2 = vld [vmem:[#allocation2 + $0x1a] sm:$0xff] }
 0x8b9   : > { %v8367_v62 = vadd.f32 %v8331_v58, %v6104_v18  ;;  %12839 = vmatmul.msk.bf16.gmra.mxu2 %vm557_vm8, %v8119_v63  ;;  %12852 = vmatmul.msk.bf16.gmra.mxu3 %vm557_vm8, %v8601_v9  ;;  %v16706_v57 = vpack.c.bf16 %v8941_v2, %v8940_v8  ;;  %v6105_v12 = vld [vmem:[#allocation2 + $0x33] sm:$0xff]  ;;  %v7809_v48 = vadd.f32 %v16523_v59, %v7558_v36  ;;  %v18390_v63 = vld [vmem:[#allocation39_spill] sm:$0xff] }
 0x8ba   : > { %12874 = vmatmul.msk.bf16.gmra.mxu0 %vm557_vm8, %v8545_v30  ;;  %v8095_v13 = vld [vmem:[#allocation3 + $0xd6] sm:$0xff] }
 0x8bb   : > { %v8403_v40 = vmax.f32 %v8367_v62, 0.0  ;;  %v8120_v9 = vpack.c.bf16 %v8096_v21, %v8095_v13  ;;  %v6106_v59 = vld [vmem:[#allocation2 + $0x3b] sm:$0xff]  ;;  %v6107_v21 = vld [vmem:[#allocation2 + $0x43] sm:$0xff] }
 0x8bc   : > { %v8208_v5 = vpop.f32.mrf.mxu2  ;;  %v18393_v13 = vld [vmem:[#allocation34_spill] sm:$0xff] }
 0x8bd   : > { %v8439_v24 = vmul.f32 %v8403_v40, %v18389_v4  ;;  %v8292_v14 = vadd.f32 %v8208_v5, %v16521_v37 }
 0x8be   : > { %v8002_v51 = vpop.f32.mrf.mxu1  ;;  %v8568_v23 = vld [vmem:[#allocation2 + $0x21] sm:$0xff] }
 0x8bf   : > { %8475 = vst.msk [vmem:[#allocation2 + $0x2b] sm:$0xff] %vm557_vm8, %v8439_v24  ;;  %v8332_v10 = vadd.f32 %v16661_v39, %v8292_v14  ;;  %v16704_v46 = vadd.f32 %v8002_v51, %v16526_v45  ;;  %v8512_v18 = vld [vmem:[#allocation2 + $0x20] sm:$0xff] }
 0x8c0   : > { %v18391_v14 = vld [vmem:[#allocation40_spill] sm:$0xff] }
 0x8c1   : > { %v8368_v20 = vadd.f32 %v8332_v10, %v6105_v12  ;;  %12896 = vmatmul.msk.bf16.gmra.mxu1 %vm557_vm8, %v16706_v57  ;;  %v8942_v12 = vld [vmem:[#allocation2 + $0x22] sm:$0xff] }
 0x8c3   : > { %v8404_v37 = vmax.f32 %v8368_v20, 0.0 }
 0x8c4   : > { %v8210_v16 = vpop.f32.mrf.mxu2 }
 0x8c5   : > { %v8440_v1 = vmul.f32 %v8404_v37, %v18390_v63  ;;  %v8293_v45 = vadd.f32 %v8210_v16, %v16534_v32 }
 0x8c6   : > { %v8004_v58 = vpop.f32.mrf.mxu1  ;;  %v8569_v30 = vld [vmem:[#allocation2 + $0x29] sm:$0xff] }
 0x8c7   : > { %v8513_v62 = vld [vmem:[#allocation2 + $0x28] sm:$0xff]  ;;  %8476 = vst.msk [vmem:[#allocation2 + $0x33] sm:$0xff] %vm557_vm8, %v8440_v1  ;;  %v8333_v19 = vadd.f32 %v16661_v39, %v8293_v45  ;;  %v16717_v41 = vadd.f32 %v8004_v58, %v7809_v48  ;;  %v8602_v40 = vpack.c.bf16 %v8569_v30, %v8568_v23  ;;  %v8098_v1 = vld [vmem:[#allocation3 + $0xee] sm:$0xff] }
 0x8c8   : > { %v8546_v5 = vpack.c.bf16 %v8513_v62, %v8512_v18  ;;  %v8943_v24 = vld [vmem:[#allocation2 + $0x2a] sm:$0xff] }
 0x8c9   : > { %v8369_v2 = vadd.f32 %v8333_v19, %v6106_v59  ;;  %12840 = vmatmul.msk.bf16.gmra.mxu2 %vm557_vm8, %v8120_v9  ;;  %12853 = vmatmul.msk.bf16.gmra.mxu3 %vm557_vm8, %v8602_v40  ;;  %v16729_v37 = vpack.c.bf16 %v8943_v24, %v8942_v12  ;;  %v18392_v48 = vld [vmem:[#allocation33_spill] sm:$0xff] }
 0x8ca   : > { %12875 = vmatmul.msk.bf16.gmra.mxu0 %vm557_vm8, %v8546_v5  ;;  %v7560_v63 = vadd.f32 %v18392_v48, %v16549_v52  ;;  %v18394_v58 = vld [vmem:[#allocation41_spill] sm:$0xff] }
 0x8cb   : > { %v8405_v32 = vmax.f32 %v8369_v2, 0.0  ;;  %v8097_v30 = vld [vmem:[#allocation3 + $0xe6] sm:$0xff] }
 0x8cc   : > { %v8213_v4 = vpop.f32.mrf.mxu2  ;;  %v7811_v23 = vadd.f32 %v18393_v13, %v7560_v63  ;;  %v8121_v19 = vpack.c.bf16 %v8098_v1, %v8097_v30  ;;  %v6108_v24 = vld [vmem:[#allocation2 + $0x4b] sm:$0xff]  ;;  %v6109_v1 = vld [vmem:[#allocation2 + $0x53] sm:$0xff] }
 0x8cd   : > { %v8441_v51 = vmul.f32 %v8405_v32, %v18391_v14  ;;  %v8294_v8 = vadd.f32 %v8213_v4, %v16539_v22  ;;  %v18396_v13 = vld [vmem:[#allocation16_spill] sm:$0xff] }
 0x8ce   : > { %v8007_v10 = vpop.f32.mrf.mxu1  ;;  %v8570_v18 = vld [vmem:[#allocation2 + $0x31] sm:$0xff] }
 0x8cf   : > { %8477 = vst.msk [vmem:[#allocation2 + $0x3b] sm:$0xff] %vm557_vm8, %v8441_v51  ;;  %v8334_v20 = vadd.f32 %v16661_v39, %v8294_v8  ;;  %v16727_v36 = vadd.f32 %v8007_v10, %v16544_v42  ;;  %v8514_v5 = vld [vmem:[#allocation2 + $0x30] sm:$0xff] }
 0x8d0   : > { %v18395_v10 = vld [vmem:[#allocation42_spill] sm:$0xff] }
 0x8d1   : > { %v8370_v16 = vadd.f32 %v8334_v20, %v6107_v21  ;;  %12897 = vmatmul.msk.bf16.gmra.mxu1 %vm557_vm8, %v16729_v37 }
 0x8d3   : > { %v8406_v22 = vmax.f32 %v8370_v16, 0.0  ;;  %v8944_v16 = vld [vmem:[#allocation2 + $0x32] sm:$0xff] }
 0x8d4   : > { %v8215_v45 = vpop.f32.mrf.mxu2 }
 0x8d5   : > { %v8442_v9 = vmul.f32 %v8406_v22, %v18394_v58  ;;  %v8295_v42 = vadd.f32 %v8215_v45, %v16552_v31  ;;  %v8100_v58 = vld [vmem:[#allocation3 + $0xfe] sm:$0xff] }
 0x8d6   : > { %v8009_v62 = vpop.f32.mrf.mxu1  ;;  %v8571_v40 = vld [vmem:[#allocation2 + $0x39] sm:$0xff] }
 0x8d7   : > { %v8515_v59 = vld [vmem:[#allocation2 + $0x38] sm:$0xff]  ;;  %8478 = vst.msk [vmem:[#allocation2 + $0x43] sm:$0xff] %vm557_vm8, %v8442_v9  ;;  %v8335_v52 = vadd.f32 %v16661_v39, %v8295_v42  ;;  %v16740_v2 = vadd.f32 %v8009_v62, %v7811_v23  ;;  %v8603_v32 = vpack.c.bf16 %v8571_v40, %v8570_v18  ;;  %v7562_v23 = vadd.f32 %v18396_v13, %v16567_v27  ;;  %v18397_v42 = vld [vmem:[#allocation17_spill] sm:$0xff] }
 0x8d8   : > { %v8547_v4 = vpack.c.bf16 %v8515_v59, %v8514_v5  ;;  %v8945_v8 = vld [vmem:[#allocation2 + $0x3a] sm:$0xff] }
 0x8d9   : > { %v8371_v14 = vadd.f32 %v8335_v52, %v6108_v24  ;;  %12841 = vmatmul.msk.bf16.gmra.mxu2 %vm557_vm8, %v8121_v19  ;;  %12854 = vmatmul.msk.bf16.gmra.mxu3 %vm557_vm8, %v8603_v32  ;;  %v16752_v22 = vpack.c.bf16 %v8945_v8, %v8944_v16  ;;  %v7813_v30 = vadd.f32 %v18397_v42, %v7562_v23  ;;  %v18398_v18 = vld [vmem:[#allocation43_spill] sm:$0xff] }
 0x8da   : > { %12876 = vmatmul.msk.bf16.gmra.mxu0 %vm557_vm8, %v8547_v4  ;;  %v8099_v19 = vld [vmem:[#allocation3 + $0xf6] sm:$0xff] }
 0x8db   : > { %v8407_v31 = vmax.f32 %v8371_v14, 0.0  ;;  %v8122_v59 = vpack.c.bf16 %v8100_v58, %v8099_v19  ;;  %v18402_v19 = vld [vmem:[#allocation45_spill] sm:$0xff] }
 0x8dc   : > { %v8218_v51 = vpop.f32.mrf.mxu2 }
 0x8dd   : > { %v8443_v12 = vmul.f32 %v8407_v31, %v18395_v10  ;;  %v8296_v20 = vadd.f32 %v8218_v51, %v16557_v56  ;;  %v6110_v51 = vld [vmem:[#allocation2 + $0x5b] sm:$0xff] }
 0x8de   : > { %v8012_v21 = vpop.f32.mrf.mxu1  ;;  %v8572_v40 = vld [vmem:[#allocation2 + $0x41] sm:$0xff] }
 0x8df   : > { %8479 = vst.msk [vmem:[#allocation2 + $0x4b] sm:$0xff] %vm557_vm8, %v8443_v12  ;;  %v8336_v48 = vadd.f32 %v16661_v39, %v8296_v20  ;;  %v16750_v63 = vadd.f32 %v8012_v21, %v16562_v6  ;;  %v8516_v32 = vld [vmem:[#allocation2 + $0x40] sm:$0xff] }
 0x8e0   : > { %v18399_v20 = vld [vmem:[#allocation44_spill] sm:$0xff] }
 0x8e1   : > { %v8372_v45 = vadd.f32 %v8336_v48, %v6109_v1  ;;  %12898 = vmatmul.msk.bf16.gmra.mxu1 %vm557_vm8, %v16752_v22  ;;  %v8946_v1 = vld [vmem:[#allocation2 + $0x42] sm:$0xff] }
 0x8e3   : > { %v8408_v56 = vmax.f32 %v8372_v45, 0.0 }
 0x8e4   : > { %v8220_v9 = vpop.f32.mrf.mxu2 }
 0x8e5   : > { %v8444_v62 = vmul.f32 %v8408_v56, %v18398_v18  ;;  %v8297_v6 = vadd.f32 %v8220_v9, %v16570_v47  ;;  %v6111_v56 = vld [vmem:[#allocation2 + $0x63] sm:$0xff] }
 0x8e6   : > { %v8014_v5 = vpop.f32.mrf.mxu1  ;;  %v8573_v52 = vld [vmem:[#allocation2 + $0x49] sm:$0xff] }
 0x8e7   : > { %v8517_v4 = vld [vmem:[#allocation2 + $0x48] sm:$0xff]  ;;  %8480 = vst.msk [vmem:[#allocation2 + $0x53] sm:$0xff] %vm557_vm8, %v8444_v62  ;;  %v8337_v27 = vadd.f32 %v16661_v39, %v8297_v6  ;;  %v16763_v24 = vadd.f32 %v8014_v5, %v7813_v30  ;;  %v8604_v14 = vpack.c.bf16 %v8573_v52, %v8572_v40  ;;  %v8102_v30 = vld [vmem:[#allocation3 + $0x10e] sm:$0xff] }
 0x8e8   : > { %v8548_v31 = vpack.c.bf16 %v8517_v4, %v8516_v32  ;;  %v8947_v12 = vld [vmem:[#allocation2 + $0x4a] sm:$0xff]  ;;  %v18401_v62 = vld [vmem:[#allocation55_spill] sm:$0xff] }
 0x8e9   : > { %v8373_v8 = vadd.f32 %v8337_v27, %v6110_v51  ;;  %12842 = vmatmul.msk.bf16.gmra.mxu2 %vm557_vm8, %v8122_v59  ;;  %12855 = vmatmul.msk.bf16.gmra.mxu3 %vm557_vm8, %v8604_v14  ;;  %v16775_v23 = vpack.c.bf16 %v8947_v12, %v8946_v1  ;;  %v18400_v9 = vld [vmem:[#allocation56_spill] sm:$0xff]  ;;  %v8101_v5 = vld [vmem:[#allocation3 + $0x106] sm:$0xff] }
 0x8ea   : > { %12877 = vmatmul.msk.bf16.gmra.mxu0 %vm557_vm8, %v8548_v31  ;;  %v7564_v42 = vadd.f32 %v18400_v9, %v16585_v54  ;;  %v8123_v32 = vpack.c.bf16 %v8102_v30, %v8101_v5  ;;  %v7566_v30 = vadd.f32 %v16602_v26, %v16606_v49  ;;  %v8103_v5 = vld [vmem:[#allocation3 + $0x116] sm:$0xff] }
 0x8eb   : > { %v8409_v47 = vmax.f32 %v8373_v8, 0.0 }
 0x8ec   : > { %v8223_v10 = vpop.f32.mrf.mxu2  ;;  %v7815_v6 = vadd.f32 %v18401_v62, %v7564_v42  ;;  %v6113_v42 = vld [vmem:[#allocation2 + $0x73] sm:$0xff] }
 0x8ed   : > { %v8445_v21 = vmul.f32 %v8409_v47, %v18399_v20  ;;  %v8298_v16 = vadd.f32 %v8223_v10, %v16575_v53  ;;  %v6112_v47 = vld [vmem:[#allocation2 + $0x6b] sm:$0xff] }
 0x8ee   : > { %v8017_v48 = vpop.f32.mrf.mxu1  ;;  %v8574_v59 = vld [vmem:[#allocation2 + $0x51] sm:$0xff] }
 0x8ef   : > { %8481 = vst.msk [vmem:[#allocation2 + $0x5b] sm:$0xff] %vm557_vm8, %v8445_v21  ;;  %v8338_v45 = vadd.f32 %v16661_v39, %v8298_v16  ;;  %v16773_v13 = vadd.f32 %v8017_v48, %v16580_v11  ;;  %v8518_v27 = vld [vmem:[#allocation2 + $0x50] sm:$0xff] }
 0x8f0   : > { %v18403_v21 = vld [vmem:[#allocation46_spill] sm:$0xff] }
 0x8f1   : > { %v8374_v58 = vadd.f32 %v8338_v45, %v6111_v56  ;;  %12899 = vmatmul.msk.bf16.gmra.mxu1 %vm557_vm8, %v16775_v23  ;;  %v8948_v45 = vld [vmem:[#allocation2 + $0x52] sm:$0xff] }
 0x8f3   : > { %v8410_v53 = vmax.f32 %v8374_v58, 0.0 }
 0x8f4   : > { %v8225_v18 = vpop.f32.mrf.mxu2 }
 0x8f5   : > { %v8446_v40 = vmul.f32 %v8410_v53, %v18402_v19  ;;  %v8299_v11 = vadd.f32 %v8225_v18, %v16588_v28  ;;  %v8104_v18 = vld [vmem:[#allocation3 + $0x11e] sm:$0xff] }
 0x8f6   : > { %v8019_v52 = vpop.f32.mrf.mxu1  ;;  %v8575_v4 = vld [vmem:[#allocation2 + $0x59] sm:$0xff] }
 0x8f7   : > { %v8519_v14 = vld [vmem:[#allocation2 + $0x58] sm:$0xff]  ;;  %8482 = vst.msk [vmem:[#allocation2 + $0x63] sm:$0xff] %vm557_vm8, %v8446_v40  ;;  %v8339_v54 = vadd.f32 %v16661_v39, %v8299_v11  ;;  %v16786_v31 = vadd.f32 %v8019_v52, %v7815_v6  ;;  %v8605_v51 = vpack.c.bf16 %v8575_v4, %v8574_v59  ;;  %v18404_v6 = vld [vmem:[#allocation57_spill] sm:$0xff] }
 0x8f8   : > { %v8549_v8 = vpack.c.bf16 %v8519_v14, %v8518_v27  ;;  %v8949_v20 = vld [vmem:[#allocation2 + $0x5a] sm:$0xff]  ;;  %v7817_v19 = vadd.f32 %v18404_v6, %v7566_v30  ;;  %v6115_v30 = vld [vmem:[#allocation2 + $0x83] sm:$0xff] }
 0x8f9   : > { %v8375_v10 = vadd.f32 %v8339_v54, %v6112_v47  ;;  %12843 = vmatmul.msk.bf16.gmra.mxu2 %vm557_vm8, %v8123_v32  ;;  %12856 = vmatmul.msk.bf16.gmra.mxu3 %vm557_vm8, %v8605_v51  ;;  %v16798_v9 = vpack.c.bf16 %v8949_v20, %v8948_v45  ;;  %v18405_v40 = vld [vmem:[#allocation47_spill] sm:$0xff]  ;;  %v8124_v32 = vpack.c.bf16 %v8104_v18, %v8103_v5  ;;  %v16811_v47 = vpop.f32.mrf.mxu3 }
 0x8fa   : > { %12878 = vmatmul.msk.bf16.gmra.mxu0 %vm557_vm8, %v8549_v8  ;;  %v6114_v8 = vld [vmem:[#allocation2 + $0x7b] sm:$0xff] }
 0x8fb   : > { %v8411_v28 = vmax.f32 %v8375_v10, 0.0  ;;  %v16813_v10 = vpop.f32.mrf.mxu0  ;;  %v18407_v5 = vld [vmem:[#allocation15_spill] sm:$0xff] }
 0x8fc   : > { %v8228_v12 = vpop.f32.mrf.mxu2 }
 0x8fd   : > { %v8447_v16 = vmul.f32 %v8411_v28, %v18403_v21  ;;  %v8300_v48 = vadd.f32 %v8228_v12, %v16593_v7  ;;  %v18406_v21 = vld [vmem:[#allocation48_spill] sm:$0xff] }
 0x8fe   : > { %v8022_v1 = vpop.f32.mrf.mxu1  ;;  %v8576_v59 = vld [vmem:[#allocation2 + $0x61] sm:$0xff] }
 0x8ff   : > { %8483 = vst.msk [vmem:[#allocation2 + $0x6b] sm:$0xff] %vm557_vm8, %v8447_v16  ;;  %v8340_v56 = vadd.f32 %v16661_v39, %v8300_v48  ;;  %v16796_v58 = vadd.f32 %v8022_v1, %v16598_v17  ;;  %v8520_v27 = vld [vmem:[#allocation2 + $0x60] sm:$0xff] }
 0x900   : > { %v8950_v45 = vld [vmem:[#allocation2 + $0x62] sm:$0xff] }
 0x901   : > { %v8376_v53 = vadd.f32 %v8340_v56, %v6113_v42  ;;  %12900 = vmatmul.msk.bf16.gmra.mxu1 %vm557_vm8, %v16798_v9 }
 0x903   : > { %v8412_v7 = vmax.f32 %v8376_v53, 0.0 }
 0x904   : > { %v8230_v62 = vpop.f32.mrf.mxu2 }
 0x905   : > { %v8448_v11 = vmul.f32 %v8412_v7, %v18405_v40  ;;  %v8301_v17 = vadd.f32 %v8230_v62, %v16608_v34  ;;  %v8105_v40 = vld [vmem:[#allocation3 + $0x126] sm:$0xff] }
 0x906   : > { %v8024_v52 = vpop.f32.mrf.mxu1  ;;  %v8577_v4 = vld [vmem:[#allocation2 + $0x69] sm:$0xff] }
 0x907   : > { %v8521_v14 = vld [vmem:[#allocation2 + $0x68] sm:$0xff]  ;;  %8484 = vst.msk [vmem:[#allocation2 + $0x73] sm:$0xff] %vm557_vm8, %v8448_v11  ;;  %v8341_v26 = vadd.f32 %v16661_v39, %v8301_v17  ;;  %v16809_v49 = vadd.f32 %v8024_v52, %v7817_v19  ;;  %v8606_v54 = vpack.c.bf16 %v8577_v4, %v8576_v59  ;;  %v8689_v18 = vpop.f32.mrf.mxu3  ;;  %v8106_v11 = vld [vmem:[#allocation3 + $0x12e] sm:$0xff] }
 0x908   : > { %v8550_v51 = vpack.c.bf16 %v8521_v14, %v8520_v27  ;;  %v8951_v20 = vld [vmem:[#allocation2 + $0x6a] sm:$0xff]  ;;  %v8125_v27 = vpack.c.bf16 %v8106_v11, %v8105_v40 }
 0x909   : > { %v8377_v34 = vadd.f32 %v8341_v26, %v6114_v8  ;;  %12844 = vmatmul.msk.bf16.gmra.mxu2 %vm557_vm8, %v8124_v32  ;;  %12857 = vmatmul.msk.bf16.gmra.mxu3 %vm557_vm8, %v8606_v54  ;;  %v16825_v53 = vpack.c.bf16 %v8951_v20, %v8950_v45  ;;  %v8848_v62 = vpop.f32.mrf.mxu0  ;;  %v18408_v20 = vld [vmem:[#allocation18_spill] sm:$0xff] }
 0x90a   : > { %12879 = vmatmul.msk.bf16.gmra.mxu0 %vm557_vm8, %v8550_v51  ;;  %v16829_v6 = vadd.f32 %v8848_v62, %v8689_v18  ;;  %v6117_v18 = vld [vmem:[#allocation2 + $0x93] sm:$0xff] }
 0x90b   : > { %v8413_v28 = vmax.f32 %v8377_v34, 0.0  ;;  %v6116_v34 = vld [vmem:[#allocation2 + $0x8b] sm:$0xff] }
 0x90c   : > { %v8233_v12 = vpop.f32.mrf.mxu2 }
 0x90d   : > { %v8449_v16 = vmul.f32 %v8413_v28, %v18406_v21  ;;  %v8302_v48 = vadd.f32 %v8233_v12, %v16613_v25  ;;  %v7568_v25 = vadd.f32 %v16622_v60, %v16626_v3 }
 0x90e   : > { %v8027_v1 = vpop.f32.mrf.mxu1  ;;  %v8578_v32 = vld [vmem:[#allocation2 + $0x71] sm:$0xff] }
 0x90f   : > { %8485 = vst.msk [vmem:[#allocation2 + $0x7b] sm:$0xff] %vm557_vm8, %v8449_v16  ;;  %v8342_v56 = vadd.f32 %v16661_v39, %v8302_v48  ;;  %v16823_v42 = vadd.f32 %v8027_v1, %v16616_v15  ;;  %v7819_v15 = vadd.f32 %v16620_v0, %v7568_v25  ;;  %v8522_v26 = vld [vmem:[#allocation2 + $0x70] sm:$0xff]  ;;  %v8108_v25 = vld [vmem:[#allocation3 + $0x13e] sm:$0xff] }
 0x910   : > { %v8952_v1 = vld [vmem:[#allocation2 + $0x72] sm:$0xff] }
 0x911   : > { %v8378_v7 = vadd.f32 %v8342_v56, %v6115_v30  ;;  %12901 = vmatmul.msk.bf16.gmra.mxu1 %vm557_vm8, %v16825_v53 }
 0x913   : > { %v8414_v19 = vmax.f32 %v8378_v7, 0.0  ;;  %v13302_v7 = vld [vmem:[%s18119_s10 + $0x18] sm:$0xff] }
 0x914   : > { %v8235_v17 = vpop.f32.mrf.mxu2  ;;  %9312 = vmatpush.bf16.msrb.mxu2 %v13302_v7 }
 0x915   : > { %v8450_v59 = vmul.f32 %v8414_v19, %v18407_v5  ;;  %v8303_v52 = vadd.f32 %v8235_v17, %v16628_v43  ;;  %v7570_v19 = vadd.f32 %v16811_v47, %v16650_v55  ;;  %v18409_v17 = vld [vmem:[#allocation19_spill] sm:$0xff] }
 0x916   : > { %v8029_v4 = vpop.f32.mrf.mxu1  ;;  %v8579_v14 = vld [vmem:[#allocation2 + $0x79] sm:$0xff] }
 0x917   : > { %v8523_v54 = vld [vmem:[#allocation2 + $0x78] sm:$0xff]  ;;  %8486 = vst.msk [vmem:[#allocation2 + $0x83] sm:$0xff] %vm557_vm8, %v8450_v59  ;;  %v8343_v60 = vadd.f32 %v16661_v39, %v8303_v52  ;;  %v16838_v3 = vadd.f32 %v8029_v4, %v7819_v15  ;;  %v8607_v51 = vpack.c.bf16 %v8579_v14, %v8578_v32  ;;  %v7821_v11 = vadd.f32 %v16813_v10, %v7570_v19 }
 0x918   : > { %v8551_v8 = vpack.c.bf16 %v8523_v54, %v8522_v26  ;;  %v8953_v12 = vld [vmem:[#allocation2 + $0x7a] sm:$0xff] }
 0x919   : > { %v8379_v0 = vadd.f32 %v8343_v60, %v6116_v34  ;;  %12845 = vmatmul.msk.bf16.gmra.mxu2 %vm557_vm8, %v8125_v27  ;;  %12858 = vmatmul.msk.bf16.gmra.mxu3 %vm557_vm8, %v8607_v51  ;;  %v16850_v30 = vpack.c.bf16 %v8953_v12, %v8952_v1  ;;  %v6118_v60 = vld [vmem:[#allocation2 + $0x9b] sm:$0xff]  ;;  %v18410_v34 = vld [vmem:[#allocation20_spill] sm:$0xff] }
 0x91a   : > { %12880 = vmatmul.msk.bf16.gmra.mxu0 %vm557_vm8, %v8551_v8  ;;  %v6119_v1 = vld [vmem:[#allocation2 + $0xa3] sm:$0xff] }
 0x91b   : > { %v8415_v43 = vmax.f32 %v8379_v0, 0.0 }
 0x91c   : > { %v8238_v28 = vpop.f32.mrf.mxu2 }
 0x91d   : > { %v8451_v21 = vmul.f32 %v8415_v43, %v18408_v20  ;;  %v8304_v16 = vadd.f32 %v8238_v28, %v16637_v35  ;;  %v8107_v35 = vld [vmem:[#allocation3 + $0x136] sm:$0xff] }
 0x91e   : > { %v8032_v48 = vpop.f32.mrf.mxu1  ;;  %v8126_v59 = vpack.c.bf16 %v8108_v25, %v8107_v35  ;;  %v8580_v52 = vld [vmem:[#allocation2 + $0x81] sm:$0xff] }
 0x91f   : > { %8487 = vst.msk [vmem:[#allocation2 + $0x8b] sm:$0xff] %vm557_vm8, %v8451_v21  ;;  %v8344_v45 = vadd.f32 %v16661_v39, %v8304_v16  ;;  %v16848_v56 = vadd.f32 %v8032_v48, %v16643_v44  ;;  %v8524_v27 = vld [vmem:[#allocation2 + $0x80] sm:$0xff]  ;;  %v16873_v21 = vpop.f32.mrf.mxu0 }
 0x920   : > { %v8954_v12 = vld [vmem:[#allocation2 + $0x82] sm:$0xff] }
 0x921   : > { %v8380_v62 = vadd.f32 %v8344_v45, %v6117_v18  ;;  %12902 = vmatmul.msk.bf16.gmra.mxu1 %vm557_vm8, %v16850_v30 }
 0x923   : > { %v8416_v40 = vmax.f32 %v8380_v62, 0.0  ;;  %v18411_v62 = vld [vmem:[#allocation49_spill] sm:$0xff] }
 0x924   : > { %v8240_v44 = vpop.f32.mrf.mxu2 }
 0x925   : > { %v8452_v15 = vmul.f32 %v8416_v40, %v18409_v17  ;;  %v8305_v5 = vadd.f32 %v8240_v44, %v16652_v33 }
 0x926   : > { %v8034_v32 = vpop.f32.mrf.mxu1  ;;  %v8581_v4 = vld [vmem:[#allocation2 + $0x89] sm:$0xff] }
 0x927   : > { %v8525_v14 = vld [vmem:[#allocation2 + $0x88] sm:$0xff]  ;;  %8488 = vst.msk [vmem:[#allocation2 + $0x93] sm:$0xff] %vm557_vm8, %v8452_v15  ;;  %v8345_v26 = vadd.f32 %v16661_v39, %v8305_v5  ;;  %v16864_v54 = vadd.f32 %v8034_v32, %v7821_v11  ;;  %v8608_v55 = vpack.c.bf16 %v8581_v4, %v8580_v52 }
 0x928   : > { %v8552_v47 = vpack.c.bf16 %v8525_v14, %v8524_v27  ;;  %v8955_v8 = vld [vmem:[#allocation2 + $0x8a] sm:$0xff] }
 0x929   : > { %v8381_v10 = vadd.f32 %v8345_v26, %v6118_v60  ;;  %12846 = vmatmul.msk.bf16.gmra.mxu2 %vm557_vm8, %v8126_v59  ;;  %12859 = vmatmul.msk.bf16.gmra.mxu3 %vm557_vm8, %v8608_v55  ;;  %v16878_v48 = vpack.c.bf16 %v8955_v8, %v8954_v12  ;;  %v6120_v52 = vld [vmem:[#allocation2 + $0xab] sm:$0xff]  ;;  %v18412_v26 = vld [vmem:[#allocation50_spill] sm:$0xff] }
 0x92a   : > { %12881 = vmatmul.msk.bf16.gmra.mxu0 %vm557_vm8, %v8552_v47 }
 0x92b   : > { %v8417_v33 = vmax.f32 %v8381_v10, 0.0 }
 0x92c   : > { %v8243_v51 = vpop.f32.mrf.mxu2 }
 0x92d   : > { %v8453_v0 = vmul.f32 %v8417_v33, %v18410_v34  ;;  %v8306_v43 = vadd.f32 %v8243_v51, %v16666_v61  ;;  %v16882_v61 = vpop.f32.mrf.mxu3 }
 0x92e   : > { %v9063_v28 = vpop.f32.mrf.mxu1  ;;  %v8582_v19 = vld [vmem:[#allocation2 + $0x91] sm:$0xff] }
 0x92f   : > { %8489 = vst.msk [vmem:[#allocation2 + $0x9b] sm:$0xff] %vm557_vm8, %v8453_v0  ;;  %v8346_v20 = vadd.f32 %v16661_v39, %v8306_v43  ;;  %v16876_v16 = vadd.f32 %v9063_v28, %v16829_v6  ;;  %v8526_v44 = vld [vmem:[#allocation2 + $0x90] sm:$0xff] }
 0x930   : > { %v8956_v33 = vld [vmem:[#allocation2 + $0x92] sm:$0xff] }
 0x931   : > { %v8382_v45 = vadd.f32 %v8346_v20, %v6119_v1  ;;  %12903 = vmatmul.msk.bf16.gmra.mxu1 %vm557_vm8, %v16878_v48  ;;  %v6121_v0 = vld [vmem:[#allocation2 + $0xb3] sm:$0xff]  ;;  %v18413_v20 = vld [vmem:[#allocation51_spill] sm:$0xff] }
 0x933   : > { %v8418_v7 = vmax.f32 %v8382_v45, 0.0 }
 0x934   : > { %v8245_v18 = vpop.f32.mrf.mxu2 }
 0x935   : > { %v8454_v35 = vmul.f32 %v8418_v7, %v18411_v62  ;;  %v8307_v25 = vadd.f32 %v8245_v18, %v16676_v29 }
 0x936   : > { %v16886_v40 = vpop.f32.mrf.mxu1  ;;  %v8583_v6 = vld [vmem:[#allocation2 + $0x99] sm:$0xff] }
 0x937   : > { %v8527_v11 = vld [vmem:[#allocation2 + $0x98] sm:$0xff]  ;;  %8490 = vst.msk [vmem:[#allocation2 + $0xa3] sm:$0xff] %vm557_vm8, %v8454_v35  ;;  %v8347_v17 = vadd.f32 %v16661_v39, %v8307_v25  ;;  %v8853_v15 = vpop.f32.mrf.mxu0  ;;  %v8609_v5 = vpack.c.bf16 %v8583_v6, %v8582_v19 }
 0x938   : > { %v8553_v59 = vpack.c.bf16 %v8527_v11, %v8526_v44  ;;  %v8957_v14 = vld [vmem:[#allocation2 + $0x9a] sm:$0xff] }
 0x939   : > { %v8383_v32 = vadd.f32 %v8347_v17, %v6120_v52  ;;  %12860 = vmatmul.msk.bf16.gmra.mxu3 %vm557_vm8, %v8609_v5  ;;  %12917 = vmatmul.msk.bf16.vlgmr.msrb.gmra.mxu2 %vm557_vm8, %v16706_v57  ;;  %v16900_v57 = vpack.c.bf16 %v8957_v14, %v8956_v33  ;;  %v6122_v5 = vld [vmem:[#allocation2 + $0xbb] sm:$0xff] }
 0x93a   : > { %12882 = vmatmul.msk.bf16.gmra.mxu0 %vm557_vm8, %v8553_v59 }
 0x93b   : > { %v8419_v29 = vmax.f32 %v8383_v32, 0.0 }
 0x93c   : > { %v8248_v4 = vpop.f32.mrf.mxu2  ;;  %v8694_v27 = vpop.f32.mrf.mxu3 }
 0x93d   : > { %v8455_v55 = vmul.f32 %v8419_v29, %v18412_v26  ;;  %v8308_v47 = vadd.f32 %v8248_v4, %v16684_v50  ;;  %v8854_v60 = vadd.f32 %v8853_v15, %v8694_v27  ;;  %v18414_v4 = vld [vmem:[#allocation52_spill] sm:$0xff] }
 0x93e   : > { %v9068_v10 = vpop.f32.mrf.mxu1  ;;  %v8584_v18 = vld [vmem:[#allocation2 + $0xa1] sm:$0xff] }
 0x93f   : > { %8491 = vst.msk [vmem:[#allocation2 + $0xab] sm:$0xff] %vm557_vm8, %v8455_v55  ;;  %v8348_v51 = vadd.f32 %v16661_v39, %v8308_v47  ;;  %v8855_v8 = vpop.f32.mrf.mxu0  ;;  %v16898_v34 = vadd.f32 %v9068_v10, %v8854_v60  ;;  %v8528_v25 = vld [vmem:[#allocation2 + $0xa0] sm:$0xff] }
 0x940   : > { %v8958_v47 = vld [vmem:[#allocation2 + $0xa2] sm:$0xff] }
 0x941   : > { %v8384_v43 = vadd.f32 %v8348_v51, %v6121_v0  ;;  %12904 = vmatmul.msk.bf16.gmra.mxu1 %vm557_vm8, %v16900_v57  ;;  %v6123_v51 = vld [vmem:[#allocation2 + $0xc3] sm:$0xff] }
 0x943   : > { %v8420_v28 = vmax.f32 %v8384_v43, 0.0 }
 0x944   : > { %v8250_v12 = vpop.f32.mrf.mxu2  ;;  %v8696_v50 = vpop.f32.mrf.mxu3 }
 0x945   : > { %v8456_v1 = vmul.f32 %v8420_v28, %v18413_v20  ;;  %v8309_v45 = vadd.f32 %v8250_v12, %v16694_v38  ;;  %v8856_v7 = vadd.f32 %v8855_v8, %v8696_v50  ;;  %v18415_v28 = vld [vmem:[#allocation53_spill] sm:$0xff] }
 0x946   : > { %v9070_v62 = vpop.f32.mrf.mxu1  ;;  %v8585_v35 = vld [vmem:[#allocation2 + $0xa9] sm:$0xff] }
 0x947   : > { %v8529_v19 = vld [vmem:[#allocation2 + $0xa8] sm:$0xff]  ;;  %8492 = vst.msk [vmem:[#allocation2 + $0xb3] sm:$0xff] %vm557_vm8, %v8456_v1  ;;  %v8349_v6 = vadd.f32 %v16661_v39, %v8309_v45  ;;  %v8858_v44 = vpop.f32.mrf.mxu0  ;;  %v16908_v11 = vadd.f32 %v9070_v62, %v8856_v7  ;;  %v8610_v17 = vpack.c.bf16 %v8585_v35, %v8584_v18 }
 0x948   : > { %v8554_v15 = vpack.c.bf16 %v8529_v19, %v8528_v25  ;;  %v8959_v29 = vld [vmem:[#allocation2 + $0xaa] sm:$0xff] }
 0x949   : > { %v8385_v59 = vadd.f32 %v8349_v6, %v6122_v5  ;;  %12861 = vmatmul.msk.bf16.gmra.mxu3 %vm557_vm8, %v8610_v17  ;;  %12918 = vmatmul.msk.bf16.gmra.mxu2 %vm557_vm8, %v16729_v37  ;;  %v16920_v37 = vpack.c.bf16 %v8959_v29, %v8958_v47  ;;  %v6124_v17 = vld [vmem:[#allocation2 + $0xcb] sm:$0xff] }
 0x94a   : > { %12883 = vmatmul.msk.bf16.gmra.mxu0 %vm557_vm8, %v8554_v15 }
 0x94b   : > { %v8421_v38 = vmax.f32 %v8385_v59, 0.0 }
 0x94c   : > { %v8253_v52 = vpop.f32.mrf.mxu2  ;;  %v8699_v32 = vpop.f32.mrf.mxu3 }
 0x94d   : > { %v8457_v27 = vmul.f32 %v8421_v38, %v18414_v4  ;;  %v8310_v14 = vadd.f32 %v8253_v52, %v16704_v46  ;;  %v8859_v26 = vadd.f32 %v8858_v44, %v8699_v32  ;;  %v18416_v52 = vld [vmem:[#allocation54_spill] sm:$0xff] }
 0x94e   : > { %v9073_v55 = vpop.f32.mrf.mxu1  ;;  %v8586_v1 = vld [vmem:[#allocation2 + $0xb1] sm:$0xff] }
 0x94f   : > { %8493 = vst.msk [vmem:[#allocation2 + $0xbb] sm:$0xff] %vm557_vm8, %v8457_v27  ;;  %v8350_v60 = vadd.f32 %v16661_v39, %v8310_v14  ;;  %v8860_v10 = vpop.f32.mrf.mxu0  ;;  %v16918_v33 = vadd.f32 %v9073_v55, %v8859_v26  ;;  %v8530_v18 = vld [vmem:[#allocation2 + $0xb0] sm:$0xff] }
 0x950   : > { %v8960_v14 = vld [vmem:[#allocation2 + $0xb2] sm:$0xff] }
 0x951   : > { %v8386_v8 = vadd.f32 %v8350_v60, %v6123_v51  ;;  %12905 = vmatmul.msk.bf16.gmra.mxu1 %vm557_vm8, %v16920_v37  ;;  %v6125_v60 = vld [vmem:[#allocation2 + $0xd3] sm:$0xff] }
 0x953   : > { %v8422_v0 = vmax.f32 %v8386_v8, 0.0 }
 0x954   : > { %v8255_v43 = vpop.f32.mrf.mxu2  ;;  %v8701_v46 = vpop.f32.mrf.mxu3 }
 0x955   : > { %v8458_v12 = vmul.f32 %v8422_v0, %v18415_v28  ;;  %v8311_v50 = vadd.f32 %v8255_v43, %v16717_v41  ;;  %v8861_v20 = vadd.f32 %v8860_v10, %v8701_v46  ;;  %v18417_v0 = vld [vmem:[#allocation23_spill] sm:$0xff] }
 0x956   : > { %v9075_v45 = vpop.f32.mrf.mxu1  ;;  %v8587_v7 = vld [vmem:[#allocation2 + $0xb9] sm:$0xff] }
 0x957   : > { %v8531_v62 = vld [vmem:[#allocation2 + $0xb8] sm:$0xff]  ;;  %8494 = vst.msk [vmem:[#allocation2 + $0xc3] sm:$0xff] %vm557_vm8, %v8458_v12  ;;  %v8351_v35 = vadd.f32 %v16661_v39, %v8311_v50  ;;  %v8863_v25 = vpop.f32.mrf.mxu0  ;;  %v16928_v19 = vadd.f32 %v9075_v45, %v8861_v20  ;;  %v8611_v6 = vpack.c.bf16 %v8587_v7, %v8586_v1 }
 0x958   : > { %v8555_v44 = vpack.c.bf16 %v8531_v62, %v8530_v18  ;;  %v8961_v38 = vld [vmem:[#allocation2 + $0xba] sm:$0xff] }
 0x959   : > { %v8387_v15 = vadd.f32 %v8351_v35, %v6124_v17  ;;  %12862 = vmatmul.msk.bf16.gmra.mxu3 %vm557_vm8, %v8611_v6  ;;  %12919 = vmatmul.msk.bf16.gmra.mxu2 %vm557_vm8, %v16752_v22  ;;  %v16940_v22 = vpack.c.bf16 %v8961_v38, %v8960_v14  ;;  %v6126_v6 = vld [vmem:[#allocation2 + $0xdb] sm:$0xff] }
 0x95a   : > { %12884 = vmatmul.msk.bf16.gmra.mxu0 %vm557_vm8, %v8555_v44 }
 0x95b   : > { %v8423_v41 = vmax.f32 %v8387_v15, 0.0 }
 0x95c   : > { %v8258_v5 = vpop.f32.mrf.mxu2  ;;  %v8704_v59 = vpop.f32.mrf.mxu3 }
 0x95d   : > { %v8459_v32 = vmul.f32 %v8423_v41, %v18416_v52  ;;  %v8312_v29 = vadd.f32 %v8258_v5, %v16727_v36  ;;  %v8864_v4 = vadd.f32 %v8863_v25, %v8704_v59  ;;  %v18418_v5 = vld [vmem:[#allocation21_spill] sm:$0xff] }
 0x95e   : > { %v9078_v27 = vpop.f32.mrf.mxu1  ;;  %v8588_v12 = vld [vmem:[#allocation2 + $0xc1] sm:$0xff] }
 0x95f   : > { %8495 = vst.msk [vmem:[#allocation2 + $0xcb] sm:$0xff] %vm557_vm8, %v8459_v32  ;;  %v8352_v26 = vadd.f32 %v16661_v39, %v8312_v29  ;;  %v8865_v55 = vpop.f32.mrf.mxu0  ;;  %v16938_v47 = vadd.f32 %v9078_v27, %v8864_v4  ;;  %v8532_v1 = vld [vmem:[#allocation2 + $0xc0] sm:$0xff] }
 0x960   : > { %v8962_v29 = vld [vmem:[#allocation2 + $0xc2] sm:$0xff] }
 0x961   : > { %v8388_v10 = vadd.f32 %v8352_v26, %v6125_v60  ;;  %12906 = vmatmul.msk.bf16.gmra.mxu1 %vm557_vm8, %v16940_v22  ;;  %v6127_v26 = vld [vmem:[#allocation2 + $0xe3] sm:$0xff] }
 0x963   : > { %v8424_v51 = vmax.f32 %v8388_v10, 0.0 }
 0x964   : > { %v8260_v8 = vpop.f32.mrf.mxu2  ;;  %v8706_v36 = vpop.f32.mrf.mxu3 }
 0x965   : > { %v8460_v43 = vmul.f32 %v8424_v51, %v18417_v0  ;;  %v8313_v46 = vadd.f32 %v8260_v8, %v16740_v2  ;;  %v8866_v28 = vadd.f32 %v8865_v55, %v8706_v36  ;;  %v18419_v51 = vld [vmem:[#allocation22_spill] sm:$0xff] }
 0x966   : > { %v9080_v50 = vpop.f32.mrf.mxu1  ;;  %v8589_v20 = vld [vmem:[#allocation2 + $0xc9] sm:$0xff] }
 0x967   : > { %v8533_v45 = vld [vmem:[#allocation2 + $0xc8] sm:$0xff]  ;;  %8496 = vst.msk [vmem:[#allocation2 + $0xd3] sm:$0xff] %vm557_vm8, %v8460_v43  ;;  %v8353_v7 = vadd.f32 %v16661_v39, %v8313_v46  ;;  %v8868_v18 = vpop.f32.mrf.mxu0  ;;  %v16948_v62 = vadd.f32 %v9080_v50, %v8866_v28  ;;  %v8612_v35 = vpack.c.bf16 %v8589_v20, %v8588_v12  ;;  %v16970_v50 = vld [vmem:[%s18118_s9] ss:$0 sm:$0xff] }
 0x968   : > { %v8556_v25 = vpack.c.bf16 %v8533_v45, %v8532_v1  ;;  %v8963_v41 = vld [vmem:[#allocation2 + $0xca] sm:$0xff] }
 0x969   : > { %v8389_v44 = vadd.f32 %v8353_v7, %v6126_v6  ;;  %12863 = vmatmul.msk.bf16.gmra.mxu3 %vm557_vm8, %v8612_v35  ;;  %12920 = vmatmul.msk.bf16.gmra.mxu2 %vm557_vm8, %v16775_v23  ;;  %v16960_v23 = vpack.c.bf16 %v8963_v41, %v8962_v29 }
 0x96a   : > { %12885 = vmatmul.msk.bf16.gmra.mxu0 %vm557_vm8, %v8556_v25 }
 0x96b   : > { %v8425_v2 = vmax.f32 %v8389_v44, 0.0 }
 0x96c   : > { %v8263_v17 = vpop.f32.mrf.mxu2  ;;  %v8709_v15 = vpop.f32.mrf.mxu3 }
 0x96d   : > { %v8461_v59 = vmul.f32 %v8425_v2, %v18418_v5  ;;  %v8314_v38 = vadd.f32 %v8263_v17, %v16750_v63  ;;  %v8869_v52 = vadd.f32 %v8868_v18, %v8709_v15  ;;  %v6128_v18 = vld [vmem:[#allocation2 + $0xeb] sm:$0xff] }
 0x96e   : > { %v9083_v32 = vpop.f32.mrf.mxu1  ;;  %v8590_v43 = vld [vmem:[#allocation2 + $0xd1] sm:$0xff]  ;;  %v18420_v17 = vld [vmem:[#allocation24_spill] sm:$0xff] }
 0x96f   : > { %8497 = vst.msk [vmem:[#allocation2 + $0xdb] sm:$0xff] %vm557_vm8, %v8461_v59  ;;  %v8354_v4 = vadd.f32 %v16661_v39, %v8314_v38  ;;  %v8870_v27 = vpop.f32.mrf.mxu0  ;;  %v16958_v14 = vadd.f32 %v9083_v32, %v8869_v52  ;;  %v8534_v28 = vld [vmem:[#allocation2 + $0xd0] sm:$0xff] }
 0x970   : > { %v8964_v38 = vld [vmem:[#allocation2 + $0xd2] sm:$0xff] }
 0x971   : > { %v8390_v55 = vadd.f32 %v8354_v4, %v6127_v26  ;;  %12907 = vmatmul.msk.bf16.gmra.mxu1 %vm557_vm8, %v16960_v23  ;;  %v6129_v4 = vld [vmem:[#allocation2 + $0xf3] sm:$0xff] }
 0x973   : > { %v8426_v60 = vmax.f32 %v8390_v55, 0.0 }
 0x974   : > { %v8265_v10 = vpop.f32.mrf.mxu2  ;;  %v8711_v63 = vpop.f32.mrf.mxu3 }
 0x975   : > { %v8462_v8 = vmul.f32 %v8426_v60, %v18419_v51  ;;  %v8315_v36 = vadd.f32 %v8265_v10, %v16763_v24  ;;  %v8871_v0 = vadd.f32 %v8870_v27, %v8711_v63  ;;  %v18421_v60 = vld [vmem:[#allocation25_spill] sm:$0xff] }
 0x976   : > { %v9085_v39 = vpop.f32.mrf.mxu1  ;;  %v8591_v46 = vld [vmem:[#allocation2 + $0xd9] sm:$0xff] }
 0x977   : > { %v8535_v12 = vld [vmem:[#allocation2 + $0xd8] sm:$0xff]  ;;  %8498 = vst.msk [vmem:[#allocation2 + $0xe3] sm:$0xff] %vm557_vm8, %v8462_v8  ;;  %v8355_v20 = vadd.f32 %v16970_v50, %v8315_v36  ;;  %v8873_v1 = vpop.f32.mrf.mxu0  ;;  %v16973_v45 = vadd.f32 %v9085_v39, %v8871_v0  ;;  %v8613_v7 = vpack.c.bf16 %v8591_v46, %v8590_v43 }
 0x978   : > { %v8557_v24 = vpack.c.bf16 %v8535_v12, %v8534_v28  ;;  %v8965_v2 = vld [vmem:[#allocation2 + $0xda] sm:$0xff] }
 0x979   : > { %v8391_v35 = vadd.f32 %v8355_v20, %v6128_v18  ;;  %12864 = vmatmul.msk.bf16.gmra.mxu3 %vm557_vm8, %v8613_v7  ;;  %12921 = vmatmul.msk.bf16.gmra.mxu2 %vm557_vm8, %v16798_v9  ;;  %v16985_v9 = vpack.c.bf16 %v8965_v2, %v8964_v38  ;;  %v6130_v7 = vld [vmem:[#allocation2 + $0xfb] sm:$0xff] }
 0x97a   : > { %12886 = vmatmul.msk.bf16.gmra.mxu0 %vm557_vm8, %v8557_v24 }
 0x97b   : > { %v8427_v25 = vmax.f32 %v8391_v35, 0.0 }
 0x97c   : > { %v8268_v6 = vpop.f32.mrf.mxu2  ;;  %v8714_v44 = vpop.f32.mrf.mxu3 }
 0x97d   : > { %v8463_v15 = vmul.f32 %v8427_v25, %v18420_v17  ;;  %v8316_v41 = vadd.f32 %v8268_v6, %v16773_v13  ;;  %v8874_v5 = vadd.f32 %v8873_v1, %v8714_v44  ;;  %v18422_v6 = vld [vmem:[#allocation26_spill] sm:$0xff] }
 0x97e   : > { %v9088_v59 = vpop.f32.mrf.mxu1  ;;  %v8592_v8 = vld [vmem:[#allocation2 + $0xe1] sm:$0xff] }
 0x97f   : > { %8499 = vst.msk [vmem:[#allocation2 + $0xeb] sm:$0xff] %vm557_vm8, %v8463_v15  ;;  %v8356_v52 = vadd.f32 %v16970_v50, %v8316_v41  ;;  %v8875_v32 = vpop.f32.mrf.mxu0  ;;  %v16983_v29 = vadd.f32 %v9088_v59, %v8874_v5  ;;  %v8536_v43 = vld [vmem:[#allocation2 + $0xe0] sm:$0xff] }
 0x980   : > { %v8966_v41 = vld [vmem:[#allocation2 + $0xe2] sm:$0xff] }
 0x981   : > { %v8392_v27 = vadd.f32 %v8356_v52, %v6129_v4  ;;  %12908 = vmatmul.msk.bf16.gmra.mxu1 %vm557_vm8, %v16985_v9  ;;  %v6131_v52 = vld [vmem:[#allocation2 + $0x103] sm:$0xff] }
 0x983   : > { %v8428_v26 = vmax.f32 %v8392_v27, 0.0 }
 0x984   : > { %v8270_v55 = vpop.f32.mrf.mxu2  ;;  %v8716_v13 = vpop.f32.mrf.mxu3 }
 0x985   : > { %v8464_v10 = vmul.f32 %v8428_v26, %v18421_v60  ;;  %v8317_v63 = vadd.f32 %v8270_v55, %v16786_v31  ;;  %v8876_v51 = vadd.f32 %v8875_v32, %v8716_v13  ;;  %v18423_v26 = vld [vmem:[#allocation27_spill] sm:$0xff] }
 0x986   : > { %v9090_v36 = vpop.f32.mrf.mxu1  ;;  %v8593_v0 = vld [vmem:[#allocation2 + $0xe9] sm:$0xff] }
 0x987   : > { %v8537_v39 = vld [vmem:[#allocation2 + $0xe8] sm:$0xff]  ;;  %8500 = vst.msk [vmem:[#allocation2 + $0xf3] sm:$0xff] %vm557_vm8, %v8464_v10  ;;  %v8357_v46 = vadd.f32 %v16970_v50, %v8317_v63  ;;  %v8878_v28 = vpop.f32.mrf.mxu0  ;;  %v16993_v12 = vadd.f32 %v9090_v36, %v8876_v51  ;;  %v8614_v20 = vpack.c.bf16 %v8593_v0, %v8592_v8 }
 0x988   : > { %v8558_v1 = vpack.c.bf16 %v8537_v39, %v8536_v43  ;;  %v8967_v25 = vld [vmem:[#allocation2 + $0xea] sm:$0xff] }
 0x989   : > { %v8393_v24 = vadd.f32 %v8357_v46, %v6130_v7  ;;  %12865 = vmatmul.msk.bf16.gmra.mxu3 %vm557_vm8, %v8614_v20  ;;  %12922 = vmatmul.msk.bf16.gmra.mxu2 %vm557_vm8, %v16825_v53  ;;  %v17005_v53 = vpack.c.bf16 %v8967_v25, %v8966_v41  ;;  %v6132_v20 = vld [vmem:[#allocation2 + $0x10b] sm:$0xff] }
 0x98a   : > { %12887 = vmatmul.msk.bf16.gmra.mxu0 %vm557_vm8, %v8558_v1 }
 0x98b   : > { %v8429_v31 = vmax.f32 %v8393_v24, 0.0 }
 0x98c   : > { %v8273_v18 = vpop.f32.mrf.mxu2  ;;  %v8719_v35 = vpop.f32.mrf.mxu3 }
 0x98d   : > { %v8465_v44 = vmul.f32 %v8429_v31, %v18422_v6  ;;  %v8318_v2 = vadd.f32 %v8273_v18, %v16796_v58  ;;  %v8879_v17 = vadd.f32 %v8878_v28, %v8719_v35  ;;  %v18424_v18 = vld [vmem:[#allocation28_spill] sm:$0xff] }
 0x98e   : > { %v9093_v15 = vpop.f32.mrf.mxu1  ;;  %v8594_v10 = vld [vmem:[#allocation2 + $0xf1] sm:$0xff] }
 0x98f   : > { %8501 = vst.msk [vmem:[#allocation2 + $0xfb] sm:$0xff] %vm557_vm8, %v8465_v44  ;;  %v8358_v5 = vadd.f32 %v16970_v50, %v8318_v2  ;;  %v8880_v59 = vpop.f32.mrf.mxu0  ;;  %v17003_v38 = vadd.f32 %v9093_v15, %v8879_v17  ;;  %v8538_v8 = vld [vmem:[#allocation2 + $0xf0] sm:$0xff] }
 0x990   : > { %v8968_v2 = vld [vmem:[#allocation2 + $0xf2] sm:$0xff] }
 0x991   : > { %v8394_v32 = vadd.f32 %v8358_v5, %v6131_v52  ;;  %12909 = vmatmul.msk.bf16.gmra.mxu1 %vm557_vm8, %v17005_v53  ;;  %v6133_v5 = vld [vmem:[#allocation2 + $0x113] sm:$0xff] }
 0x993   : > { %v8430_v4 = vmax.f32 %v8394_v32, 0.0 }
 0x994   : > { %v8275_v27 = vpop.f32.mrf.mxu2  ;;  %v8721_v58 = vpop.f32.mrf.mxu3 }
 0x995   : > { %v8466_v55 = vmul.f32 %v8430_v4, %v18423_v26  ;;  %v8319_v13 = vadd.f32 %v8275_v27, %v16809_v49  ;;  %v8881_v60 = vadd.f32 %v8880_v59, %v8721_v58  ;;  %v18425_v27 = vld [vmem:[#allocation29_spill] sm:$0xff] }
 0x996   : > { %v9095_v63 = vpop.f32.mrf.mxu1  ;;  %v8595_v51 = vld [vmem:[#allocation2 + $0xf9] sm:$0xff] }
 0x997   : > { %v8539_v36 = vld [vmem:[#allocation2 + $0xf8] sm:$0xff]  ;;  %8502 = vst.msk [vmem:[#allocation2 + $0x103] sm:$0xff] %vm557_vm8, %v8466_v55  ;;  %v8359_v0 = vadd.f32 %v16970_v50, %v8319_v13  ;;  %v8883_v43 = vpop.f32.mrf.mxu0  ;;  %v17013_v39 = vadd.f32 %v9095_v63, %v8881_v60  ;;  %v8615_v46 = vpack.c.bf16 %v8595_v51, %v8594_v10 }
 0x998   : > { %v8559_v28 = vpack.c.bf16 %v8539_v36, %v8538_v8  ;;  %v8969_v31 = vld [vmem:[#allocation2 + $0xfa] sm:$0xff] }
 0x999   : > { %v8395_v1 = vadd.f32 %v8359_v0, %v6132_v20  ;;  %12866 = vmatmul.msk.bf16.gmra.mxu3 %vm557_vm8, %v8615_v46  ;;  %12923 = vmatmul.msk.bf16.gmra.mxu2 %vm557_vm8, %v16850_v30  ;;  %v17025_v30 = vpack.c.bf16 %v8969_v31, %v8968_v2  ;;  %v18426_v31 = vld [vmem:[#allocation30_spill] sm:$0xff] }
 0x99a   : > { %12888 = vmatmul.msk.bf16.gmra.mxu0 %vm557_vm8, %v8559_v28  ;;  %v13304_v28 = vld [vmem:[%s18119_s10 + $0x28] sm:$0xff] }
 0x99b   : > { %v8431_v49 = vmax.f32 %v8395_v1, 0.0  ;;  %9814 = vmatpush.bf16.msra.mxu0 %v13304_v28  ;;  %v6136_v28 = vld [vmem:[#allocation2 + $0x12b] sm:$0xff] }
 0x99c   : > { %v8278_v7 = vpop.f32.mrf.mxu2  ;;  %v8724_v24 = vpop.f32.mrf.mxu3 }
 0x99d   : > { %v8467_v35 = vmul.f32 %v8431_v49, %v18424_v18  ;;  %v8320_v25 = vadd.f32 %v8278_v7, %v16823_v42  ;;  %v8884_v6 = vadd.f32 %v8883_v43, %v8724_v24  ;;  %v13303_v42 = vld [vmem:[%s18119_s10 + $0x20] sm:$0xff] }
 0x99e   : > { %v9098_v44 = vpop.f32.mrf.mxu1  ;;  %9563 = vmatpush.bf16.msrb.mxu3 %v13303_v42  ;;  %v8596_v13 = vld [vmem:[#allocation2 + $0x101] sm:$0xff] }
 0x99f   : > { %8503 = vst.msk [vmem:[#allocation2 + $0x10b] sm:$0xff] %vm557_vm8, %v8467_v35  ;;  %v8360_v17 = vadd.f32 %v16970_v50, %v8320_v25  ;;  %v8885_v15 = vpop.f32.mrf.mxu0  ;;  %v17023_v41 = vadd.f32 %v9098_v44, %v8884_v6  ;;  %v8540_v63 = vld [vmem:[#allocation2 + $0x100] sm:$0xff] }
 0x9a0   : > { %v8970_v44 = vld [vmem:[#allocation2 + $0x102] sm:$0xff] }
 0x9a1   : > { %v8396_v59 = vadd.f32 %v8360_v17, %v6133_v5  ;;  %12910 = vmatmul.msk.bf16.gmra.mxu1 %vm557_vm8, %v17025_v30  ;;  %v13305_v5 = vld [vmem:[%s18119_s10 + $0x30] sm:$0xff] }
 0x9a2   : > { %10065 = vmatpush.bf16.msra.mxu1 %v13305_v5  ;;  %v9441_v5 = vld [vmem:[#allocation2 + $0x1b] sm:$0xff] }
 0x9a3   : > { %v8432_v52 = vmax.f32 %v8396_v59, 0.0  ;;  %v6135_v59 = vld [vmem:[#allocation2 + $0x123] sm:$0xff] }
 0x9a4   : > { %v8280_v32 = vpop.f32.mrf.mxu2  ;;  %v8726_v4 = vpop.f32.mrf.mxu3 }
 0x9a5   : > { %v8468_v58 = vmul.f32 %v8432_v52, %v18425_v27  ;;  %v8321_v26 = vadd.f32 %v8280_v32, %v16838_v3  ;;  %v8886_v55 = vadd.f32 %v8885_v15, %v8726_v4  ;;  %v6134_v3 = vld [vmem:[#allocation2 + $0x11b] sm:$0xff] }
 0x9a6   : > { %v9100_v60 = vpop.f32.mrf.mxu1  ;;  %v8597_v10 = vld [vmem:[#allocation2 + $0x109] sm:$0xff]  ;;  %v18427_v4 = vld [vmem:[#allocation31_spill] sm:$0xff] }
 0x9a7   : > { %v8541_v51 = vld [vmem:[#allocation2 + $0x108] sm:$0xff]  ;;  %8504 = vst.msk [vmem:[#allocation2 + $0x113] sm:$0xff] %vm557_vm8, %v8468_v58  ;;  %v8361_v8 = vadd.f32 %v16970_v50, %v8321_v26  ;;  %v8888_v36 = vpop.f32.mrf.mxu0  ;;  %v17036_v0 = vadd.f32 %v9100_v60, %v8886_v55  ;;  %v8616_v43 = vpack.c.bf16 %v8597_v10, %v8596_v13 }
 0x9a8   : > { %v8560_v46 = vpack.c.bf16 %v8541_v51, %v8540_v63  ;;  %v8971_v24 = vld [vmem:[#allocation2 + $0x10a] sm:$0xff] }
 0x9a9   : > { %v8397_v20 = vadd.f32 %v8361_v8, %v6134_v3  ;;  %12867 = vmatmul.msk.bf16.gmra.mxu3 %vm557_vm8, %v8616_v43  ;;  %12924 = vmatmul.msk.bf16.gmra.mxu2 %vm557_vm8, %v16878_v48  ;;  %v17051_v15 = vpack.c.bf16 %v8971_v24, %v8970_v44  ;;  %v8851_v44 = vadd.f32 %v16873_v21, %v16882_v61 }
 0x9aa   : > { %12889 = vmatmul.msk.bf16.gmra.mxu0 %vm557_vm8, %v8560_v46 }
 0x9ab   : > { %v8433_v1 = vmax.f32 %v8397_v20, 0.0 }
 0x9ac   : > { %v8283_v49 = vpop.f32.mrf.mxu2  ;;  %v8729_v7 = vpop.f32.mrf.mxu3 }
 0x9ad   : > { %v8469_v18 = vmul.f32 %v8433_v1, %v18426_v31  ;;  %v8322_v35 = vadd.f32 %v8283_v49, %v16848_v56  ;;  %v8889_v25 = vadd.f32 %v8888_v36, %v8729_v7  ;;  %v18428_v7 = vld [vmem:[#allocation32_spill] sm:$0xff] }
 0x9ae   : > { %v9103_v6 = vpop.f32.mrf.mxu1  ;;  %v8598_v55 = vld [vmem:[#allocation2 + $0x111] sm:$0xff] }
 0x9af   : > { %8505 = vst.msk [vmem:[#allocation2 + $0x11b] sm:$0xff] %vm557_vm8, %v8469_v18  ;;  %v8362_v2 = vadd.f32 %v16970_v50, %v8322_v35  ;;  %v8890_v17 = vpop.f32.mrf.mxu0  ;;  %v17049_v48 = vadd.f32 %v9103_v6, %v8889_v25  ;;  %v8542_v10 = vld [vmem:[#allocation2 + $0x110] sm:$0xff] }
 0x9b0   : > { %v8972_v35 = vld [vmem:[#allocation2 + $0x112] sm:$0xff] }
 0x9b1   : > { %v8398_v42 = vadd.f32 %v8362_v2, %v6135_v59  ;;  %12911 = vmatmul.msk.bf16.gmra.mxu1 %vm557_vm8, %v17051_v15  ;;  %v9154_v2 = vadd.f32 %v16886_v40, %v8851_v44  ;;  %v9944_v44 = vld [vmem:[#allocation2 + $0x34] sm:$0xff] }
 0x9b3   : > { %v8434_v56 = vmax.f32 %v8398_v42, 0.0 }
 0x9b4   : > { %v8285_v52 = vpop.f32.mrf.mxu2  ;;  %v8731_v32 = vpop.f32.mrf.mxu3 }
 0x9b5   : > { %v8470_v27 = vmul.f32 %v8434_v56, %v18427_v4  ;;  %v8323_v58 = vadd.f32 %v8285_v52, %v16864_v54  ;;  %v8891_v26 = vadd.f32 %v8890_v17, %v8731_v32  ;;  %v9692_v56 = vld [vmem:[#allocation2 + $0x1c] sm:$0xff]  ;;  %v9440_v32 = vld [vmem:[#allocation2 + $0x13] sm:$0xff] }
 0x9b6   : > { %v9105_v13 = vpop.f32.mrf.mxu1  ;;  %v8599_v60 = vld [vmem:[#allocation2 + $0x119] sm:$0xff] }
 0x9b7   : > { %v8543_v63 = vld [vmem:[#allocation2 + $0x118] sm:$0xff]  ;;  %8506 = vst.msk [vmem:[#allocation2 + $0x123] sm:$0xff] %vm557_vm8, %v8470_v27  ;;  %v8363_v51 = vadd.f32 %v16970_v50, %v8323_v58  ;;  %v8893_v8 = vpop.f32.mrf.mxu0  ;;  %v17062_v36 = vadd.f32 %v9105_v13, %v8891_v26  ;;  %v8617_v43 = vpack.c.bf16 %v8599_v60, %v8598_v55  ;;  %v9476_v58 = vpack.c.bf16 %v9441_v5, %v9440_v32  ;;  %v9943_v55 = vld [vmem:[#allocation2 + $0x2c] sm:$0xff] }
 0x9b8   : > { %v8561_v46 = vpack.c.bf16 %v8543_v63, %v8542_v10  ;;  %v8973_v49 = vld [vmem:[#allocation2 + $0x11a] sm:$0xff]  ;;  %v9942_v63 = vld [vmem:[#allocation2 + $0x24] sm:$0xff] }
 0x9b9   : > { %v8399_v3 = vadd.f32 %v8363_v51, %v6136_v28  ;;  %12868 = vmatmul.msk.bf16.gmra.mxu3 %vm557_vm8, %v8617_v43  ;;  %12925 = vmatmul.msk.bf16.gmra.mxu2 %vm557_vm8, %v16900_v57  ;;  %v17075_v57 = vpack.c.bf16 %v8973_v49, %v8972_v35  ;;  %v9691_v26 = vld [vmem:[#allocation2 + $0x14] sm:$0xff]  ;;  %v9978_v43 = vpack.c.bf16 %v9943_v55, %v9942_v63  ;;  %v9443_v28 = vld [vmem:[#allocation2 + $0x2b] sm:$0xff] }
 0x9ba   : > { %12890 = vmatmul.msk.bf16.gmra.mxu0 %vm557_vm8, %v8561_v46  ;;  %v9727_v21 = vpack.c.bf16 %v9692_v56, %v9691_v26 }
 0x9bb   : > { %v8435_v54 = vmax.f32 %v8399_v3, 0.0 }
 0x9bc   : > { %v8734_v20 = vpop.f32.mrf.mxu3  ;;  %v9314_v1 = vpop.f32.mrf.mxu2 }
 0x9bd   : > { %v8471_v50 = vmul.f32 %v8435_v54, %v18428_v7  ;;  %v8894_v24 = vadd.f32 %v8893_v8, %v8734_v20  ;;  %v17070_v31 = vadd.f32 %v9314_v1, %v16876_v16  ;;  %v9442_v1 = vld [vmem:[#allocation2 + $0x23] sm:$0xff] }
 0x9be   : > { %v9108_v18 = vpop.f32.mrf.mxu1  ;;  %v9477_v7 = vpack.c.bf16 %v9443_v28, %v9442_v1  ;;  %v9446_v1 = vld [vmem:[#allocation2 + $0x43] sm:$0xff] }
 0x9bf   : > { %8507 = vst.msk [vmem:[#allocation2 + $0x12b] sm:$0xff] %vm557_vm8, %v8471_v50  ;;  %v8895_v25 = vpop.f32.mrf.mxu0  ;;  %v17073_v6 = vadd.f32 %v9108_v18, %v8894_v24  ;;  %v9945_v18 = vld [vmem:[#allocation2 + $0x3c] sm:$0xff] }
 0x9c1   : > { %12912 = vmatmul.msk.bf16.gmra.mxu1 %vm557_vm8, %v17075_v57 }
 0x9c4   : > { %v8736_v17 = vpop.f32.mrf.mxu3  ;;  %v9316_v16 = vpop.f32.mrf.mxu2 }
 0x9c5   : > { %v8896_v59 = vadd.f32 %v8895_v25, %v8736_v17  ;;  %v17082_v42 = vadd.f32 %v9316_v16, %v9154_v2  ;;  %v9979_v16 = vpack.c.bf16 %v9945_v18, %v9944_v44  ;;  %v9949_v18 = vld [vmem:[#allocation2 + $0x5c] sm:$0xff]  ;;  %v9948_v44 = vld [vmem:[#allocation2 + $0x54] sm:$0xff] }
 0x9c6   : > { %v9110_v52 = vpop.f32.mrf.mxu1 }
 0x9c7   : > { %v8898_v4 = vpop.f32.mrf.mxu0  ;;  %v17084_v27 = vadd.f32 %v9110_v52, %v8896_v59  ;;  %v9445_v59 = vld [vmem:[#allocation2 + $0x3b] sm:$0xff] }
 0x9c9   : > { %12926 = vmatmul.msk.bf16.gmra.mxu2 %vm557_vm8, %v16920_v37  ;;  %12939 = vmatmul.msk.bf16.vlgmr.msrb.gmra.mxu3 %vm557_vm8, %v9476_v58 }
 0x9ca   : > { %12961 = vmatmul.msk.bf16.vlgmr.msra.gmra.mxu0 %vm557_vm8, %v9727_v21 }
 0x9cc   : > { %v8739_v61 = vpop.f32.mrf.mxu3  ;;  %v9319_v40 = vpop.f32.mrf.mxu2 }
 0x9cd   : > { %v8899_v13 = vadd.f32 %v8898_v4, %v8739_v61  ;;  %v17091_v60 = vadd.f32 %v9319_v40, %v16898_v34  ;;  %v9444_v4 = vld [vmem:[#allocation2 + $0x33] sm:$0xff] }
 0x9ce   : > { %v9113_v10 = vpop.f32.mrf.mxu1  ;;  %v9478_v26 = vpack.c.bf16 %v9445_v59, %v9444_v4  ;;  %v9947_v40 = vld [vmem:[#allocation2 + $0x4c] sm:$0xff]  ;;  %v9449_v59 = vld [vmem:[#allocation2 + $0x5b] sm:$0xff] }
 0x9cf   : > { %v8900_v51 = vpop.f32.mrf.mxu0  ;;  %v17093_v8 = vadd.f32 %v9113_v10, %v8899_v13  ;;  %v9946_v10 = vld [vmem:[#allocation2 + $0x44] sm:$0xff] }
 0x9d1   : > { %12983 = vmatmul.msk.bf16.vlgmr.msra.gmra.mxu1 %vm557_vm8, %v9978_v43 }
 0x9d4   : > { %v8741_v37 = vpop.f32.mrf.mxu3  ;;  %v9321_v46 = vpop.f32.mrf.mxu2 }
 0x9d5   : > { %v8901_v3 = vadd.f32 %v8900_v51, %v8741_v37  ;;  %v17097_v54 = vadd.f32 %v9321_v46, %v16908_v11  ;;  %v9447_v46 = vld [vmem:[#allocation2 + $0x4b] sm:$0xff] }
 0x9d6   : > { %v9115_v20 = vpop.f32.mrf.mxu1 }
 0x9d7   : > { %v8903_v49 = vpop.f32.mrf.mxu0  ;;  %v17099_v34 = vadd.f32 %v9115_v20, %v8901_v3 }
 0x9d9   : > { %12927 = vmatmul.msk.bf16.gmra.mxu2 %vm557_vm8, %v16940_v22  ;;  %12940 = vmatmul.msk.bf16.gmra.mxu3 %vm557_vm8, %v9477_v7  ;;  %v9479_v7 = vpack.c.bf16 %v9447_v46, %v9446_v1 }
 0x9da   : > { %12962 = vmatmul.msk.bf16.gmra.mxu0 %vm557_vm8, %v9978_v43  ;;  %v9980_v43 = vpack.c.bf16 %v9947_v40, %v9946_v10 }
 0x9dc   : > { %v8744_v50 = vpop.f32.mrf.mxu3  ;;  %v9324_v24 = vpop.f32.mrf.mxu2 }
 0x9dd   : > { %v8904_v35 = vadd.f32 %v8903_v49, %v8744_v50  ;;  %v17106_v11 = vadd.f32 %v9324_v24, %v16918_v33 }
 0x9de   : > { %v9118_v25 = vpop.f32.mrf.mxu1 }
 0x9df   : > { %v8905_v2 = vpop.f32.mrf.mxu0  ;;  %v17108_v17 = vadd.f32 %v9118_v25, %v8904_v35 }
 0x9e1   : > { %12984 = vmatmul.msk.bf16.gmra.mxu1 %vm557_vm8, %v9979_v16 }
 0x9e4   : > { %v8746_v22 = vpop.f32.mrf.mxu3  ;;  %v9326_v5 = vpop.f32.mrf.mxu2 }
 0x9e5   : > { %v8906_v56 = vadd.f32 %v8905_v2, %v8746_v22  ;;  %v17112_v52 = vadd.f32 %v9326_v5, %v16928_v19  ;;  %v9981_v22 = vpack.c.bf16 %v9949_v18, %v9948_v44 }
 0x9e6   : > { %v9120_v32 = vpop.f32.mrf.mxu1 }
 0x9e7   : > { %v8908_v58 = vpop.f32.mrf.mxu0  ;;  %v17114_v33 = vadd.f32 %v9120_v32, %v8906_v56 }
 0x9e9   : > { %12928 = vmatmul.msk.bf16.gmra.mxu2 %vm557_vm8, %v16960_v23  ;;  %12941 = vmatmul.msk.bf16.gmra.mxu3 %vm557_vm8, %v9478_v26 }
 0x9ea   : > { %12963 = vmatmul.msk.bf16.gmra.mxu0 %vm557_vm8, %v9979_v16 }
 0x9ec   : > { %v8749_v21 = vpop.f32.mrf.mxu3  ;;  %v9329_v61 = vpop.f32.mrf.mxu2 }
 0x9ed   : > { %v8909_v55 = vadd.f32 %v8908_v58, %v8749_v21  ;;  %v17121_v19 = vadd.f32 %v9329_v61, %v16938_v47  ;;  %v9448_v58 = vld [vmem:[#allocation2 + $0x53] sm:$0xff] }
 0x9ee   : > { %v9123_v13 = vpop.f32.mrf.mxu1  ;;  %v9480_v21 = vpack.c.bf16 %v9449_v59, %v9448_v58 }
 0x9ef   : > { %v8910_v63 = vpop.f32.mrf.mxu0  ;;  %v17123_v51 = vadd.f32 %v9123_v13, %v8909_v55  ;;  %v9951_v55 = vld [vmem:[#allocation2 + $0x6c] sm:$0xff] }
 0x9f1   : > { %12985 = vmatmul.msk.bf16.gmra.mxu1 %vm557_vm8, %v9980_v43 }
 0x9f4   : > { %v8751_v23 = vpop.f32.mrf.mxu3  ;;  %v9331_v37 = vpop.f32.mrf.mxu2 }
 0x9f5   : > { %v8911_v28 = vadd.f32 %v8910_v63, %v8751_v23  ;;  %v17127_v3 = vadd.f32 %v9331_v37, %v16948_v62  ;;  %v9950_v63 = vld [vmem:[#allocation2 + $0x64] sm:$0xff] }
 0x9f6   : > { %v9125_v20 = vpop.f32.mrf.mxu1  ;;  %v9982_v37 = vpack.c.bf16 %v9951_v55, %v9950_v63  ;;  %v9955_v63 = vld [vmem:[#allocation2 + $0x8c] sm:$0xff] }
 0x9f7   : > { %v8913_v49 = vpop.f32.mrf.mxu0  ;;  %v17129_v47 = vadd.f32 %v9125_v20, %v8911_v28  ;;  %v9451_v28 = vld [vmem:[#allocation2 + $0x6b] sm:$0xff] }
 0x9f9   : > { %12929 = vmatmul.msk.bf16.gmra.mxu2 %vm557_vm8, %v16985_v9  ;;  %12942 = vmatmul.msk.bf16.gmra.mxu3 %vm557_vm8, %v9479_v7  ;;  %v9450_v7 = vld [vmem:[#allocation2 + $0x63] sm:$0xff] }
 0x9fa   : > { %12964 = vmatmul.msk.bf16.gmra.mxu0 %vm557_vm8, %v9980_v43 }
 0x9fc   : > { %v8754_v50 = vpop.f32.mrf.mxu3  ;;  %v9334_v24 = vpop.f32.mrf.mxu2 }
 0x9fd   : > { %v8914_v35 = vadd.f32 %v8913_v49, %v8754_v50  ;;  %v17136_v62 = vadd.f32 %v9334_v24, %v16958_v14  ;;  %v9481_v24 = vpack.c.bf16 %v9451_v28, %v9450_v7  ;;  %v9455_v7 = vld [vmem:[#allocation2 + $0x8b] sm:$0xff] }
 0x9fe   : > { %v9128_v25 = vpop.f32.mrf.mxu1 }
 0x9ff   : > { %v8915_v2 = vpop.f32.mrf.mxu0  ;;  %v17138_v16 = vadd.f32 %v9128_v25, %v8914_v35  ;;  %v9953_v25 = vld [vmem:[#allocation2 + $0x7c] sm:$0xff] }
 0xa01   : > { %12986 = vmatmul.msk.bf16.gmra.mxu1 %vm557_vm8, %v9981_v22 }
 0xa04   : > { %v8756_v9 = vpop.f32.mrf.mxu3  ;;  %v9336_v5 = vpop.f32.mrf.mxu2 }
 0xa05   : > { %v8916_v56 = vadd.f32 %v8915_v2, %v8756_v9  ;;  %v17142_v32 = vadd.f32 %v9336_v5, %v16973_v45 }
 0xa06   : > { %v9130_v4 = vpop.f32.mrf.mxu1 }
 0xa07   : > { %v8918_v26 = vpop.f32.mrf.mxu0  ;;  %v17144_v14 = vadd.f32 %v9130_v4, %v8916_v56  ;;  %v9453_v4 = vld [vmem:[#allocation2 + $0x7b] sm:$0xff] }
 0xa09   : > { %12930 = vmatmul.msk.bf16.gmra.mxu2 %vm557_vm8, %v17005_v53  ;;  %12943 = vmatmul.msk.bf16.gmra.mxu3 %vm557_vm8, %v9480_v21 }
 0xa0a   : > { %12965 = vmatmul.msk.bf16.gmra.mxu0 %vm557_vm8, %v9981_v22  ;;  %v9952_v22 = vld [vmem:[#allocation2 + $0x74] sm:$0xff] }
 0xa0b   : > { %v9983_v59 = vpack.c.bf16 %v9953_v25, %v9952_v22 }
 0xa0c   : > { %v8759_v61 = vpop.f32.mrf.mxu3  ;;  %v9339_v40 = vpop.f32.mrf.mxu2 }
 0xa0d   : > { %v8919_v13 = vadd.f32 %v8918_v26, %v8759_v61  ;;  %v17151_v45 = vadd.f32 %v9339_v40, %v16983_v29  ;;  %v9452_v61 = vld [vmem:[#allocation2 + $0x73] sm:$0xff] }
 0xa0e   : > { %v9133_v10 = vpop.f32.mrf.mxu1  ;;  %v9482_v55 = vpack.c.bf16 %v9453_v4, %v9452_v61  ;;  %v9956_v4 = vld [vmem:[#allocation2 + $0x94] sm:$0xff] }
 0xa0f   : > { %v8920_v43 = vpop.f32.mrf.mxu0  ;;  %v17153_v23 = vadd.f32 %v9133_v10, %v8919_v13 }
 0xa11   : > { %12987 = vmatmul.msk.bf16.gmra.mxu1 %vm557_vm8, %v9982_v37 }
 0xa14   : > { %v8761_v53 = vpop.f32.mrf.mxu3  ;;  %v9341_v46 = vpop.f32.mrf.mxu2 }
 0xa15   : > { %v8921_v20 = vadd.f32 %v8920_v43, %v8761_v53  ;;  %v17157_v1 = vadd.f32 %v9341_v46, %v16993_v12  ;;  %v9954_v53 = vld [vmem:[#allocation2 + $0x84] sm:$0xff] }
 0xa16   : > { %v9135_v49 = vpop.f32.mrf.mxu1 }
 0xa17   : > { %v8923_v50 = vpop.f32.mrf.mxu0  ;;  %v17159_v29 = vadd.f32 %v9135_v49, %v8921_v20  ;;  %v9984_v20 = vpack.c.bf16 %v9955_v63, %v9954_v53 }
 0xa19   : > { %12931 = vmatmul.msk.bf16.gmra.mxu2 %vm557_vm8, %v17025_v30  ;;  %12944 = vmatmul.msk.bf16.gmra.mxu3 %vm557_vm8, %v9481_v24 }
 0xa1a   : > { %12966 = vmatmul.msk.bf16.gmra.mxu0 %vm557_vm8, %v9982_v37 }
 0xa1c   : > { %v8764_v18 = vpop.f32.mrf.mxu3  ;;  %v9344_v35 = vpop.f32.mrf.mxu2 }
 0xa1d   : > { %v8924_v44 = vadd.f32 %v8923_v50, %v8764_v18  ;;  %v17166_v12 = vadd.f32 %v9344_v35, %v17003_v38  ;;  %v9454_v35 = vld [vmem:[#allocation2 + $0x83] sm:$0xff] }
 0xa1e   : > { %v9138_v2 = vpop.f32.mrf.mxu1 }
 0xa1f   : > { %v8925_v9 = vpop.f32.mrf.mxu0  ;;  %v17168_v5 = vadd.f32 %v9138_v2, %v8924_v44  ;;  %v9483_v44 = vpack.c.bf16 %v9455_v7, %v9454_v35  ;;  %v13306_v2 = vld [vmem:[%s18119_s10 + $0x38] sm:$0xff] }
 0xa20   : > { %10316 = vmatpush.bf16.msra.mxu2 %v13306_v2 }
 0xa21   : > { %12988 = vmatmul.msk.bf16.gmra.mxu1 %vm557_vm8, %v9983_v59 }
 0xa24   : > { %v8766_v30 = vpop.f32.mrf.mxu3  ;;  %v9346_v56 = vpop.f32.mrf.mxu2 }
 0xa25   : > { %v8926_v58 = vadd.f32 %v8925_v9, %v8766_v30  ;;  %v17172_v26 = vadd.f32 %v9346_v56, %v17013_v39  ;;  %v9957_v9 = vld [vmem:[#allocation2 + $0x9c] sm:$0xff] }
 0xa26   : > { %v9140_v21 = vpop.f32.mrf.mxu1 }
 0xa27   : > { %v8928_v40 = vpop.f32.mrf.mxu0  ;;  %v17174_v38 = vadd.f32 %v9140_v21, %v8926_v58  ;;  %v9985_v21 = vpack.c.bf16 %v9957_v9, %v9956_v4  ;;  %v10194_v4 = vld [vmem:[#allocation2 + $0x2d] sm:$0xff] }
 0xa29   : > { %12932 = vmatmul.msk.bf16.gmra.mxu2 %vm557_vm8, %v17051_v15  ;;  %12945 = vmatmul.msk.bf16.gmra.mxu3 %vm557_vm8, %v9482_v55  ;;  %v9224_v55 = vld [vmem:[#allocation2 + $0x12a] sm:$0xff] }
 0xa2a   : > { %12967 = vmatmul.msk.bf16.gmra.mxu0 %vm557_vm8, %v9983_v59 }
 0xa2c   : > { %v8769_v13 = vpop.f32.mrf.mxu3  ;;  %v9349_v10 = vpop.f32.mrf.mxu2 }
 0xa2d   : > { %v8929_v43 = vadd.f32 %v8928_v40, %v8769_v13  ;;  %v17181_v39 = vadd.f32 %v9349_v10, %v17023_v41  ;;  %v9457_v13 = vld [vmem:[#allocation2 + $0x9b] sm:$0xff] }
 0xa2e   : > { %v9143_v37 = vpop.f32.mrf.mxu1 }
 0xa2f   : > { %v8930_v46 = vpop.f32.mrf.mxu0  ;;  %v17183_v28 = vadd.f32 %v9143_v37, %v8929_v43  ;;  %v9223_v37 = vld [vmem:[#allocation2 + $0x122] sm:$0xff] }
 0xa31   : > { %12989 = vmatmul.msk.bf16.gmra.mxu1 %vm557_vm8, %v9984_v20 }
 0xa34   : > { %v8771_v15 = vpop.f32.mrf.mxu3  ;;  %v9351_v49 = vpop.f32.mrf.mxu2 }
 0xa35   : > { %v8931_v50 = vadd.f32 %v8930_v46, %v8771_v15  ;;  %v17187_v24 = vadd.f32 %v9351_v49, %v17036_v0 }
 0xa36   : > { %v9145_v18 = vpop.f32.mrf.mxu1 }
 0xa37   : > { %v8933_v25 = vpop.f32.mrf.mxu0  ;;  %v17189_v41 = vadd.f32 %v9145_v18, %v8931_v50  ;;  %v9959_v50 = vld [vmem:[#allocation2 + $0xac] sm:$0xff] }
 0xa39   : > { %12933 = vmatmul.msk.bf16.gmra.mxu2 %vm557_vm8, %v17075_v57  ;;  %12946 = vmatmul.msk.bf16.gmra.mxu3 %vm557_vm8, %v9483_v44 }
 0xa3a   : > { %12968 = vmatmul.msk.bf16.gmra.mxu0 %vm557_vm8, %v9984_v20  ;;  %v9242_v20 = vpack.c.bf16 %v9224_v55, %v9223_v37 }
 0xa3c   : > { %v8774_v0 = vpop.f32.mrf.mxu3  ;;  %v9354_v22 = vpop.f32.mrf.mxu2 }
 0xa3d   : > { %v8934_v59 = vadd.f32 %v8933_v25, %v8774_v0  ;;  %v17199_v30 = vadd.f32 %v9354_v22, %v17049_v48  ;;  %v9456_v48 = vld [vmem:[#allocation2 + $0x93] sm:$0xff]  ;;  %v9958_v25 = vld [vmem:[#allocation2 + $0xa4] sm:$0xff] }
 0xa3e   : > { %v9148_v56 = vpop.f32.mrf.mxu1  ;;  %v9484_v15 = vpack.c.bf16 %v9457_v13, %v9456_v48  ;;  %v9986_v0 = vpack.c.bf16 %v9959_v50, %v9958_v25  ;;  %v9961_v48 = vld [vmem:[#allocation2 + $0xbc] sm:$0xff] }
 0xa3f   : > { %v8935_v58 = vpop.f32.mrf.mxu0  ;;  %v17201_v57 = vadd.f32 %v9148_v56, %v8934_v59  ;;  %v9459_v56 = vld [vmem:[#allocation2 + $0xab] sm:$0xff] }
 0xa41   : > { %12990 = vmatmul.msk.bf16.gmra.mxu1 %vm557_vm8, %v9985_v21 }
 0xa44   : > { %v8776_v61 = vpop.f32.mrf.mxu3  ;;  %v9356_v40 = vpop.f32.mrf.mxu2 }
 0xa45   : > { %v8936_v10 = vadd.f32 %v8935_v58, %v8776_v61  ;;  %v17205_v63 = vadd.f32 %v9356_v40, %v17062_v36  ;;  %v10193_v61 = vld [vmem:[#allocation2 + $0x25] sm:$0xff] }
 0xa46   : > { %v9150_v43 = vpop.f32.mrf.mxu1 }
 0xa47   : > { %v17207_v53 = vadd.f32 %v9150_v43, %v8936_v10  ;;  %v9816_v46 = vpop.f32.mrf.mxu0  ;;  %v10229_v10 = vpack.c.bf16 %v10194_v4, %v10193_v61 }
 0xa49   : > { %12934 = vmatmul.msk.bf16.gmra.mxu2 %vm557_vm8, %v9242_v20  ;;  %12947 = vmatmul.msk.bf16.gmra.mxu3 %vm557_vm8, %v9484_v15  ;;  %v9960_v15 = vld [vmem:[#allocation2 + $0xb4] sm:$0xff] }
 0xa4a   : > { %12969 = vmatmul.msk.bf16.gmra.mxu0 %vm557_vm8, %v9985_v21  ;;  %v9987_v50 = vpack.c.bf16 %v9961_v48, %v9960_v15 }
 0xa4c   : > { %v9359_v49 = vpop.f32.mrf.mxu2  ;;  %v9565_v7 = vpop.f32.mrf.mxu3 }
 0xa4d   : > { %v17213_v36 = vadd.f32 %v9359_v49, %v17073_v6  ;;  %v9655_v18 = vadd.f32 %v9565_v7, %v17070_v31  ;;  %v9458_v31 = vld [vmem:[#allocation2 + $0xa3] sm:$0xff] }
 0xa4e   : > { %v10067_v35 = vpop.f32.mrf.mxu1  ;;  %v9485_v13 = vpack.c.bf16 %v9459_v56, %v9458_v31 }
 0xa4f   : > { %v9818_v44 = vpop.f32.mrf.mxu0  ;;  %v9906_v2 = vadd.f32 %v9816_v46, %v9655_v18 }
 0xa51   : > { %v17216_v22 = vadd.f32 %v10067_v35, %v9906_v2  ;;  %12991 = vmatmul.msk.bf16.gmra.mxu1 %vm557_vm8, %v9986_v0  ;;  %v10196_v2 = vld [vmem:[#allocation2 + $0x3d] sm:$0xff] }
 0xa54   : > { %v9361_v9 = vpop.f32.mrf.mxu2  ;;  %v9567_v59 = vpop.f32.mrf.mxu3 }
 0xa55   : > { %v17220_v58 = vadd.f32 %v9361_v9, %v17084_v27  ;;  %v9656_v6 = vadd.f32 %v9567_v59, %v17082_v42  ;;  %v10195_v59 = vld [vmem:[#allocation2 + $0x35] sm:$0xff] }
 0xa56   : > { %v10069_v21 = vpop.f32.mrf.mxu1 }
 0xa57   : > { %v9821_v40 = vpop.f32.mrf.mxu0  ;;  %v9907_v55 = vadd.f32 %v9818_v44, %v9656_v6  ;;  %v9461_v44 = vld [vmem:[#allocation2 + $0xbb] sm:$0xff] }
 0xa59   : > { %v17223_v43 = vadd.f32 %v10069_v21, %v9907_v55  ;;  %12948 = vmatmul.msk.bf16.gmra.mxu3 %vm557_vm8, %v9485_v13  ;;  %13005 = vmatmul.msk.bf16.vlgmr.msra.gmra.mxu2 %vm557_vm8, %v10229_v10  ;;  %v10230_v21 = vpack.c.bf16 %v10196_v2, %v10195_v59  ;;  %v9962_v10 = vld [vmem:[#allocation2 + $0xc4] sm:$0xff] }
 0xa5a   : > { %12970 = vmatmul.msk.bf16.gmra.mxu0 %vm557_vm8, %v9986_v0 }
 0xa5c   : > { %v9364_v37 = vpop.f32.mrf.mxu2  ;;  %v9570_v27 = vpop.f32.mrf.mxu3 }
 0xa5d   : > { %v17229_v42 = vadd.f32 %v9364_v37, %v17093_v8  ;;  %v9657_v46 = vadd.f32 %v9570_v27, %v17091_v60  ;;  %v9460_v60 = vld [vmem:[#allocation2 + $0xb3] sm:$0xff] }
 0xa5e   : > { %v10072_v20 = vpop.f32.mrf.mxu1  ;;  %v9486_v6 = vpack.c.bf16 %v9461_v44, %v9460_v60 }
 0xa5f   : > { %v9823_v49 = vpop.f32.mrf.mxu0  ;;  %v9908_v7 = vadd.f32 %v9821_v40, %v9657_v46  ;;  %v9963_v40 = vld [vmem:[#allocation2 + $0xcc] sm:$0xff] }
 0xa60   : > { %v9988_v48 = vpack.c.bf16 %v9963_v40, %v9962_v10 }
 0xa61   : > { %v17232_v18 = vadd.f32 %v10072_v20, %v9908_v7  ;;  %12992 = vmatmul.msk.bf16.gmra.mxu1 %vm557_vm8, %v9987_v50  ;;  %v10198_v7 = vld [vmem:[#allocation2 + $0x4d] sm:$0xff] }
 0xa64   : > { %v9366_v35 = vpop.f32.mrf.mxu2  ;;  %v9572_v25 = vpop.f32.mrf.mxu3 }
 0xa65   : > { %v17236_v0 = vadd.f32 %v9366_v35, %v17099_v34  ;;  %v9658_v8 = vadd.f32 %v9572_v25, %v17097_v54  ;;  %v10197_v25 = vld [vmem:[#allocation2 + $0x45] sm:$0xff] }
 0xa66   : > { %v10074_v9 = vpop.f32.mrf.mxu1 }
 0xa67   : > { %v9826_v56 = vpop.f32.mrf.mxu0  ;;  %v9909_v4 = vadd.f32 %v9823_v49, %v9658_v8  ;;  %v9463_v49 = vld [vmem:[#allocation2 + $0xcb] sm:$0xff] }
 0xa69   : > { %v17239_v31 = vadd.f32 %v10074_v9, %v9909_v4  ;;  %12949 = vmatmul.msk.bf16.gmra.mxu3 %vm557_vm8, %v9486_v6  ;;  %13006 = vmatmul.msk.bf16.gmra.mxu2 %vm557_vm8, %v10230_v21  ;;  %v10231_v9 = vpack.c.bf16 %v10198_v7, %v10197_v25  ;;  %v9964_v21 = vld [vmem:[#allocation2 + $0xd4] sm:$0xff] }
 0xa6a   : > { %12971 = vmatmul.msk.bf16.gmra.mxu0 %vm557_vm8, %v9987_v50 }
 0xa6c   : > { %v9369_v61 = vpop.f32.mrf.mxu2  ;;  %v9575_v34 = vpop.f32.mrf.mxu3 }
 0xa6d   : > { %v17245_v54 = vadd.f32 %v9369_v61, %v17108_v17  ;;  %v9659_v55 = vadd.f32 %v9575_v34, %v17106_v11  ;;  %v9462_v11 = vld [vmem:[#allocation2 + $0xc3] sm:$0xff] }
 0xa6e   : > { %v10077_v13 = vpop.f32.mrf.mxu1  ;;  %v9487_v8 = vpack.c.bf16 %v9463_v49, %v9462_v11 }
 0xa6f   : > { %v9828_v37 = vpop.f32.mrf.mxu0  ;;  %v9910_v27 = vadd.f32 %v9826_v56, %v9659_v55  ;;  %v9965_v56 = vld [vmem:[#allocation2 + $0xdc] sm:$0xff] }
 0xa70   : > { %v9989_v40 = vpack.c.bf16 %v9965_v56, %v9964_v21 }
 0xa71   : > { %v17248_v46 = vadd.f32 %v10077_v13, %v9910_v27  ;;  %12993 = vmatmul.msk.bf16.gmra.mxu1 %vm557_vm8, %v9988_v48  ;;  %v10200_v27 = vld [vmem:[#allocation2 + $0x5d] sm:$0xff] }
 0xa74   : > { %v9371_v20 = vpop.f32.mrf.mxu2  ;;  %v9577_v15 = vpop.f32.mrf.mxu3 }
 0xa75   : > { %v17252_v50 = vadd.f32 %v9371_v20, %v17114_v33  ;;  %v9660_v17 = vadd.f32 %v9577_v15, %v17112_v52  ;;  %v10199_v15 = vld [vmem:[#allocation2 + $0x55] sm:$0xff] }
 0xa76   : > { %v10079_v35 = vpop.f32.mrf.mxu1 }
 0xa77   : > { %v9831_v44 = vpop.f32.mrf.mxu0  ;;  %v9911_v2 = vadd.f32 %v9828_v37, %v9660_v17  ;;  %v9465_v37 = vld [vmem:[#allocation2 + $0xdb] sm:$0xff] }
 0xa79   : > { %v17255_v60 = vadd.f32 %v10079_v35, %v9911_v2  ;;  %12950 = vmatmul.msk.bf16.gmra.mxu3 %vm557_vm8, %v9487_v8  ;;  %13007 = vmatmul.msk.bf16.gmra.mxu2 %vm557_vm8, %v10231_v9  ;;  %v10232_v35 = vpack.c.bf16 %v10200_v27, %v10199_v15  ;;  %v9966_v9 = vld [vmem:[#allocation2 + $0xe4] sm:$0xff] }
 0xa7a   : > { %12972 = vmatmul.msk.bf16.gmra.mxu0 %vm557_vm8, %v9988_v48 }
 0xa7c   : > { %v9374_v59 = vpop.f32.mrf.mxu2  ;;  %v9580_v33 = vpop.f32.mrf.mxu3 }
 0xa7d   : > { %v17261_v52 = vadd.f32 %v9374_v59, %v17123_v51  ;;  %v9661_v4 = vadd.f32 %v9580_v33, %v17121_v19  ;;  %v9464_v19 = vld [vmem:[#allocation2 + $0xd3] sm:$0xff] }
 0xa7e   : > { %v10082_v6 = vpop.f32.mrf.mxu1  ;;  %v9488_v17 = vpack.c.bf16 %v9465_v37, %v9464_v19 }
 0xa7f   : > { %v9833_v61 = vpop.f32.mrf.mxu0  ;;  %v9912_v34 = vadd.f32 %v9831_v44, %v9661_v4  ;;  %v9967_v44 = vld [vmem:[#allocation2 + $0xec] sm:$0xff] }
 0xa80   : > { %v9990_v56 = vpack.c.bf16 %v9967_v44, %v9966_v9 }
 0xa81   : > { %v17264_v55 = vadd.f32 %v10082_v6, %v9912_v34  ;;  %12994 = vmatmul.msk.bf16.gmra.mxu1 %vm557_vm8, %v9989_v40  ;;  %v10202_v34 = vld [vmem:[#allocation2 + $0x6d] sm:$0xff] }
 0xa84   : > { %v9376_v13 = vpop.f32.mrf.mxu2  ;;  %v9582_v10 = vpop.f32.mrf.mxu3 }
 0xa85   : > { %v17268_v48 = vadd.f32 %v9376_v13, %v17129_v47  ;;  %v9662_v51 = vadd.f32 %v9582_v10, %v17127_v3  ;;  %v10201_v10 = vld [vmem:[#allocation2 + $0x65] sm:$0xff] }
 0xa86   : > { %v10084_v20 = vpop.f32.mrf.mxu1 }
 0xa87   : > { %v9836_v49 = vpop.f32.mrf.mxu0  ;;  %v9913_v7 = vadd.f32 %v9833_v61, %v9662_v51  ;;  %v9467_v61 = vld [vmem:[#allocation2 + $0xeb] sm:$0xff] }
 0xa89   : > { %v17271_v11 = vadd.f32 %v10084_v20, %v9913_v7  ;;  %12951 = vmatmul.msk.bf16.gmra.mxu3 %vm557_vm8, %v9488_v17  ;;  %13008 = vmatmul.msk.bf16.gmra.mxu2 %vm557_vm8, %v10232_v35  ;;  %v10233_v20 = vpack.c.bf16 %v10202_v34, %v10201_v10  ;;  %v9968_v35 = vld [vmem:[#allocation2 + $0xf4] sm:$0xff] }
 0xa8a   : > { %12973 = vmatmul.msk.bf16.gmra.mxu0 %vm557_vm8, %v9989_v40 }
 0xa8c   : > { %v9379_v25 = vpop.f32.mrf.mxu2  ;;  %v9585_v47 = vpop.f32.mrf.mxu3 }
 0xa8d   : > { %v17277_v3 = vadd.f32 %v9379_v25, %v17138_v16  ;;  %v9663_v2 = vadd.f32 %v9585_v47, %v17136_v62  ;;  %v9466_v62 = vld [vmem:[#allocation2 + $0xe3] sm:$0xff] }
 0xa8e   : > { %v10087_v8 = vpop.f32.mrf.mxu1  ;;  %v9489_v51 = vpack.c.bf16 %v9467_v61, %v9466_v62 }
 0xa8f   : > { %v9838_v59 = vpop.f32.mrf.mxu0  ;;  %v9914_v33 = vadd.f32 %v9836_v49, %v9663_v2  ;;  %v9969_v49 = vld [vmem:[#allocation2 + $0xfc] sm:$0xff] }
 0xa90   : > { %v9991_v44 = vpack.c.bf16 %v9969_v49, %v9968_v35  ;;  %v10206_v35 = vld [vmem:[#allocation2 + $0x8d] sm:$0xff] }
 0xa91   : > { %v17280_v4 = vadd.f32 %v10087_v8, %v9914_v33  ;;  %12995 = vmatmul.msk.bf16.gmra.mxu1 %vm557_vm8, %v9990_v56  ;;  %v10204_v33 = vld [vmem:[#allocation2 + $0x7d] sm:$0xff] }
 0xa94   : > { %v9381_v6 = vpop.f32.mrf.mxu2  ;;  %v9587_v21 = vpop.f32.mrf.mxu3 }
 0xa95   : > { %v17284_v40 = vadd.f32 %v9381_v6, %v17144_v14  ;;  %v9664_v16 = vadd.f32 %v9587_v21, %v17142_v32  ;;  %v10203_v21 = vld [vmem:[#allocation2 + $0x75] sm:$0xff] }
 0xa96   : > { %v10089_v13 = vpop.f32.mrf.mxu1 }
 0xa97   : > { %v9841_v37 = vpop.f32.mrf.mxu0  ;;  %v9915_v27 = vadd.f32 %v9838_v59, %v9664_v16  ;;  %v9469_v59 = vld [vmem:[#allocation2 + $0xfb] sm:$0xff] }
 0xa99   : > { %v17287_v19 = vadd.f32 %v10089_v13, %v9915_v27  ;;  %12952 = vmatmul.msk.bf16.gmra.mxu3 %vm557_vm8, %v9489_v51  ;;  %13009 = vmatmul.msk.bf16.gmra.mxu2 %vm557_vm8, %v10233_v20  ;;  %v10234_v13 = vpack.c.bf16 %v10204_v33, %v10203_v21  ;;  %v9970_v20 = vld [vmem:[#allocation2 + $0x104] sm:$0xff]  ;;  %v9972_v21 = vld [vmem:[#allocation2 + $0x114] sm:$0xff] }
 0xa9a   : > { %12974 = vmatmul.msk.bf16.gmra.mxu0 %vm557_vm8, %v9990_v56 }
 0xa9c   : > { %v9384_v15 = vpop.f32.mrf.mxu2  ;;  %v9590_v14 = vpop.f32.mrf.mxu3 }
 0xa9d   : > { %v17293_v32 = vadd.f32 %v9384_v15, %v17153_v23  ;;  %v9665_v7 = vadd.f32 %v9590_v14, %v17151_v45  ;;  %v9468_v45 = vld [vmem:[#allocation2 + $0xf3] sm:$0xff] }
 0xa9e   : > { %v10092_v17 = vpop.f32.mrf.mxu1  ;;  %v9490_v16 = vpack.c.bf16 %v9469_v59, %v9468_v45 }
 0xa9f   : > { %v9843_v25 = vpop.f32.mrf.mxu0  ;;  %v9916_v47 = vadd.f32 %v9841_v37, %v9665_v7  ;;  %v9971_v37 = vld [vmem:[#allocation2 + $0x10c] sm:$0xff] }
 0xaa0   : > { %v9992_v14 = vpack.c.bf16 %v9971_v37, %v9970_v20  ;;  %v10208_v37 = vld [vmem:[#allocation2 + $0x9d] sm:$0xff] }
 0xaa1   : > { %v17296_v2 = vadd.f32 %v10092_v17, %v9916_v47  ;;  %12996 = vmatmul.msk.bf16.gmra.mxu1 %vm557_vm8, %v9991_v44  ;;  %v9471_v17 = vld [vmem:[#allocation2 + $0x10b] sm:$0xff]  ;;  %v9470_v47 = vld [vmem:[#allocation2 + $0x103] sm:$0xff] }
 0xaa4   : > { %v9386_v8 = vpop.f32.mrf.mxu2  ;;  %v9592_v9 = vpop.f32.mrf.mxu3 }
 0xaa5   : > { %v17300_v56 = vadd.f32 %v9386_v8, %v17159_v29  ;;  %v9666_v23 = vadd.f32 %v9592_v9, %v17157_v1  ;;  %v9491_v9 = vpack.c.bf16 %v9471_v17, %v9470_v47 }
 0xaa6   : > { %v10094_v6 = vpop.f32.mrf.mxu1 }
 0xaa7   : > { %v17303_v61 = vpop.f32.mrf.mxu0  ;;  %v9917_v34 = vadd.f32 %v9843_v25, %v9666_v23  ;;  %v9973_v23 = vld [vmem:[#allocation2 + $0x11c] sm:$0xff] }
 0xaa9   : > { %v17305_v62 = vadd.f32 %v10094_v6, %v9917_v34  ;;  %12953 = vmatmul.msk.bf16.gmra.mxu3 %vm557_vm8, %v9490_v16  ;;  %13010 = vmatmul.msk.bf16.gmra.mxu2 %vm557_vm8, %v10234_v13  ;;  %v9993_v16 = vpack.c.bf16 %v9973_v23, %v9972_v21  ;;  %v13307_v13 = vld [vmem:[%s18119_s10 + $0x40] sm:$0xff] }
 0xaaa   : > { %12975 = vmatmul.msk.bf16.gmra.mxu0 %vm557_vm8, %v9991_v44  ;;  %v10205_v44 = vld [vmem:[#allocation2 + $0x85] sm:$0xff]  ;;  %10567 = vmatpush.bf16.msra.mxu3 %v13307_v13 }
 0xaab   : > { %v10235_v59 = vpack.c.bf16 %v10206_v35, %v10205_v44 }
 0xaac   : > { %v9389_v29 = vpop.f32.mrf.mxu2  ;;  %v9595_v10 = vpop.f32.mrf.mxu3 }
 0xaad   : > { %v17311_v1 = vadd.f32 %v9389_v29, %v17168_v5  ;;  %v17314_v27 = vadd.f32 %v9595_v10, %v17166_v12 }
 0xaae   : > { %v17316_v51 = vpop.f32.mrf.mxu1 }
 0xaaf   : > { %v17318_v15 = vpop.f32.mrf.mxu0 }
 0xab1   : > { %12997 = vmatmul.msk.bf16.gmra.mxu1 %vm557_vm8, %v9992_v14 }
 0xab4   : > { %v9391_v49 = vpop.f32.mrf.mxu2  ;;  %v9597_v7 = vpop.f32.mrf.mxu3 }
 0xab5   : > { %v17322_v25 = vadd.f32 %v9391_v49, %v17174_v38  ;;  %v17325_v5 = vadd.f32 %v9597_v7, %v17172_v26  ;;  %v9472_v49 = vld [vmem:[#allocation2 + $0x113] sm:$0xff] }
 0xab6   : > { %v17327_v12 = vpop.f32.mrf.mxu1  ;;  %v10207_v7 = vld [vmem:[#allocation2 + $0x95] sm:$0xff] }
 0xab7   : > { %v17329_v8 = vpop.f32.mrf.mxu0  ;;  %v10236_v47 = vpack.c.bf16 %v10208_v37, %v10207_v7  ;;  %v10210_v37 = vld [vmem:[#allocation2 + $0xad] sm:$0xff]  ;;  %v9474_v7 = vld [vmem:[#allocation2 + $0x123] sm:$0xff] }
 0xab9   : > { %12954 = vmatmul.msk.bf16.gmra.mxu3 %vm557_vm8, %v9491_v9  ;;  %13011 = vmatmul.msk.bf16.gmra.mxu2 %vm557_vm8, %v10235_v59  ;;  %v9975_v59 = vld [vmem:[#allocation2 + $0x12c] sm:$0xff] }
 0xaba   : > { %12976 = vmatmul.msk.bf16.gmra.mxu0 %vm557_vm8, %v9992_v14 }
 0xabc   : > { %v9394_v33 = vpop.f32.mrf.mxu2  ;;  %v9600_v38 = vpop.f32.mrf.mxu3 }
 0xabd   : > { %v17335_v26 = vadd.f32 %v9394_v33, %v17183_v28  ;;  %v17338_v6 = vadd.f32 %v9600_v38, %v17181_v39  ;;  %v9473_v28 = vld [vmem:[#allocation2 + $0x11b] sm:$0xff] }
 0xabe   : > { %v17340_v45 = vpop.f32.mrf.mxu1  ;;  %v9492_v35 = vpack.c.bf16 %v9473_v28, %v9472_v49  ;;  %v9475_v28 = vld [vmem:[#allocation2 + $0x12b] sm:$0xff] }
 0xabf   : > { %v17342_v34 = vpop.f32.mrf.mxu0 }
 0xac1   : > { %12998 = vmatmul.msk.bf16.gmra.mxu1 %vm557_vm8, %v9993_v16 }
 0xac4   : > { %v9396_v29 = vpop.f32.mrf.mxu2  ;;  %v9602_v10 = vpop.f32.mrf.mxu3 }
 0xac5   : > { %v17349_v39 = vadd.f32 %v9396_v29, %v17189_v41  ;;  %v17352_v20 = vadd.f32 %v9602_v10, %v17187_v24  ;;  %v9974_v41 = vld [vmem:[#allocation2 + $0x124] sm:$0xff] }
 0xac6   : > { %v17354_v14 = vpop.f32.mrf.mxu1  ;;  %v9994_v13 = vpack.c.bf16 %v9975_v59, %v9974_v41  ;;  %v9977_v41 = vld [vmem:[#allocation2 + $0x13c] sm:$0xff] }
 0xac7   : > { %v9856_v17 = vpop.f32.mrf.mxu0 }
 0xac9   : > { %12955 = vmatmul.msk.bf16.gmra.mxu3 %vm557_vm8, %v9492_v35  ;;  %13012 = vmatmul.msk.bf16.gmra.mxu2 %vm557_vm8, %v10236_v47  ;;  %v10209_v35 = vld [vmem:[#allocation2 + $0xa5] sm:$0xff]  ;;  %v9493_v47 = vpack.c.bf16 %v9475_v28, %v9474_v7  ;;  %v10212_v7 = vld [vmem:[#allocation2 + $0xbd] sm:$0xff] }
 0xaca   : > { %12977 = vmatmul.msk.bf16.gmra.mxu0 %vm557_vm8, %v9993_v16 }
 0xacc   : > { %v9399_v44 = vpop.f32.mrf.mxu2  ;;  %v9605_v9 = vpop.f32.mrf.mxu3 }
 0xacd   : > { %v17360_v24 = vadd.f32 %v9399_v44, %v17201_v57  ;;  %v9671_v33 = vadd.f32 %v9605_v9, %v17199_v30  ;;  %v10237_v44 = vpack.c.bf16 %v10210_v37, %v10209_v35  ;;  %v9976_v9 = vld [vmem:[#allocation2 + $0x134] sm:$0xff] }
 0xace   : > { %v10107_v38 = vpop.f32.mrf.mxu1  ;;  %v10445_v35 = vld [vmem:[#allocation2 + $0x2e] sm:$0xff] }
 0xacf   : > { %v17363_v23 = vpop.f32.mrf.mxu0  ;;  %v9922_v21 = vadd.f32 %v9856_v17, %v9671_v33 }
 0xad1   : > { %v17365_v29 = vadd.f32 %v10107_v38, %v9922_v21  ;;  %12999 = vmatmul.msk.bf16.gmra.mxu1 %vm557_vm8, %v9994_v13  ;;  %v9995_v38 = vpack.c.bf16 %v9977_v41, %v9976_v9  ;;  %v10444_v9 = vld [vmem:[#allocation2 + $0x26] sm:$0xff] }
 0xad4   : > { %v9401_v10 = vpop.f32.mrf.mxu2  ;;  %v9607_v16 = vpop.f32.mrf.mxu3 }
 0xad5   : > { %v17369_v49 = vadd.f32 %v9401_v10, %v17207_v53  ;;  %v17372_v57 = vadd.f32 %v9607_v16, %v17205_v63 }
 0xad6   : > { %v17374_v30 = vpop.f32.mrf.mxu1 }
 0xad7   : > { %v9861_v17 = vpop.f32.mrf.mxu0 }
 0xad9   : > { %12956 = vmatmul.msk.bf16.gmra.mxu3 %vm557_vm8, %v9493_v47  ;;  %13013 = vmatmul.msk.bf16.gmra.mxu2 %vm557_vm8, %v10237_v44  ;;  %v10211_v44 = vld [vmem:[#allocation2 + $0xb5] sm:$0xff] }
 0xada   : > { %12978 = vmatmul.msk.bf16.gmra.mxu0 %vm557_vm8, %v9994_v13 }
 0xadc   : > { %v9610_v53 = vpop.f32.mrf.mxu3  ;;  %v10318_v59 = vpop.f32.mrf.mxu2 }
 0xadd   : > { %v9673_v63 = vadd.f32 %v9610_v53, %v17213_v36  ;;  %v17381_v33 = vadd.f32 %v10318_v59, %v17216_v22  ;;  %v10480_v53 = vpack.c.bf16 %v10445_v35, %v10444_v9  ;;  %v10214_v35 = vld [vmem:[#allocation2 + $0xcd] sm:$0xff] }
 0xade   : > { %v10112_v21 = vpop.f32.mrf.mxu1 }
 0xadf   : > { %v17383_v10 = vpop.f32.mrf.mxu0  ;;  %v9924_v16 = vadd.f32 %v9861_v17, %v9673_v63  ;;  %v10238_v17 = vpack.c.bf16 %v10212_v7, %v10211_v44  ;;  %v10447_v44 = vld [vmem:[#allocation2 + $0x3e] sm:$0xff] }
 0xae1   : > { %v17385_v28 = vadd.f32 %v10112_v21, %v9924_v16  ;;  %13000 = vmatmul.msk.bf16.gmra.mxu1 %vm557_vm8, %v9995_v38 }
 0xae4   : > { %v9612_v37 = vpop.f32.mrf.mxu3  ;;  %v10320_v13 = vpop.f32.mrf.mxu2 }
 0xae5   : > { %v17389_v47 = vadd.f32 %v9612_v37, %v17220_v58  ;;  %v17392_v36 = vadd.f32 %v10320_v13, %v17223_v43 }
 0xae6   : > { %v17394_v22 = vpop.f32.mrf.mxu1 }
 0xae7   : > { %v9866_v41 = vpop.f32.mrf.mxu0 }
 0xae9   : > { %13014 = vmatmul.msk.bf16.gmra.mxu2 %vm557_vm8, %v10238_v17  ;;  %13027 = vmatmul.msk.bf16.vlgmr.msra.gmra.mxu3 %vm557_vm8, %v10480_v53  ;;  %v10446_v53 = vld [vmem:[#allocation2 + $0x36] sm:$0xff] }
 0xaec   : > { %v9615_v59 = vpop.f32.mrf.mxu3  ;;  %v10323_v63 = vpop.f32.mrf.mxu2 }
 0xaed   : > { %v9675_v38 = vadd.f32 %v9615_v59, %v17229_v42  ;;  %v17400_v58 = vadd.f32 %v10323_v63, %v17232_v18  ;;  %v10213_v18 = vld [vmem:[#allocation2 + $0xc5] sm:$0xff]  ;;  %v10481_v63 = vpack.c.bf16 %v10447_v44, %v10446_v53  ;;  %v10449_v53 = vld [vmem:[#allocation2 + $0x4e] sm:$0xff] }
 0xaee   : > { %v10117_v43 = vpop.f32.mrf.mxu1  ;;  %v10239_v59 = vpack.c.bf16 %v10214_v35, %v10213_v18  ;;  %v10216_v18 = vld [vmem:[#allocation2 + $0xdd] sm:$0xff] }
 0xaef   : > { %v17402_v21 = vpop.f32.mrf.mxu0  ;;  %v9926_v16 = vadd.f32 %v9866_v41, %v9675_v38 }
 0xaf0   : > { %18429 = vst [vmem:[#allocation58_spill] sm:$0xff] %v17402_v21 }
 0xaf1   : > { %v17404_v37 = vadd.f32 %v10117_v43, %v9926_v16 }
 0xaf4   : > { %v9617_v13 = vpop.f32.mrf.mxu3  ;;  %v10325_v7 = vpop.f32.mrf.mxu2 }
 0xaf5   : > { %v17407_v9 = vadd.f32 %v9617_v13, %v17236_v0  ;;  %v17410_v17 = vadd.f32 %v10325_v7, %v17239_v31 }
 0xaf6   : > { %v17412_v42 = vpop.f32.mrf.mxu1 }
 0xaf7   : > { %v9871_v21 = vpop.f32.mrf.mxu0 }
 0xaf9   : > { %13015 = vmatmul.msk.bf16.gmra.mxu2 %vm557_vm8, %v10239_v59  ;;  %13028 = vmatmul.msk.bf16.gmra.mxu3 %vm557_vm8, %v10481_v63 }
 0xafc   : > { %v9620_v41 = vpop.f32.mrf.mxu3  ;;  %v10328_v38 = vpop.f32.mrf.mxu2 }
 0xafd   : > { %v9677_v43 = vadd.f32 %v9620_v41, %v17245_v54  ;;  %v17418_v0 = vadd.f32 %v10328_v38, %v17248_v46  ;;  %v10215_v46 = vld [vmem:[#allocation2 + $0xd5] sm:$0xff]  ;;  %v10448_v41 = vld [vmem:[#allocation2 + $0x46] sm:$0xff] }
 0xafe   : > { %v10122_v31 = vpop.f32.mrf.mxu1  ;;  %v10240_v38 = vpack.c.bf16 %v10216_v18, %v10215_v46  ;;  %v10218_v18 = vld [vmem:[#allocation2 + $0xed] sm:$0xff] }
 0xaff   : > { %v9928_v16 = vadd.f32 %v9871_v21, %v9677_v43  ;;  %v17422_v7 = vpop.f32.mrf.mxu0  ;;  %v10482_v21 = vpack.c.bf16 %v10449_v53, %v10448_v41  ;;  %v10451_v53 = vld [vmem:[#allocation2 + $0x5e] sm:$0xff] }
 0xb00   : > { %18430 = vst [vmem:[#allocation59_spill] sm:$0xff] %v17422_v7 }
 0xb01   : > { %v17420_v13 = vadd.f32 %v10122_v31, %v9928_v16 }
 0xb04   : > { %v9622_v35 = vpop.f32.mrf.mxu3  ;;  %v10330_v44 = vpop.f32.mrf.mxu2 }
 0xb05   : > { %v17425_v59 = vadd.f32 %v9622_v35, %v17252_v50  ;;  %v17428_v63 = vadd.f32 %v10330_v44, %v17255_v60 }
 0xb06   : > { %v17430_v54 = vpop.f32.mrf.mxu1 }
 0xb07   : > { %18431 = vst [vmem:[#allocation60_spill] sm:$0xff] %v17425_v59  ;;  %v9876_v35 = vpop.f32.mrf.mxu0 }
 0xb08   : > { %18432 = vst [vmem:[#allocation61_spill] sm:$0xff] %v17430_v54 }
 0xb09   : > { %13016 = vmatmul.msk.bf16.gmra.mxu2 %vm557_vm8, %v10240_v38  ;;  %13029 = vmatmul.msk.bf16.gmra.mxu3 %vm557_vm8, %v10482_v21  ;;  %v10217_v38 = vld [vmem:[#allocation2 + $0xe5] sm:$0xff] }
 0xb0a   : > { %v10241_v21 = vpack.c.bf16 %v10218_v18, %v10217_v38  ;;  %v10219_v18 = vld [vmem:[#allocation2 + $0xf5] sm:$0xff] }
 0xb0c   : > { %v9625_v43 = vpop.f32.mrf.mxu3  ;;  %v10333_v31 = vpop.f32.mrf.mxu2 }
 0xb0d   : > { %v9679_v16 = vadd.f32 %v9625_v43, %v17261_v52  ;;  %v17436_v50 = vadd.f32 %v10333_v31, %v17264_v55  ;;  %v10450_v52 = vld [vmem:[#allocation2 + $0x56] sm:$0xff] }
 0xb0e   : > { %v10127_v44 = vpop.f32.mrf.mxu1  ;;  %v10483_v55 = vpack.c.bf16 %v10451_v53, %v10450_v52  ;;  %v10452_v53 = vld [vmem:[#allocation2 + $0x66] sm:$0xff] }
 0xb0f   : > { %v9930_v60 = vadd.f32 %v9876_v35, %v9679_v16 }
 0xb11   : > { %v17438_v7 = vadd.f32 %v10127_v44, %v9930_v60 }
 0xb14   : > { %v9627_v54 = vpop.f32.mrf.mxu3  ;;  %v10335_v59 = vpop.f32.mrf.mxu2 }
 0xb15   : > { %v17441_v46 = vadd.f32 %v9627_v54, %v17268_v48  ;;  %v17444_v41 = vadd.f32 %v10335_v59, %v17271_v11  ;;  %v10220_v11 = vld [vmem:[#allocation2 + $0xfd] sm:$0xff]  ;;  %v10453_v59 = vld [vmem:[#allocation2 + $0x6e] sm:$0xff] }
 0xb16   : > { %v10242_v38 = vpack.c.bf16 %v10220_v11, %v10219_v18  ;;  %v10484_v52 = vpack.c.bf16 %v10453_v59, %v10452_v53  ;;  %v10221_v11 = vld [vmem:[#allocation2 + $0x105] sm:$0xff]  ;;  %v10454_v59 = vld [vmem:[#allocation2 + $0x76] sm:$0xff] }
 0xb19   : > { %13017 = vmatmul.msk.bf16.gmra.mxu2 %vm557_vm8, %v10241_v21  ;;  %13030 = vmatmul.msk.bf16.gmra.mxu3 %vm557_vm8, %v10483_v55 }
 0xb1c   : > { %v9630_v43 = vpop.f32.mrf.mxu3  ;;  %v10338_v31 = vpop.f32.mrf.mxu2 }
 0xb1d   : > { %v17449_v16 = vadd.f32 %v9630_v43, %v17277_v3  ;;  %v17452_v35 = vadd.f32 %v10338_v31, %v17280_v4  ;;  %v10455_v31 = vld [vmem:[#allocation2 + $0x7e] sm:$0xff] }
 0xb1e   : > { %v10485_v53 = vpack.c.bf16 %v10455_v31, %v10454_v59 }
 0xb24   : > { %v9632_v48 = vpop.f32.mrf.mxu3  ;;  %v10340_v54 = vpop.f32.mrf.mxu2 }
 0xb25   : > { %v17455_v60 = vadd.f32 %v9632_v48, %v17284_v40  ;;  %v17458_v44 = vadd.f32 %v10340_v54, %v17287_v19  ;;  %v10222_v19 = vld [vmem:[#allocation2 + $0x10d] sm:$0xff] }
 0xb26   : > { %v10243_v18 = vpack.c.bf16 %v10222_v19, %v10221_v11 }
 0xb29   : > { %13018 = vmatmul.msk.bf16.gmra.mxu2 %vm557_vm8, %v10242_v38  ;;  %13031 = vmatmul.msk.bf16.gmra.mxu3 %vm557_vm8, %v10484_v52 }
 0xb2c   : > { %v9635_v3 = vpop.f32.mrf.mxu3  ;;  %v10343_v4 = vpop.f32.mrf.mxu2 }
 0xb2d   : > { %v17463_v21 = vadd.f32 %v9635_v3, %v17293_v32  ;;  %v17466_v55 = vadd.f32 %v10343_v4, %v17296_v2  ;;  %v10224_v3 = vld [vmem:[#allocation2 + $0x11d] sm:$0xff] }
 0xb34   : > { %v9637_v40 = vpop.f32.mrf.mxu3  ;;  %v10345_v43 = vpop.f32.mrf.mxu2 }
 0xb35   : > { %v17469_v48 = vadd.f32 %v9637_v40, %v17300_v56  ;;  %v17472_v54 = vadd.f32 %v10345_v43, %v17305_v62  ;;  %v10457_v62 = vld [vmem:[#allocation2 + $0x8e] sm:$0xff]  ;;  %v10456_v43 = vld [vmem:[#allocation2 + $0x86] sm:$0xff] }
 0xb36   : > { %v10223_v40 = vld [vmem:[#allocation2 + $0x115] sm:$0xff]  ;;  %v10486_v31 = vpack.c.bf16 %v10457_v62, %v10456_v43 }
 0xb37   : > { %v10244_v19 = vpack.c.bf16 %v10224_v3, %v10223_v40  ;;  %v10458_v3 = vld [vmem:[#allocation2 + $0x96] sm:$0xff] }
 0xb39   : > { %13019 = vmatmul.msk.bf16.gmra.mxu2 %vm557_vm8, %v10243_v18  ;;  %13032 = vmatmul.msk.bf16.gmra.mxu3 %vm557_vm8, %v10485_v53 }
 0xb3c   : > { %v9640_v32 = vpop.f32.mrf.mxu3  ;;  %v17476_v2 = vpop.f32.mrf.mxu2 }
 0xb3d   : > { %v17479_v38 = vadd.f32 %v9640_v32, %v17311_v1  ;;  %v10225_v32 = vld [vmem:[#allocation2 + $0x125] sm:$0xff] }
 0xb3f   : > { %18433 = vst [vmem:[#allocation62_spill] sm:$0xff] %v17479_v38 }
 0xb44   : > { %v9642_v52 = vpop.f32.mrf.mxu3  ;;  %v17481_v56 = vpop.f32.mrf.mxu2 }
 0xb45   : > { %v17484_v4 = vadd.f32 %v9642_v52, %v17322_v25  ;;  %v10226_v25 = vld [vmem:[#allocation2 + $0x12d] sm:$0xff]  ;;  %v10459_v52 = vld [vmem:[#allocation2 + $0x9e] sm:$0xff] }
 0xb46   : > { %v10245_v62 = vpack.c.bf16 %v10226_v25, %v10225_v32  ;;  %v10487_v40 = vpack.c.bf16 %v10459_v52, %v10458_v3  ;;  %v10460_v52 = vld [vmem:[#allocation2 + $0xa6] sm:$0xff] }
 0xb47   : > { %18434 = vst [vmem:[#allocation67_spill] sm:$0xff] %v17484_v4 }
 0xb49   : > { %13020 = vmatmul.msk.bf16.gmra.mxu2 %vm557_vm8, %v10244_v19  ;;  %13033 = vmatmul.msk.bf16.gmra.mxu3 %vm557_vm8, %v10486_v31 }
 0xb4c   : > { %v9645_v11 = vpop.f32.mrf.mxu3  ;;  %v17488_v59 = vpop.f32.mrf.mxu2 }
 0xb4d   : > { %v17491_v1 = vadd.f32 %v9645_v11, %v17335_v26  ;;  %v10227_v11 = vld [vmem:[#allocation2 + $0x135] sm:$0xff] }
 0xb4f   : > { %18435 = vst [vmem:[#allocation63_spill] sm:$0xff] %v17491_v1  ;;  %v10228_v1 = vld [vmem:[#allocation2 + $0x13d] sm:$0xff] }
 0xb50   : > { %v10246_v25 = vpack.c.bf16 %v10228_v1, %v10227_v11  ;;  %v10463_v1 = vld [vmem:[#allocation2 + $0xbe] sm:$0xff]  ;;  %v10462_v11 = vld [vmem:[#allocation2 + $0xb6] sm:$0xff] }
 0xb54   : > { %v9647_v18 = vpop.f32.mrf.mxu3  ;;  %v17493_v53 = vpop.f32.mrf.mxu2 }
 0xb55   : > { %v17496_v4 = vadd.f32 %v9647_v18, %v17349_v39  ;;  %v10461_v18 = vld [vmem:[#allocation2 + $0xae] sm:$0xff] }
 0xb56   : > { %v10488_v3 = vpack.c.bf16 %v10461_v18, %v10460_v52 }
 0xb57   : > { %18436 = vst [vmem:[#allocation64_spill] sm:$0xff] %v17496_v4  ;;  %v10468_v4 = vld [vmem:[#allocation2 + $0xe6] sm:$0xff] }
 0xb59   : > { %13021 = vmatmul.msk.bf16.gmra.mxu2 %vm557_vm8, %v10245_v62  ;;  %13034 = vmatmul.msk.bf16.gmra.mxu3 %vm557_vm8, %v10487_v40 }
 0xb5c   : > { %v9650_v43 = vpop.f32.mrf.mxu3  ;;  %v10358_v19 = vpop.f32.mrf.mxu2 }
 0xb5d   : > { %v17501_v26 = vadd.f32 %v9650_v43, %v17360_v24  ;;  %v17504_v31 = vadd.f32 %v10358_v19, %v17365_v29  ;;  %v17520_v43 = vld [vmem:[%s18120_s11] ss:$0 sm:$0xff] }
 0xb5f   : > { %18437 = vst [vmem:[#allocation65_spill] sm:$0xff] %v17501_v26  ;;  %v10466_v26 = vld [vmem:[#allocation2 + $0xd6] sm:$0xff] }
 0xb64   : > { %v9652_v38 = vpop.f32.mrf.mxu3  ;;  %v17506_v39 = vpop.f32.mrf.mxu2 }
 0xb65   : > { %v17509_v32 = vadd.f32 %v9652_v38, %v17369_v49 }
 0xb67   : > { %18438 = vst [vmem:[#allocation66_spill] sm:$0xff] %v17509_v32  ;;  %v10464_v32 = vld [vmem:[#allocation2 + $0xc6] sm:$0xff] }
 0xb69   : > { %13022 = vmatmul.msk.bf16.gmra.mxu2 %vm557_vm8, %v10246_v25  ;;  %13035 = vmatmul.msk.bf16.gmra.mxu3 %vm557_vm8, %v10488_v3  ;;  %v10489_v25 = vpack.c.bf16 %v10463_v1, %v10462_v11 }
 0xb6c   : > { %v10363_v24 = vpop.f32.mrf.mxu2  ;;  %v10569_v62 = vpop.f32.mrf.mxu3 }
 0xb6d   : > { %v17514_v29 = vadd.f32 %v10363_v24, %v17385_v28  ;;  %v10659_v40 = vadd.f32 %v10569_v62, %v17381_v33  ;;  %v10467_v33 = vld [vmem:[#allocation2 + $0xde] sm:$0xff] }
 0xb6f   : > { %v17526_v18 = vadd.f32 %v17520_v43, %v10659_v40 }
 0xb74   : > { %v17522_v49 = vpop.f32.mrf.mxu2  ;;  %v10571_v38 = vpop.f32.mrf.mxu3 }
 0xb75   : > { %v10660_v19 = vadd.f32 %v10571_v38, %v17392_v36  ;;  %v10465_v38 = vld [vmem:[#allocation2 + $0xce] sm:$0xff] }
 0xb77   : > { %v17529_v28 = vadd.f32 %v17520_v43, %v10660_v19 }
 0xb79   : > { %13036 = vmatmul.msk.bf16.gmra.mxu3 %vm557_vm8, %v10489_v25  ;;  %v10490_v25 = vpack.c.bf16 %v10465_v38, %v10464_v32 }
 0xb7c   : > { %v10368_v52 = vpop.f32.mrf.mxu2  ;;  %v10574_v3 = vpop.f32.mrf.mxu3 }
 0xb7d   : > { %v17535_v24 = vadd.f32 %v10368_v52, %v17404_v37  ;;  %v10661_v36 = vadd.f32 %v10574_v3, %v17400_v58  ;;  %v10469_v37 = vld [vmem:[#allocation2 + $0xee] sm:$0xff] }
 0xb7f   : > { %v17542_v1 = vadd.f32 %v17520_v43, %v10661_v36 }
 0xb84   : > { %v17538_v62 = vpop.f32.mrf.mxu2  ;;  %v10576_v40 = vpop.f32.mrf.mxu3 }
 0xb85   : > { %v10662_v19 = vadd.f32 %v10576_v40, %v17410_v17 }
 0xb87   : > { %v17545_v11 = vadd.f32 %v17520_v43, %v10662_v19 }
 0xb89   : > { %13037 = vmatmul.msk.bf16.gmra.mxu3 %vm557_vm8, %v10490_v25  ;;  %v10491_v25 = vpack.c.bf16 %v10467_v33, %v10466_v26  ;;  %v10492_v33 = vpack.c.bf16 %v10469_v37, %v10468_v4 }
 0xb8c   : > { %v10373_v58 = vpop.f32.mrf.mxu2  ;;  %v10579_v52 = vpop.f32.mrf.mxu3 }
 0xb8d   : > { %v17551_v3 = vadd.f32 %v10373_v58, %v17420_v13  ;;  %v10663_v17 = vadd.f32 %v10579_v52, %v17418_v0  ;;  %v10473_v13 = vld [vmem:[#allocation2 + $0x10e] sm:$0xff] }
 0xb8f   : > { %v17558_v32 = vadd.f32 %v17520_v43, %v10663_v17 }
 0xb94   : > { %v17554_v40 = vpop.f32.mrf.mxu2  ;;  %v10581_v36 = vpop.f32.mrf.mxu3 }
 0xb95   : > { %v10664_v19 = vadd.f32 %v10581_v36, %v17428_v63 }
 0xb97   : > { %v17561_v38 = vadd.f32 %v17520_v43, %v10664_v19 }
 0xb99   : > { %13038 = vmatmul.msk.bf16.gmra.mxu3 %vm557_vm8, %v10491_v25 }
 0xb9c   : > { %v10378_v0 = vpop.f32.mrf.mxu2  ;;  %v10584_v58 = vpop.f32.mrf.mxu3 }
 0xb9d   : > { %v17567_v52 = vadd.f32 %v10378_v0, %v17438_v7  ;;  %v10665_v63 = vadd.f32 %v10584_v58, %v17436_v50  ;;  %v10471_v58 = vld [vmem:[#allocation2 + $0xfe] sm:$0xff] }
 0xb9f   : > { %v17572_v19 = vadd.f32 %v17520_v43, %v10665_v63 }
 0xba4   : > { %v10586_v36 = vpop.f32.mrf.mxu3 }
 0xba5   : > { %v10666_v17 = vadd.f32 %v10586_v36, %v17444_v41  ;;  %v10470_v36 = vld [vmem:[#allocation2 + $0xf6] sm:$0xff] }
 0xba6   : > { %v10493_v4 = vpack.c.bf16 %v10471_v58, %v10470_v36  ;;  %v9918_v36 = vadd.f32 %v17303_v61, %v17314_v27 }
 0xba7   : > { %v17575_v26 = vadd.f32 %v17520_v43, %v10666_v17 }
 0xba9   : > { %13039 = vmatmul.msk.bf16.gmra.mxu3 %vm557_vm8, %v10492_v33 }
 0xbac   : > { %v10589_v25 = vpop.f32.mrf.mxu3 }
 0xbad   : > { %v10667_v50 = vadd.f32 %v10589_v25, %v17452_v35 }
 0xbaf   : > { %v17583_v63 = vadd.f32 %v17520_v43, %v10667_v50 }
 0xbb4   : > { %v10591_v0 = vpop.f32.mrf.mxu3 }
 0xbb5   : > { %v10668_v41 = vadd.f32 %v10591_v0, %v17458_v44  ;;  %v10472_v0 = vld [vmem:[#allocation2 + $0x106] sm:$0xff] }
 0xbb7   : > { %v17586_v17 = vadd.f32 %v17520_v43, %v10668_v41  ;;  %v10494_v41 = vpack.c.bf16 %v10473_v13, %v10472_v0 }
 0xbb9   : > { %13040 = vmatmul.msk.bf16.gmra.mxu3 %vm557_vm8, %v10493_v4  ;;  %v10759_v37 = vpack.c.bf16 %v17586_v17, %v17583_v63  ;;  %v10169_v17 = vadd.f32 %v17316_v51, %v9918_v36  ;;  %v9920_v51 = vadd.f32 %v17329_v8, %v17338_v6 }
 0xbbb   : > { %v10420_v4 = vadd.f32 %v17476_v2, %v10169_v17  ;;  %v10171_v2 = vadd.f32 %v17340_v45, %v9920_v51  ;;  %v10477_v17 = vld [vmem:[#allocation2 + $0x12e] sm:$0xff] }
 0xbbc   : > { %v10594_v33 = vpop.f32.mrf.mxu3 }
 0xbbd   : > { %v10669_v35 = vadd.f32 %v10594_v33, %v17466_v55  ;;  %v9919_v55 = vadd.f32 %v17318_v15, %v17325_v5 }
 0xbbf   : > { %v10709_v50 = vadd.f32 %v17520_v43, %v10669_v35 }
 0xbc4   : > { %v10596_v25 = vpop.f32.mrf.mxu3 }
 0xbc5   : > { %v10670_v44 = vadd.f32 %v10596_v25, %v17472_v54  ;;  %v10170_v54 = vadd.f32 %v17327_v12, %v9919_v55  ;;  %v10475_v25 = vld [vmem:[#allocation2 + $0x11e] sm:$0xff]  ;;  %v9921_v12 = vadd.f32 %v17342_v34, %v17352_v20  ;;  %v10476_v55 = vld [vmem:[#allocation2 + $0x126] sm:$0xff]  ;;  %v9923_v34 = vadd.f32 %v17363_v23, %v17372_v57 }
 0xbc6   : > { %v10496_v6 = vpack.c.bf16 %v10477_v17, %v10476_v55  ;;  %v18439_v57 = vpack.c.bf16 %v17575_v26, %v17572_v19 }
 0xbc7   : > { %v10710_v7 = vadd.f32 %v17520_v43, %v10670_v44  ;;  %v10421_v33 = vadd.f32 %v17481_v56, %v10170_v54  ;;  %v10172_v56 = vadd.f32 %v17354_v14, %v9921_v12  ;;  %v10174_v14 = vadd.f32 %v17374_v30, %v9923_v34 }
 0xbc9   : > { %13041 = vmatmul.msk.bf16.gmra.mxu3 %vm557_vm8, %v10494_v41  ;;  %v10760_v58 = vpack.c.bf16 %v10710_v7, %v10709_v50  ;;  %v10474_v7 = vld [vmem:[#allocation2 + $0x116] sm:$0xff]  ;;  %v10422_v50 = vadd.f32 %v17488_v59, %v10171_v2  ;;  %v10423_v41 = vadd.f32 %v17493_v53, %v10172_v56  ;;  %v10479_v53 = vld [vmem:[#allocation2 + $0x13e] sm:$0xff]  ;;  %v10129_v56 = vpop.f32.mrf.mxu1 }
 0xbca   : > { %v10495_v27 = vpack.c.bf16 %v10475_v25, %v10474_v7  ;;  %v10478_v59 = vld [vmem:[#allocation2 + $0x136] sm:$0xff] }
 0xbcc   : > { %v10599_v63 = vpop.f32.mrf.mxu3 }
 0xbcd   : > { %v10671_v35 = vadd.f32 %v10599_v63, %v10420_v4 }
 0xbcf   : > { %v10711_v0 = vadd.f32 %v17520_v43, %v10671_v35  ;;  %v10425_v35 = vadd.f32 %v17506_v39, %v10174_v14 }
 0xbd4   : > { %v10601_v13 = vpop.f32.mrf.mxu3 }
 0xbd5   : > { %v10672_v44 = vadd.f32 %v10601_v13, %v10421_v33 }
 0xbd7   : > { %v10712_v61 = vadd.f32 %v17520_v43, %v10672_v44  ;;  %v10497_v44 = vpack.c.bf16 %v10479_v53, %v10478_v59 }
 0xbd9   : > { %13042 = vmatmul.msk.bf16.gmra.mxu3 %vm557_vm8, %v10495_v27  ;;  %v10761_v15 = vpack.c.bf16 %v10712_v61, %v10711_v0  ;;  %v18441_v27 = vpack.c.bf16 %v17545_v11, %v17542_v1 }
 0xbdc   : > { %v10604_v5 = vpop.f32.mrf.mxu3 }
 0xbdd   : > { %v10673_v36 = vadd.f32 %v10604_v5, %v10422_v50 }
 0xbdf   : > { %v10713_v4 = vadd.f32 %v17520_v43, %v10673_v36  ;;  %v18446_v36 = vld [vmem:[#allocation61_spill] sm:$0xff] }
 0xbe4   : > { %v10606_v63 = vpop.f32.mrf.mxu3 }
 0xbe5   : > { %v10674_v54 = vadd.f32 %v10606_v63, %v10423_v41  ;;  %v18445_v41 = vld [vmem:[#allocation59_spill] sm:$0xff] }
 0xbe7   : > { %v10714_v8 = vadd.f32 %v17520_v43, %v10674_v54 }
 0xbe9   : > { %v10762_v33 = vpack.c.bf16 %v10714_v8, %v10713_v4  ;;  %13043 = vmatmul.msk.bf16.gmra.mxu3 %vm557_vm8, %v10496_v6  ;;  %v10132_v4 = vpop.f32.mrf.mxu1 }
 0xbeb   : > { %10863 = vmatpush.bf16.msrb.mxu0 %v10762_v33 }
 0xbec   : > { %v10609_v45 = vpop.f32.mrf.mxu3 }
 0xbed   : > { %v10675_v20 = vadd.f32 %v10609_v45, %v17504_v31  ;;  %v9925_v31 = vadd.f32 %v17383_v10, %v17389_v47  ;;  %v18442_v47 = vpack.c.bf16 %v17529_v28, %v17526_v18  ;;  %v9878_v28 = vpop.f32.mrf.mxu0 }
 0xbee   : > { %v9931_v14 = vadd.f32 %v9878_v28, %v17441_v46 }
 0xbef   : > { %10864 = vmatpush.bf16.msrb.mxu0 %v10761_v15  ;;  %v17624_v7 = vadd.f32 %v17520_v43, %v10675_v20 }
 0xbf3   : > { %10865 = vmatpush.bf16.msrb.mxu0 %v10760_v58  ;;  %v18440_v58 = vpack.c.bf16 %v17561_v38, %v17558_v32 }
 0xbf4   : > { %v10611_v13 = vpop.f32.mrf.mxu3 }
 0xbf5   : > { %v10676_v25 = vadd.f32 %v10611_v13, %v10425_v35  ;;  %v9881_v55 = vpop.f32.mrf.mxu0  ;;  %v10182_v35 = vadd.f32 %v10129_v56, %v9931_v14 }
 0xbf7   : > { %v17627_v0 = vadd.f32 %v17520_v43, %v10676_v25  ;;  %10866 = vmatpush.bf16.msrb.mxu0 %v10759_v37  ;;  %v10176_v37 = vadd.f32 %v17394_v22, %v9925_v31 }
 0xbf9   : > { %13044 = vmatmul.msk.bf16.gmra.mxu3 %vm557_vm8, %v10497_v44  ;;  %v10763_v23 = vpack.c.bf16 %v17627_v0, %v17624_v7  ;;  %v10427_v61 = vadd.f32 %v17522_v49, %v10176_v37  ;;  %v18443_v49 = vld [vmem:[#allocation58_spill] sm:$0xff]  ;;  %v13315_v7 = vld [vmem:[%s18452_s22 + $0x38] sm:$0xf0] }
 0xbfa   : > { %v9927_v1 = vadd.f32 %v18443_v49, %v17407_v9  ;;  %v10380_v9 = vpop.f32.mrf.mxu2  ;;  %v13311_v0 = vld [vmem:[%s18452_s22 + $0x1c] sm:$0xf] }
 0xbfb   : > { %10867 = vmatpush.bf16.msrb.mxu0 %v18439_v57  ;;  %v10433_v13 = vadd.f32 %v10380_v9, %v10182_v35 }
 0xbfc   : > { %v10614_v30 = vpop.f32.mrf.mxu3  ;;  %v10178_v32 = vadd.f32 %v17412_v42, %v9927_v1 }
 0xbfd   : > { %v10677_v39 = vadd.f32 %v10614_v30, %v17514_v29  ;;  %v9883_v20 = vpop.f32.mrf.mxu0 }
 0xbfe   : > { %v10429_v38 = vadd.f32 %v17538_v62, %v10178_v32 }
 0xbff   : > { %10868 = vmatpush.bf16.msrb.mxu0 %v18440_v58  ;;  %v17647_v15 = vadd.f32 %v17520_v43, %v10677_v39 }
 0xc02   : > { %v10383_v6 = vpop.f32.mrf.mxu2 }
 0xc03   : > { %10869 = vmatpush.bf16.msrb.mxu0 %v18441_v27 }
 0xc04   : > { %v10616_v19 = vpop.f32.mrf.mxu3 }
 0xc05   : > { %v10678_v26 = vadd.f32 %v10616_v19, %v10427_v61  ;;  %v9886_v57 = vpop.f32.mrf.mxu0  ;;  %v9933_v61 = vadd.f32 %v9883_v20, %v17455_v60 }
 0xc07   : > { %v17650_v10 = vadd.f32 %v17520_v43, %v10678_v26  ;;  %10870 = vmatpush.bf16.msrb.mxu0 %v18442_v47 }
 0xc09   : > { %v10764_v22 = vpack.c.bf16 %v17650_v10, %v17647_v15  ;;  %v13055_v10 = vld [vmem:[%s18452_s22 + $0x8] sm:$0xf] }
 0xc0a   : > { %v10385_v53 = vpop.f32.mrf.mxu2 }
 0xc0c   : > { %v10619_v29 = vpop.f32.mrf.mxu3 }
 0xc0d   : > { %v10679_v11 = vadd.f32 %v10619_v29, %v17535_v24  ;;  %v18444_v24 = vld [vmem:[#allocation60_spill] sm:$0xff]  ;;  %v9888_v19 = vpop.f32.mrf.mxu0 }
 0xc0e   : > { %v9929_v42 = vadd.f32 %v18445_v41, %v18444_v24  ;;  %v9935_v60 = vadd.f32 %v9888_v19, %v17469_v48 }
 0xc0f   : > { %v17663_v12 = vadd.f32 %v17520_v43, %v10679_v11 }
 0xc10   : > { %v10180_v63 = vadd.f32 %v18446_v36, %v9929_v42 }
 0xc12   : > { %v10431_v17 = vadd.f32 %v17554_v40, %v10180_v63  ;;  %v10134_v40 = vpop.f32.mrf.mxu1  ;;  %v10388_v46 = vpop.f32.mrf.mxu2 }
 0xc13   : > { %v10184_v26 = vadd.f32 %v10134_v40, %v9933_v61 }
 0xc14   : > { %v10621_v51 = vpop.f32.mrf.mxu3 }
 0xc15   : > { %v10680_v5 = vadd.f32 %v10621_v51, %v10429_v38  ;;  %v10435_v49 = vadd.f32 %v10385_v53, %v10184_v26  ;;  %v9891_v56 = vpop.f32.mrf.mxu0 }
 0xc17   : > { %v17666_v18 = vadd.f32 %v17520_v43, %v10680_v5 }
 0xc19   : > { %v10765_v2 = vpack.c.bf16 %v17666_v18, %v17663_v12  ;;  %v13308_v12 = vld [vmem:[%s18452_s22 + $0x4] sm:$0xf]  ;;  %v13049_v18 = vld [vmem:[%s18452_s22 + $0xc] sm:$0xf0] }
 0xc1a   : > { %v10137_v39 = vpop.f32.mrf.mxu1  ;;  %v10390_v11 = vpop.f32.mrf.mxu2 }
 0xc1c   : > { %v10624_v50 = vpop.f32.mrf.mxu3 }
 0xc1d   : > { %v10681_v62 = vadd.f32 %v10624_v50, %v17551_v3 }
 0xc1f   : > { %v17676_v33 = vadd.f32 %v17520_v43, %v10681_v62 }
 0xc22   : > { %v10139_v29 = vpop.f32.mrf.mxu1  ;;  %v10393_v24 = vpop.f32.mrf.mxu2 }
 0xc23   : > { %v10186_v42 = vadd.f32 %v10139_v29, %v9935_v60  ;;  %v13047_v60 = vld [vmem:[%s18452_s22] sm:$0xf] }
 0xc24   : > { %v10626_v54 = vpop.f32.mrf.mxu3 }
 0xc25   : > { %v10682_v8 = vadd.f32 %v10626_v54, %v10431_v17  ;;  %v10437_v36 = vadd.f32 %v10390_v11, %v10186_v42 }
 0xc27   : > { %v17679_v45 = vadd.f32 %v17520_v43, %v10682_v8 }
 0xc29   : > { %v10766_v34 = vpack.c.bf16 %v17679_v45, %v17676_v33  ;;  %v13059_v45 = vld [vmem:[%s18452_s22 + $0x18] sm:$0xf] }
 0xc2a   : > { %v10142_v50 = vpop.f32.mrf.mxu1  ;;  %v10395_v20 = vpop.f32.mrf.mxu2 }
 0xc2c   : > { %v10629_v3 = vpop.f32.mrf.mxu3 }
 0xc2d   : > { %v10683_v59 = vadd.f32 %v10629_v3, %v17567_v52  ;;  %v9932_v52 = vadd.f32 %v9881_v55, %v17449_v16  ;;  %v9934_v16 = vadd.f32 %v9886_v57, %v17463_v21  ;;  %v9893_v55 = vpop.f32.mrf.mxu0  ;;  %v18447_v3 = vld [vmem:[#allocation62_spill] sm:$0xff] }
 0xc2e   : > { %v9936_v14 = vadd.f32 %v9891_v56, %v18447_v3 }
 0xc2f   : > { %v17686_v30 = vadd.f32 %v17520_v43, %v10683_v59  ;;  %v10183_v27 = vadd.f32 %v10132_v4, %v9932_v52  ;;  %v10185_v41 = vadd.f32 %v10137_v39, %v9934_v16  ;;  %v18448_v59 = vld [vmem:[#allocation67_spill] sm:$0xff] }
 0xc30   : > { %v9937_v40 = vadd.f32 %v9893_v55, %v18448_v59  ;;  %v10187_v35 = vadd.f32 %v10142_v50, %v9936_v14  ;;  %v13309_v50 = vld [vmem:[%s18452_s22 + $0x8] sm:$0xf0] }
 0xc31   : > { %v10434_v47 = vadd.f32 %v10383_v6, %v10183_v27  ;;  %v10436_v62 = vadd.f32 %v10388_v46, %v10185_v41  ;;  %v13048_v42 = vor.u32 %v13309_v50, %v13047_v60  ;;  %v13319_v60 = vld [vmem:[%s18452_s22 + $0x58] sm:$0xf0] }
 0xc32   : > { %v10144_v4 = vpop.f32.mrf.mxu1  ;;  %v10398_v57 = vpop.f32.mrf.mxu2 }
 0xc33   : > { %10871 = vmatmul.bf16.vlgmr.msrb.gmra.mxu0 %v13048_v42 }
 0xc34   : > { %v10631_v25 = vpop.f32.mrf.mxu3 }
 0xc35   : > { %v10684_v44 = vadd.f32 %v10631_v25, %v10433_v13  ;;  %v9896_v53 = vpop.f32.mrf.mxu0  ;;  %v10188_v13 = vadd.f32 %v10144_v4, %v9937_v40  ;;  %v18453_v4 = vld [vmem:[#allocation65_spill] sm:$0xff] }
 0xc37   : > { %v17689_v31 = vadd.f32 %v17520_v43, %v10684_v44  ;;  %v10438_v44 = vadd.f32 %v10393_v24, %v10187_v35  ;;  %v10439_v39 = vadd.f32 %v10395_v20, %v10188_v13  ;;  %v13052_v35 = vor.u32 %v13308_v12, %v13049_v18 }
 0xc39   : > { %v10767_v58 = vpack.c.bf16 %v17689_v31, %v17686_v30 }
 0xc3a   : > { %v10147_v25 = vpop.f32.mrf.mxu1 }
 0xc3c   : > { %v10634_v37 = vpop.f32.mrf.mxu3 }
 0xc3d   : > { %v10685_v1 = vadd.f32 %v10634_v37, %v10434_v47  ;;  %v9898_v19 = vpop.f32.mrf.mxu0  ;;  %v18449_v47 = vld [vmem:[#allocation63_spill] sm:$0xff] }
 0xc3e   : > { %v9938_v29 = vadd.f32 %v9896_v53, %v18449_v47 }
 0xc3f   : > { %v10725_v51 = vadd.f32 %v17520_v43, %v10685_v1  ;;  %v10400_v1 = vpop.f32.mrf.mxu2 }
 0xc44   : > { %v10636_v32 = vpop.f32.mrf.mxu3 }
 0xc45   : > { %v10686_v38 = vadd.f32 %v10636_v32, %v10435_v49  ;;  %v10149_v49 = vpop.f32.mrf.mxu1  ;;  %v18450_v32 = vld [vmem:[#allocation64_spill] sm:$0xff] }
 0xc47   : > { %v10726_v5 = vadd.f32 %v17520_v43, %v10686_v38  ;;  %v9939_v38 = vadd.f32 %v9898_v19, %v18450_v32  ;;  %v10403_v55 = vpop.f32.mrf.mxu2  ;;  %v13314_v19 = vld [vmem:[%s18452_s22 + $0x34] sm:$0xf]  ;;  %v13095_v32 = vld [vmem:[%s18452_s22 + $0x60] sm:$0xf] }
 0xc49   : > { %v10768_v28 = vpack.c.bf16 %v10726_v5, %v10725_v51  ;;  %v10189_v51 = vadd.f32 %v10147_v25, %v9938_v29  ;;  %v18451_v5 = vmov 0.0   ;;  %v10190_v56 = vadd.f32 %v10149_v49, %v9939_v38  ;;  %v13079_v49 = vld [vmem:[%s18452_s22 + $0x38] sm:$0xf]  ;;  %v13321_v38 = vld [vmem:[%s18452_s22 + $0x68] sm:$0xf0] }
 0xc4a   : > { %641 = vst.msk [vmem:[#allocation4] sm:$0xff] %vm640_vm9, %v18451_v5 }
 0xc4b   : > { %v10440_v16 = vadd.f32 %v10398_v57, %v10189_v51  ;;  %642 = vst.msk [vmem:[#allocation4 + $0x8] sm:$0xff] %vm640_vm9, %v18451_v5  ;;  %v10441_v24 = vadd.f32 %v10400_v1, %v10190_v56  ;;  %v13316_v1 = vld [vmem:[%s18452_s22 + $0x40] sm:$0xf0]  ;;  %v13317_v51 = vld [vmem:[%s18452_s22 + $0x4c] sm:$0xf]  ;;  %v13096_v56 = vor.u32 %v13321_v38, %v13095_v32 }
 0xc4c   : > { %v10639_v9 = vpop.f32.mrf.mxu3  ;;  %643 = vst.msk [vmem:[#allocation4 + $0x10] sm:$0xff] %vm640_vm9, %v18451_v5 }
 0xc4d   : > { %v10687_v63 = vadd.f32 %v10639_v9, %v10436_v62  ;;  %v9901_v9 = vpop.f32.mrf.mxu0  ;;  %644 = vst.msk [vmem:[#allocation4 + $0x18] sm:$0xff] %vm640_vm9, %v18451_v5  ;;  %v10152_v62 = vpop.f32.mrf.mxu1 }
 0xc4e   : > { %645 = vst.msk [vmem:[#allocation4 + $0x20] sm:$0xff] %vm640_vm9, %v18451_v5 }
 0xc4f   : > { %v10727_v8 = vadd.f32 %v17520_v43, %v10687_v63  ;;  %646 = vst.msk [vmem:[#allocation4 + $0x28] sm:$0xff] %vm640_vm9, %v18451_v5  ;;  %v10405_v3 = vpop.f32.mrf.mxu2 }
 0xc50   : > { %647 = vst.msk [vmem:[#allocation4 + $0x30] sm:$0xff] %vm640_vm9, %v18451_v5 }
 0xc51   : > { %648 = vst.msk [vmem:[#allocation4 + $0x38] sm:$0xff] %vm640_vm9, %v18451_v5 }
 0xc52   : > { %649 = vst.msk [vmem:[#allocation4 + $0x40] sm:$0xff] %vm640_vm9, %v18451_v5 }
 0xc53   : > { %650 = vst.msk [vmem:[#allocation4 + $0x48] sm:$0xff] %vm640_vm9, %v18451_v5 }
 0xc54   : > { %v10641_v17 = vpop.f32.mrf.mxu3  ;;  %651 = vst.msk [vmem:[#allocation4 + $0x50] sm:$0xff] %vm640_vm9, %v18451_v5 }
 0xc55   : > { %v10688_v54 = vadd.f32 %v10641_v17, %v10437_v36  ;;  %652 = vst.msk [vmem:[#allocation4 + $0x58] sm:$0xff] %vm640_vm9, %v18451_v5  ;;  %v9903_v30 = vpop.f32.mrf.mxu0  ;;  %v10154_v20 = vpop.f32.mrf.mxu1 }
 0xc56   : > { %653 = vst.msk [vmem:[#allocation4 + $0x60] sm:$0xff] %vm640_vm9, %v18451_v5  ;;  %v13085_v5 = vld [vmem:[%s18452_s22 + $0x54] sm:$0xf0] }
 0xc57   : > { %v10728_v6 = vadd.f32 %v17520_v43, %v10688_v54 }
 0xc59   : > { %v10769_v21 = vpack.c.bf16 %v10728_v6, %v10727_v8  ;;  %v9940_v8 = vadd.f32 %v9901_v9, %v18453_v4  ;;  %v13091_v9 = vld [vmem:[%s18452_s22 + $0x50] sm:$0xf] }
 0xc5a   : > { %v13092_v50 = vor.u32 %v13319_v60, %v13091_v9 }
 0xc5c   : > { %v10644_v48 = vpop.f32.mrf.mxu3 }
 0xc5d   : > { %v10689_v46 = vadd.f32 %v10644_v48, %v10438_v44 }
 0xc5f   : > { %v10729_v61 = vadd.f32 %v17520_v43, %v10689_v46  ;;  %v13067_v46 = vld [vmem:[%s18452_s22 + $0x20] sm:$0xf] }
 0xc64   : > { %v10646_v52 = vpop.f32.mrf.mxu3 }
 0xc65   : > { %v10690_v37 = vadd.f32 %v10646_v52, %v10439_v39  ;;  %v13313_v52 = vld [vmem:[%s18452_s22 + $0x28] sm:$0xf0] }
 0xc67   : > { %v10730_v27 = vadd.f32 %v17520_v43, %v10690_v37  ;;  %v13068_v37 = vor.u32 %v13313_v52, %v13067_v46 }
 0xc69   : > { %v10770_v26 = vpack.c.bf16 %v10730_v27, %v10729_v61  ;;  %v13083_v61 = vld [vmem:[%s18452_s22 + $0x48] sm:$0xf]  ;;  %v13318_v27 = vld [vmem:[%s18452_s22 + $0x50] sm:$0xf0] }
 0xc6a   : > { %v13084_v47 = vor.u32 %v13318_v27, %v13083_v61 }
 0xc6b   : > { %10897 = vmatpush.bf16.msrb.mxu1 %v10770_v26  ;;  %v13073_v26 = vld [vmem:[%s18452_s22 + $0x3c] sm:$0xf0] }
 0xc6c   : > { %v10649_v11 = vpop.f32.mrf.mxu3  ;;  %v13076_v29 = vor.u32 %v13314_v19, %v13073_v26 }
 0xc6d   : > { %v10691_v41 = vadd.f32 %v10649_v11, %v10440_v16  ;;  %v13080_v11 = vor.u32 %v13316_v1, %v13079_v49  ;;  %v13088_v16 = vor.u32 %v13317_v51, %v13085_v5 }
 0xc6f   : > { %10898 = vmatpush.bf16.msrb.mxu1 %v10769_v21  ;;  %v10191_v21 = vadd.f32 %v10152_v62, %v9940_v8  ;;  %v13103_v62 = vld [vmem:[%s18452_s22 + $0x68] sm:$0xf] }
 0xc70   : > { %v13324_v8 = vld [vmem:[%s18121_s12 + $0x8] sm:$0xff] }
 0xc71   : > { %v10442_v33 = vadd.f32 %v10403_v55, %v10191_v21  ;;  %11117 = vmatpush.bf16.msra.mxu0 %v13324_v8 }
 0xc73   : > { %10899 = vmatpush.bf16.msrb.mxu1 %v10768_v28  ;;  %v10731_v28 = vadd.f32 %v17520_v43, %v10691_v41  ;;  %v13097_v41 = vld [vmem:[%s18452_s22 + $0x6c] sm:$0xf0] }
 0xc74   : > { %v10651_v36 = vpop.f32.mrf.mxu3 }
 0xc75   : > { %v10692_v63 = vadd.f32 %v10651_v36, %v10441_v24  ;;  %v13320_v24 = vld [vmem:[%s18452_s22 + $0x64] sm:$0xf]  ;;  %v13322_v36 = vld [vmem:[%s18452_s22 + $0x70] sm:$0xf0] }
 0xc76   : > { %v13100_v42 = vor.u32 %v13320_v24, %v13097_v41 }
 0xc77   : > { %v10732_v17 = vadd.f32 %v17520_v43, %v10692_v63  ;;  %10900 = vmatpush.bf16.msrb.mxu1 %v10767_v58  ;;  %v18454_v58 = vld [vmem:[#allocation66_spill] sm:$0xff]  ;;  %v13104_v63 = vor.u32 %v13322_v36, %v13103_v62 }
 0xc78   : > { %v9941_v6 = vadd.f32 %v9903_v30, %v18454_v58  ;;  %v13328_v30 = vld [vmem:[%s18121_s12 + $0x28] sm:$0xff]  ;;  %v13323_v58 = vld [vmem:[%s18121_s12] sm:$0xff] }
 0xc79   : > { %v10771_v54 = vpack.c.bf16 %v10732_v17, %v10731_v28  ;;  %v13326_v28 = vld [vmem:[%s18121_s12 + $0x18] sm:$0xff]  ;;  %v13325_v17 = vld [vmem:[%s18121_s12 + $0x10] sm:$0xff]  ;;  %11118 = vmatpush.bf16.msra.mxu0 %v13323_v58 }
 0xc7a   : > { %v10192_v14 = vadd.f32 %v10154_v20, %v9941_v6  ;;  %11056 = vmatpush.bf16.msrb.mxu3 %v13326_v28  ;;  %v13327_v6 = vld [vmem:[%s18121_s12 + $0x20] sm:$0xff] }
 0xc7b   : > { %10901 = vmatpush.bf16.msrb.mxu1 %v10766_v34  ;;  %v13312_v34 = vld [vmem:[%s18452_s22 + $0x20] sm:$0xf0] }
 0xc7c   : > { %v10654_v31 = vpop.f32.mrf.mxu3  ;;  %v10443_v48 = vadd.f32 %v10405_v3, %v10192_v14  ;;  %v13330_v3 = vld [vmem:[%s18121_s12 + $0x38] sm:$0xff] }
 0xc7d   : > { %v10693_v59 = vadd.f32 %v10654_v31, %v10442_v33 }
 0xc7e   : > { %11057 = vmatpush.bf16.msrb.mxu3 %v13325_v17 }
 0xc7f   : > { %10902 = vmatpush.bf16.msrb.mxu1 %v10765_v2  ;;  %v13060_v2 = vor.u32 %v13312_v34, %v13059_v45  ;;  %v10733_v13 = vadd.f32 %v17520_v43, %v10693_v59  ;;  %v13329_v34 = vld [vmem:[%s18121_s12 + $0x30] sm:$0xff] }
 0xc81   : > { %10876 = vmatmul.bf16.gmra.mxu0 %v13060_v2 }
 0xc83   : > { %10903 = vmatpush.bf16.msrb.mxu1 %v10764_v22  ;;  %v13310_v22 = vld [vmem:[%s18452_s22 + $0x10] sm:$0xf0] }
 0xc84   : > { %v10656_v40 = vpop.f32.mrf.mxu3  ;;  %v13056_v44 = vor.u32 %v13310_v22, %v13055_v10 }
 0xc85   : > { %v10694_v53 = vadd.f32 %v10656_v40, %v10443_v48  ;;  %v11004_v40 = vld [vmem:[#allocation4 + $0x1] sm:$0xff] }
 0xc87   : > { %v10734_v25 = vadd.f32 %v17520_v43, %v10694_v53  ;;  %10904 = vmatpush.bf16.msrb.mxu1 %v10763_v23  ;;  %v13071_v43 = vld [vmem:[%s18452_s22 + $0x30] sm:$0xf]  ;;  %v13061_v23 = vld [vmem:[%s18452_s22 + $0x24] sm:$0xf0] }
 0xc88   : > { %v13072_v57 = vor.u32 %v13315_v7, %v13071_v43  ;;  %v13064_v39 = vor.u32 %v13311_v0, %v13061_v23 }
 0xc89   : > { %v10772_v15 = vpack.c.bf16 %v10734_v25, %v10733_v13  ;;  %v11145_v13 = vld [vmem:[#allocation4 + $0x2] sm:$0xff] }
 0xc8a   : > { %10905 = vmatmul.bf16.vlgmr.msrb.gmra.mxu1 %v13052_v35  ;;  %v10985_v35 = vld [vmem:[#allocation4] sm:$0xff] }
 0xc8b   : > { %10937 = vmatpush.bf16.msrb.mxu2 %v10772_v15  ;;  %11197 = vmatpush.bf16.msra.mxu1 %v13328_v30 }
 0xc8f   : > { %10938 = vmatpush.bf16.msrb.mxu2 %v10771_v54  ;;  %11198 = vmatpush.bf16.msra.mxu1 %v13327_v6 }
 0xc91   : > { %10881 = vmatmul.bf16.gmra.mxu0 %v13072_v57 }
 0xc92   : > { %13105 = vmatmul.msk.bf16.vlgmr.msrb.gmra.mxu2 %vm640_vm9, %v13056_v44 }
 0xc93   : > { %11287 = vmatpush.bf16.msra.mxu2 %v13330_v3 }
 0xc97   : > { %11288 = vmatpush.bf16.msra.mxu2 %v13329_v34 }
 0xc9a   : > { %10910 = vmatmul.bf16.gmra.mxu1 %v13064_v39 }
 0xca1   : > { %10886 = vmatmul.bf16.gmra.mxu0 %v13084_v47 }
 0xca2   : > { %13106 = vmatmul.msk.bf16.gmra.mxu2 %vm640_vm9, %v13068_v37 }
 0xcaa   : > { %10915 = vmatmul.bf16.gmra.mxu1 %v13076_v29 }
 0xcb0   : > { %v10872_v55 = vpop.f32.mrf.mxu0 }
 0xcb1   : > { %10891 = vmatmul.bf16.gmra.mxu0 %v13096_v56 }
 0xcb2   : > { %13107 = vmatmul.msk.bf16.gmra.mxu2 %vm640_vm9, %v13080_v11 }
 0xcb8   : > { %v10874_v4 = vpop.f32.mrf.mxu0 }
 0xcba   : > { %10920 = vmatmul.bf16.gmra.mxu1 %v13088_v16 }
 0xcc2   : > { %13108 = vmatmul.msk.bf16.gmra.mxu2 %vm640_vm9, %v13092_v50 }
 0xcca   : > { %10925 = vmatmul.bf16.gmra.mxu1 %v13100_v42 }
 0xcd2   : > { %13109 = vmatmul.msk.bf16.gmra.mxu2 %vm640_vm9, %v13104_v63 }
 0xcfe   : > { %v10877_v21 = vpop.f32.mrf.mxu0 }
 0xd06   : > { %v10879_v12 = vpop.f32.mrf.mxu0 }
 0xd07   : > { %v10906_v54 = vpop.f32.mrf.mxu1 }
 0xd08   : > { %v10907_v20 = vadd.f32 %v10906_v54, %v10872_v55 }
 0xd0e   : > { %v10882_v39 = vpop.f32.mrf.mxu0 }
 0xd0f   : > { %v10908_v31 = vpop.f32.mrf.mxu1 }
 0xd10   : > { %v10909_v59 = vadd.f32 %v10908_v31, %v10874_v4 }
 0xd15   : > { %v10940_v14 = vpop.f32.mrf.mxu2 }
 0xd16   : > { %v10941_v33 = vadd.f32 %v10940_v14, %v10907_v20  ;;  %v10884_v49 = vpop.f32.mrf.mxu0 }
 0xd17   : > { %v10911_v45 = vpop.f32.mrf.mxu1 }
 0xd18   : > { %v10965_v48 = vmax.f32 %v10941_v33, 0.0  ;;  %11799 = vrot.lane.b32.xlu0 %v10941_v33, %s13535_s30  ;;  %v10912_v44 = vadd.f32 %v10911_v45, %v10877_v21 }
 0xd1a   : > { %10975 = vst.msk [vmem:[#allocation4 + $0xb] sm:$0xff] %vm640_vm9, %v10965_v48  ;;  %v13332_v48 = vld [vmem:[%s18121_s12 + $0x48] sm:$0xff] }
 0xd1b   : > { %11377 = vmatpush.bf16.msra.mxu3 %v13332_v48 }
 0xd1d   : > { %v10942_v18 = vpop.f32.mrf.mxu2 }
 0xd1e   : > { %v10943_v2 = vadd.f32 %v10942_v18, %v10909_v59  ;;  %v10887_v42 = vpop.f32.mrf.mxu0 }
 0xd1f   : > { %v10913_v53 = vpop.f32.mrf.mxu1 }
 0xd20   : > { %v10966_v25 = vmax.f32 %v10943_v2, 0.0  ;;  %11801 = vrot.lane.b32.xlu1 %v10943_v2, %s13535_s30  ;;  %v10914_v27 = vadd.f32 %v10913_v53, %v10879_v12  ;;  %v13331_v12 = vld [vmem:[%s18121_s12 + $0x40] sm:$0xff] }
 0xd21   : > { %v11005_v15 = vld [vmem:[#allocation4 + $0x9] sm:$0xff]  ;;  %11378 = vmatpush.bf16.msra.mxu3 %v13331_v12 }
 0xd22   : > { %v11235_v10 = vld [vmem:[#allocation4 + $0xa] sm:$0xff]  ;;  %10976 = vst.msk [vmem:[#allocation4 + $0x13] sm:$0xff] %vm640_vm9, %v10966_v25  ;;  %v11014_v43 = vpack.c.bf16 %v11005_v15, %v11004_v40 }
 0xd23   : > { %v10986_v22 = vld [vmem:[#allocation4 + $0x8] sm:$0xff]  ;;  %v11155_v0 = vpack.c.bf16 %v11235_v10, %v11145_v13 }
 0xd24   : > { %v10995_v7 = vpack.c.bf16 %v10986_v22, %v10985_v35  ;;  %13118 = vmatmul.msk.bf16.vlgmr.msrb.gmra.mxu3 %vm640_vm9, %v11014_v43 }
 0xd25   : > { %v10945_v23 = vpop.f32.mrf.mxu2  ;;  %13144 = vmatmul.msk.bf16.vlgmr.msra.gmra.mxu1 %vm640_vm9, %v11155_v0 }
 0xd26   : > { %13131 = vmatmul.msk.bf16.vlgmr.msra.gmra.mxu0 %vm640_vm9, %v10995_v7  ;;  %v10946_v57 = vadd.f32 %v10945_v23, %v10912_v44  ;;  %v10889_v3 = vpop.f32.mrf.mxu0 }
 0xd27   : > { %v10916_v46 = vpop.f32.mrf.mxu1 }
 0xd28   : > { %v10967_v52 = vmax.f32 %v10946_v57, 0.0  ;;  %11803 = vrot.lane.b32.xlu2 %v10946_v57, %s13535_s30  ;;  %v10917_v5 = vadd.f32 %v10916_v46, %v10882_v39  ;;  %v698_v46 = vld [vmem:[%s18233_s3 + $0x40] sm:$0xff] }
 0xd29   : > { %v11236_v37 = vld [vmem:[#allocation4 + $0x12] sm:$0xff] }
 0xd2a   : > { %10977 = vst.msk [vmem:[#allocation4 + $0x1b] sm:$0xff] %vm640_vm9, %v10967_v52  ;;  %v11245_v61 = vpack.c.bf16 %v11236_v37, %v11235_v10  ;;  %v11006_v29 = vld [vmem:[#allocation4 + $0x11] sm:$0xff] }
 0xd2b   : > { %v10987_v1 = vld [vmem:[#allocation4 + $0x10] sm:$0xff] }
 0xd2c   : > { %13157 = vmatmul.msk.bf16.vlgmr.msra.gmra.mxu2 %vm640_vm9, %v11245_v61 }
 0xd2d   : > { %v10947_v19 = vpop.f32.mrf.mxu2 }
 0xd2e   : > { %v10948_v26 = vadd.f32 %v10947_v19, %v10914_v27  ;;  %v10892_v35 = vpop.f32.mrf.mxu0 }
 0xd2f   : > { %v10918_v32 = vpop.f32.mrf.mxu1 }
 0xd30   : > { %v10968_v47 = vmax.f32 %v10948_v26, 0.0  ;;  %11805 = vrot.lane.b32.xlu0 %v10948_v26, %s13535_s30  ;;  %v10919_v63 = vadd.f32 %v10918_v32, %v10884_v49 }
 0xd31   : > { %v11007_v11 = vld [vmem:[#allocation4 + $0x19] sm:$0xff] }
 0xd32   : > { %v11237_v38 = vld [vmem:[#allocation4 + $0x1a] sm:$0xff]  ;;  %10978 = vst.msk [vmem:[#allocation4 + $0x23] sm:$0xff] %vm640_vm9, %v10968_v47  ;;  %v11015_v56 = vpack.c.bf16 %v11007_v11, %v11006_v29  ;;  %v13334_v47 = vld [vmem:[%s18121_s12 + $0x58] sm:$0xff] }
 0xd33   : > { %v10988_v51 = vld [vmem:[#allocation4 + $0x18] sm:$0xff]  ;;  %v11156_v9 = vpack.c.bf16 %v11237_v38, %v11236_v37  ;;  %v697_v11 = vld [vmem:[%s18233_s3 + $0x38] sm:$0xff]  ;;  %11467 = vmatpush.bf16.msrb.mxu0 %v13334_v47 }
 0xd34   : > { %v10996_v16 = vpack.c.bf16 %v10988_v51, %v10987_v1  ;;  %13119 = vmatmul.msk.bf16.gmra.mxu3 %vm640_vm9, %v11015_v56  ;;  %v13336_v29 = vld [vmem:[%s18121_s12 + $0x68] sm:$0xff]  ;;  %v13335_v51 = vld [vmem:[%s18121_s12 + $0x60] sm:$0xff] }
 0xd35   : > { %v10950_v60 = vpop.f32.mrf.mxu2  ;;  %13145 = vmatmul.msk.bf16.gmra.mxu1 %vm640_vm9, %v11156_v9 }
 0xd36   : > { %13132 = vmatmul.msk.bf16.gmra.mxu0 %vm640_vm9, %v10996_v16  ;;  %v10951_v50 = vadd.f32 %v10950_v60, %v10917_v5  ;;  %v10894_v61 = vpop.f32.mrf.mxu0  ;;  %11557 = vmatpush.bf16.msrb.mxu1 %v13336_v29 }
 0xd37   : > { %v10921_v36 = vpop.f32.mrf.mxu1 }
 0xd38   : > { %v10969_v24 = vmax.f32 %v10951_v50, 0.0  ;;  %11807 = vrot.lane.b32.xlu0 %v10951_v50, %s13535_s30  ;;  %v10922_v58 = vadd.f32 %v10921_v36, %v10887_v42  ;;  %v699_v36 = vld [vmem:[%s18233_s3 + $0x48] sm:$0xff] }
 0xd39   : > { %v11238_v41 = vld [vmem:[#allocation4 + $0x22] sm:$0xff] }
 0xd3a   : > { %10979 = vst.msk [vmem:[#allocation4 + $0x2b] sm:$0xff] %vm640_vm9, %v10969_v24  ;;  %v11246_v62 = vpack.c.bf16 %v11238_v41, %v11237_v38  ;;  %v11008_v54 = vld [vmem:[#allocation4 + $0x21] sm:$0xff]  ;;  %11558 = vmatpush.bf16.msrb.mxu1 %v13335_v51 }
 0xd3b   : > { %v10989_v4 = vld [vmem:[#allocation4 + $0x20] sm:$0xff] }
 0xd3c   : > { %13158 = vmatmul.msk.bf16.gmra.mxu2 %vm640_vm9, %v11246_v62  ;;  %v13333_v38 = vld [vmem:[%s18121_s12 + $0x50] sm:$0xff]  ;;  %v13338_v62 = vld [vmem:[%s18121_s12 + $0x78] sm:$0xff] }
 0xd3d   : > { %v10952_v55 = vpop.f32.mrf.mxu2  ;;  %11468 = vmatpush.bf16.msrb.mxu0 %v13333_v38  ;;  %11647 = vmatpush.bf16.msrb.mxu2 %v13338_v62 }
 0xd3e   : > { %v10953_v28 = vadd.f32 %v10952_v55, %v10919_v63  ;;  %v13337_v63 = vld [vmem:[%s18121_s12 + $0x70] sm:$0xff] }
 0xd3f   : > { %v10923_v33 = vpop.f32.mrf.mxu1 }
 0xd40   : > { %v10970_v17 = vmax.f32 %v10953_v28, 0.0  ;;  %11809 = vrot.lane.b32.xlu2 %v10953_v28, %s13535_s30  ;;  %v10924_v2 = vadd.f32 %v10923_v33, %v10889_v3 }
 0xd41   : > { %v11009_v8 = vld [vmem:[#allocation4 + $0x29] sm:$0xff]  ;;  %11648 = vmatpush.bf16.msrb.mxu2 %v13337_v63 }
 0xd42   : > { %v11239_v30 = vld [vmem:[#allocation4 + $0x2a] sm:$0xff]  ;;  %10980 = vst.msk [vmem:[#allocation4 + $0x33] sm:$0xff] %vm640_vm9, %v10970_v17  ;;  %v11016_v6 = vpack.c.bf16 %v11009_v8, %v11008_v54  ;;  %v11326_v17 = vld [vmem:[#allocation4 + $0x13] sm:$0xff] }
 0xd43   : > { %v10990_v31 = vld [vmem:[#allocation4 + $0x28] sm:$0xff]  ;;  %v11157_v21 = vpack.c.bf16 %v11239_v30, %v11238_v41  ;;  %v11416_v54 = vld [vmem:[#allocation4 + $0x14] sm:$0xff] }
 0xd44   : > { %v10997_v20 = vpack.c.bf16 %v10990_v31, %v10989_v4  ;;  %13120 = vmatmul.msk.bf16.gmra.mxu3 %vm640_vm9, %v11016_v6  ;;  %v11506_v4 = vld [vmem:[#allocation4 + $0x1c] sm:$0xff]  ;;  %v11325_v8 = vld [vmem:[#allocation4 + $0xb] sm:$0xff] }
 0xd45   : > { %v10955_v14 = vpop.f32.mrf.mxu2  ;;  %13146 = vmatmul.msk.bf16.gmra.mxu1 %vm640_vm9, %v11157_v21  ;;  %v11335_v31 = vpack.c.bf16 %v11326_v17, %v11325_v8  ;;  %v11515_v6 = vpack.c.bf16 %v11506_v4, %v11416_v54  ;;  %v11595_v21 = vld [vmem:[#allocation4 + $0x15] sm:$0xff]  ;;  %v11418_v33 = vld [vmem:[#allocation4 + $0x24] sm:$0xff] }
 0xd46   : > { %13133 = vmatmul.msk.bf16.gmra.mxu0 %vm640_vm9, %v10997_v20  ;;  %v10956_v45 = vadd.f32 %v10955_v14, %v10922_v58  ;;  %v11596_v20 = vld [vmem:[#allocation4 + $0x1d] sm:$0xff] }
 0xd47   : > { %v10926_v13 = vpop.f32.mrf.mxu1  ;;  %v11605_v3 = vpack.c.bf16 %v11596_v20, %v11595_v21  ;;  %v11328_v14 = vld [vmem:[#allocation4 + $0x23] sm:$0xff] }
 0xd48   : > { %v10971_v34 = vmax.f32 %v10956_v45, 0.0  ;;  %11811 = vrot.lane.b32.xlu1 %v10956_v45, %s13535_s30  ;;  %v10927_v7 = vadd.f32 %v10926_v13, %v10892_v35  ;;  %v11604_v8 = vld [vmem:[#allocation4 + $0x5d] sm:$0xff] }
 0xd49   : > { %v11240_v59 = vld [vmem:[#allocation4 + $0x32] sm:$0xff] }
 0xd4a   : > { %10981 = vst.msk [vmem:[#allocation4 + $0x3b] sm:$0xff] %vm640_vm9, %v10971_v34  ;;  %v11247_v18 = vpack.c.bf16 %v11240_v59, %v11239_v30  ;;  %v11010_v15 = vld [vmem:[#allocation4 + $0x31] sm:$0xff]  ;;  %v11327_v34 = vld [vmem:[#allocation4 + $0x1b] sm:$0xff] }
 0xd4b   : > { %v10991_v10 = vld [vmem:[#allocation4 + $0x30] sm:$0xff]  ;;  %v11336_v48 = vpack.c.bf16 %v11328_v14, %v11327_v34  ;;  %v11686_v14 = vld [vmem:[#allocation4 + $0x1e] sm:$0xff] }
 0xd4c   : > { %13159 = vmatmul.msk.bf16.gmra.mxu2 %vm640_vm9, %v11247_v18  ;;  %v11415_v30 = vld [vmem:[#allocation4 + $0xc] sm:$0xff] }
 0xd4d   : > { %v10957_v40 = vpop.f32.mrf.mxu2  ;;  %v11425_v58 = vpack.c.bf16 %v11416_v54, %v11415_v30  ;;  %v11508_v45 = vld [vmem:[#allocation4 + $0x2c] sm:$0xff] }
 0xd4e   : > { %v10958_v53 = vadd.f32 %v10957_v40, %v10924_v2  ;;  %v11516_v12 = vpack.c.bf16 %v11508_v45, %v11418_v33  ;;  %v11598_v18 = vld [vmem:[#allocation4 + $0x2d] sm:$0xff]  ;;  %v11597_v2 = vld [vmem:[#allocation4 + $0x25] sm:$0xff] }
 0xd4f   : > { %v10928_v27 = vpop.f32.mrf.mxu1  ;;  %v11606_v40 = vpack.c.bf16 %v11598_v18, %v11597_v2 }
 0xd50   : > { %v10972_v25 = vmax.f32 %v10958_v53, 0.0  ;;  %11813 = vrot.lane.b32.xlu0 %v10958_v53, %s13535_s30  ;;  %v10929_v49 = vadd.f32 %v10928_v27, %v10894_v61  ;;  %v11330_v53 = vld [vmem:[#allocation4 + $0x33] sm:$0xff] }
 0xd51   : > { %v11011_v22 = vld [vmem:[#allocation4 + $0x39] sm:$0xff] }
 0xd52   : > { %v11241_v44 = vld [vmem:[#allocation4 + $0x3a] sm:$0xff]  ;;  %10982 = vst.msk [vmem:[#allocation4 + $0x43] sm:$0xff] %vm640_vm9, %v10972_v25  ;;  %v11017_v0 = vpack.c.bf16 %v11011_v22, %v11010_v15  ;;  %v11329_v25 = vld [vmem:[#allocation4 + $0x2b] sm:$0xff] }
 0xd53   : > { %v10992_v43 = vld [vmem:[#allocation4 + $0x38] sm:$0xff]  ;;  %v11158_v57 = vpack.c.bf16 %v11241_v44, %v11240_v59  ;;  %v11426_v59 = vpack.c.bf16 %v11418_v33, %v11506_v4  ;;  %v11337_v15 = vpack.c.bf16 %v11330_v53, %v11329_v25 }
 0xd54   : > { %v10998_v23 = vpack.c.bf16 %v10992_v43, %v10991_v10  ;;  %13121 = vmatmul.msk.bf16.gmra.mxu3 %vm640_vm9, %v11017_v0  ;;  %v11420_v35 = vld [vmem:[#allocation4 + $0x34] sm:$0xff] }
 0xd55   : > { %v10960_v39 = vpop.f32.mrf.mxu2  ;;  %13147 = vmatmul.msk.bf16.gmra.mxu1 %vm640_vm9, %v11158_v57  ;;  %v11427_v10 = vpack.c.bf16 %v11420_v35, %v11508_v45  ;;  %v11599_v43 = vld [vmem:[#allocation4 + $0x35] sm:$0xff] }
 0xd56   : > { %13134 = vmatmul.msk.bf16.gmra.mxu0 %vm640_vm9, %v10998_v23  ;;  %v10961_v52 = vadd.f32 %v10960_v39, %v10927_v7  ;;  %v13340_v7 = vld [vmem:[%s18121_s12 + $0x88] sm:$0xff]  ;;  %v13339_v57 = vld [vmem:[%s18121_s12 + $0x80] sm:$0xff] }
 0xd57   : > { %11737 = vmatpush.bf16.msrb.mxu3 %v13340_v7 }
 0xd58   : > { %v10973_v37 = vmax.f32 %v10961_v52, 0.0  ;;  %11815 = vrot.lane.b32.xlu2 %v10961_v52, %s13535_s30  ;;  %11891 = vperm.xlu0 %13396, %v698_v46   ;;  %v11331_v52 = vld [vmem:[#allocation4 + $0x3b] sm:$0xff] }
 0xd59   : > { %v11242_v19 = vld [vmem:[#allocation4 + $0x42] sm:$0xff] }
 0xd5a   : > { %10983 = vst.msk [vmem:[#allocation4 + $0x4b] sm:$0xff] %vm640_vm9, %v10973_v37  ;;  %v11248_v26 = vpack.c.bf16 %v11242_v19, %v11241_v44  ;;  %v11012_v56 = vld [vmem:[#allocation4 + $0x41] sm:$0xff] }
 0xd5b   : > { %v10993_v16 = vld [vmem:[#allocation4 + $0x40] sm:$0xff]  ;;  %11738 = vmatpush.bf16.msrb.mxu3 %v13339_v57 }
 0xd5c   : > { %13160 = vmatmul.msk.bf16.gmra.mxu2 %vm640_vm9, %v11248_v26  ;;  %v11510_v13 = vld [vmem:[#allocation4 + $0x3c] sm:$0xff] }
 0xd5d   : > { %v10962_v1 = vpop.f32.mrf.mxu2  ;;  %v11517_v22 = vpack.c.bf16 %v11510_v13, %v11420_v35  ;;  %v11600_v44 = vld [vmem:[#allocation4 + $0x3d] sm:$0xff] }
 0xd5e   : > { %v10963_v32 = vadd.f32 %v10962_v1, %v10929_v49  ;;  %v11607_v0 = vpack.c.bf16 %v11600_v44, %v11599_v43  ;;  %v11332_v23 = vld [vmem:[#allocation4 + $0x43] sm:$0xff]  ;;  %v11688_v44 = vld [vmem:[#allocation4 + $0x2e] sm:$0xff] }
 0xd5f   : > { %v11338_v61 = vpack.c.bf16 %v11332_v23, %v11331_v52  ;;  %v11687_v23 = vld [vmem:[#allocation4 + $0x26] sm:$0xff] }
 0xd60   : > { %v10974_v5 = vmax.f32 %v10963_v32, 0.0  ;;  %11886 = vperm.xlu2 %13398, %v697_v11   ;;  %11817 = vrot.lane.b32.xlu1 %v10963_v32, %s13535_s30 }
 0xd61   : > { %v11013_v9 = vld [vmem:[#allocation4 + $0x49] sm:$0xff] }
 0xd62   : > { %v11243_v60 = vld [vmem:[#allocation4 + $0x4a] sm:$0xff]  ;;  %10984 = vst.msk [vmem:[#allocation4 + $0x53] sm:$0xff] %vm640_vm9, %v10974_v5  ;;  %v11018_v24 = vpack.c.bf16 %v11013_v9, %v11012_v56 }
 0xd63   : > { %v10994_v50 = vld [vmem:[#allocation4 + $0x48] sm:$0xff]  ;;  %v11159_v42 = vpack.c.bf16 %v11243_v60, %v11242_v19 }
 0xd64   : > { %v10999_v41 = vpack.c.bf16 %v10994_v50, %v10993_v16  ;;  %13122 = vmatmul.msk.bf16.gmra.mxu3 %vm640_vm9, %v11018_v24  ;;  %v11422_v39 = vld [vmem:[#allocation4 + $0x44] sm:$0xff]  ;;  %v11514_v24 = vld [vmem:[#allocation4 + $0x5c] sm:$0xff] }
 0xd65   : > { %13148 = vmatmul.msk.bf16.gmra.mxu1 %vm640_vm9, %v11159_v42  ;;  %v11428_v19 = vpack.c.bf16 %v11422_v39, %v11510_v13  ;;  %v11601_v1 = vld [vmem:[#allocation4 + $0x45] sm:$0xff] }
 0xd66   : > { %13135 = vmatmul.msk.bf16.gmra.mxu0 %vm640_vm9, %v10999_v41  ;;  %v11333_v41 = vld [vmem:[#allocation4 + $0x4b] sm:$0xff] }
 0xd68   : > { %11896 = vperm.xlu1 %13397, %v699_v36  }
 0xd69   : > { %v11244_v55 = vld [vmem:[#allocation4 + $0x52] sm:$0xff] }
 0xd6a   : > { %v11249_v28 = vpack.c.bf16 %v11244_v55, %v11243_v60  ;;  %v11512_v46 = vld [vmem:[#allocation4 + $0x4c] sm:$0xff]  ;;  %v11424_v9 = vld [vmem:[#allocation4 + $0x54] sm:$0xff] }
 0xd6b   : > { %v11518_v26 = vpack.c.bf16 %v11512_v46, %v11422_v39  ;;  %v11602_v29 = vld [vmem:[#allocation4 + $0x4d] sm:$0xff]  ;;  %v11429_v55 = vpack.c.bf16 %v11424_v9, %v11512_v46  ;;  %v11603_v4 = vld [vmem:[#allocation4 + $0x55] sm:$0xff]  ;;  %v11696_v39 = vpack.c.bf16 %v11688_v44, %v11687_v23  ;;  %v11852_v23 = vpop.permute.xlu1 %11851 }
 0xd6c   : > { %13161 = vmatmul.msk.bf16.gmra.mxu2 %vm640_vm9, %v11249_v28  ;;  %v11608_v32 = vpack.c.bf16 %v11602_v29, %v11601_v1  ;;  %v11334_v56 = vld [vmem:[#allocation4 + $0x53] sm:$0xff]  ;;  %v11519_v28 = vpack.c.bf16 %v11514_v24, %v11424_v9  ;;  %v11690_v1 = vld [vmem:[#allocation4 + $0x3e] sm:$0xff] }
 0xd6d   : > { %v11339_v62 = vpack.c.bf16 %v11334_v56, %v11333_v41 }
 0xd74   : > { %13170 = vmatmul.msk.bf16.vlgmr.msra.gmra.mxu3 %vm640_vm9, %v11335_v31 }
 0xd75   : > { %13196 = vmatmul.msk.bf16.vlgmr.msrb.gmra.mxu1 %vm640_vm9, %v11515_v6  ;;  %v11609_v6 = vpack.c.bf16 %v11604_v8, %v11603_v4  ;;  %v11691_v4 = vld [vmem:[#allocation4 + $0x46] sm:$0xff] }
 0xd76   : > { %13183 = vmatmul.msk.bf16.vlgmr.msrb.gmra.mxu0 %vm640_vm9, %v11425_v58 }
 0xd7c   : > { %13209 = vmatmul.msk.bf16.vlgmr.msrb.gmra.mxu2 %vm640_vm9, %v11605_v3 }
 0xd84   : > { %13171 = vmatmul.msk.bf16.gmra.mxu3 %vm640_vm9, %v11336_v48  ;;  %v11685_v48 = vld [vmem:[#allocation4 + $0x16] sm:$0xff] }
 0xd85   : > { %13197 = vmatmul.msk.bf16.gmra.mxu1 %vm640_vm9, %v11516_v12  ;;  %v11695_v12 = vpack.c.bf16 %v11686_v14, %v11685_v48 }
 0xd86   : > { %13184 = vmatmul.msk.bf16.gmra.mxu0 %vm640_vm9, %v11426_v59 }
 0xd8c   : > { %13210 = vmatmul.msk.bf16.gmra.mxu2 %vm640_vm9, %v11606_v40 }
 0xd94   : > { %13172 = vmatmul.msk.bf16.gmra.mxu3 %vm640_vm9, %v11337_v15 }
 0xd95   : > { %13198 = vmatmul.msk.bf16.gmra.mxu1 %vm640_vm9, %v11517_v22 }
 0xd96   : > { %13185 = vmatmul.msk.bf16.gmra.mxu0 %vm640_vm9, %v11427_v10 }
 0xd9c   : > { %13211 = vmatmul.msk.bf16.gmra.mxu2 %vm640_vm9, %v11607_v0 }
 0xda2   : > { %v11200_v27 = vpop.f32.mrf.mxu1 }
 0xda3   : > { %v11120_v37 = vpop.f32.mrf.mxu0 }
 0xda4   : > { %13173 = vmatmul.msk.bf16.gmra.mxu3 %vm640_vm9, %v11338_v61 }
 0xda5   : > { %13199 = vmatmul.msk.bf16.gmra.mxu1 %vm640_vm9, %v11518_v26 }
 0xda6   : > { %13186 = vmatmul.msk.bf16.gmra.mxu0 %vm640_vm9, %v11428_v19 }
 0xda7   : > { %v11059_v47 = vpop.f32.mrf.mxu3 }
 0xda8   : > { %v11121_v49 = vadd.f32 %v11120_v37, %v11059_v47 }
 0xdaa   : > { %v11225_v38 = vadd.f32 %v11200_v27, %v11121_v49  ;;  %v11202_v51 = vpop.f32.mrf.mxu1 }
 0xdab   : > { %v11122_v11 = vpop.f32.mrf.mxu0 }
 0xdac   : > { %13212 = vmatmul.msk.bf16.gmra.mxu2 %vm640_vm9, %v11608_v32 }
 0xdaf   : > { %v11061_v5 = vpop.f32.mrf.mxu3  ;;  %v11290_v16 = vpop.f32.mrf.mxu2 }
 0xdb0   : > { %v17968_v60 = vadd.f32 %v11290_v16, %v11225_v38  ;;  %v11123_v50 = vadd.f32 %v11122_v11, %v11061_v5 }
 0xdb2   : > { %v11226_v36 = vadd.f32 %v11202_v51, %v11123_v50  ;;  %v11205_v63 = vpop.f32.mrf.mxu1  ;;  %v11689_v51 = vld [vmem:[#allocation4 + $0x36] sm:$0xff] }
 0xdb3   : > { %v11125_v42 = vpop.f32.mrf.mxu0  ;;  %v11697_v5 = vpack.c.bf16 %v11690_v1, %v11689_v51 }
 0xdb4   : > { %13174 = vmatmul.msk.bf16.gmra.mxu3 %vm640_vm9, %v11339_v62 }
 0xdb5   : > { %13200 = vmatmul.msk.bf16.gmra.mxu1 %vm640_vm9, %v11519_v28 }
 0xdb6   : > { %13187 = vmatmul.msk.bf16.gmra.mxu0 %vm640_vm9, %v11429_v55  ;;  %v11692_v55 = vld [vmem:[#allocation4 + $0x4e] sm:$0xff] }
 0xdb7   : > { %v11064_v17 = vpop.f32.mrf.mxu3  ;;  %v11292_v54 = vpop.f32.mrf.mxu2 }
 0xdb8   : > { %v17973_v30 = vadd.f32 %v11292_v54, %v11226_v36  ;;  %v11126_v31 = vadd.f32 %v11125_v42, %v11064_v17 }
 0xdba   : > { %v11227_v20 = vadd.f32 %v11205_v63, %v11126_v31  ;;  %v11207_v21 = vpop.f32.mrf.mxu1  ;;  %v11698_v31 = vpack.c.bf16 %v11692_v55, %v11691_v4 }
 0xdbb   : > { %v11127_v58 = vpop.f32.mrf.mxu0 }
 0xdbc   : > { %13213 = vmatmul.msk.bf16.gmra.mxu2 %vm640_vm9, %v11609_v6 }
 0xdbf   : > { %v11066_v3 = vpop.f32.mrf.mxu3  ;;  %v11295_v33 = vpop.f32.mrf.mxu2 }
 0xdc0   : > { %v17976_v45 = vadd.f32 %v11295_v33, %v11227_v20  ;;  %v11128_v34 = vadd.f32 %v11127_v58, %v11066_v3  ;;  %v11693_v33 = vld [vmem:[#allocation4 + $0x56] sm:$0xff] }
 0xdc2   : > { %v11228_v18 = vadd.f32 %v11207_v21, %v11128_v34  ;;  %v11210_v2 = vpop.f32.mrf.mxu1  ;;  %v11694_v34 = vld [vmem:[#allocation4 + $0x5e] sm:$0xff] }
 0xdc3   : > { %v11130_v59 = vpop.f32.mrf.mxu0 }
 0xdc4   : > { %13222 = vmatmul.msk.bf16.vlgmr.msrb.gmra.mxu3 %vm640_vm9, %v11695_v12 }
 0xdc7   : > { %v11069_v40 = vpop.f32.mrf.mxu3  ;;  %v11297_v53 = vpop.f32.mrf.mxu2 }
 0xdc8   : > { %v17979_v35 = vadd.f32 %v11297_v53, %v11228_v18  ;;  %v11131_v13 = vadd.f32 %v11130_v59, %v11069_v40  ;;  %v11699_v59 = vpack.c.bf16 %v11694_v34, %v11693_v33 }
 0xdca   : > { %v11229_v15 = vadd.f32 %v11210_v2, %v11131_v13  ;;  %v11212_v10 = vpop.f32.mrf.mxu1 }
 0xdcb   : > { %v11132_v25 = vpop.f32.mrf.mxu0 }
 0xdcf   : > { %v11071_v22 = vpop.f32.mrf.mxu3  ;;  %v11300_v43 = vpop.f32.mrf.mxu2 }
 0xdd0   : > { %v11319_v7 = vadd.f32 %v11300_v43, %v11229_v15  ;;  %v11133_v0 = vadd.f32 %v11132_v25, %v11071_v22 }
 0xdd2   : > { %v11230_v46 = vadd.f32 %v11212_v10, %v11133_v0  ;;  %v11215_v52 = vpop.f32.mrf.mxu1 }
 0xdd3   : > { %v11135_v57 = vpop.f32.mrf.mxu0 }
 0xdd4   : > { %13223 = vmatmul.msk.bf16.gmra.mxu3 %vm640_vm9, %v11696_v39 }
 0xdd7   : > { %v11074_v37 = vpop.f32.mrf.mxu3  ;;  %v11302_v61 = vpop.f32.mrf.mxu2 }
 0xdd8   : > { %v11320_v27 = vadd.f32 %v11302_v61, %v11230_v46  ;;  %v11136_v19 = vadd.f32 %v11135_v57, %v11074_v37 }
 0xdda   : > { %v11231_v26 = vadd.f32 %v11215_v52, %v11136_v19  ;;  %v11217_v29 = vpop.f32.mrf.mxu1 }
 0xddb   : > { %v11137_v47 = vpop.f32.mrf.mxu0 }
 0xddf   : > { %v11076_v49 = vpop.f32.mrf.mxu3  ;;  %v11305_v11 = vpop.f32.mrf.mxu2 }
 0xde0   : > { %v11321_v32 = vadd.f32 %v11305_v11, %v11231_v26  ;;  %v11138_v38 = vadd.f32 %v11137_v47, %v11076_v49  ;;  %v18008_v11 = vld [vmem:[%s18122_s13] ss:$0 sm:$0xff] }
 0xde2   : > { %v11232_v56 = vadd.f32 %v11217_v29, %v11138_v38  ;;  %v11220_v9 = vpop.f32.mrf.mxu1 }
 0xde3   : > { %v11140_v16 = vpop.f32.mrf.mxu0 }
 0xde4   : > { %13224 = vmatmul.msk.bf16.gmra.mxu3 %vm640_vm9, %v11697_v5  ;;  %v11857_v5 = vpop.permute.xlu2 %11856 }
 0xde7   : > { %v11079_v50 = vpop.f32.mrf.mxu3  ;;  %v11307_v24 = vpop.f32.mrf.mxu2 }
 0xde8   : > { %v11322_v41 = vadd.f32 %v11307_v24, %v11232_v56  ;;  %v11141_v42 = vadd.f32 %v11140_v16, %v11079_v50 }
 0xdea   : > { %v11233_v62 = vadd.f32 %v11220_v9, %v11141_v42  ;;  %v11222_v8 = vpop.f32.mrf.mxu1 }
 0xdeb   : > { %v11142_v36 = vpop.f32.mrf.mxu0 }
 0xdec   : > { %v11872_v4 = vpop.permute.xlu2 %11871 }
 0xdef   : > { %v11081_v63 = vpop.f32.mrf.mxu3  ;;  %v11310_v28 = vpop.f32.mrf.mxu2 }
 0xdf0   : > { %v11323_v17 = vadd.f32 %v11310_v28, %v11233_v62  ;;  %v11143_v54 = vadd.f32 %v11142_v36, %v11081_v63 }
 0xdf2   : > { %v11234_v58 = vadd.f32 %v11222_v8, %v11143_v54  ;;  %v11560_v43 = vpop.f32.mrf.mxu1 }
 0xdf3   : > { %v11470_v22 = vpop.f32.mrf.mxu0 }
 0xdf4   : > { %13225 = vmatmul.msk.bf16.gmra.mxu3 %vm640_vm9, %v11698_v31 }
 0xdf7   : > { %v11380_v6 = vpop.f32.mrf.mxu3  ;;  %v11312_v20 = vpop.f32.mrf.mxu2 }
 0xdf8   : > { %v11405_v21 = vadd.f32 %v11380_v6, %v17968_v60  ;;  %v11324_v3 = vadd.f32 %v11312_v20, %v11234_v58 }
 0xdfa   : > { %v11495_v61 = vadd.f32 %v11470_v22, %v11405_v21 }
 0xdfb   : > { %v11472_v57 = vpop.f32.mrf.mxu0 }
 0xdfc   : > { %v11585_v26 = vadd.f32 %v11560_v43, %v11495_v61 }
 0xdff   : > { %v11382_v14 = vpop.f32.mrf.mxu3  ;;  %v11650_v0 = vpop.f32.mrf.mxu2 }
 0xe00   : > { %v11406_v48 = vadd.f32 %v11382_v14, %v17973_v30  ;;  %v11675_v1 = vadd.f32 %v11650_v0, %v11585_v26 }
 0xe02   : > { %v11496_v51 = vadd.f32 %v11472_v57, %v11406_v48 }
 0xe03   : > { %v11475_v19 = vpop.f32.mrf.mxu0 }
 0xe04   : > { %13226 = vmatmul.msk.bf16.gmra.mxu3 %vm640_vm9, %v11699_v59 }
 0xe07   : > { %v11385_v12 = vpop.f32.mrf.mxu3  ;;  %v11652_v46 = vpop.f32.mrf.mxu2 }
 0xe08   : > { %v11407_v18 = vadd.f32 %v11385_v12, %v17976_v45 }
 0xe0a   : > { %v11497_v28 = vadd.f32 %v11475_v19, %v11407_v18 }
 0xe0b   : > { %v11477_v9 = vpop.f32.mrf.mxu0 }
 0xe0f   : > { %v11387_v2 = vpop.f32.mrf.mxu3  ;;  %v11655_v49 = vpop.f32.mrf.mxu2 }
 0xe10   : > { %v11408_v40 = vadd.f32 %v11387_v2, %v17979_v35  ;;  %v11562_v35 = vpop.f32.mrf.mxu1 }
 0xe11   : > { %v11586_v50 = vadd.f32 %v11562_v35, %v11496_v51 }
 0xe12   : > { %v11498_v48 = vadd.f32 %v11477_v9, %v11408_v40 }
 0xe13   : > { %v11676_v42 = vadd.f32 %v11652_v46, %v11586_v50  ;;  %v11480_v6 = vpop.f32.mrf.mxu0 }
 0xe17   : > { %v11390_v53 = vpop.f32.mrf.mxu3  ;;  %v11657_v63 = vpop.f32.mrf.mxu2 }
 0xe18   : > { %v17989_v13 = vadd.f32 %v11390_v53, %v11319_v7  ;;  %v17999_v7 = vpop.permute.xlu0 %11866  ;;  %v11565_v47 = vpop.f32.mrf.mxu1 }
 0xe19   : > { %v11587_v58 = vadd.f32 %v11565_v47, %v11497_v28 }
 0xe1a   : > { %v11499_v40 = vadd.f32 %v11480_v6, %v17989_v13 }
 0xe1f   : > { %v11392_v25 = vpop.f32.mrf.mxu3  ;;  %v11660_v12 = vpop.f32.mrf.mxu2 }
 0xe20   : > { %v17991_v60 = vadd.f32 %v11392_v25, %v11320_v27  ;;  %v11862_v27 = vpop.permute.xlu1 %11861  ;;  %v18003_v29 = vpop.permute.xlu0 %11881 }
 0xe21   : > { %v11567_v62 = vpop.f32.mrf.mxu1  ;;  %v11804_v25 = vpop.permute.xlu2 %11803 }
 0xe27   : > { %v11395_v15 = vpop.f32.mrf.mxu3  ;;  %v11662_v47 = vpop.f32.mrf.mxu2 }
 0xe28   : > { %v17993_v10 = vadd.f32 %v11395_v15, %v11321_v32  ;;  %v18011_v16 = vpop.permute.xlu1 %11876  ;;  %v11800_v24 = vpop.permute.xlu0 %11799 }
 0xe29   : > { %v11570_v59 = vpop.f32.mrf.mxu1 }
 0xe2f   : > { %v11397_v30 = vpop.f32.mrf.mxu3 }
 0xe30   : > { %v17995_v44 = vadd.f32 %v11397_v30, %v11322_v41  ;;  %v11802_v8 = vpop.permute.xlu1 %11801  ;;  %v11588_v30 = vadd.f32 %v11567_v62, %v11498_v48  ;;  %v11806_v46 = vpop.permute.xlu0 %11805 }
 0xe31   : > { %v11572_v19 = vpop.f32.mrf.mxu1 }
 0xe32   : > { %v11678_v0 = vadd.f32 %v11657_v63, %v11588_v30  ;;  %v11665_v63 = vpop.f32.mrf.mxu2 }
 0xe37   : > { %v11400_v45 = vpop.f32.mrf.mxu3 }
 0xe38   : > { %v17997_v39 = vadd.f32 %v11400_v45, %v11323_v17  ;;  %v11482_v45 = vpop.f32.mrf.mxu0 }
 0xe3f   : > { %v11402_v52 = vpop.f32.mrf.mxu3 }
 0xe40   : > { %v18001_v37 = vadd.f32 %v11402_v52, %v11324_v3  ;;  %v11677_v3 = vadd.f32 %v11655_v49, %v11587_v58  ;;  %v11485_v9 = vpop.f32.mrf.mxu0  ;;  %v11810_v58 = vpop.permute.xlu2 %11809 }
 0xe47   : > { %v11740_v32 = vpop.f32.mrf.mxu3 }
 0xe48   : > { %v11765_v38 = vadd.f32 %v11740_v32, %v11675_v1  ;;  %v11589_v1 = vadd.f32 %v11570_v59, %v11499_v40  ;;  %v11667_v59 = vpop.f32.mrf.mxu2 }
 0xe4a   : > { %v11779_v56 = vadd.f32 %v18008_v11, %v11765_v38  ;;  %v11679_v38 = vadd.f32 %v11660_v12, %v11589_v1 }
 0xe4c   : > { %v11829_v41 = vadd.f32 %v11800_v24, %v11779_v56  ;;  %v11808_v24 = vpop.permute.xlu0 %11807 }
 0xe4e   : > { %v11839_v17 = vmax.f32 %v11829_v41, 0.0 }
 0xe4f   : > { %v11742_v36 = vpop.f32.mrf.mxu3 }
 0xe50   : > { %v11766_v55 = vadd.f32 %v11742_v36, %v11676_v42  ;;  %v11899_v20 = vmul.f32 %v11852_v23, %v11839_v17  ;;  %v11575_v36 = vpop.f32.mrf.mxu1 }
 0xe52   : > { %v11780_v54 = vadd.f32 %v18008_v11, %v11766_v55  ;;  %v11909_v2 = vsel %vm640_vm9, %v11899_v20, 0.0  ;;  %v11487_v20 = vpop.f32.mrf.mxu0 }
 0xe54   : > { %v11830_v31 = vadd.f32 %v11802_v8, %v11780_v54 }
 0xe56   : > { %v11840_v21 = vmax.f32 %v11830_v31, 0.0 }
 0xe57   : > { %v11745_v14 = vpop.f32.mrf.mxu3 }
 0xe58   : > { %v11900_v33 = vmul.f32 %v11857_v5, %v11840_v21  ;;  %v11767_v34 = vadd.f32 %v11745_v14, %v11677_v3 }
 0xe5a   : > { %v11910_v18 = vsel %vm640_vm9, %v11900_v33, 0.0  ;;  %v11781_v53 = vadd.f32 %v18008_v11, %v11767_v34  ;;  %v11577_v34 = vpop.f32.mrf.mxu1 }
 0xe5b   : > { %v11911_v15 = vadd.f32 %v11910_v18, %v11909_v2  ;;  %v11502_v2 = vadd.f32 %v11487_v20, %v17995_v44  ;;  %v11670_v44 = vpop.f32.mrf.mxu2 }
 0xe5c   : > { %v11831_v22 = vadd.f32 %v11804_v25, %v11781_v53  ;;  %v11812_v53 = vpop.permute.xlu1 %11811 }
 0xe5d   : > { %v11592_v30 = vadd.f32 %v11577_v34, %v11502_v2 }
 0xe5e   : > { %v11841_v43 = vmax.f32 %v11831_v22, 0.0 }
 0xe5f   : > { %v11747_v23 = vpop.f32.mrf.mxu3 }
 0xe60   : > { %v11901_v57 = vmul.f32 %v11862_v27, %v11841_v43  ;;  %v11768_v35 = vadd.f32 %v11747_v23, %v11678_v0  ;;  %v11500_v27 = vadd.f32 %v11482_v45, %v17991_v60  ;;  %v11490_v43 = vpop.f32.mrf.mxu0  ;;  %v11682_v23 = vadd.f32 %v11667_v59, %v11592_v30 }
 0xe62   : > { %v11912_v52 = vsel %vm640_vm9, %v11901_v57, 0.0  ;;  %v11782_v61 = vadd.f32 %v18008_v11, %v11768_v35  ;;  %v11590_v62 = vadd.f32 %v11572_v19, %v11500_v27  ;;  %v11580_v40 = vpop.f32.mrf.mxu1  ;;  %v11939_v27 = vld [vmem:[%s18123_s14 + $0x10] sm:$0xff] }
 0xe63   : > { %v11913_v26 = vadd.f32 %v11912_v52, %v11911_v15  ;;  %v11816_v15 = vpop.permute.xlu2 %11815 }
 0xe64   : > { %v11832_v49 = vadd.f32 %v11806_v46, %v11782_v61  ;;  %v11680_v28 = vadd.f32 %v11662_v47, %v11590_v62  ;;  %v11814_v61 = vpop.permute.xlu0 %11813 }
 0xe66   : > { %v11842_v32 = vmax.f32 %v11832_v49, 0.0 }
 0xe67   : > { %v11750_v51 = vpop.f32.mrf.mxu3 }
 0xe68   : > { %v11902_v5 = vmul.f32 %v17999_v7, %v11842_v32  ;;  %v11769_v56 = vadd.f32 %v11750_v51, %v11679_v38  ;;  %v11501_v7 = vadd.f32 %v11485_v9, %v17993_v10  ;;  %v11492_v51 = vpop.f32.mrf.mxu0 }
 0xe6a   : > { %v11914_v13 = vsel %vm640_vm9, %v11902_v5, 0.0  ;;  %v11783_v50 = vadd.f32 %v18008_v11, %v11769_v56  ;;  %v11591_v3 = vadd.f32 %v11575_v36, %v11501_v7  ;;  %v11504_v56 = vadd.f32 %v11492_v51, %v18001_v37  ;;  %v11938_v37 = vld [vmem:[%s18123_s14 + $0x8] sm:$0xff]  ;;  %v11818_v36 = vpop.permute.xlu1 %11817 }
 0xe6b   : > { %v11915_v41 = vadd.f32 %v11914_v13, %v11913_v26  ;;  %v11887_v49 = vpop.permute.xlu2 %11886 }
 0xe6c   : > { %v11833_v42 = vadd.f32 %v11808_v24, %v11783_v50  ;;  %v11681_v33 = vadd.f32 %v11665_v63, %v11591_v3  ;;  %v11582_v24 = vpop.f32.mrf.mxu1  ;;  %v11937_v63 = vld [vmem:[%s18123_s14] sm:$0xff] }
 0xe6d   : > { %v11594_v62 = vadd.f32 %v11582_v24, %v11504_v56 }
 0xe6e   : > { %v11843_v55 = vmax.f32 %v11833_v42, 0.0 }
 0xe6f   : > { %v11752_v17 = vpop.f32.mrf.mxu3 }
 0xe70   : > { %v11903_v54 = vmul.f32 %v11872_v4, %v11843_v55  ;;  %v11770_v8 = vadd.f32 %v11752_v17, %v11680_v28  ;;  %v11892_v17 = vpop.permute.xlu0 %11891 }
 0xe72   : > { %v11916_v60 = vsel %vm640_vm9, %v11903_v54, 0.0  ;;  %v11784_v31 = vadd.f32 %v18008_v11, %v11770_v8 }
 0xe73   : > { %v11917_v6 = vadd.f32 %v11916_v60, %v11915_v41  ;;  %v11672_v41 = vpop.f32.mrf.mxu2 }
 0xe74   : > { %v11834_v21 = vadd.f32 %v11810_v58, %v11784_v31  ;;  %v11684_v28 = vadd.f32 %v11672_v41, %v11594_v62 }
 0xe76   : > { %v11844_v14 = vmax.f32 %v11834_v21, 0.0  ;;  %v11897_v21 = vpop.permute.xlu1 %11896 }
 0xe77   : > { %v11755_v48 = vpop.f32.mrf.mxu3 }
 0xe78   : > { %v11904_v12 = vmul.f32 %v18011_v16, %v11844_v14  ;;  %v11771_v4 = vadd.f32 %v11755_v48, %v11681_v33  ;;  %v11503_v16 = vadd.f32 %v11490_v43, %v17997_v39  ;;  %v11940_v39 = vld [vmem:[%s18123_s14 + $0x18] sm:$0xff] }
 0xe79   : > { %11957 = vmatpush.msra.mxu0 %v11940_v39 }
 0xe7a   : > { %v11918_v10 = vsel %vm640_vm9, %v11904_v12, 0.0  ;;  %v11785_v18 = vadd.f32 %v18008_v11, %v11771_v4  ;;  %v11593_v47 = vadd.f32 %v11580_v40, %v11503_v16 }
 0xe7b   : > { %v11919_v25 = vadd.f32 %v11918_v10, %v11917_v6  ;;  %11958 = vmatpush.msra.mxu0 %v11939_v27 }
 0xe7c   : > { %v11835_v22 = vadd.f32 %v11812_v53, %v11785_v18  ;;  %v11683_v32 = vadd.f32 %v11670_v44, %v11593_v47 }
 0xe7d   : > { %11959 = vmatpush.msra.mxu0 %v11938_v37 }
 0xe7e   : > { %v11845_v0 = vmax.f32 %v11835_v22, 0.0 }
 0xe7f   : > { %v11757_v45 = vpop.f32.mrf.mxu3  ;;  %11960 = vmatpush.msra.mxu0 %v11937_v63 }
 0xe80   : > { %v11905_v57 = vmul.f32 %v18003_v29, %v11845_v0  ;;  %v11772_v35 = vadd.f32 %v11757_v45, %v11682_v23 }
 0xe82   : > { %v11920_v46 = vsel %vm640_vm9, %v11905_v57, 0.0  ;;  %v11786_v52 = vadd.f32 %v18008_v11, %v11772_v35 }
 0xe83   : > { %v11921_v19 = vadd.f32 %v11920_v46, %v11919_v25 }
 0xe84   : > { %v11836_v26 = vadd.f32 %v11814_v61, %v11786_v52 }
 0xe86   : > { %v11846_v1 = vmax.f32 %v11836_v26, 0.0 }
 0xe87   : > { %v11760_v38 = vpop.f32.mrf.mxu3 }
 0xe88   : > { %v11906_v5 = vmul.f32 %v11887_v49, %v11846_v1  ;;  %v11773_v29 = vadd.f32 %v11760_v38, %v11683_v32 }
 0xe8a   : > { %v11922_v9 = vsel %vm640_vm9, %v11906_v5, 0.0  ;;  %v11787_v13 = vadd.f32 %v18008_v11, %v11773_v29 }
 0xe8b   : > { %v11923_v50 = vadd.f32 %v11922_v9, %v11921_v19 }
 0xe8c   : > { %v11837_v42 = vadd.f32 %v11816_v15, %v11787_v13 }
 0xe8e   : > { %v11847_v55 = vmax.f32 %v11837_v42, 0.0 }
 0xe8f   : > { %v11762_v54 = vpop.f32.mrf.mxu3 }
 0xe90   : > { %v11907_v8 = vmul.f32 %v11892_v17, %v11847_v55  ;;  %v11774_v7 = vadd.f32 %v11762_v54, %v11684_v28 }
 0xe92   : > { %v11924_v60 = vsel %vm640_vm9, %v11907_v8, 0.0  ;;  %v11788_v31 = vadd.f32 %v18008_v11, %v11774_v7 }
 0xe93   : > { %v11925_v58 = vadd.f32 %v11924_v60, %v11923_v50 }
 0xe94   : > { %v11838_v6 = vadd.f32 %v11818_v36, %v11788_v31 }
 0xe96   : > { %v11848_v20 = vmax.f32 %v11838_v6, 0.0 }
 0xe98   : > { %v11908_v3 = vmul.f32 %v11897_v21, %v11848_v20 }
 0xe9a   : > { %v11926_v14 = vsel %vm640_vm9, %v11908_v3, 0.0 }
 0xe9b   : > { %v11927_v33 = vadd.f32 %v11926_v14, %v11925_v58 }
 0xe9d   : > { %v11928_v34 = vrot.slane %v11927_v33, 4 }
 0xe9f   : > { %v11929_v48 = vadd.f32 %v11928_v34, %v11927_v33 }
 0xea1   : > { %v11930_v59 = vrot.slane %v11929_v48, 2 }
 0xea3   : > { %v11931_v12 = vadd.f32 %v11930_v59, %v11929_v48 }
 0xea5   : > { %v11932_v4 = vrot.slane %v11931_v12, 1 }
 0xea7   : > { %v11933_v2 = vadd.f32 %v11932_v4, %v11931_v12 }
 0xea9   : > { %v11934_v11 = vmul.f32 0.015625, %v11933_v2 }
 0xeab   : > { %13227 = vmatmul.msk.f32.vlgmr.msra.gmra.mxu0 %vm640_vm9, %v11934_v11  ;;  %11936 = vst.msk [vmem:[%s550_s19] sm:$0x1] %vm11935_vm10, %v11934_v11 }
 0xeac   : > { %13464 = shalt.err (!%p13461_p3)
}
 0xead   : > { %13350 = dma.vmem_to_hbm [thread:$0]  (%p13664_p5), %s11996_s20, 16, %s11998_s21, %s11972_s23   ;;  %v11941_v10 = vld [vmem:[%s18124_s15] sm:$0x1]  ;;  %vm11965_vm11 = vcmask 73728  }
 0xeae   : > { %s11980_s18 = scalar_lea.hbm %s18125_s16, %s13647_s28  ;;  %s544_s6 = scalar_lea.vmem [#allocation5], %s18054_s0 }
 0xeaf   : > { %s11982_s5 = sshll.u32 %s544_s6, 4  ;;  %s11984_s7 = sshll.u32 %s11980_s18, 4  ;;  %s11983_s5 = int_to_ptr.vmem [resolvable:$true] %s11982_s5  ;;  %s11985_s7 = int_to_ptr.hbm [resolvable:$true] %s11984_s7 }
 0xeb0   : > { %s11968_s2 = scalar_lea.sflag [#allocation6], %s18054_s0  ;;  %s13479_s20 = sshra.s32 %s11985_s7, 4  ;;  %s13480_s20 = int_to_ptr.hbm [resolvable:$true] %s13479_s20 }
 0xeb1   : > { %s13481_s21 = scalar_lea.hbm %s13480_s20, 1  ;;  %s13485_s29 = scalar_lea.hbm %s18125_s16, 2 }
 0xeb2   : > { %p13482_p4 = scmp.ne.s32.totalorder %s13480_s20, %s13481_s21  ;;  %p13486_p9 = scmp.lt.s32.totalorder %s13480_s20, %s18125_s16 }
 0xeb3   : > { %p13487_p10 = scmp.lt.s32.totalorder %s13485_s29, %s13481_s21 }
 0xeb4   : > { %p13483_p7 = pnand %p13482_p4, %p13664_p5 }
 0xeb5   : > { %p13488_p11 = por %p13487_p10, %p13486_p9 }
 0xeb6   : > { %p13484_p8 = pneg %p13483_p7 }
 0xeb8   : > { %p13489_p12 = pnand %p13488_p11, %p13484_p8 }
 0xf28   : > { %v11962_v18 = vpop.f32.mrf.mxu0 }
 0xf29   : > { %v11963_v53 = vadd.f32 %v11962_v18, %v11941_v10 }
 0xf2b   : > { %11966 = vst.msk [vmem:[%s544_s6] sm:$0x1] %vm11965_vm11, %v11963_v53 }
 0xf2c   : > { %13492 = shalt.err (!%p13489_p12)
}
 0xf2d   : > { %13349 = dma.vmem_to_hbm [thread:$0]  (%p13664_p5), %s11983_s5, 16, %s11985_s7, %s11968_s2  }
 0xf2e PF: > { %p13360_p13 = scmp.ge.s32.totalorder %s13531_s27, 2  ;;  %s12009_s30 = sand.u32 1, %s13519_s24  }
 0xf2f   : > { %s12010_s18 = scalar_lea.sflag [#allocation6], %s12009_s30 }
 0xf30   : > { %p13354_p0 = pnand %p13360_p13, %p13668_p6 }
 0xf32   : > { %p13355_p1 = pneg %p13354_p0 }
 0xf34   : > { %13510 = dma.done.wait (%p13355_p1), %s12010_s18, 16  }
 0xf35   : > { %13512 = vsyncadd (%p13355_p1), %s12010_s18, 4294967280  ;;  %s12019_s3 = scalar_lea.sflag [#allocation8], %s12009_s30 }
 0xf36   : > { %13514 = dma.done.wait (%p13355_p1), %s12019_s3, 16  }
 0xf37   : > { %13516 = vsyncadd (%p13355_p1), %s12019_s3, 4294967280  ;;  %s18456_s27 = sld [smem:[#allocation12_spill]]  ;;  %s18459_s24 = smov %s13523_s25 }
 0xf38   : > { %s18457_s4 = sld [smem:[#allocation11_spill]] }
 0xf39   : > { %s18458_s26 = sld [smem:[#allocation13_spill]] }
 0xf3d   : > { %p31_p5 = scmp.ge.s32.totalorder %s18456_s27, 4  }
 0xf3e   : > { %s18460_s25 = smov %s18457_s4 }
 0xf3f   :  { %33 = sbr.rel (!%p31_p5) target bundleno = 14 (0xe), region = 136 }
 0xf44   :  { %12024 = vsyncpa [#allocation6], 1 }
 0xf45   :  { %12026 = vsyncpa [#allocation6 + $0x1], 1 }
 0xf46   :  { %12027 = vsyncpa [#allocation8], 1 }
 0xf47   :  { %12029 = vsyncpa [#allocation8 + $0x1], 1 }

</bundles_post_ra>
